<compile_context>
chip_gen: v7x
topology: tpu7x:2x2x1
jax: 0.10.0
libtpu: 0.0.40
codegen_flags: <defaults>
</compile_context>

<pallas_src>
import math

import jax
import jax.numpy as jnp
from jax.experimental import pallas as pl
from jax.experimental.pallas import tpu as pltpu

# -------------------- small ViT config --------------------
B = 2
IN_CH = 3
IMG = 64
PATCH = 32
DIM = 32
HEADS = 4
HEAD_DIM = DIM // HEADS
MLP_DIM = 64
LAYERS = 2
NUM_CLASSES = 2
NUM_PATCHES = (IMG // PATCH) * (IMG // PATCH)
SEQ = NUM_PATCHES + 1            # +1 cls token
CPP = IN_CH * PATCH * PATCH      # per-patch feature size
LN_EPS = 1e-6                    # pytorch_pretrained_vit uses eps=1e-6
_SQRT_HALF = 0.7071067811865476
_ATTN_SCALE = 1.0 / math.sqrt(HEAD_DIM)


# -------------------- in-kernel helpers --------------------

def _ln(x, g, b):
    # f32 LayerNorm. mean(x) and mean(x*x) are independent lane reductions, so
    # the two XLU reduces can overlap (no reduce -> sub -> reduce chain).
    mu = jnp.mean(x, axis=-1, keepdims=True)
    ms = jnp.mean(x * x, axis=-1, keepdims=True)
    var = ms - mu * mu
    return (x - mu) * jax.lax.rsqrt(var + LN_EPS) * g + b


def _erf(x):
    # Abramowitz & Stegun 7.1.26 polynomial (|err| < 1.5e-7) using only
    # exp/abs/where/mul/add -- guaranteed Mosaic lowering, near-exact GELU.
    a1, a2, a3, a4, a5 = 0.254829592, -0.284496736, 1.421413741, -1.453152027, 1.061405429
    p = 0.3275911
    ax = jnp.abs(x)
    t = 1.0 / (1.0 + p * ax)
    poly = ((((a5 * t + a4) * t + a3) * t + a2) * t + a1) * t
    y = 1.0 - poly * jnp.exp(-ax * ax)
    return jnp.where(x >= 0.0, y, -y)


def _gelu(x):
    # exact (erf-based) GELU, matching torch.nn.functional.gelu
    return 0.5 * x * (1.0 + _erf(x * _SQRT_HALF))


# -------------------- fused kernel (whole ViT forward) --------------------

def _make_kernel(bb):
    """bb = samples processed per grid step (1 on v7x per-core, B otherwise)."""

    def kernel(
        patches_ref,                    # (bb, S, CPP) bf16 (row 0 zeros = cls slot)
        patch_w_ref,                    # (CPP, D)     bf16
        cls_pos_ref,                    # (S, D)       f32  (cls+pos / pos+conv-bias)
        ln1_g_ref, ln1_b_ref,           # (L, 1, D)    f32
        wq_ref, bq_ref,                 # (L, H, D, d) bf16 / (L, H, 1, d) f32
        wk_ref, bk_ref,
        wv_ref, bv_ref,
        proj_w_ref, proj_b_ref,         # (L, H, d, D) bf16 / (L, 1, D) f32
        ln2_g_ref, ln2_b_ref,           # (L, 1, D)    f32
        fc1_w_ref, fc1_b_ref,           # (L, D, M)    bf16 / (L, 1, M) f32
        fc2_w_ref, fc2_b_ref,           # (L, M, D)    bf16 / (L, 1, D) f32
        norm_g_ref, norm_b_ref,         # (1, D)       f32
        head_w_ref, head_b_ref,         # (D, NC) bf16 / (1, NC) f32
        logits_ref,                     # (bb, 1, NC)  f32 out
    ):
        patch_w = patch_w_ref[...]
        cls_pos = cls_pos_ref[...]

        # Patch embedding. Conv bias + cls token + positional embedding are all
        # pre-folded into cls_pos; row 0 of patches is zero -> cls slot.
        hs = [jnp.dot(patches_ref[b], patch_w, preferred_element_type=jnp.float32)
              + cls_pos
              for b in range(bb)]                                     # bb x (S, D) f32

        for l in range(LAYERS):                                       # static unroll
            ln1_g, ln1_b = ln1_g_ref[l], ln1_b_ref[l]
            wq, bq = wq_ref[l], bq_ref[l]
            wk, bk = wk_ref[l], bk_ref[l]
            wv, bv = wv_ref[l], bv_ref[l]
            wo, bo = proj_w_ref[l], proj_b_ref[l]
            ln2_g, ln2_b = ln2_g_ref[l], ln2_b_ref[l]
            w1, b1 = fc1_w_ref[l], fc1_b_ref[l]
            w2, b2 = fc2_w_ref[l], fc2_b_ref[l]

            # independent per-sample chains -> VLIW scheduler interleaves them
            for b in range(bb):
                h = hs[b]

                # ---- multi-head self-attention (pre-norm), batched over heads ----
                hn = _ln(h, ln1_g, ln1_b)                              # (S, D)
                hg = jnp.broadcast_to(hn.astype(jnp.bfloat16)[None],
                                      (HEADS, SEQ, DIM))               # (H, S, D)
                q = jnp.einsum('hsd,hde->hse', hg, wq,
                               preferred_element_type=jnp.float32) + bq   # (H, S, d)
                k = jnp.einsum('hsd,hde->hse', hg, wk,
                               preferred_element_type=jnp.float32) + bk
                v = jnp.einsum('hsd,hde->hse', hg, wv,
                               preferred_element_type=jnp.float32) + bv
                s = jnp.einsum('hqd,hkd->hqk',
                               q.astype(jnp.bfloat16), k.astype(jnp.bfloat16),
                               preferred_element_type=jnp.float32) * _ATTN_SCALE
                s = s - jnp.max(s, axis=-1, keepdims=True)
                p = jnp.exp(s)
                p = p * pl.reciprocal(jnp.sum(p, axis=-1, keepdims=True), approx=True)
                ctx = jnp.einsum('hqk,hkd->hqd',
                                 p.astype(jnp.bfloat16), v.astype(jnp.bfloat16),
                                 preferred_element_type=jnp.float32)   # (H, S, d)
                # per-head output projection; summing over the head axis is
                # equivalent to concat(heads) @ proj_w
                outh = jnp.einsum('hsd,hde->hse', ctx.astype(jnp.bfloat16), wo,
                                  preferred_element_type=jnp.float32)  # (H, S, D)
                h = h + jnp.sum(outh, axis=0) + bo                     # residual

                # ---- MLP (pre-norm, exact erf GELU) ----
                hn = _ln(h, ln2_g, ln2_b)
                m = jnp.dot(hn.astype(jnp.bfloat16), w1,
                            preferred_element_type=jnp.float32) + b1
                m = _gelu(m)
                h = h + jnp.dot(m.astype(jnp.bfloat16), w2,
                                preferred_element_type=jnp.float32) + b2
                hs[b] = h

        # final LayerNorm on the cls token + classification head
        norm_g, norm_b = norm_g_ref[...], norm_b_ref[...]
        head_w, head_b = head_w_ref[...], head_b_ref[...]
        for b in range(bb):
            cls = _ln(hs[b][0:1, :], norm_g, norm_b)                   # (1, D)
            logits = jnp.dot(cls.astype(jnp.bfloat16), head_w,
                             preferred_element_type=jnp.float32) + head_b
            logits_ref[b] = logits.astype(logits_ref.dtype)

    return kernel


# -------------------- parameters (deterministic synthetic init) --------------------

def init_params(key):
    keys = iter(jax.random.split(key, 32))

    def rnd(shape, dtype=jnp.float32, scale=0.02):
        v = scale * jax.random.normal(next(keys), shape, dtype=jnp.float32)
        return v.astype(dtype)

    # conv bias + cls token + positional embedding folded into one (S, D) table
    patch_b = rnd((DIM,))
    cls_token = rnd((1, DIM))
    pos_embed = rnd((SEQ, DIM))
    cls_pos = jnp.concatenate(
        [cls_token + pos_embed[:1], pos_embed[1:] + patch_b[None, :]], axis=0)

    # Attention weights are stored pre-split per head: wq/wk/wv are the
    # (D, D) q/k/v Linear weights reshaped to (H, D, head_dim); proj_w is the
    # (D, D) output projection reshaped to (H, head_dim, D) (rows grouped by head).
    return {
        # conv weight (D, C, p, p) flattened to (C*p*p, D); stored bf16 for MXU
        "patch_w": rnd((CPP, DIM), jnp.bfloat16),
        "cls_pos": cls_pos,
        "ln1_g": jnp.ones((LAYERS, 1, DIM), jnp.float32),
        "ln1_b": jnp.zeros((LAYERS, 1, DIM), jnp.float32),
        "wq": rnd((LAYERS, HEADS, DIM, HEAD_DIM), jnp.bfloat16),
        "bq": rnd((LAYERS, HEADS, 1, HEAD_DIM)),
        "wk": rnd((LAYERS, HEADS, DIM, HEAD_DIM), jnp.bfloat16),
        "bk": rnd((LAYERS, HEADS, 1, HEAD_DIM)),
        "wv": rnd((LAYERS, HEADS, DIM, HEAD_DIM), jnp.bfloat16),
        "bv": rnd((LAYERS, HEADS, 1, HEAD_DIM)),
        "proj_w": rnd((LAYERS, HEADS, HEAD_DIM, DIM), jnp.bfloat16),
        "proj_b": rnd((LAYERS, 1, DIM)),
        "ln2_g": jnp.ones((LAYERS, 1, DIM), jnp.float32),
        "ln2_b": jnp.zeros((LAYERS, 1, DIM), jnp.float32),
        "fc1_w": rnd((LAYERS, DIM, MLP_DIM), jnp.bfloat16),
        "fc1_b": rnd((LAYERS, 1, MLP_DIM)),
        "fc2_w": rnd((LAYERS, MLP_DIM, DIM), jnp.bfloat16),
        "fc2_b": rnd((LAYERS, 1, DIM)),
        "norm_g": jnp.ones((1, DIM), jnp.float32),
        "norm_b": jnp.zeros((1, DIM), jnp.float32),
        "head_w": rnd((DIM, NUM_CLASSES), jnp.bfloat16),
        "head_b": rnd((1, NUM_CLASSES)),
    }


# -------------------- forward (one pallas_call for the whole ViT) --------------------

def _prep_patches(x):
    # NCHW -> (B, num_patches, C*p*p) in bf16; token order and per-patch feature
    # order (C, kh, kw) match Conv2d(k=stride=p) followed by flatten(2).transpose(1,2).
    Bn, C, H, W = x.shape
    gh, gw = H // PATCH, W // PATCH
    p = x.reshape(Bn, C, gh, PATCH, gw, PATCH)
    p = jnp.transpose(p, (0, 2, 4, 1, 3, 5)).reshape(Bn, gh * gw, CPP)
    p = p.astype(jnp.bfloat16)
    # One zero row in front = cls slot (contributes nothing to the shared patch
    # matmul).  Kept wrapper-side: an in-kernel unaligned sublane concat is
    # riskier to lower than 6 KiB of bf16 zeros, and XLA fuses pad+cast+transpose.
    return jnp.pad(p, ((0, 0), (1, 0), (0, 0)))


def _const_spec(shape):
    nd = len(shape)
    return pl.BlockSpec(shape, lambda i, _nd=nd: (0,) * _nd)


def _samples_per_step(batch):
    # v7x has 2 TensorCores per chip -> split the batch across them via the grid.
    # On single-TC v5e/v6e the grid is a sequential loop, so fold the whole batch
    # into one kernel invocation (no per-step overhead, better overlap).
    try:
        kind = jax.devices()[0].device_kind.lower()
    except Exception:
        kind = ""
    if "v7" in kind and batch % 2 == 0:
        return batch // 2
    return batch


def vit_forward(params, x):
    Bn = x.shape[0]
    bb = _samples_per_step(Bn)
    patches = _prep_patches(x)                                        # (B, S, CPP) bf16

    weight_args = (
        params["patch_w"], params["cls_pos"],
        params["ln1_g"], params["ln1_b"],
        params["wq"], params["bq"], params["wk"], params["bk"],
        params["wv"], params["bv"],
        params["proj_w"], params["proj_b"],
        params["ln2_g"], params["ln2_b"],
        params["fc1_w"], params["fc1_b"], params["fc2_w"], params["fc2_b"],
        params["norm_g"], params["norm_b"], params["head_w"], params["head_b"],
    )

    in_specs = [pl.BlockSpec((bb, SEQ, CPP), lambda i: (i, 0, 0))]     # per-sample-group
    in_specs += [_const_spec(w.shape) for w in weight_args]           # resident weights

    logits = pl.pallas_call(
        _make_kernel(bb),
        out_shape=jax.ShapeDtypeStruct((Bn, 1, NUM_CLASSES), jnp.float32),
        grid=(Bn // bb,),
        in_specs=in_specs,
        out_specs=pl.BlockSpec((bb, 1, NUM_CLASSES), lambda i: (i, 0, 0)),
        compiler_params=pltpu.CompilerParams(
            dimension_semantics=("parallel",)),
    )(patches, *weight_args)

    # MorphDetection.forward returns (model(x), None)
    return logits.reshape(Bn, NUM_CLASSES), None
    # TODO(synk): pretrained ImageNet1k weights are not loadable here (no .pt I/O);
    # weights are deterministic synthetic. Dropout is a no-op in eval mode.
    # TODO(synk): at the real ViT-L/32@512 config per-layer weights (~12 MiB bf16
    # x 24 layers) must stream through VMEM via a layer grid axis / Buffered(2)
    # BlockSpecs instead of full-array resident specs (v7x VMEM is 64 MiB).


if __name__ == "__main__":
    key = jax.random.PRNGKey(0)
    pkey, xkey = jax.random.split(key)
    params = init_params(pkey)
    x = jax.random.normal(xkey, (B, IN_CH, IMG, IMG), dtype=jnp.float32)

    logits, aux = jax.jit(vit_forward)(params, x)
    logits = jax.block_until_ready(logits)

    assert logits.shape == (B, NUM_CLASSES), logits.shape
    assert logits.dtype == jnp.float32
    assert aux is None
    assert bool(jnp.all(jnp.isfinite(logits)))
    print("KERNEL_OK")
</pallas_src>

<mosaic_0001>
module attributes {stable_mosaic.version = 11 : i64} {
  func.func @kernel(%arg0: i32, %arg1: memref<2x5x3072xbf16, #tpu.memory_space<vmem>>, %arg2: memref<3072x32xbf16, #tpu.memory_space<vmem>>, %arg3: memref<5x32xf32, #tpu.memory_space<vmem>>, %arg4: memref<2x1x32xf32, #tpu.memory_space<vmem>>, %arg5: memref<2x1x32xf32, #tpu.memory_space<vmem>>, %arg6: memref<2x4x32x8xbf16, #tpu.memory_space<vmem>>, %arg7: memref<2x4x1x8xf32, #tpu.memory_space<vmem>>, %arg8: memref<2x4x32x8xbf16, #tpu.memory_space<vmem>>, %arg9: memref<2x4x1x8xf32, #tpu.memory_space<vmem>>, %arg10: memref<2x4x32x8xbf16, #tpu.memory_space<vmem>>, %arg11: memref<2x4x1x8xf32, #tpu.memory_space<vmem>>, %arg12: memref<2x4x8x32xbf16, #tpu.memory_space<vmem>>, %arg13: memref<2x1x32xf32, #tpu.memory_space<vmem>>, %arg14: memref<2x1x32xf32, #tpu.memory_space<vmem>>, %arg15: memref<2x1x32xf32, #tpu.memory_space<vmem>>, %arg16: memref<2x32x64xbf16, #tpu.memory_space<vmem>>, %arg17: memref<2x1x64xf32, #tpu.memory_space<vmem>>, %arg18: memref<2x64x32xbf16, #tpu.memory_space<vmem>>, %arg19: memref<2x1x32xf32, #tpu.memory_space<vmem>>, %arg20: memref<1x32xf32, #tpu.memory_space<vmem>>, %arg21: memref<1x32xf32, #tpu.memory_space<vmem>>, %arg22: memref<32x2xbf16, #tpu.memory_space<vmem>>, %arg23: memref<1x2xf32, #tpu.memory_space<vmem>>, %arg24: memref<2x1x2xf32, #tpu.memory_space<vmem>>) attributes {dimension_semantics = [#tpu.dimension_semantics<parallel>], iteration_bounds = array<i64: 1>, scalar_prefetch = 0 : i64, scratch_operands = 0 : i64, tpu.core_type = #tpu.core_type<tc>, window_params = [{transform_indices = @transform_0, window_bounds = array<i64: 2, 5, 3072>}, {pipeline_mode = #tpu.pipeline_mode<synchronous>, transform_indices = @transform_1, window_bounds = array<i64: 3072, 32>}, {pipeline_mode = #tpu.pipeline_mode<synchronous>, transform_indices = @transform_2, window_bounds = array<i64: 5, 32>}, {pipeline_mode = #tpu.pipeline_mode<synchronous>, transform_indices = @transform_3, window_bounds = array<i64: 2, 1, 32>}, {pipeline_mode = #tpu.pipeline_mode<synchronous>, transform_indices = @transform_4, window_bounds = array<i64: 2, 1, 32>}, {pipeline_mode = #tpu.pipeline_mode<synchronous>, transform_indices = @transform_5, window_bounds = array<i64: 2, 4, 32, 8>}, {pipeline_mode = #tpu.pipeline_mode<synchronous>, transform_indices = @transform_6, window_bounds = array<i64: 2, 4, 1, 8>}, {pipeline_mode = #tpu.pipeline_mode<synchronous>, transform_indices = @transform_7, window_bounds = array<i64: 2, 4, 32, 8>}, {pipeline_mode = #tpu.pipeline_mode<synchronous>, transform_indices = @transform_8, window_bounds = array<i64: 2, 4, 1, 8>}, {pipeline_mode = #tpu.pipeline_mode<synchronous>, transform_indices = @transform_9, window_bounds = array<i64: 2, 4, 32, 8>}, {pipeline_mode = #tpu.pipeline_mode<synchronous>, transform_indices = @transform_10, window_bounds = array<i64: 2, 4, 1, 8>}, {pipeline_mode = #tpu.pipeline_mode<synchronous>, transform_indices = @transform_11, window_bounds = array<i64: 2, 4, 8, 32>}, {pipeline_mode = #tpu.pipeline_mode<synchronous>, transform_indices = @transform_12, window_bounds = array<i64: 2, 1, 32>}, {pipeline_mode = #tpu.pipeline_mode<synchronous>, transform_indices = @transform_13, window_bounds = array<i64: 2, 1, 32>}, {pipeline_mode = #tpu.pipeline_mode<synchronous>, transform_indices = @transform_14, window_bounds = array<i64: 2, 1, 32>}, {pipeline_mode = #tpu.pipeline_mode<synchronous>, transform_indices = @transform_15, window_bounds = array<i64: 2, 32, 64>}, {pipeline_mode = #tpu.pipeline_mode<synchronous>, transform_indices = @transform_16, window_bounds = array<i64: 2, 1, 64>}, {pipeline_mode = #tpu.pipeline_mode<synchronous>, transform_indices = @transform_17, window_bounds = array<i64: 2, 64, 32>}, {pipeline_mode = #tpu.pipeline_mode<synchronous>, transform_indices = @transform_18, window_bounds = array<i64: 2, 1, 32>}, {pipeline_mode = #tpu.pipeline_mode<synchronous>, transform_indices = @transform_19, window_bounds = array<i64: 1, 32>}, {pipeline_mode = #tpu.pipeline_mode<synchronous>, transform_indices = @transform_20, window_bounds = array<i64: 1, 32>}, {pipeline_mode = #tpu.pipeline_mode<synchronous>, transform_indices = @transform_21, window_bounds = array<i64: 32, 2>}, {pipeline_mode = #tpu.pipeline_mode<synchronous>, transform_indices = @transform_22, window_bounds = array<i64: 1, 2>}, {transform_indices = @transform_23, window_bounds = array<i64: 2, 1, 2>}]} {
    %c0 = arith.constant 0 : index
    %c0_0 = arith.constant 0 : index
    %0 = vector.load %arg2[%c0, %c0_0] : memref<3072x32xbf16, #tpu.memory_space<vmem>>, vector<3072x32xbf16>
    %c0_1 = arith.constant 0 : index
    %c0_2 = arith.constant 0 : index
    %1 = vector.load %arg3[%c0_1, %c0_2] : memref<5x32xf32, #tpu.memory_space<vmem>>, vector<5x32xf32>
    %c0_3 = arith.constant 0 : index
    %c0_4 = arith.constant 0 : index
    %c0_5 = arith.constant 0 : index
    %2 = vector.load %arg1[%c0_3, %c0_4, %c0_5] : memref<2x5x3072xbf16, #tpu.memory_space<vmem>>, vector<1x5x3072xbf16>
    %3 = vector.shape_cast %2 : vector<1x5x3072xbf16> to vector<5x3072xbf16>
    %cst = arith.constant dense<0.000000e+00> : vector<5x32xf32>
    %4 = tpu.matmul %3, %0, %cst {dimension_numbers = #tpu.dot_dimension_numbers<[1], [0], [0], [1], [0, 0, 1, 1], [], []>} : vector<5x3072xbf16>, vector<3072x32xbf16>, vector<5x32xf32> -> vector<5x32xf32>
    %5 = arith.addf %4, %1 : vector<5x32xf32>
    %c1 = arith.constant 1 : index
    %c0_6 = arith.constant 0 : index
    %c0_7 = arith.constant 0 : index
    %6 = vector.load %arg1[%c1, %c0_6, %c0_7] : memref<2x5x3072xbf16, #tpu.memory_space<vmem>>, vector<1x5x3072xbf16>
    %7 = vector.shape_cast %6 : vector<1x5x3072xbf16> to vector<5x3072xbf16>
    %cst_8 = arith.constant dense<0.000000e+00> : vector<5x32xf32>
    %8 = tpu.matmul %7, %0, %cst_8 {dimension_numbers = #tpu.dot_dimension_numbers<[1], [0], [0], [1], [0, 0, 1, 1], [], []>} : vector<5x3072xbf16>, vector<3072x32xbf16>, vector<5x32xf32> -> vector<5x32xf32>
    %9 = arith.addf %8, %1 : vector<5x32xf32>
    %c0_9 = arith.constant 0 : index
    %c0_10 = arith.constant 0 : index
    %c0_11 = arith.constant 0 : index
    %10 = vector.load %arg4[%c0_9, %c0_10, %c0_11] : memref<2x1x32xf32, #tpu.memory_space<vmem>>, vector<1x1x32xf32>
    %11 = vector.shape_cast %10 : vector<1x1x32xf32> to vector<1x32xf32>
    %c0_12 = arith.constant 0 : index
    %c0_13 = arith.constant 0 : index
    %c0_14 = arith.constant 0 : index
    %12 = vector.load %arg5[%c0_12, %c0_13, %c0_14] : memref<2x1x32xf32, #tpu.memory_space<vmem>>, vector<1x1x32xf32>
    %13 = vector.shape_cast %12 : vector<1x1x32xf32> to vector<1x32xf32>
    %c0_15 = arith.constant 0 : index
    %c0_16 = arith.constant 0 : index
    %c0_17 = arith.constant 0 : index
    %c0_18 = arith.constant 0 : index
    %14 = vector.load %arg6[%c0_15, %c0_16, %c0_17, %c0_18] : memref<2x4x32x8xbf16, #tpu.memory_space<vmem>>, vector<1x4x32x8xbf16>
    %15 = vector.shape_cast %14 : vector<1x4x32x8xbf16> to vector<4x32x8xbf16>
    %c0_19 = arith.constant 0 : index
    %c0_20 = arith.constant 0 : index
    %c0_21 = arith.constant 0 : index
    %c0_22 = arith.constant 0 : index
    %16 = vector.load %arg7[%c0_19, %c0_20, %c0_21, %c0_22] : memref<2x4x1x8xf32, #tpu.memory_space<vmem>>, vector<1x4x1x8xf32>
    %17 = vector.shape_cast %16 : vector<1x4x1x8xf32> to vector<4x1x8xf32>
    %c0_23 = arith.constant 0 : index
    %c0_24 = arith.constant 0 : index
    %c0_25 = arith.constant 0 : index
    %c0_26 = arith.constant 0 : index
    %18 = vector.load %arg8[%c0_23, %c0_24, %c0_25, %c0_26] : memref<2x4x32x8xbf16, #tpu.memory_space<vmem>>, vector<1x4x32x8xbf16>
    %19 = vector.shape_cast %18 : vector<1x4x32x8xbf16> to vector<4x32x8xbf16>
    %c0_27 = arith.constant 0 : index
    %c0_28 = arith.constant 0 : index
    %c0_29 = arith.constant 0 : index
    %c0_30 = arith.constant 0 : index
    %20 = vector.load %arg9[%c0_27, %c0_28, %c0_29, %c0_30] : memref<2x4x1x8xf32, #tpu.memory_space<vmem>>, vector<1x4x1x8xf32>
    %21 = vector.shape_cast %20 : vector<1x4x1x8xf32> to vector<4x1x8xf32>
    %c0_31 = arith.constant 0 : index
    %c0_32 = arith.constant 0 : index
    %c0_33 = arith.constant 0 : index
    %c0_34 = arith.constant 0 : index
    %22 = vector.load %arg10[%c0_31, %c0_32, %c0_33, %c0_34] : memref<2x4x32x8xbf16, #tpu.memory_space<vmem>>, vector<1x4x32x8xbf16>
    %23 = vector.shape_cast %22 : vector<1x4x32x8xbf16> to vector<4x32x8xbf16>
    %c0_35 = arith.constant 0 : index
    %c0_36 = arith.constant 0 : index
    %c0_37 = arith.constant 0 : index
    %c0_38 = arith.constant 0 : index
    %24 = vector.load %arg11[%c0_35, %c0_36, %c0_37, %c0_38] : memref<2x4x1x8xf32, #tpu.memory_space<vmem>>, vector<1x4x1x8xf32>
    %25 = vector.shape_cast %24 : vector<1x4x1x8xf32> to vector<4x1x8xf32>
    %c0_39 = arith.constant 0 : index
    %c0_40 = arith.constant 0 : index
    %c0_41 = arith.constant 0 : index
    %c0_42 = arith.constant 0 : index
    %26 = vector.load %arg12[%c0_39, %c0_40, %c0_41, %c0_42] : memref<2x4x8x32xbf16, #tpu.memory_space<vmem>>, vector<1x4x8x32xbf16>
    %27 = vector.shape_cast %26 : vector<1x4x8x32xbf16> to vector<4x8x32xbf16>
    %c0_43 = arith.constant 0 : index
    %c0_44 = arith.constant 0 : index
    %c0_45 = arith.constant 0 : index
    %28 = vector.load %arg13[%c0_43, %c0_44, %c0_45] : memref<2x1x32xf32, #tpu.memory_space<vmem>>, vector<1x1x32xf32>
    %29 = vector.shape_cast %28 : vector<1x1x32xf32> to vector<1x32xf32>
    %c0_46 = arith.constant 0 : index
    %c0_47 = arith.constant 0 : index
    %c0_48 = arith.constant 0 : index
    %30 = vector.load %arg14[%c0_46, %c0_47, %c0_48] : memref<2x1x32xf32, #tpu.memory_space<vmem>>, vector<1x1x32xf32>
    %31 = vector.shape_cast %30 : vector<1x1x32xf32> to vector<1x32xf32>
    %c0_49 = arith.constant 0 : index
    %c0_50 = arith.constant 0 : index
    %c0_51 = arith.constant 0 : index
    %32 = vector.load %arg15[%c0_49, %c0_50, %c0_51] : memref<2x1x32xf32, #tpu.memory_space<vmem>>, vector<1x1x32xf32>
    %33 = vector.shape_cast %32 : vector<1x1x32xf32> to vector<1x32xf32>
    %c0_52 = arith.constant 0 : index
    %c0_53 = arith.constant 0 : index
    %c0_54 = arith.constant 0 : index
    %34 = vector.load %arg16[%c0_52, %c0_53, %c0_54] : memref<2x32x64xbf16, #tpu.memory_space<vmem>>, vector<1x32x64xbf16>
    %35 = vector.shape_cast %34 : vector<1x32x64xbf16> to vector<32x64xbf16>
    %c0_55 = arith.constant 0 : index
    %c0_56 = arith.constant 0 : index
    %c0_57 = arith.constant 0 : index
    %36 = vector.load %arg17[%c0_55, %c0_56, %c0_57] : memref<2x1x64xf32, #tpu.memory_space<vmem>>, vector<1x1x64xf32>
    %37 = vector.shape_cast %36 : vector<1x1x64xf32> to vector<1x64xf32>
    %c0_58 = arith.constant 0 : index
    %c0_59 = arith.constant 0 : index
    %c0_60 = arith.constant 0 : index
    %38 = vector.load %arg18[%c0_58, %c0_59, %c0_60] : memref<2x64x32xbf16, #tpu.memory_space<vmem>>, vector<1x64x32xbf16>
    %39 = vector.shape_cast %38 : vector<1x64x32xbf16> to vector<64x32xbf16>
    %c0_61 = arith.constant 0 : index
    %c0_62 = arith.constant 0 : index
    %c0_63 = arith.constant 0 : index
    %40 = vector.load %arg19[%c0_61, %c0_62, %c0_63] : memref<2x1x32xf32, #tpu.memory_space<vmem>>, vector<1x1x32xf32>
    %41 = vector.shape_cast %40 : vector<1x1x32xf32> to vector<1x32xf32>
    %cst_64 = arith.constant dense<0.000000e+00> : vector<5xf32>
    %42 = vector.multi_reduction <add>, %5, %cst_64 [1] : vector<5x32xf32> to vector<5xf32>
    %43 = vector.shape_cast %42 : vector<5xf32> to vector<5x1xf32>
    %cst_65 = arith.constant 3.200000e+01 : f32
    %44 = vector.broadcast %cst_65 : f32 to vector<5x1xf32>
    %45 = arith.divf %43, %44 : vector<5x1xf32>
    %46 = arith.mulf %5, %5 : vector<5x32xf32>
    %cst_66 = arith.constant dense<0.000000e+00> : vector<5xf32>
    %47 = vector.multi_reduction <add>, %46, %cst_66 [1] : vector<5x32xf32> to vector<5xf32>
    %48 = vector.shape_cast %47 : vector<5xf32> to vector<5x1xf32>
    %cst_67 = arith.constant 3.200000e+01 : f32
    %49 = vector.broadcast %cst_67 : f32 to vector<5x1xf32>
    %50 = arith.divf %48, %49 : vector<5x1xf32>
    %51 = arith.mulf %45, %45 : vector<5x1xf32>
    %52 = arith.subf %50, %51 : vector<5x1xf32>
    %53 = vector.broadcast %45 : vector<5x1xf32> to vector<5x32xf32>
    %54 = arith.subf %5, %53 : vector<5x32xf32>
    %cst_68 = arith.constant 9.99999997E-7 : f32
    %55 = vector.broadcast %cst_68 : f32 to vector<5x1xf32>
    %56 = arith.addf %52, %55 : vector<5x1xf32>
    %57 = math.rsqrt %56 : vector<5x1xf32>
    %58 = vector.broadcast %57 : vector<5x1xf32> to vector<5x32xf32>
    %59 = arith.mulf %54, %58 : vector<5x32xf32>
    %60 = vector.broadcast %11 : vector<1x32xf32> to vector<5x32xf32>
    %61 = arith.mulf %59, %60 : vector<5x32xf32>
    %62 = vector.broadcast %13 : vector<1x32xf32> to vector<5x32xf32>
    %63 = arith.addf %61, %62 : vector<5x32xf32>
    %64 = arith.truncf %63 : vector<5x32xf32> to vector<5x32xbf16>
    %65 = vector.shape_cast %64 : vector<5x32xbf16> to vector<1x5x32xbf16>
    %66 = vector.shape_cast %65 : vector<1x5x32xbf16> to vector<1x5x32xbf16>
    %67 = vector.broadcast %66 : vector<1x5x32xbf16> to vector<4x5x32xbf16>
    "tpu.trace_start"() <{level = 10 : i32, message = "hsd,hde->hse"}> : () -> ()
    %cst_69 = arith.constant dense<0.000000e+00> : vector<4x5x8xf32>
    %68 = tpu.matmul %67, %15, %cst_69 {dimension_numbers = #tpu.dot_dimension_numbers<[2], [1], [1], [2], [0, 0, 0, 1, 1, 2], [0], [0]>} : vector<4x5x32xbf16>, vector<4x32x8xbf16>, vector<4x5x8xf32> -> vector<4x5x8xf32>
    "tpu.trace_stop"() : () -> ()
    %69 = vector.broadcast %17 : vector<4x1x8xf32> to vector<4x5x8xf32>
    %70 = arith.addf %68, %69 : vector<4x5x8xf32>
    "tpu.trace_start"() <{level = 10 : i32, message = "hsd,hde->hse"}> : () -> ()
    %cst_70 = arith.constant dense<0.000000e+00> : vector<4x5x8xf32>
    %71 = tpu.matmul %67, %19, %cst_70 {dimension_numbers = #tpu.dot_dimension_numbers<[2], [1], [1], [2], [0, 0, 0, 1, 1, 2], [0], [0]>} : vector<4x5x32xbf16>, vector<4x32x8xbf16>, vector<4x5x8xf32> -> vector<4x5x8xf32>
    "tpu.trace_stop"() : () -> ()
    %72 = vector.broadcast %21 : vector<4x1x8xf32> to vector<4x5x8xf32>
    %73 = arith.addf %71, %72 : vector<4x5x8xf32>
    "tpu.trace_start"() <{level = 10 : i32, message = "hsd,hde->hse"}> : () -> ()
    %cst_71 = arith.constant dense<0.000000e+00> : vector<4x5x8xf32>
    %74 = tpu.matmul %67, %23, %cst_71 {dimension_numbers = #tpu.dot_dimension_numbers<[2], [1], [1], [2], [0, 0, 0, 1, 1, 2], [0], [0]>} : vector<4x5x32xbf16>, vector<4x32x8xbf16>, vector<4x5x8xf32> -> vector<4x5x8xf32>
    "tpu.trace_stop"() : () -> ()
    %75 = vector.broadcast %25 : vector<4x1x8xf32> to vector<4x5x8xf32>
    %76 = arith.addf %74, %75 : vector<4x5x8xf32>
    %77 = arith.truncf %70 : vector<4x5x8xf32> to vector<4x5x8xbf16>
    %78 = arith.truncf %73 : vector<4x5x8xf32> to vector<4x5x8xbf16>
    "tpu.trace_start"() <{level = 10 : i32, message = "hqd,hkd->hqk"}> : () -> ()
    %cst_72 = arith.constant dense<0.000000e+00> : vector<4x5x5xf32>
    %79 = tpu.matmul %77, %78, %cst_72 {dimension_numbers = #tpu.dot_dimension_numbers<[2], [2], [1], [1], [0, 0, 0, 1, 1, 1], [0], [0]>} : vector<4x5x8xbf16>, vector<4x5x8xbf16>, vector<4x5x5xf32> -> vector<4x5x5xf32>
    "tpu.trace_stop"() : () -> ()
    %cst_73 = arith.constant 0.353553385 : f32
    %80 = vector.broadcast %cst_73 : f32 to vector<4x5x5xf32>
    %81 = arith.mulf %79, %80 : vector<4x5x5xf32>
    %cst_74 = arith.constant dense<0xFF800000> : vector<4x5xf32>
    %82 = vector.multi_reduction <maximumf>, %81, %cst_74 [2] : vector<4x5x5xf32> to vector<4x5xf32>
    %83 = vector.shape_cast %82 : vector<4x5xf32> to vector<4x5x1xf32>
    %84 = vector.broadcast %83 : vector<4x5x1xf32> to vector<4x5x5xf32>
    %85 = arith.subf %81, %84 : vector<4x5x5xf32>
    %86 = math.exp %85 : vector<4x5x5xf32>
    %cst_75 = arith.constant dense<0.000000e+00> : vector<4x5xf32>
    %87 = vector.multi_reduction <add>, %86, %cst_75 [2] : vector<4x5x5xf32> to vector<4x5xf32>
    %88 = vector.shape_cast %87 : vector<4x5xf32> to vector<4x5x1xf32>
    %89 = tpu.reciprocal %88 {approx = true} : vector<4x5x1xf32> -> vector<4x5x1xf32>
    %90 = vector.broadcast %89 : vector<4x5x1xf32> to vector<4x5x5xf32>
    %91 = arith.mulf %86, %90 : vector<4x5x5xf32>
    %92 = arith.truncf %91 : vector<4x5x5xf32> to vector<4x5x5xbf16>
    %93 = arith.truncf %76 : vector<4x5x8xf32> to vector<4x5x8xbf16>
    "tpu.trace_start"() <{level = 10 : i32, message = "hqk,hkd->hqd"}> : () -> ()
    %cst_76 = arith.constant dense<0.000000e+00> : vector<4x5x8xf32>
    %94 = tpu.matmul %92, %93, %cst_76 {dimension_numbers = #tpu.dot_dimension_numbers<[2], [1], [1], [2], [0, 0, 0, 1, 1, 2], [0], [0]>} : vector<4x5x5xbf16>, vector<4x5x8xbf16>, vector<4x5x8xf32> -> vector<4x5x8xf32>
    "tpu.trace_stop"() : () -> ()
    %95 = arith.truncf %94 : vector<4x5x8xf32> to vector<4x5x8xbf16>
    "tpu.trace_start"() <{level = 10 : i32, message = "hsd,hde->hse"}> : () -> ()
    %cst_77 = arith.constant dense<0.000000e+00> : vector<4x5x32xf32>
    %96 = tpu.matmul %95, %27, %cst_77 {dimension_numbers = #tpu.dot_dimension_numbers<[2], [1], [1], [2], [0, 0, 0, 1, 1, 2], [0], [0]>} : vector<4x5x8xbf16>, vector<4x8x32xbf16>, vector<4x5x32xf32> -> vector<4x5x32xf32>
    "tpu.trace_stop"() : () -> ()
    %cst_78 = arith.constant dense<0.000000e+00> : vector<5x32xf32>
    %97 = vector.multi_reduction <add>, %96, %cst_78 [0] : vector<4x5x32xf32> to vector<5x32xf32>
    %98 = arith.addf %5, %97 : vector<5x32xf32>
    %99 = vector.broadcast %29 : vector<1x32xf32> to vector<5x32xf32>
    %100 = arith.addf %98, %99 : vector<5x32xf32>
    %cst_79 = arith.constant dense<0.000000e+00> : vector<5xf32>
    %101 = vector.multi_reduction <add>, %100, %cst_79 [1] : vector<5x32xf32> to vector<5xf32>
    %102 = vector.shape_cast %101 : vector<5xf32> to vector<5x1xf32>
    %cst_80 = arith.constant 3.200000e+01 : f32
    %103 = vector.broadcast %cst_80 : f32 to vector<5x1xf32>
    %104 = arith.divf %102, %103 : vector<5x1xf32>
    %105 = arith.mulf %100, %100 : vector<5x32xf32>
    %cst_81 = arith.constant dense<0.000000e+00> : vector<5xf32>
    %106 = vector.multi_reduction <add>, %105, %cst_81 [1] : vector<5x32xf32> to vector<5xf32>
    %107 = vector.shape_cast %106 : vector<5xf32> to vector<5x1xf32>
    %cst_82 = arith.constant 3.200000e+01 : f32
    %108 = vector.broadcast %cst_82 : f32 to vector<5x1xf32>
    %109 = arith.divf %107, %108 : vector<5x1xf32>
    %110 = arith.mulf %104, %104 : vector<5x1xf32>
    %111 = arith.subf %109, %110 : vector<5x1xf32>
    %112 = vector.broadcast %104 : vector<5x1xf32> to vector<5x32xf32>
    %113 = arith.subf %100, %112 : vector<5x32xf32>
    %cst_83 = arith.constant 9.99999997E-7 : f32
    %114 = vector.broadcast %cst_83 : f32 to vector<5x1xf32>
    %115 = arith.addf %111, %114 : vector<5x1xf32>
    %116 = math.rsqrt %115 : vector<5x1xf32>
    %117 = vector.broadcast %116 : vector<5x1xf32> to vector<5x32xf32>
    %118 = arith.mulf %113, %117 : vector<5x32xf32>
    %119 = vector.broadcast %31 : vector<1x32xf32> to vector<5x32xf32>
    %120 = arith.mulf %118, %119 : vector<5x32xf32>
    %121 = vector.broadcast %33 : vector<1x32xf32> to vector<5x32xf32>
    %122 = arith.addf %120, %121 : vector<5x32xf32>
    %123 = arith.truncf %122 : vector<5x32xf32> to vector<5x32xbf16>
    %cst_84 = arith.constant dense<0.000000e+00> : vector<5x64xf32>
    %124 = tpu.matmul %123, %35, %cst_84 {dimension_numbers = #tpu.dot_dimension_numbers<[1], [0], [0], [1], [0, 0, 1, 1], [], []>} : vector<5x32xbf16>, vector<32x64xbf16>, vector<5x64xf32> -> vector<5x64xf32>
    %125 = vector.broadcast %37 : vector<1x64xf32> to vector<5x64xf32>
    %126 = arith.addf %124, %125 : vector<5x64xf32>
    %cst_85 = arith.constant 5.000000e-01 : f32
    %127 = vector.broadcast %cst_85 : f32 to vector<5x64xf32>
    %128 = arith.mulf %127, %126 : vector<5x64xf32>
    %cst_86 = arith.constant 0.707106769 : f32
    %129 = vector.broadcast %cst_86 : f32 to vector<5x64xf32>
    %130 = arith.mulf %126, %129 : vector<5x64xf32>
    %131 = math.absf %130 : vector<5x64xf32>
    %cst_87 = arith.constant 0.327591091 : f32
    %132 = vector.broadcast %cst_87 : f32 to vector<5x64xf32>
    %133 = arith.mulf %132, %131 : vector<5x64xf32>
    %cst_88 = arith.constant 1.000000e+00 : f32
    %134 = vector.broadcast %cst_88 : f32 to vector<5x64xf32>
    %135 = arith.addf %134, %133 : vector<5x64xf32>
    %cst_89 = arith.constant 1.000000e+00 : f32
    %136 = vector.broadcast %cst_89 : f32 to vector<5x64xf32>
    %137 = arith.divf %136, %135 : vector<5x64xf32>
    %cst_90 = arith.constant 1.06140542 : f32
    %138 = vector.broadcast %cst_90 : f32 to vector<5x64xf32>
    %139 = arith.mulf %138, %137 : vector<5x64xf32>
    %cst_91 = arith.constant -1.45315206 : f32
    %140 = vector.broadcast %cst_91 : f32 to vector<5x64xf32>
    %141 = arith.addf %139, %140 : vector<5x64xf32>
    %142 = arith.mulf %141, %137 : vector<5x64xf32>
    %cst_92 = arith.constant 1.42141378 : f32
    %143 = vector.broadcast %cst_92 : f32 to vector<5x64xf32>
    %144 = arith.addf %142, %143 : vector<5x64xf32>
    %145 = arith.mulf %144, %137 : vector<5x64xf32>
    %cst_93 = arith.constant -0.284496725 : f32
    %146 = vector.broadcast %cst_93 : f32 to vector<5x64xf32>
    %147 = arith.addf %145, %146 : vector<5x64xf32>
    %148 = arith.mulf %147, %137 : vector<5x64xf32>
    %cst_94 = arith.constant 0.254829586 : f32
    %149 = vector.broadcast %cst_94 : f32 to vector<5x64xf32>
    %150 = arith.addf %148, %149 : vector<5x64xf32>
    %151 = arith.mulf %150, %137 : vector<5x64xf32>
    %cst_95 = arith.constant 0.000000e+00 : f32
    %152 = vector.broadcast %cst_95 : f32 to vector<5x64xf32>
    %153 = arith.subf %152, %131 : vector<5x64xf32>
    %154 = arith.mulf %153, %131 : vector<5x64xf32>
    %155 = math.exp %154 : vector<5x64xf32>
    %156 = arith.mulf %151, %155 : vector<5x64xf32>
    %cst_96 = arith.constant 1.000000e+00 : f32
    %157 = vector.broadcast %cst_96 : f32 to vector<5x64xf32>
    %158 = arith.subf %157, %156 : vector<5x64xf32>
    %cst_97 = arith.constant 0.000000e+00 : f32
    %159 = vector.broadcast %cst_97 : f32 to vector<5x64xf32>
    %160 = arith.cmpf oge, %130, %159 : vector<5x64xf32>
    %cst_98 = arith.constant 0.000000e+00 : f32
    %161 = vector.broadcast %cst_98 : f32 to vector<5x64xf32>
    %162 = arith.subf %161, %158 : vector<5x64xf32>
    %163 = arith.select %160, %158, %162 : vector<5x64xi1>, vector<5x64xf32>
    %cst_99 = arith.constant 1.000000e+00 : f32
    %164 = vector.broadcast %cst_99 : f32 to vector<5x64xf32>
    %165 = arith.addf %164, %163 : vector<5x64xf32>
    %166 = arith.mulf %128, %165 : vector<5x64xf32>
    %167 = arith.truncf %166 : vector<5x64xf32> to vector<5x64xbf16>
    %cst_100 = arith.constant dense<0.000000e+00> : vector<5x32xf32>
    %168 = tpu.matmul %167, %39, %cst_100 {dimension_numbers = #tpu.dot_dimension_numbers<[1], [0], [0], [1], [0, 0, 1, 1], [], []>} : vector<5x64xbf16>, vector<64x32xbf16>, vector<5x32xf32> -> vector<5x32xf32>
    %169 = arith.addf %100, %168 : vector<5x32xf32>
    %170 = vector.broadcast %41 : vector<1x32xf32> to vector<5x32xf32>
    %171 = arith.addf %169, %170 : vector<5x32xf32>
    %cst_101 = arith.constant dense<0.000000e+00> : vector<5xf32>
    %172 = vector.multi_reduction <add>, %9, %cst_101 [1] : vector<5x32xf32> to vector<5xf32>
    %173 = vector.shape_cast %172 : vector<5xf32> to vector<5x1xf32>
    %cst_102 = arith.constant 3.200000e+01 : f32
    %174 = vector.broadcast %cst_102 : f32 to vector<5x1xf32>
    %175 = arith.divf %173, %174 : vector<5x1xf32>
    %176 = arith.mulf %9, %9 : vector<5x32xf32>
    %cst_103 = arith.constant dense<0.000000e+00> : vector<5xf32>
    %177 = vector.multi_reduction <add>, %176, %cst_103 [1] : vector<5x32xf32> to vector<5xf32>
    %178 = vector.shape_cast %177 : vector<5xf32> to vector<5x1xf32>
    %cst_104 = arith.constant 3.200000e+01 : f32
    %179 = vector.broadcast %cst_104 : f32 to vector<5x1xf32>
    %180 = arith.divf %178, %179 : vector<5x1xf32>
    %181 = arith.mulf %175, %175 : vector<5x1xf32>
    %182 = arith.subf %180, %181 : vector<5x1xf32>
    %183 = vector.broadcast %175 : vector<5x1xf32> to vector<5x32xf32>
    %184 = arith.subf %9, %183 : vector<5x32xf32>
    %cst_105 = arith.constant 9.99999997E-7 : f32
    %185 = vector.broadcast %cst_105 : f32 to vector<5x1xf32>
    %186 = arith.addf %182, %185 : vector<5x1xf32>
    %187 = math.rsqrt %186 : vector<5x1xf32>
    %188 = vector.broadcast %187 : vector<5x1xf32> to vector<5x32xf32>
    %189 = arith.mulf %184, %188 : vector<5x32xf32>
    %190 = vector.broadcast %11 : vector<1x32xf32> to vector<5x32xf32>
    %191 = arith.mulf %189, %190 : vector<5x32xf32>
    %192 = vector.broadcast %13 : vector<1x32xf32> to vector<5x32xf32>
    %193 = arith.addf %191, %192 : vector<5x32xf32>
    %194 = arith.truncf %193 : vector<5x32xf32> to vector<5x32xbf16>
    %195 = vector.shape_cast %194 : vector<5x32xbf16> to vector<1x5x32xbf16>
    %196 = vector.shape_cast %195 : vector<1x5x32xbf16> to vector<1x5x32xbf16>
    %197 = vector.broadcast %196 : vector<1x5x32xbf16> to vector<4x5x32xbf16>
    "tpu.trace_start"() <{level = 10 : i32, message = "hsd,hde->hse"}> : () -> ()
    %cst_106 = arith.constant dense<0.000000e+00> : vector<4x5x8xf32>
    %198 = tpu.matmul %197, %15, %cst_106 {dimension_numbers = #tpu.dot_dimension_numbers<[2], [1], [1], [2], [0, 0, 0, 1, 1, 2], [0], [0]>} : vector<4x5x32xbf16>, vector<4x32x8xbf16>, vector<4x5x8xf32> -> vector<4x5x8xf32>
    "tpu.trace_stop"() : () -> ()
    %199 = vector.broadcast %17 : vector<4x1x8xf32> to vector<4x5x8xf32>
    %200 = arith.addf %198, %199 : vector<4x5x8xf32>
    "tpu.trace_start"() <{level = 10 : i32, message = "hsd,hde->hse"}> : () -> ()
    %cst_107 = arith.constant dense<0.000000e+00> : vector<4x5x8xf32>
    %201 = tpu.matmul %197, %19, %cst_107 {dimension_numbers = #tpu.dot_dimension_numbers<[2], [1], [1], [2], [0, 0, 0, 1, 1, 2], [0], [0]>} : vector<4x5x32xbf16>, vector<4x32x8xbf16>, vector<4x5x8xf32> -> vector<4x5x8xf32>
    "tpu.trace_stop"() : () -> ()
    %202 = vector.broadcast %21 : vector<4x1x8xf32> to vector<4x5x8xf32>
    %203 = arith.addf %201, %202 : vector<4x5x8xf32>
    "tpu.trace_start"() <{level = 10 : i32, message = "hsd,hde->hse"}> : () -> ()
    %cst_108 = arith.constant dense<0.000000e+00> : vector<4x5x8xf32>
    %204 = tpu.matmul %197, %23, %cst_108 {dimension_numbers = #tpu.dot_dimension_numbers<[2], [1], [1], [2], [0, 0, 0, 1, 1, 2], [0], [0]>} : vector<4x5x32xbf16>, vector<4x32x8xbf16>, vector<4x5x8xf32> -> vector<4x5x8xf32>
    "tpu.trace_stop"() : () -> ()
    %205 = vector.broadcast %25 : vector<4x1x8xf32> to vector<4x5x8xf32>
    %206 = arith.addf %204, %205 : vector<4x5x8xf32>
    %207 = arith.truncf %200 : vector<4x5x8xf32> to vector<4x5x8xbf16>
    %208 = arith.truncf %203 : vector<4x5x8xf32> to vector<4x5x8xbf16>
    "tpu.trace_start"() <{level = 10 : i32, message = "hqd,hkd->hqk"}> : () -> ()
    %cst_109 = arith.constant dense<0.000000e+00> : vector<4x5x5xf32>
    %209 = tpu.matmul %207, %208, %cst_109 {dimension_numbers = #tpu.dot_dimension_numbers<[2], [2], [1], [1], [0, 0, 0, 1, 1, 1], [0], [0]>} : vector<4x5x8xbf16>, vector<4x5x8xbf16>, vector<4x5x5xf32> -> vector<4x5x5xf32>
    "tpu.trace_stop"() : () -> ()
    %cst_110 = arith.constant 0.353553385 : f32
    %210 = vector.broadcast %cst_110 : f32 to vector<4x5x5xf32>
    %211 = arith.mulf %209, %210 : vector<4x5x5xf32>
    %cst_111 = arith.constant dense<0xFF800000> : vector<4x5xf32>
    %212 = vector.multi_reduction <maximumf>, %211, %cst_111 [2] : vector<4x5x5xf32> to vector<4x5xf32>
    %213 = vector.shape_cast %212 : vector<4x5xf32> to vector<4x5x1xf32>
    %214 = vector.broadcast %213 : vector<4x5x1xf32> to vector<4x5x5xf32>
    %215 = arith.subf %211, %214 : vector<4x5x5xf32>
    %216 = math.exp %215 : vector<4x5x5xf32>
    %cst_112 = arith.constant dense<0.000000e+00> : vector<4x5xf32>
    %217 = vector.multi_reduction <add>, %216, %cst_112 [2] : vector<4x5x5xf32> to vector<4x5xf32>
    %218 = vector.shape_cast %217 : vector<4x5xf32> to vector<4x5x1xf32>
    %219 = tpu.reciprocal %218 {approx = true} : vector<4x5x1xf32> -> vector<4x5x1xf32>
    %220 = vector.broadcast %219 : vector<4x5x1xf32> to vector<4x5x5xf32>
    %221 = arith.mulf %216, %220 : vector<4x5x5xf32>
    %222 = arith.truncf %221 : vector<4x5x5xf32> to vector<4x5x5xbf16>
    %223 = arith.truncf %206 : vector<4x5x8xf32> to vector<4x5x8xbf16>
    "tpu.trace_start"() <{level = 10 : i32, message = "hqk,hkd->hqd"}> : () -> ()
    %cst_113 = arith.constant dense<0.000000e+00> : vector<4x5x8xf32>
    %224 = tpu.matmul %222, %223, %cst_113 {dimension_numbers = #tpu.dot_dimension_numbers<[2], [1], [1], [2], [0, 0, 0, 1, 1, 2], [0], [0]>} : vector<4x5x5xbf16>, vector<4x5x8xbf16>, vector<4x5x8xf32> -> vector<4x5x8xf32>
    "tpu.trace_stop"() : () -> ()
    %225 = arith.truncf %224 : vector<4x5x8xf32> to vector<4x5x8xbf16>
    "tpu.trace_start"() <{level = 10 : i32, message = "hsd,hde->hse"}> : () -> ()
    %cst_114 = arith.constant dense<0.000000e+00> : vector<4x5x32xf32>
    %226 = tpu.matmul %225, %27, %cst_114 {dimension_numbers = #tpu.dot_dimension_numbers<[2], [1], [1], [2], [0, 0, 0, 1, 1, 2], [0], [0]>} : vector<4x5x8xbf16>, vector<4x8x32xbf16>, vector<4x5x32xf32> -> vector<4x5x32xf32>
    "tpu.trace_stop"() : () -> ()
    %cst_115 = arith.constant dense<0.000000e+00> : vector<5x32xf32>
    %227 = vector.multi_reduction <add>, %226, %cst_115 [0] : vector<4x5x32xf32> to vector<5x32xf32>
    %228 = arith.addf %9, %227 : vector<5x32xf32>
    %229 = vector.broadcast %29 : vector<1x32xf32> to vector<5x32xf32>
    %230 = arith.addf %228, %229 : vector<5x32xf32>
    %cst_116 = arith.constant dense<0.000000e+00> : vector<5xf32>
    %231 = vector.multi_reduction <add>, %230, %cst_116 [1] : vector<5x32xf32> to vector<5xf32>
    %232 = vector.shape_cast %231 : vector<5xf32> to vector<5x1xf32>
    %cst_117 = arith.constant 3.200000e+01 : f32
    %233 = vector.broadcast %cst_117 : f32 to vector<5x1xf32>
    %234 = arith.divf %232, %233 : vector<5x1xf32>
    %235 = arith.mulf %230, %230 : vector<5x32xf32>
    %cst_118 = arith.constant dense<0.000000e+00> : vector<5xf32>
    %236 = vector.multi_reduction <add>, %235, %cst_118 [1] : vector<5x32xf32> to vector<5xf32>
    %237 = vector.shape_cast %236 : vector<5xf32> to vector<5x1xf32>
    %cst_119 = arith.constant 3.200000e+01 : f32
    %238 = vector.broadcast %cst_119 : f32 to vector<5x1xf32>
    %239 = arith.divf %237, %238 : vector<5x1xf32>
    %240 = arith.mulf %234, %234 : vector<5x1xf32>
    %241 = arith.subf %239, %240 : vector<5x1xf32>
    %242 = vector.broadcast %234 : vector<5x1xf32> to vector<5x32xf32>
    %243 = arith.subf %230, %242 : vector<5x32xf32>
    %cst_120 = arith.constant 9.99999997E-7 : f32
    %244 = vector.broadcast %cst_120 : f32 to vector<5x1xf32>
    %245 = arith.addf %241, %244 : vector<5x1xf32>
    %246 = math.rsqrt %245 : vector<5x1xf32>
    %247 = vector.broadcast %246 : vector<5x1xf32> to vector<5x32xf32>
    %248 = arith.mulf %243, %247 : vector<5x32xf32>
    %249 = vector.broadcast %31 : vector<1x32xf32> to vector<5x32xf32>
    %250 = arith.mulf %248, %249 : vector<5x32xf32>
    %251 = vector.broadcast %33 : vector<1x32xf32> to vector<5x32xf32>
    %252 = arith.addf %250, %251 : vector<5x32xf32>
    %253 = arith.truncf %252 : vector<5x32xf32> to vector<5x32xbf16>
    %cst_121 = arith.constant dense<0.000000e+00> : vector<5x64xf32>
    %254 = tpu.matmul %253, %35, %cst_121 {dimension_numbers = #tpu.dot_dimension_numbers<[1], [0], [0], [1], [0, 0, 1, 1], [], []>} : vector<5x32xbf16>, vector<32x64xbf16>, vector<5x64xf32> -> vector<5x64xf32>
    %255 = vector.broadcast %37 : vector<1x64xf32> to vector<5x64xf32>
    %256 = arith.addf %254, %255 : vector<5x64xf32>
    %cst_122 = arith.constant 5.000000e-01 : f32
    %257 = vector.broadcast %cst_122 : f32 to vector<5x64xf32>
    %258 = arith.mulf %257, %256 : vector<5x64xf32>
    %cst_123 = arith.constant 0.707106769 : f32
    %259 = vector.broadcast %cst_123 : f32 to vector<5x64xf32>
    %260 = arith.mulf %256, %259 : vector<5x64xf32>
    %261 = math.absf %260 : vector<5x64xf32>
    %cst_124 = arith.constant 0.327591091 : f32
    %262 = vector.broadcast %cst_124 : f32 to vector<5x64xf32>
    %263 = arith.mulf %262, %261 : vector<5x64xf32>
    %cst_125 = arith.constant 1.000000e+00 : f32
    %264 = vector.broadcast %cst_125 : f32 to vector<5x64xf32>
    %265 = arith.addf %264, %263 : vector<5x64xf32>
    %cst_126 = arith.constant 1.000000e+00 : f32
    %266 = vector.broadcast %cst_126 : f32 to vector<5x64xf32>
    %267 = arith.divf %266, %265 : vector<5x64xf32>
    %cst_127 = arith.constant 1.06140542 : f32
    %268 = vector.broadcast %cst_127 : f32 to vector<5x64xf32>
    %269 = arith.mulf %268, %267 : vector<5x64xf32>
    %cst_128 = arith.constant -1.45315206 : f32
    %270 = vector.broadcast %cst_128 : f32 to vector<5x64xf32>
    %271 = arith.addf %269, %270 : vector<5x64xf32>
    %272 = arith.mulf %271, %267 : vector<5x64xf32>
    %cst_129 = arith.constant 1.42141378 : f32
    %273 = vector.broadcast %cst_129 : f32 to vector<5x64xf32>
    %274 = arith.addf %272, %273 : vector<5x64xf32>
    %275 = arith.mulf %274, %267 : vector<5x64xf32>
    %cst_130 = arith.constant -0.284496725 : f32
    %276 = vector.broadcast %cst_130 : f32 to vector<5x64xf32>
    %277 = arith.addf %275, %276 : vector<5x64xf32>
    %278 = arith.mulf %277, %267 : vector<5x64xf32>
    %cst_131 = arith.constant 0.254829586 : f32
    %279 = vector.broadcast %cst_131 : f32 to vector<5x64xf32>
    %280 = arith.addf %278, %279 : vector<5x64xf32>
    %281 = arith.mulf %280, %267 : vector<5x64xf32>
    %cst_132 = arith.constant 0.000000e+00 : f32
    %282 = vector.broadcast %cst_132 : f32 to vector<5x64xf32>
    %283 = arith.subf %282, %261 : vector<5x64xf32>
    %284 = arith.mulf %283, %261 : vector<5x64xf32>
    %285 = math.exp %284 : vector<5x64xf32>
    %286 = arith.mulf %281, %285 : vector<5x64xf32>
    %cst_133 = arith.constant 1.000000e+00 : f32
    %287 = vector.broadcast %cst_133 : f32 to vector<5x64xf32>
    %288 = arith.subf %287, %286 : vector<5x64xf32>
    %cst_134 = arith.constant 0.000000e+00 : f32
    %289 = vector.broadcast %cst_134 : f32 to vector<5x64xf32>
    %290 = arith.cmpf oge, %260, %289 : vector<5x64xf32>
    %cst_135 = arith.constant 0.000000e+00 : f32
    %291 = vector.broadcast %cst_135 : f32 to vector<5x64xf32>
    %292 = arith.subf %291, %288 : vector<5x64xf32>
    %293 = arith.select %290, %288, %292 : vector<5x64xi1>, vector<5x64xf32>
    %cst_136 = arith.constant 1.000000e+00 : f32
    %294 = vector.broadcast %cst_136 : f32 to vector<5x64xf32>
    %295 = arith.addf %294, %293 : vector<5x64xf32>
    %296 = arith.mulf %258, %295 : vector<5x64xf32>
    %297 = arith.truncf %296 : vector<5x64xf32> to vector<5x64xbf16>
    %cst_137 = arith.constant dense<0.000000e+00> : vector<5x32xf32>
    %298 = tpu.matmul %297, %39, %cst_137 {dimension_numbers = #tpu.dot_dimension_numbers<[1], [0], [0], [1], [0, 0, 1, 1], [], []>} : vector<5x64xbf16>, vector<64x32xbf16>, vector<5x32xf32> -> vector<5x32xf32>
    %299 = arith.addf %230, %298 : vector<5x32xf32>
    %300 = vector.broadcast %41 : vector<1x32xf32> to vector<5x32xf32>
    %301 = arith.addf %299, %300 : vector<5x32xf32>
    %c1_138 = arith.constant 1 : index
    %c0_139 = arith.constant 0 : index
    %c0_140 = arith.constant 0 : index
    %302 = vector.load %arg4[%c1_138, %c0_139, %c0_140] : memref<2x1x32xf32, #tpu.memory_space<vmem>>, vector<1x1x32xf32>
    %303 = vector.shape_cast %302 : vector<1x1x32xf32> to vector<1x32xf32>
    %c1_141 = arith.constant 1 : index
    %c0_142 = arith.constant 0 : index
    %c0_143 = arith.constant 0 : index
    %304 = vector.load %arg5[%c1_141, %c0_142, %c0_143] : memref<2x1x32xf32, #tpu.memory_space<vmem>>, vector<1x1x32xf32>
    %305 = vector.shape_cast %304 : vector<1x1x32xf32> to vector<1x32xf32>
    %c1_144 = arith.constant 1 : index
    %c0_145 = arith.constant 0 : index
    %c0_146 = arith.constant 0 : index
    %c0_147 = arith.constant 0 : index
    %306 = vector.load %arg6[%c1_144, %c0_145, %c0_146, %c0_147] : memref<2x4x32x8xbf16, #tpu.memory_space<vmem>>, vector<1x4x32x8xbf16>
    %307 = vector.shape_cast %306 : vector<1x4x32x8xbf16> to vector<4x32x8xbf16>
    %c1_148 = arith.constant 1 : index
    %c0_149 = arith.constant 0 : index
    %c0_150 = arith.constant 0 : index
    %c0_151 = arith.constant 0 : index
    %308 = vector.load %arg7[%c1_148, %c0_149, %c0_150, %c0_151] : memref<2x4x1x8xf32, #tpu.memory_space<vmem>>, vector<1x4x1x8xf32>
    %309 = vector.shape_cast %308 : vector<1x4x1x8xf32> to vector<4x1x8xf32>
    %c1_152 = arith.constant 1 : index
    %c0_153 = arith.constant 0 : index
    %c0_154 = arith.constant 0 : index
    %c0_155 = arith.constant 0 : index
    %310 = vector.load %arg8[%c1_152, %c0_153, %c0_154, %c0_155] : memref<2x4x32x8xbf16, #tpu.memory_space<vmem>>, vector<1x4x32x8xbf16>
    %311 = vector.shape_cast %310 : vector<1x4x32x8xbf16> to vector<4x32x8xbf16>
    %c1_156 = arith.constant 1 : index
    %c0_157 = arith.constant 0 : index
    %c0_158 = arith.constant 0 : index
    %c0_159 = arith.constant 0 : index
    %312 = vector.load %arg9[%c1_156, %c0_157, %c0_158, %c0_159] : memref<2x4x1x8xf32, #tpu.memory_space<vmem>>, vector<1x4x1x8xf32>
    %313 = vector.shape_cast %312 : vector<1x4x1x8xf32> to vector<4x1x8xf32>
    %c1_160 = arith.constant 1 : index
    %c0_161 = arith.constant 0 : index
    %c0_162 = arith.constant 0 : index
    %c0_163 = arith.constant 0 : index
    %314 = vector.load %arg10[%c1_160, %c0_161, %c0_162, %c0_163] : memref<2x4x32x8xbf16, #tpu.memory_space<vmem>>, vector<1x4x32x8xbf16>
    %315 = vector.shape_cast %314 : vector<1x4x32x8xbf16> to vector<4x32x8xbf16>
    %c1_164 = arith.constant 1 : index
    %c0_165 = arith.constant 0 : index
    %c0_166 = arith.constant 0 : index
    %c0_167 = arith.constant 0 : index
    %316 = vector.load %arg11[%c1_164, %c0_165, %c0_166, %c0_167] : memref<2x4x1x8xf32, #tpu.memory_space<vmem>>, vector<1x4x1x8xf32>
    %317 = vector.shape_cast %316 : vector<1x4x1x8xf32> to vector<4x1x8xf32>
    %c1_168 = arith.constant 1 : index
    %c0_169 = arith.constant 0 : index
    %c0_170 = arith.constant 0 : index
    %c0_171 = arith.constant 0 : index
    %318 = vector.load %arg12[%c1_168, %c0_169, %c0_170, %c0_171] : memref<2x4x8x32xbf16, #tpu.memory_space<vmem>>, vector<1x4x8x32xbf16>
    %319 = vector.shape_cast %318 : vector<1x4x8x32xbf16> to vector<4x8x32xbf16>
    %c1_172 = arith.constant 1 : index
    %c0_173 = arith.constant 0 : index
    %c0_174 = arith.constant 0 : index
    %320 = vector.load %arg13[%c1_172, %c0_173, %c0_174] : memref<2x1x32xf32, #tpu.memory_space<vmem>>, vector<1x1x32xf32>
    %321 = vector.shape_cast %320 : vector<1x1x32xf32> to vector<1x32xf32>
    %c1_175 = arith.constant 1 : index
    %c0_176 = arith.constant 0 : index
    %c0_177 = arith.constant 0 : index
    %322 = vector.load %arg14[%c1_175, %c0_176, %c0_177] : memref<2x1x32xf32, #tpu.memory_space<vmem>>, vector<1x1x32xf32>
    %323 = vector.shape_cast %322 : vector<1x1x32xf32> to vector<1x32xf32>
    %c1_178 = arith.constant 1 : index
    %c0_179 = arith.constant 0 : index
    %c0_180 = arith.constant 0 : index
    %324 = vector.load %arg15[%c1_178, %c0_179, %c0_180] : memref<2x1x32xf32, #tpu.memory_space<vmem>>, vector<1x1x32xf32>
    %325 = vector.shape_cast %324 : vector<1x1x32xf32> to vector<1x32xf32>
    %c1_181 = arith.constant 1 : index
    %c0_182 = arith.constant 0 : index
    %c0_183 = arith.constant 0 : index
    %326 = vector.load %arg16[%c1_181, %c0_182, %c0_183] : memref<2x32x64xbf16, #tpu.memory_space<vmem>>, vector<1x32x64xbf16>
    %327 = vector.shape_cast %326 : vector<1x32x64xbf16> to vector<32x64xbf16>
    %c1_184 = arith.constant 1 : index
    %c0_185 = arith.constant 0 : index
    %c0_186 = arith.constant 0 : index
    %328 = vector.load %arg17[%c1_184, %c0_185, %c0_186] : memref<2x1x64xf32, #tpu.memory_space<vmem>>, vector<1x1x64xf32>
    %329 = vector.shape_cast %328 : vector<1x1x64xf32> to vector<1x64xf32>
    %c1_187 = arith.constant 1 : index
    %c0_188 = arith.constant 0 : index
    %c0_189 = arith.constant 0 : index
    %330 = vector.load %arg18[%c1_187, %c0_188, %c0_189] : memref<2x64x32xbf16, #tpu.memory_space<vmem>>, vector<1x64x32xbf16>
    %331 = vector.shape_cast %330 : vector<1x64x32xbf16> to vector<64x32xbf16>
    %c1_190 = arith.constant 1 : index
    %c0_191 = arith.constant 0 : index
    %c0_192 = arith.constant 0 : index
    %332 = vector.load %arg19[%c1_190, %c0_191, %c0_192] : memref<2x1x32xf32, #tpu.memory_space<vmem>>, vector<1x1x32xf32>
    %333 = vector.shape_cast %332 : vector<1x1x32xf32> to vector<1x32xf32>
    %cst_193 = arith.constant dense<0.000000e+00> : vector<5xf32>
    %334 = vector.multi_reduction <add>, %171, %cst_193 [1] : vector<5x32xf32> to vector<5xf32>
    %335 = vector.shape_cast %334 : vector<5xf32> to vector<5x1xf32>
    %cst_194 = arith.constant 3.200000e+01 : f32
    %336 = vector.broadcast %cst_194 : f32 to vector<5x1xf32>
    %337 = arith.divf %335, %336 : vector<5x1xf32>
    %338 = arith.mulf %171, %171 : vector<5x32xf32>
    %cst_195 = arith.constant dense<0.000000e+00> : vector<5xf32>
    %339 = vector.multi_reduction <add>, %338, %cst_195 [1] : vector<5x32xf32> to vector<5xf32>
    %340 = vector.shape_cast %339 : vector<5xf32> to vector<5x1xf32>
    %cst_196 = arith.constant 3.200000e+01 : f32
    %341 = vector.broadcast %cst_196 : f32 to vector<5x1xf32>
    %342 = arith.divf %340, %341 : vector<5x1xf32>
    %343 = arith.mulf %337, %337 : vector<5x1xf32>
    %344 = arith.subf %342, %343 : vector<5x1xf32>
    %345 = vector.broadcast %337 : vector<5x1xf32> to vector<5x32xf32>
    %346 = arith.subf %171, %345 : vector<5x32xf32>
    %cst_197 = arith.constant 9.99999997E-7 : f32
    %347 = vector.broadcast %cst_197 : f32 to vector<5x1xf32>
    %348 = arith.addf %344, %347 : vector<5x1xf32>
    %349 = math.rsqrt %348 : vector<5x1xf32>
    %350 = vector.broadcast %349 : vector<5x1xf32> to vector<5x32xf32>
    %351 = arith.mulf %346, %350 : vector<5x32xf32>
    %352 = vector.broadcast %303 : vector<1x32xf32> to vector<5x32xf32>
    %353 = arith.mulf %351, %352 : vector<5x32xf32>
    %354 = vector.broadcast %305 : vector<1x32xf32> to vector<5x32xf32>
    %355 = arith.addf %353, %354 : vector<5x32xf32>
    %356 = arith.truncf %355 : vector<5x32xf32> to vector<5x32xbf16>
    %357 = vector.shape_cast %356 : vector<5x32xbf16> to vector<1x5x32xbf16>
    %358 = vector.shape_cast %357 : vector<1x5x32xbf16> to vector<1x5x32xbf16>
    %359 = vector.broadcast %358 : vector<1x5x32xbf16> to vector<4x5x32xbf16>
    "tpu.trace_start"() <{level = 10 : i32, message = "hsd,hde->hse"}> : () -> ()
    %cst_198 = arith.constant dense<0.000000e+00> : vector<4x5x8xf32>
    %360 = tpu.matmul %359, %307, %cst_198 {dimension_numbers = #tpu.dot_dimension_numbers<[2], [1], [1], [2], [0, 0, 0, 1, 1, 2], [0], [0]>} : vector<4x5x32xbf16>, vector<4x32x8xbf16>, vector<4x5x8xf32> -> vector<4x5x8xf32>
    "tpu.trace_stop"() : () -> ()
    %361 = vector.broadcast %309 : vector<4x1x8xf32> to vector<4x5x8xf32>
    %362 = arith.addf %360, %361 : vector<4x5x8xf32>
    "tpu.trace_start"() <{level = 10 : i32, message = "hsd,hde->hse"}> : () -> ()
    %cst_199 = arith.constant dense<0.000000e+00> : vector<4x5x8xf32>
    %363 = tpu.matmul %359, %311, %cst_199 {dimension_numbers = #tpu.dot_dimension_numbers<[2], [1], [1], [2], [0, 0, 0, 1, 1, 2], [0], [0]>} : vector<4x5x32xbf16>, vector<4x32x8xbf16>, vector<4x5x8xf32> -> vector<4x5x8xf32>
    "tpu.trace_stop"() : () -> ()
    %364 = vector.broadcast %313 : vector<4x1x8xf32> to vector<4x5x8xf32>
    %365 = arith.addf %363, %364 : vector<4x5x8xf32>
    "tpu.trace_start"() <{level = 10 : i32, message = "hsd,hde->hse"}> : () -> ()
    %cst_200 = arith.constant dense<0.000000e+00> : vector<4x5x8xf32>
    %366 = tpu.matmul %359, %315, %cst_200 {dimension_numbers = #tpu.dot_dimension_numbers<[2], [1], [1], [2], [0, 0, 0, 1, 1, 2], [0], [0]>} : vector<4x5x32xbf16>, vector<4x32x8xbf16>, vector<4x5x8xf32> -> vector<4x5x8xf32>
    "tpu.trace_stop"() : () -> ()
    %367 = vector.broadcast %317 : vector<4x1x8xf32> to vector<4x5x8xf32>
    %368 = arith.addf %366, %367 : vector<4x5x8xf32>
    %369 = arith.truncf %362 : vector<4x5x8xf32> to vector<4x5x8xbf16>
    %370 = arith.truncf %365 : vector<4x5x8xf32> to vector<4x5x8xbf16>
    "tpu.trace_start"() <{level = 10 : i32, message = "hqd,hkd->hqk"}> : () -> ()
    %cst_201 = arith.constant dense<0.000000e+00> : vector<4x5x5xf32>
    %371 = tpu.matmul %369, %370, %cst_201 {dimension_numbers = #tpu.dot_dimension_numbers<[2], [2], [1], [1], [0, 0, 0, 1, 1, 1], [0], [0]>} : vector<4x5x8xbf16>, vector<4x5x8xbf16>, vector<4x5x5xf32> -> vector<4x5x5xf32>
    "tpu.trace_stop"() : () -> ()
    %cst_202 = arith.constant 0.353553385 : f32
    %372 = vector.broadcast %cst_202 : f32 to vector<4x5x5xf32>
    %373 = arith.mulf %371, %372 : vector<4x5x5xf32>
    %cst_203 = arith.constant dense<0xFF800000> : vector<4x5xf32>
    %374 = vector.multi_reduction <maximumf>, %373, %cst_203 [2] : vector<4x5x5xf32> to vector<4x5xf32>
    %375 = vector.shape_cast %374 : vector<4x5xf32> to vector<4x5x1xf32>
    %376 = vector.broadcast %375 : vector<4x5x1xf32> to vector<4x5x5xf32>
    %377 = arith.subf %373, %376 : vector<4x5x5xf32>
    %378 = math.exp %377 : vector<4x5x5xf32>
    %cst_204 = arith.constant dense<0.000000e+00> : vector<4x5xf32>
    %379 = vector.multi_reduction <add>, %378, %cst_204 [2] : vector<4x5x5xf32> to vector<4x5xf32>
    %380 = vector.shape_cast %379 : vector<4x5xf32> to vector<4x5x1xf32>
    %381 = tpu.reciprocal %380 {approx = true} : vector<4x5x1xf32> -> vector<4x5x1xf32>
    %382 = vector.broadcast %381 : vector<4x5x1xf32> to vector<4x5x5xf32>
    %383 = arith.mulf %378, %382 : vector<4x5x5xf32>
    %384 = arith.truncf %383 : vector<4x5x5xf32> to vector<4x5x5xbf16>
    %385 = arith.truncf %368 : vector<4x5x8xf32> to vector<4x5x8xbf16>
    "tpu.trace_start"() <{level = 10 : i32, message = "hqk,hkd->hqd"}> : () -> ()
    %cst_205 = arith.constant dense<0.000000e+00> : vector<4x5x8xf32>
    %386 = tpu.matmul %384, %385, %cst_205 {dimension_numbers = #tpu.dot_dimension_numbers<[2], [1], [1], [2], [0, 0, 0, 1, 1, 2], [0], [0]>} : vector<4x5x5xbf16>, vector<4x5x8xbf16>, vector<4x5x8xf32> -> vector<4x5x8xf32>
    "tpu.trace_stop"() : () -> ()
    %387 = arith.truncf %386 : vector<4x5x8xf32> to vector<4x5x8xbf16>
    "tpu.trace_start"() <{level = 10 : i32, message = "hsd,hde->hse"}> : () -> ()
    %cst_206 = arith.constant dense<0.000000e+00> : vector<4x5x32xf32>
    %388 = tpu.matmul %387, %319, %cst_206 {dimension_numbers = #tpu.dot_dimension_numbers<[2], [1], [1], [2], [0, 0, 0, 1, 1, 2], [0], [0]>} : vector<4x5x8xbf16>, vector<4x8x32xbf16>, vector<4x5x32xf32> -> vector<4x5x32xf32>
    "tpu.trace_stop"() : () -> ()
    %cst_207 = arith.constant dense<0.000000e+00> : vector<5x32xf32>
    %389 = vector.multi_reduction <add>, %388, %cst_207 [0] : vector<4x5x32xf32> to vector<5x32xf32>
    %390 = arith.addf %171, %389 : vector<5x32xf32>
    %391 = vector.broadcast %321 : vector<1x32xf32> to vector<5x32xf32>
    %392 = arith.addf %390, %391 : vector<5x32xf32>
    %cst_208 = arith.constant dense<0.000000e+00> : vector<5xf32>
    %393 = vector.multi_reduction <add>, %392, %cst_208 [1] : vector<5x32xf32> to vector<5xf32>
    %394 = vector.shape_cast %393 : vector<5xf32> to vector<5x1xf32>
    %cst_209 = arith.constant 3.200000e+01 : f32
    %395 = vector.broadcast %cst_209 : f32 to vector<5x1xf32>
    %396 = arith.divf %394, %395 : vector<5x1xf32>
    %397 = arith.mulf %392, %392 : vector<5x32xf32>
    %cst_210 = arith.constant dense<0.000000e+00> : vector<5xf32>
    %398 = vector.multi_reduction <add>, %397, %cst_210 [1] : vector<5x32xf32> to vector<5xf32>
    %399 = vector.shape_cast %398 : vector<5xf32> to vector<5x1xf32>
    %cst_211 = arith.constant 3.200000e+01 : f32
    %400 = vector.broadcast %cst_211 : f32 to vector<5x1xf32>
    %401 = arith.divf %399, %400 : vector<5x1xf32>
    %402 = arith.mulf %396, %396 : vector<5x1xf32>
    %403 = arith.subf %401, %402 : vector<5x1xf32>
    %404 = vector.broadcast %396 : vector<5x1xf32> to vector<5x32xf32>
    %405 = arith.subf %392, %404 : vector<5x32xf32>
    %cst_212 = arith.constant 9.99999997E-7 : f32
    %406 = vector.broadcast %cst_212 : f32 to vector<5x1xf32>
    %407 = arith.addf %403, %406 : vector<5x1xf32>
    %408 = math.rsqrt %407 : vector<5x1xf32>
    %409 = vector.broadcast %408 : vector<5x1xf32> to vector<5x32xf32>
    %410 = arith.mulf %405, %409 : vector<5x32xf32>
    %411 = vector.broadcast %323 : vector<1x32xf32> to vector<5x32xf32>
    %412 = arith.mulf %410, %411 : vector<5x32xf32>
    %413 = vector.broadcast %325 : vector<1x32xf32> to vector<5x32xf32>
    %414 = arith.addf %412, %413 : vector<5x32xf32>
    %415 = arith.truncf %414 : vector<5x32xf32> to vector<5x32xbf16>
    %cst_213 = arith.constant dense<0.000000e+00> : vector<5x64xf32>
    %416 = tpu.matmul %415, %327, %cst_213 {dimension_numbers = #tpu.dot_dimension_numbers<[1], [0], [0], [1], [0, 0, 1, 1], [], []>} : vector<5x32xbf16>, vector<32x64xbf16>, vector<5x64xf32> -> vector<5x64xf32>
    %417 = vector.broadcast %329 : vector<1x64xf32> to vector<5x64xf32>
    %418 = arith.addf %416, %417 : vector<5x64xf32>
    %cst_214 = arith.constant 5.000000e-01 : f32
    %419 = vector.broadcast %cst_214 : f32 to vector<5x64xf32>
    %420 = arith.mulf %419, %418 : vector<5x64xf32>
    %cst_215 = arith.constant 0.707106769 : f32
    %421 = vector.broadcast %cst_215 : f32 to vector<5x64xf32>
    %422 = arith.mulf %418, %421 : vector<5x64xf32>
    %423 = math.absf %422 : vector<5x64xf32>
    %cst_216 = arith.constant 0.327591091 : f32
    %424 = vector.broadcast %cst_216 : f32 to vector<5x64xf32>
    %425 = arith.mulf %424, %423 : vector<5x64xf32>
    %cst_217 = arith.constant 1.000000e+00 : f32
    %426 = vector.broadcast %cst_217 : f32 to vector<5x64xf32>
    %427 = arith.addf %426, %425 : vector<5x64xf32>
    %cst_218 = arith.constant 1.000000e+00 : f32
    %428 = vector.broadcast %cst_218 : f32 to vector<5x64xf32>
    %429 = arith.divf %428, %427 : vector<5x64xf32>
    %cst_219 = arith.constant 1.06140542 : f32
    %430 = vector.broadcast %cst_219 : f32 to vector<5x64xf32>
    %431 = arith.mulf %430, %429 : vector<5x64xf32>
    %cst_220 = arith.constant -1.45315206 : f32
    %432 = vector.broadcast %cst_220 : f32 to vector<5x64xf32>
    %433 = arith.addf %431, %432 : vector<5x64xf32>
    %434 = arith.mulf %433, %429 : vector<5x64xf32>
    %cst_221 = arith.constant 1.42141378 : f32
    %435 = vector.broadcast %cst_221 : f32 to vector<5x64xf32>
    %436 = arith.addf %434, %435 : vector<5x64xf32>
    %437 = arith.mulf %436, %429 : vector<5x64xf32>
    %cst_222 = arith.constant -0.284496725 : f32
    %438 = vector.broadcast %cst_222 : f32 to vector<5x64xf32>
    %439 = arith.addf %437, %438 : vector<5x64xf32>
    %440 = arith.mulf %439, %429 : vector<5x64xf32>
    %cst_223 = arith.constant 0.254829586 : f32
    %441 = vector.broadcast %cst_223 : f32 to vector<5x64xf32>
    %442 = arith.addf %440, %441 : vector<5x64xf32>
    %443 = arith.mulf %442, %429 : vector<5x64xf32>
    %cst_224 = arith.constant 0.000000e+00 : f32
    %444 = vector.broadcast %cst_224 : f32 to vector<5x64xf32>
    %445 = arith.subf %444, %423 : vector<5x64xf32>
    %446 = arith.mulf %445, %423 : vector<5x64xf32>
    %447 = math.exp %446 : vector<5x64xf32>
    %448 = arith.mulf %443, %447 : vector<5x64xf32>
    %cst_225 = arith.constant 1.000000e+00 : f32
    %449 = vector.broadcast %cst_225 : f32 to vector<5x64xf32>
    %450 = arith.subf %449, %448 : vector<5x64xf32>
    %cst_226 = arith.constant 0.000000e+00 : f32
    %451 = vector.broadcast %cst_226 : f32 to vector<5x64xf32>
    %452 = arith.cmpf oge, %422, %451 : vector<5x64xf32>
    %cst_227 = arith.constant 0.000000e+00 : f32
    %453 = vector.broadcast %cst_227 : f32 to vector<5x64xf32>
    %454 = arith.subf %453, %450 : vector<5x64xf32>
    %455 = arith.select %452, %450, %454 : vector<5x64xi1>, vector<5x64xf32>
    %cst_228 = arith.constant 1.000000e+00 : f32
    %456 = vector.broadcast %cst_228 : f32 to vector<5x64xf32>
    %457 = arith.addf %456, %455 : vector<5x64xf32>
    %458 = arith.mulf %420, %457 : vector<5x64xf32>
    %459 = arith.truncf %458 : vector<5x64xf32> to vector<5x64xbf16>
    %cst_229 = arith.constant dense<0.000000e+00> : vector<5x32xf32>
    %460 = tpu.matmul %459, %331, %cst_229 {dimension_numbers = #tpu.dot_dimension_numbers<[1], [0], [0], [1], [0, 0, 1, 1], [], []>} : vector<5x64xbf16>, vector<64x32xbf16>, vector<5x32xf32> -> vector<5x32xf32>
    %461 = arith.addf %392, %460 : vector<5x32xf32>
    %462 = vector.broadcast %333 : vector<1x32xf32> to vector<5x32xf32>
    %463 = arith.addf %461, %462 : vector<5x32xf32>
    %cst_230 = arith.constant dense<0.000000e+00> : vector<5xf32>
    %464 = vector.multi_reduction <add>, %301, %cst_230 [1] : vector<5x32xf32> to vector<5xf32>
    %465 = vector.shape_cast %464 : vector<5xf32> to vector<5x1xf32>
    %cst_231 = arith.constant 3.200000e+01 : f32
    %466 = vector.broadcast %cst_231 : f32 to vector<5x1xf32>
    %467 = arith.divf %465, %466 : vector<5x1xf32>
    %468 = arith.mulf %301, %301 : vector<5x32xf32>
    %cst_232 = arith.constant dense<0.000000e+00> : vector<5xf32>
    %469 = vector.multi_reduction <add>, %468, %cst_232 [1] : vector<5x32xf32> to vector<5xf32>
    %470 = vector.shape_cast %469 : vector<5xf32> to vector<5x1xf32>
    %cst_233 = arith.constant 3.200000e+01 : f32
    %471 = vector.broadcast %cst_233 : f32 to vector<5x1xf32>
    %472 = arith.divf %470, %471 : vector<5x1xf32>
    %473 = arith.mulf %467, %467 : vector<5x1xf32>
    %474 = arith.subf %472, %473 : vector<5x1xf32>
    %475 = vector.broadcast %467 : vector<5x1xf32> to vector<5x32xf32>
    %476 = arith.subf %301, %475 : vector<5x32xf32>
    %cst_234 = arith.constant 9.99999997E-7 : f32
    %477 = vector.broadcast %cst_234 : f32 to vector<5x1xf32>
    %478 = arith.addf %474, %477 : vector<5x1xf32>
    %479 = math.rsqrt %478 : vector<5x1xf32>
    %480 = vector.broadcast %479 : vector<5x1xf32> to vector<5x32xf32>
    %481 = arith.mulf %476, %480 : vector<5x32xf32>
    %482 = vector.broadcast %303 : vector<1x32xf32> to vector<5x32xf32>
    %483 = arith.mulf %481, %482 : vector<5x32xf32>
    %484 = vector.broadcast %305 : vector<1x32xf32> to vector<5x32xf32>
    %485 = arith.addf %483, %484 : vector<5x32xf32>
    %486 = arith.truncf %485 : vector<5x32xf32> to vector<5x32xbf16>
    %487 = vector.shape_cast %486 : vector<5x32xbf16> to vector<1x5x32xbf16>
    %488 = vector.shape_cast %487 : vector<1x5x32xbf16> to vector<1x5x32xbf16>
    %489 = vector.broadcast %488 : vector<1x5x32xbf16> to vector<4x5x32xbf16>
    "tpu.trace_start"() <{level = 10 : i32, message = "hsd,hde->hse"}> : () -> ()
    %cst_235 = arith.constant dense<0.000000e+00> : vector<4x5x8xf32>
    %490 = tpu.matmul %489, %307, %cst_235 {dimension_numbers = #tpu.dot_dimension_numbers<[2], [1], [1], [2], [0, 0, 0, 1, 1, 2], [0], [0]>} : vector<4x5x32xbf16>, vector<4x32x8xbf16>, vector<4x5x8xf32> -> vector<4x5x8xf32>
    "tpu.trace_stop"() : () -> ()
    %491 = vector.broadcast %309 : vector<4x1x8xf32> to vector<4x5x8xf32>
    %492 = arith.addf %490, %491 : vector<4x5x8xf32>
    "tpu.trace_start"() <{level = 10 : i32, message = "hsd,hde->hse"}> : () -> ()
    %cst_236 = arith.constant dense<0.000000e+00> : vector<4x5x8xf32>
    %493 = tpu.matmul %489, %311, %cst_236 {dimension_numbers = #tpu.dot_dimension_numbers<[2], [1], [1], [2], [0, 0, 0, 1, 1, 2], [0], [0]>} : vector<4x5x32xbf16>, vector<4x32x8xbf16>, vector<4x5x8xf32> -> vector<4x5x8xf32>
    "tpu.trace_stop"() : () -> ()
    %494 = vector.broadcast %313 : vector<4x1x8xf32> to vector<4x5x8xf32>
    %495 = arith.addf %493, %494 : vector<4x5x8xf32>
    "tpu.trace_start"() <{level = 10 : i32, message = "hsd,hde->hse"}> : () -> ()
    %cst_237 = arith.constant dense<0.000000e+00> : vector<4x5x8xf32>
    %496 = tpu.matmul %489, %315, %cst_237 {dimension_numbers = #tpu.dot_dimension_numbers<[2], [1], [1], [2], [0, 0, 0, 1, 1, 2], [0], [0]>} : vector<4x5x32xbf16>, vector<4x32x8xbf16>, vector<4x5x8xf32> -> vector<4x5x8xf32>
    "tpu.trace_stop"() : () -> ()
    %497 = vector.broadcast %317 : vector<4x1x8xf32> to vector<4x5x8xf32>
    %498 = arith.addf %496, %497 : vector<4x5x8xf32>
    %499 = arith.truncf %492 : vector<4x5x8xf32> to vector<4x5x8xbf16>
    %500 = arith.truncf %495 : vector<4x5x8xf32> to vector<4x5x8xbf16>
    "tpu.trace_start"() <{level = 10 : i32, message = "hqd,hkd->hqk"}> : () -> ()
    %cst_238 = arith.constant dense<0.000000e+00> : vector<4x5x5xf32>
    %501 = tpu.matmul %499, %500, %cst_238 {dimension_numbers = #tpu.dot_dimension_numbers<[2], [2], [1], [1], [0, 0, 0, 1, 1, 1], [0], [0]>} : vector<4x5x8xbf16>, vector<4x5x8xbf16>, vector<4x5x5xf32> -> vector<4x5x5xf32>
    "tpu.trace_stop"() : () -> ()
    %cst_239 = arith.constant 0.353553385 : f32
    %502 = vector.broadcast %cst_239 : f32 to vector<4x5x5xf32>
    %503 = arith.mulf %501, %502 : vector<4x5x5xf32>
    %cst_240 = arith.constant dense<0xFF800000> : vector<4x5xf32>
    %504 = vector.multi_reduction <maximumf>, %503, %cst_240 [2] : vector<4x5x5xf32> to vector<4x5xf32>
    %505 = vector.shape_cast %504 : vector<4x5xf32> to vector<4x5x1xf32>
    %506 = vector.broadcast %505 : vector<4x5x1xf32> to vector<4x5x5xf32>
    %507 = arith.subf %503, %506 : vector<4x5x5xf32>
    %508 = math.exp %507 : vector<4x5x5xf32>
    %cst_241 = arith.constant dense<0.000000e+00> : vector<4x5xf32>
    %509 = vector.multi_reduction <add>, %508, %cst_241 [2] : vector<4x5x5xf32> to vector<4x5xf32>
    %510 = vector.shape_cast %509 : vector<4x5xf32> to vector<4x5x1xf32>
    %511 = tpu.reciprocal %510 {approx = true} : vector<4x5x1xf32> -> vector<4x5x1xf32>
    %512 = vector.broadcast %511 : vector<4x5x1xf32> to vector<4x5x5xf32>
    %513 = arith.mulf %508, %512 : vector<4x5x5xf32>
    %514 = arith.truncf %513 : vector<4x5x5xf32> to vector<4x5x5xbf16>
    %515 = arith.truncf %498 : vector<4x5x8xf32> to vector<4x5x8xbf16>
    "tpu.trace_start"() <{level = 10 : i32, message = "hqk,hkd->hqd"}> : () -> ()
    %cst_242 = arith.constant dense<0.000000e+00> : vector<4x5x8xf32>
    %516 = tpu.matmul %514, %515, %cst_242 {dimension_numbers = #tpu.dot_dimension_numbers<[2], [1], [1], [2], [0, 0, 0, 1, 1, 2], [0], [0]>} : vector<4x5x5xbf16>, vector<4x5x8xbf16>, vector<4x5x8xf32> -> vector<4x5x8xf32>
    "tpu.trace_stop"() : () -> ()
    %517 = arith.truncf %516 : vector<4x5x8xf32> to vector<4x5x8xbf16>
    "tpu.trace_start"() <{level = 10 : i32, message = "hsd,hde->hse"}> : () -> ()
    %cst_243 = arith.constant dense<0.000000e+00> : vector<4x5x32xf32>
    %518 = tpu.matmul %517, %319, %cst_243 {dimension_numbers = #tpu.dot_dimension_numbers<[2], [1], [1], [2], [0, 0, 0, 1, 1, 2], [0], [0]>} : vector<4x5x8xbf16>, vector<4x8x32xbf16>, vector<4x5x32xf32> -> vector<4x5x32xf32>
    "tpu.trace_stop"() : () -> ()
    %cst_244 = arith.constant dense<0.000000e+00> : vector<5x32xf32>
    %519 = vector.multi_reduction <add>, %518, %cst_244 [0] : vector<4x5x32xf32> to vector<5x32xf32>
    %520 = arith.addf %301, %519 : vector<5x32xf32>
    %521 = vector.broadcast %321 : vector<1x32xf32> to vector<5x32xf32>
    %522 = arith.addf %520, %521 : vector<5x32xf32>
    %cst_245 = arith.constant dense<0.000000e+00> : vector<5xf32>
    %523 = vector.multi_reduction <add>, %522, %cst_245 [1] : vector<5x32xf32> to vector<5xf32>
    %524 = vector.shape_cast %523 : vector<5xf32> to vector<5x1xf32>
    %cst_246 = arith.constant 3.200000e+01 : f32
    %525 = vector.broadcast %cst_246 : f32 to vector<5x1xf32>
    %526 = arith.divf %524, %525 : vector<5x1xf32>
    %527 = arith.mulf %522, %522 : vector<5x32xf32>
    %cst_247 = arith.constant dense<0.000000e+00> : vector<5xf32>
    %528 = vector.multi_reduction <add>, %527, %cst_247 [1] : vector<5x32xf32> to vector<5xf32>
    %529 = vector.shape_cast %528 : vector<5xf32> to vector<5x1xf32>
    %cst_248 = arith.constant 3.200000e+01 : f32
    %530 = vector.broadcast %cst_248 : f32 to vector<5x1xf32>
    %531 = arith.divf %529, %530 : vector<5x1xf32>
    %532 = arith.mulf %526, %526 : vector<5x1xf32>
    %533 = arith.subf %531, %532 : vector<5x1xf32>
    %534 = vector.broadcast %526 : vector<5x1xf32> to vector<5x32xf32>
    %535 = arith.subf %522, %534 : vector<5x32xf32>
    %cst_249 = arith.constant 9.99999997E-7 : f32
    %536 = vector.broadcast %cst_249 : f32 to vector<5x1xf32>
    %537 = arith.addf %533, %536 : vector<5x1xf32>
    %538 = math.rsqrt %537 : vector<5x1xf32>
    %539 = vector.broadcast %538 : vector<5x1xf32> to vector<5x32xf32>
    %540 = arith.mulf %535, %539 : vector<5x32xf32>
    %541 = vector.broadcast %323 : vector<1x32xf32> to vector<5x32xf32>
    %542 = arith.mulf %540, %541 : vector<5x32xf32>
    %543 = vector.broadcast %325 : vector<1x32xf32> to vector<5x32xf32>
    %544 = arith.addf %542, %543 : vector<5x32xf32>
    %545 = arith.truncf %544 : vector<5x32xf32> to vector<5x32xbf16>
    %cst_250 = arith.constant dense<0.000000e+00> : vector<5x64xf32>
    %546 = tpu.matmul %545, %327, %cst_250 {dimension_numbers = #tpu.dot_dimension_numbers<[1], [0], [0], [1], [0, 0, 1, 1], [], []>} : vector<5x32xbf16>, vector<32x64xbf16>, vector<5x64xf32> -> vector<5x64xf32>
    %547 = vector.broadcast %329 : vector<1x64xf32> to vector<5x64xf32>
    %548 = arith.addf %546, %547 : vector<5x64xf32>
    %cst_251 = arith.constant 5.000000e-01 : f32
    %549 = vector.broadcast %cst_251 : f32 to vector<5x64xf32>
    %550 = arith.mulf %549, %548 : vector<5x64xf32>
    %cst_252 = arith.constant 0.707106769 : f32
    %551 = vector.broadcast %cst_252 : f32 to vector<5x64xf32>
    %552 = arith.mulf %548, %551 : vector<5x64xf32>
    %553 = math.absf %552 : vector<5x64xf32>
    %cst_253 = arith.constant 0.327591091 : f32
    %554 = vector.broadcast %cst_253 : f32 to vector<5x64xf32>
    %555 = arith.mulf %554, %553 : vector<5x64xf32>
    %cst_254 = arith.constant 1.000000e+00 : f32
    %556 = vector.broadcast %cst_254 : f32 to vector<5x64xf32>
    %557 = arith.addf %556, %555 : vector<5x64xf32>
    %cst_255 = arith.constant 1.000000e+00 : f32
    %558 = vector.broadcast %cst_255 : f32 to vector<5x64xf32>
    %559 = arith.divf %558, %557 : vector<5x64xf32>
    %cst_256 = arith.constant 1.06140542 : f32
    %560 = vector.broadcast %cst_256 : f32 to vector<5x64xf32>
    %561 = arith.mulf %560, %559 : vector<5x64xf32>
    %cst_257 = arith.constant -1.45315206 : f32
    %562 = vector.broadcast %cst_257 : f32 to vector<5x64xf32>
    %563 = arith.addf %561, %562 : vector<5x64xf32>
    %564 = arith.mulf %563, %559 : vector<5x64xf32>
    %cst_258 = arith.constant 1.42141378 : f32
    %565 = vector.broadcast %cst_258 : f32 to vector<5x64xf32>
    %566 = arith.addf %564, %565 : vector<5x64xf32>
    %567 = arith.mulf %566, %559 : vector<5x64xf32>
    %cst_259 = arith.constant -0.284496725 : f32
    %568 = vector.broadcast %cst_259 : f32 to vector<5x64xf32>
    %569 = arith.addf %567, %568 : vector<5x64xf32>
    %570 = arith.mulf %569, %559 : vector<5x64xf32>
    %cst_260 = arith.constant 0.254829586 : f32
    %571 = vector.broadcast %cst_260 : f32 to vector<5x64xf32>
    %572 = arith.addf %570, %571 : vector<5x64xf32>
    %573 = arith.mulf %572, %559 : vector<5x64xf32>
    %cst_261 = arith.constant 0.000000e+00 : f32
    %574 = vector.broadcast %cst_261 : f32 to vector<5x64xf32>
    %575 = arith.subf %574, %553 : vector<5x64xf32>
    %576 = arith.mulf %575, %553 : vector<5x64xf32>
    %577 = math.exp %576 : vector<5x64xf32>
    %578 = arith.mulf %573, %577 : vector<5x64xf32>
    %cst_262 = arith.constant 1.000000e+00 : f32
    %579 = vector.broadcast %cst_262 : f32 to vector<5x64xf32>
    %580 = arith.subf %579, %578 : vector<5x64xf32>
    %cst_263 = arith.constant 0.000000e+00 : f32
    %581 = vector.broadcast %cst_263 : f32 to vector<5x64xf32>
    %582 = arith.cmpf oge, %552, %581 : vector<5x64xf32>
    %cst_264 = arith.constant 0.000000e+00 : f32
    %583 = vector.broadcast %cst_264 : f32 to vector<5x64xf32>
    %584 = arith.subf %583, %580 : vector<5x64xf32>
    %585 = arith.select %582, %580, %584 : vector<5x64xi1>, vector<5x64xf32>
    %cst_265 = arith.constant 1.000000e+00 : f32
    %586 = vector.broadcast %cst_265 : f32 to vector<5x64xf32>
    %587 = arith.addf %586, %585 : vector<5x64xf32>
    %588 = arith.mulf %550, %587 : vector<5x64xf32>
    %589 = arith.truncf %588 : vector<5x64xf32> to vector<5x64xbf16>
    %cst_266 = arith.constant dense<0.000000e+00> : vector<5x32xf32>
    %590 = tpu.matmul %589, %331, %cst_266 {dimension_numbers = #tpu.dot_dimension_numbers<[1], [0], [0], [1], [0, 0, 1, 1], [], []>} : vector<5x64xbf16>, vector<64x32xbf16>, vector<5x32xf32> -> vector<5x32xf32>
    %591 = arith.addf %522, %590 : vector<5x32xf32>
    %592 = vector.broadcast %333 : vector<1x32xf32> to vector<5x32xf32>
    %593 = arith.addf %591, %592 : vector<5x32xf32>
    %c0_267 = arith.constant 0 : index
    %c0_268 = arith.constant 0 : index
    %594 = vector.load %arg20[%c0_267, %c0_268] : memref<1x32xf32, #tpu.memory_space<vmem>>, vector<1x32xf32>
    %c0_269 = arith.constant 0 : index
    %c0_270 = arith.constant 0 : index
    %595 = vector.load %arg21[%c0_269, %c0_270] : memref<1x32xf32, #tpu.memory_space<vmem>>, vector<1x32xf32>
    %c0_271 = arith.constant 0 : index
    %c0_272 = arith.constant 0 : index
    %596 = vector.load %arg22[%c0_271, %c0_272] : memref<32x2xbf16, #tpu.memory_space<vmem>>, vector<32x2xbf16>
    %c0_273 = arith.constant 0 : index
    %c0_274 = arith.constant 0 : index
    %597 = vector.load %arg23[%c0_273, %c0_274] : memref<1x2xf32, #tpu.memory_space<vmem>>, vector<1x2xf32>
    %598 = vector.extract_strided_slice %463 {offsets = [0, 0], sizes = [1, 32], strides = [1, 1]} : vector<5x32xf32> to vector<1x32xf32>
    %cst_275 = arith.constant dense<0.000000e+00> : vector<1xf32>
    %599 = vector.multi_reduction <add>, %598, %cst_275 [1] : vector<1x32xf32> to vector<1xf32>
    %600 = vector.shape_cast %599 : vector<1xf32> to vector<1x1xf32>
    %cst_276 = arith.constant 3.200000e+01 : f32
    %601 = vector.broadcast %cst_276 : f32 to vector<1x1xf32>
    %602 = arith.divf %600, %601 : vector<1x1xf32>
    %603 = arith.mulf %598, %598 : vector<1x32xf32>
    %cst_277 = arith.constant dense<0.000000e+00> : vector<1xf32>
    %604 = vector.multi_reduction <add>, %603, %cst_277 [1] : vector<1x32xf32> to vector<1xf32>
    %605 = vector.shape_cast %604 : vector<1xf32> to vector<1x1xf32>
    %cst_278 = arith.constant 3.200000e+01 : f32
    %606 = vector.broadcast %cst_278 : f32 to vector<1x1xf32>
    %607 = arith.divf %605, %606 : vector<1x1xf32>
    %608 = arith.mulf %602, %602 : vector<1x1xf32>
    %609 = arith.subf %607, %608 : vector<1x1xf32>
    %610 = vector.broadcast %602 : vector<1x1xf32> to vector<1x32xf32>
    %611 = arith.subf %598, %610 : vector<1x32xf32>
    %cst_279 = arith.constant 9.99999997E-7 : f32
    %612 = vector.broadcast %cst_279 : f32 to vector<1x1xf32>
    %613 = arith.addf %609, %612 : vector<1x1xf32>
    %614 = math.rsqrt %613 : vector<1x1xf32>
    %615 = vector.broadcast %614 : vector<1x1xf32> to vector<1x32xf32>
    %616 = arith.mulf %611, %615 : vector<1x32xf32>
    %617 = arith.mulf %616, %594 : vector<1x32xf32>
    %618 = arith.addf %617, %595 : vector<1x32xf32>
    %619 = arith.truncf %618 : vector<1x32xf32> to vector<1x32xbf16>
    %cst_280 = arith.constant dense<0.000000e+00> : vector<1x2xf32>
    %620 = tpu.matmul %619, %596, %cst_280 {dimension_numbers = #tpu.dot_dimension_numbers<[1], [0], [0], [1], [0, 0, 1, 1], [], []>} : vector<1x32xbf16>, vector<32x2xbf16>, vector<1x2xf32> -> vector<1x2xf32>
    %621 = arith.addf %620, %597 : vector<1x2xf32>
    %c0_281 = arith.constant 0 : index
    %c0_282 = arith.constant 0 : index
    %c0_283 = arith.constant 0 : index
    %622 = vector.load %arg24[%c0_281, %c0_282, %c0_283] : memref<2x1x2xf32, #tpu.memory_space<vmem>>, vector<1x1x2xf32>
    %623 = vector.shape_cast %622 : vector<1x1x2xf32> to vector<1x2xf32>
    %624 = vector.shape_cast %621 : vector<1x2xf32> to vector<1x1x2xf32>
    tpu.vector_store %arg24[%c0_281, %c0_282, %c0_283], %624 {strides = array<i32>} : memref<2x1x2xf32, #tpu.memory_space<vmem>>, vector<1x1x2xf32>,
    %625 = vector.extract_strided_slice %593 {offsets = [0, 0], sizes = [1, 32], strides = [1, 1]} : vector<5x32xf32> to vector<1x32xf32>
    %cst_284 = arith.constant dense<0.000000e+00> : vector<1xf32>
    %626 = vector.multi_reduction <add>, %625, %cst_284 [1] : vector<1x32xf32> to vector<1xf32>
    %627 = vector.shape_cast %626 : vector<1xf32> to vector<1x1xf32>
    %cst_285 = arith.constant 3.200000e+01 : f32
    %628 = vector.broadcast %cst_285 : f32 to vector<1x1xf32>
    %629 = arith.divf %627, %628 : vector<1x1xf32>
    %630 = arith.mulf %625, %625 : vector<1x32xf32>
    %cst_286 = arith.constant dense<0.000000e+00> : vector<1xf32>
    %631 = vector.multi_reduction <add>, %630, %cst_286 [1] : vector<1x32xf32> to vector<1xf32>
    %632 = vector.shape_cast %631 : vector<1xf32> to vector<1x1xf32>
    %cst_287 = arith.constant 3.200000e+01 : f32
    %633 = vector.broadcast %cst_287 : f32 to vector<1x1xf32>
    %634 = arith.divf %632, %633 : vector<1x1xf32>
    %635 = arith.mulf %629, %629 : vector<1x1xf32>
    %636 = arith.subf %634, %635 : vector<1x1xf32>
    %637 = vector.broadcast %629 : vector<1x1xf32> to vector<1x32xf32>
    %638 = arith.subf %625, %637 : vector<1x32xf32>
    %cst_288 = arith.constant 9.99999997E-7 : f32
    %639 = vector.broadcast %cst_288 : f32 to vector<1x1xf32>
    %640 = arith.addf %636, %639 : vector<1x1xf32>
    %641 = math.rsqrt %640 : vector<1x1xf32>
    %642 = vector.broadcast %641 : vector<1x1xf32> to vector<1x32xf32>
    %643 = arith.mulf %638, %642 : vector<1x32xf32>
    %644 = arith.mulf %643, %594 : vector<1x32xf32>
    %645 = arith.addf %644, %595 : vector<1x32xf32>
    %646 = arith.truncf %645 : vector<1x32xf32> to vector<1x32xbf16>
    %cst_289 = arith.constant dense<0.000000e+00> : vector<1x2xf32>
    %647 = tpu.matmul %646, %596, %cst_289 {dimension_numbers = #tpu.dot_dimension_numbers<[1], [0], [0], [1], [0, 0, 1, 1], [], []>} : vector<1x32xbf16>, vector<32x2xbf16>, vector<1x2xf32> -> vector<1x2xf32>
    %648 = arith.addf %647, %597 : vector<1x2xf32>
    %c1_290 = arith.constant 1 : index
    %c0_291 = arith.constant 0 : index
    %c0_292 = arith.constant 0 : index
    %649 = vector.load %arg24[%c1_290, %c0_291, %c0_292] : memref<2x1x2xf32, #tpu.memory_space<vmem>>, vector<1x1x2xf32>
    %650 = vector.shape_cast %649 : vector<1x1x2xf32> to vector<1x2xf32>
    %651 = vector.shape_cast %648 : vector<1x2xf32> to vector<1x1x2xf32>
    tpu.vector_store %arg24[%c1_290, %c0_291, %c0_292], %651 {strides = array<i32>} : memref<2x1x2xf32, #tpu.memory_space<vmem>>, vector<1x1x2xf32>,
    return
  }
  func.func @transform_0(%arg0: i32) -> (i32, i32, i32) {
    %c0_i32 = arith.constant 0 : i32
    %c0_i32_0 = arith.constant 0 : i32
    %c0_i32_1 = arith.constant 0 : i32
    return %arg0, %c0_i32, %c0_i32_0 : i32, i32, i32
  }
  func.func @transform_1(%arg0: i32) -> (i32, i32) {
    %c0_i32 = arith.constant 0 : i32
    %c0_i32_0 = arith.constant 0 : i32
    %c0_i32_1 = arith.constant 0 : i32
    return %c0_i32, %c0_i32_0 : i32, i32
  }
  func.func @transform_2(%arg0: i32) -> (i32, i32) {
    %c0_i32 = arith.constant 0 : i32
    %c0_i32_0 = arith.constant 0 : i32
    %c0_i32_1 = arith.constant 0 : i32
    return %c0_i32, %c0_i32_0 : i32, i32
  }
  func.func @transform_3(%arg0: i32) -> (i32, i32, i32) {
    %c0_i32 = arith.constant 0 : i32
    %c0_i32_0 = arith.constant 0 : i32
    %c0_i32_1 = arith.constant 0 : i32
    %c0_i32_2 = arith.constant 0 : i32
    return %c0_i32, %c0_i32_0, %c0_i32_1 : i32, i32, i32
  }
  func.func @transform_4(%arg0: i32) -> (i32, i32, i32) {
    %c0_i32 = arith.constant 0 : i32
    %c0_i32_0 = arith.constant 0 : i32
    %c0_i32_1 = arith.constant 0 : i32
    %c0_i32_2 = arith.constant 0 : i32
    return %c0_i32, %c0_i32_0, %c0_i32_1 : i32, i32, i32
  }
  func.func @transform_5(%arg0: i32) -> (i32, i32, i32, i32) {
    %c0_i32 = arith.constant 0 : i32
    %c0_i32_0 = arith.constant 0 : i32
    %c0_i32_1 = arith.constant 0 : i32
    %c0_i32_2 = arith.constant 0 : i32
    %c0_i32_3 = arith.constant 0 : i32
    return %c0_i32, %c0_i32_0, %c0_i32_1, %c0_i32_2 : i32, i32, i32, i32
  }
  func.func @transform_6(%arg0: i32) -> (i32, i32, i32, i32) {
    %c0_i32 = arith.constant 0 : i32
    %c0_i32_0 = arith.constant 0 : i32
    %c0_i32_1 = arith.constant 0 : i32
    %c0_i32_2 = arith.constant 0 : i32
    %c0_i32_3 = arith.constant 0 : i32
    return %c0_i32, %c0_i32_0, %c0_i32_1, %c0_i32_2 : i32, i32, i32, i32
  }
  func.func @transform_7(%arg0: i32) -> (i32, i32, i32, i32) {
    %c0_i32 = arith.constant 0 : i32
    %c0_i32_0 = arith.constant 0 : i32
    %c0_i32_1 = arith.constant 0 : i32
    %c0_i32_2 = arith.constant 0 : i32
    %c0_i32_3 = arith.constant 0 : i32
    return %c0_i32, %c0_i32_0, %c0_i32_1, %c0_i32_2 : i32, i32, i32, i32
  }
  func.func @transform_8(%arg0: i32) -> (i32, i32, i32, i32) {
    %c0_i32 = arith.constant 0 : i32
    %c0_i32_0 = arith.constant 0 : i32
    %c0_i32_1 = arith.constant 0 : i32
    %c0_i32_2 = arith.constant 0 : i32
    %c0_i32_3 = arith.constant 0 : i32
    return %c0_i32, %c0_i32_0, %c0_i32_1, %c0_i32_2 : i32, i32, i32, i32
  }
  func.func @transform_9(%arg0: i32) -> (i32, i32, i32, i32) {
    %c0_i32 = arith.constant 0 : i32
    %c0_i32_0 = arith.constant 0 : i32
    %c0_i32_1 = arith.constant 0 : i32
    %c0_i32_2 = arith.constant 0 : i32
    %c0_i32_3 = arith.constant 0 : i32
    return %c0_i32, %c0_i32_0, %c0_i32_1, %c0_i32_2 : i32, i32, i32, i32
  }
  func.func @transform_10(%arg0: i32) -> (i32, i32, i32, i32) {
    %c0_i32 = arith.constant 0 : i32
    %c0_i32_0 = arith.constant 0 : i32
    %c0_i32_1 = arith.constant 0 : i32
    %c0_i32_2 = arith.constant 0 : i32
    %c0_i32_3 = arith.constant 0 : i32
    return %c0_i32, %c0_i32_0, %c0_i32_1, %c0_i32_2 : i32, i32, i32, i32
  }
  func.func @transform_11(%arg0: i32) -> (i32, i32, i32, i32) {
    %c0_i32 = arith.constant 0 : i32
    %c0_i32_0 = arith.constant 0 : i32
    %c0_i32_1 = arith.constant 0 : i32
    %c0_i32_2 = arith.constant 0 : i32
    %c0_i32_3 = arith.constant 0 : i32
    return %c0_i32, %c0_i32_0, %c0_i32_1, %c0_i32_2 : i32, i32, i32, i32
  }
  func.func @transform_12(%arg0: i32) -> (i32, i32, i32) {
    %c0_i32 = arith.constant 0 : i32
    %c0_i32_0 = arith.constant 0 : i32
    %c0_i32_1 = arith.constant 0 : i32
    %c0_i32_2 = arith.constant 0 : i32
    return %c0_i32, %c0_i32_0, %c0_i32_1 : i32, i32, i32
  }
  func.func @transform_13(%arg0: i32) -> (i32, i32, i32) {
    %c0_i32 = arith.constant 0 : i32
    %c0_i32_0 = arith.constant 0 : i32
    %c0_i32_1 = arith.constant 0 : i32
    %c0_i32_2 = arith.constant 0 : i32
    return %c0_i32, %c0_i32_0, %c0_i32_1 : i32, i32, i32
  }
  func.func @transform_14(%arg0: i32) -> (i32, i32, i32) {
    %c0_i32 = arith.constant 0 : i32
    %c0_i32_0 = arith.constant 0 : i32
    %c0_i32_1 = arith.constant 0 : i32
    %c0_i32_2 = arith.constant 0 : i32
    return %c0_i32, %c0_i32_0, %c0_i32_1 : i32, i32, i32
  }
  func.func @transform_15(%arg0: i32) -> (i32, i32, i32) {
    %c0_i32 = arith.constant 0 : i32
    %c0_i32_0 = arith.constant 0 : i32
    %c0_i32_1 = arith.constant 0 : i32
    %c0_i32_2 = arith.constant 0 : i32
    return %c0_i32, %c0_i32_0, %c0_i32_1 : i32, i32, i32
  }
  func.func @transform_16(%arg0: i32) -> (i32, i32, i32) {
    %c0_i32 = arith.constant 0 : i32
    %c0_i32_0 = arith.constant 0 : i32
    %c0_i32_1 = arith.constant 0 : i32
    %c0_i32_2 = arith.constant 0 : i32
    return %c0_i32, %c0_i32_0, %c0_i32_1 : i32, i32, i32
  }
  func.func @transform_17(%arg0: i32) -> (i32, i32, i32) {
    %c0_i32 = arith.constant 0 : i32
    %c0_i32_0 = arith.constant 0 : i32
    %c0_i32_1 = arith.constant 0 : i32
    %c0_i32_2 = arith.constant 0 : i32
    return %c0_i32, %c0_i32_0, %c0_i32_1 : i32, i32, i32
  }
  func.func @transform_18(%arg0: i32) -> (i32, i32, i32) {
    %c0_i32 = arith.constant 0 : i32
    %c0_i32_0 = arith.constant 0 : i32
    %c0_i32_1 = arith.constant 0 : i32
    %c0_i32_2 = arith.constant 0 : i32
    return %c0_i32, %c0_i32_0, %c0_i32_1 : i32, i32, i32
  }
  func.func @transform_19(%arg0: i32) -> (i32, i32) {
    %c0_i32 = arith.constant 0 : i32
    %c0_i32_0 = arith.constant 0 : i32
    %c0_i32_1 = arith.constant 0 : i32
    return %c0_i32, %c0_i32_0 : i32, i32
  }
  func.func @transform_20(%arg0: i32) -> (i32, i32) {
    %c0_i32 = arith.constant 0 : i32
    %c0_i32_0 = arith.constant 0 : i32
    %c0_i32_1 = arith.constant 0 : i32
    return %c0_i32, %c0_i32_0 : i32, i32
  }
  func.func @transform_21(%arg0: i32) -> (i32, i32) {
    %c0_i32 = arith.constant 0 : i32
    %c0_i32_0 = arith.constant 0 : i32
    %c0_i32_1 = arith.constant 0 : i32
    return %c0_i32, %c0_i32_0 : i32, i32
  }
  func.func @transform_22(%arg0: i32) -> (i32, i32) {
    %c0_i32 = arith.constant 0 : i32
    %c0_i32_0 = arith.constant 0 : i32
    %c0_i32_1 = arith.constant 0 : i32
    return %c0_i32, %c0_i32_0 : i32, i32
  }
  func.func @transform_23(%arg0: i32) -> (i32, i32, i32) {
    %c0_i32 = arith.constant 0 : i32
    %c0_i32_0 = arith.constant 0 : i32
    %c0_i32_1 = arith.constant 0 : i32
    return %arg0, %c0_i32, %c0_i32_0 : i32, i32, i32
  }
}

</mosaic_0001>

<bundles_post_ra>
// kernel: vit_forward.1
= control target key start
LH: loop header
LB: loop body
LE: loop exit
PB: predicated region body
PF: predicated region fallthrough
CT: control target
= control target key end

     0   :  { %s14465_s0 = inlined_call_operand.vmem [shape: bf16[2,5,3072], index: 0, kind: input, shape index: {}]   ;;  %s14466_s1 = inlined_call_operand.vmem [shape: bf16[3072,32], index: 1, kind: input, shape index: {}]   ;;  %s14467_s2 = inlined_call_operand.vmem [shape: f32[5,32], index: 2, kind: input, shape index: {}]   ;;  %s14468_s3 = inlined_call_operand.vmem [shape: f32[2,1,32], index: 3, kind: input, shape index: {}]   ;;  %s14469_s4 = inlined_call_operand.vmem [shape: f32[2,1,32], index: 4, kind: input, shape index: {}]   ;;  %s14470_s5 = inlined_call_operand.vmem [shape: bf16[2,4,32,8], index: 5, kind: input, shape index: {}]   ;;  %s14471_s6 = inlined_call_operand.vmem [shape: f32[2,4,1,8], index: 6, kind: input, shape index: {}]   ;;  %s14472_s7 = inlined_call_operand.vmem [shape: bf16[2,4,32,8], index: 7, kind: input, shape index: {}]   ;;  %s14473_s8 = inlined_call_operand.vmem [shape: f32[2,4,1,8], index: 8, kind: input, shape index: {}]   ;;  %s14474_s9 = inlined_call_operand.vmem [shape: bf16[2,4,32,8], index: 9, kind: input, shape index: {}]   ;;  %s14475_s10 = inlined_call_operand.vmem [shape: f32[2,4,1,8], index: 10, kind: input, shape index: {}]   ;;  %s14476_s11 = inlined_call_operand.vmem [shape: bf16[2,4,8,32], index: 11, kind: input, shape index: {}]   ;;  %s14477_s12 = inlined_call_operand.vmem [shape: f32[2,1,32], index: 12, kind: input, shape index: {}]   ;;  %s14478_s13 = inlined_call_operand.vmem [shape: f32[2,1,32], index: 13, kind: input, shape index: {}]   ;;  %s14479_s14 = inlined_call_operand.vmem [shape: f32[2,1,32], index: 14, kind: input, shape index: {}]   ;;  %s14480_s15 = inlined_call_operand.vmem [shape: bf16[2,32,64], index: 15, kind: input, shape index: {}]   ;;  %s14481_s16 = inlined_call_operand.vmem [shape: f32[2,1,64], index: 16, kind: input, shape index: {}]   ;;  %s14482_s17 = inlined_call_operand.vmem [shape: bf16[2,64,32], index: 17, kind: input, shape index: {}]   ;;  %s14483_s18 = inlined_call_operand.vmem [shape: f32[2,1,32], index: 18, kind: input, shape index: {}]   ;;  %s14484_s19 = inlined_call_operand.vmem [shape: f32[1,32], index: 19, kind: input, shape index: {}]   ;;  %s14485_s20 = inlined_call_operand.vmem [shape: f32[1,32], index: 20, kind: input, shape index: {}]   ;;  %s14486_s21 = inlined_call_operand.vmem [shape: bf16[32,2], index: 21, kind: input, shape index: {}]   ;;  %s14487_s22 = inlined_call_operand.vmem [shape: f32[1,2], index: 22, kind: input, shape index: {}]   ;;  %s14488_s23 = inlined_call_operand.hbm [shape: f32[2,1,2], index: 23, kind: output, shape index: {}]  }
   0x1   :  { %14500 = sst [smem:[#allocation7_spill]] %s14465_s0 }
   0x2   :  { %14501 = sst [smem:[#allocation8_spill]] %s14466_s1 }
   0x3   :  { %14502 = sst [smem:[#allocation9_spill]] %s14467_s2 }
   0x4   :  { %14503 = sst [smem:[#allocation10_spill]] %s14468_s3 }
   0x5   :  { %14504 = sst [smem:[#allocation11_spill]] %s14469_s4 }
   0x6   :  { %14505 = sst [smem:[#allocation12_spill]] %s14470_s5 }
   0x7   :  { %14506 = sst [smem:[#allocation13_spill]] %s14471_s6 }
   0x8   :  { %14507 = sst [smem:[#allocation14_spill]] %s14472_s7 }
   0x9   :  { %s14508_s24 = sld [smem:[#allocation8_spill]]  ;;  %s14509_s28 = sld [smem:[#allocation7_spill]] }
   0xf   :  { %v10863_v0 = vld [vmem:[%s14508_s24 + $0x40] sm:$0xff]   ;;  %v10867_v4 = vld [vmem:[%s14508_s24 + $0x48] sm:$0xff]   ;;  %v10871_v8 = vld [vmem:[%s14508_s24 + $0x50] sm:$0xff]  }
  0x10   :  { %v10864_v1 = vld [vmem:[%s14508_s24 + $0xc0] sm:$0xff]   ;;  %9283 = vmatprep.subr.bf16.mxu0 %v10863_v0  ;;  %v10868_v5 = vld [vmem:[%s14508_s24 + $0xc8] sm:$0xff]   ;;  %v10872_v9 = vld [vmem:[%s14508_s24 + $0xd0] sm:$0xff]  }
  0x11   :  { %v10865_v2 = vld [vmem:[%s14508_s24] sm:$0xff]   ;;  %9305 = vmatprep.subr.bf16.mxu1 %v10864_v1  ;;  %v10869_v6 = vld [vmem:[%s14508_s24 + $0x8] sm:$0xff]   ;;  %v10873_v10 = vld [vmem:[%s14508_s24 + $0x10] sm:$0xff]  }
  0x12   :  { %v10866_v3 = vld [vmem:[%s14508_s24 + $0x80] sm:$0xff]   ;;  %9284 = vmatpush3.bf16.msra.mxu0 %v10865_v2  ;;  %v10870_v7 = vld [vmem:[%s14508_s24 + $0x88] sm:$0xff]   ;;  %v10874_v11 = vld [vmem:[%s14508_s24 + $0x90] sm:$0xff]  }
  0x13   :  { %9306 = vmatpush3.bf16.msra.mxu1 %v10866_v3  ;;  %9285 = vmatprep.subr.bf16.mxu0 %v10867_v4  ;;  %v10875_v12 = vld [vmem:[%s14508_s24 + $0x58] sm:$0xff]   ;;  %v10879_v16 = vld [vmem:[%s14508_s24 + $0x60] sm:$0xff]   ;;  %v10883_v20 = vld [vmem:[%s14508_s24 + $0x68] sm:$0xff]  }
  0x14   :  { %9307 = vmatprep.subr.bf16.mxu1 %v10868_v5  ;;  %v10876_v13 = vld [vmem:[%s14508_s24 + $0xd8] sm:$0xff]   ;;  %v10880_v17 = vld [vmem:[%s14508_s24 + $0xe0] sm:$0xff]   ;;  %v10884_v21 = vld [vmem:[%s14508_s24 + $0xe8] sm:$0xff]  }
  0x15   :  { %v10877_v14 = vld [vmem:[%s14508_s24 + $0x18] sm:$0xff]   ;;  %v10881_v18 = vld [vmem:[%s14508_s24 + $0x20] sm:$0xff]   ;;  %v10885_v22 = vld [vmem:[%s14508_s24 + $0x28] sm:$0xff]  }
  0x16   :  { %9286 = vmatpush3.bf16.msra.mxu0 %v10869_v6  ;;  %v10878_v15 = vld [vmem:[%s14508_s24 + $0x98] sm:$0xff]   ;;  %v10882_v19 = vld [vmem:[%s14508_s24 + $0xa0] sm:$0xff]   ;;  %v10886_v23 = vld [vmem:[%s14508_s24 + $0xa8] sm:$0xff]  }
  0x17   :  { %9308 = vmatpush3.bf16.msra.mxu1 %v10870_v7  ;;  %9287 = vmatprep.subr.bf16.mxu0 %v10871_v8  ;;  %v10887_v24 = vld [vmem:[%s14508_s24 + $0x70] sm:$0xff]   ;;  %v10891_v28 = vld [vmem:[%s14508_s24 + $0x78] sm:$0xff]   ;;  %v461_v32 = vld [vmem:[%s14509_s28] sm:$0x77] }
  0x18   :  { %9309 = vmatprep.subr.bf16.mxu1 %v10872_v9  ;;  %v10888_v25 = vld [vmem:[%s14508_s24 + $0xf0] sm:$0xff]   ;;  %v10892_v29 = vld [vmem:[%s14508_s24 + $0xf8] sm:$0xff]   ;;  %v462_v33 = vld [vmem:[%s14509_s28 + $0x8] sm:$0x77]  ;;  %v8742_v34 = vcombine.low %v461_v32, %v461_v32  ;;  %v8743_v35 = vcombine.high %v461_v32, %v461_v32 }
  0x19   :  { %v10889_v26 = vld [vmem:[%s14508_s24 + $0x30] sm:$0xff]   ;;  %v10893_v30 = vld [vmem:[%s14508_s24 + $0x38] sm:$0xff]   ;;  %v8744_v36 = vcombine.low %v462_v33, %v462_v33  ;;  %v8745_v37 = vcombine.high %v462_v33, %v462_v33  ;;  %v10899_v38 = vld [vmem:[%s14508_s24 + $0x140] sm:$0xff]  }
  0x1a   :  { %9288 = vmatpush3.bf16.msra.mxu0 %v10873_v10  ;;  %v10890_v27 = vld [vmem:[%s14508_s24 + $0xb0] sm:$0xff]   ;;  %v10894_v31 = vld [vmem:[%s14508_s24 + $0xb8] sm:$0xff]   ;;  %v10900_v39 = vld [vmem:[%s14508_s24 + $0x1c0] sm:$0xff]   ;;  %1741 = vmatprep.mubr.bf16.mxu0 %v8743_v35 }
  0x1b   :  { %9310 = vmatpush3.bf16.msra.mxu1 %v10874_v11  ;;  %9289 = vmatprep.subr.bf16.mxu0 %v10875_v12  ;;  %v10901_v40 = vld [vmem:[%s14508_s24 + $0x100] sm:$0xff]   ;;  %v10903_v42 = vld [vmem:[%s14508_s24 + $0x148] sm:$0xff]   ;;  %v10907_v46 = vld [vmem:[%s14508_s24 + $0x150] sm:$0xff]  }
  0x1c   :  { %9311 = vmatprep.subr.bf16.mxu1 %v10876_v13  ;;  %1781 = vmatprep.mubr.bf16.mxu1 %v8745_v37  ;;  %v10902_v41 = vld [vmem:[%s14508_s24 + $0x180] sm:$0xff]   ;;  %v10904_v43 = vld [vmem:[%s14508_s24 + $0x1c8] sm:$0xff]   ;;  %v10908_v47 = vld [vmem:[%s14508_s24 + $0x1d0] sm:$0xff]  }
  0x1d   :  { %v10905_v44 = vld [vmem:[%s14508_s24 + $0x108] sm:$0xff]   ;;  %v10909_v48 = vld [vmem:[%s14508_s24 + $0x110] sm:$0xff]   ;;  %v10911_v50 = vld [vmem:[%s14508_s24 + $0x158] sm:$0xff]  }
  0x1e   :  { %9290 = vmatpush3.bf16.msra.mxu0 %v10877_v14  ;;  %v10906_v45 = vld [vmem:[%s14508_s24 + $0x188] sm:$0xff]   ;;  %v10910_v49 = vld [vmem:[%s14508_s24 + $0x190] sm:$0xff]   ;;  %v10912_v51 = vld [vmem:[%s14508_s24 + $0x1d8] sm:$0xff]  }
  0x1f   :  { %9312 = vmatpush3.bf16.msra.mxu1 %v10878_v15  ;;  %9291 = vmatprep.subr.bf16.mxu0 %v10879_v16  ;;  %v10913_v52 = vld [vmem:[%s14508_s24 + $0x118] sm:$0xff]   ;;  %v10915_v54 = vld [vmem:[%s14508_s24 + $0x160] sm:$0xff]   ;;  %v10919_v58 = vld [vmem:[%s14508_s24 + $0x168] sm:$0xff]  }
  0x20   :  { %9313 = vmatprep.subr.bf16.mxu1 %v10880_v17  ;;  %v10914_v53 = vld [vmem:[%s14508_s24 + $0x198] sm:$0xff]   ;;  %v10916_v55 = vld [vmem:[%s14508_s24 + $0x1e0] sm:$0xff]   ;;  %v10920_v59 = vld [vmem:[%s14508_s24 + $0x1e8] sm:$0xff]  }
  0x21   :  { %v10917_v56 = vld [vmem:[%s14508_s24 + $0x120] sm:$0xff]   ;;  %v10921_v60 = vld [vmem:[%s14508_s24 + $0x128] sm:$0xff]   ;;  %v10923_v62 = vld [vmem:[%s14508_s24 + $0x170] sm:$0xff]  }
  0x22   :  { %9292 = vmatpush3.bf16.msra.mxu0 %v10881_v18  ;;  %v10918_v57 = vld [vmem:[%s14508_s24 + $0x1a0] sm:$0xff]   ;;  %v10922_v61 = vld [vmem:[%s14508_s24 + $0x1a8] sm:$0xff]   ;;  %v10924_v63 = vld [vmem:[%s14508_s24 + $0x1f0] sm:$0xff]  }
  0x23   :  { %9314 = vmatpush3.bf16.msra.mxu1 %v10882_v19  ;;  %9293 = vmatprep.subr.bf16.mxu0 %v10883_v20  ;;  %v10925_v0 = vld [vmem:[%s14508_s24 + $0x130] sm:$0xff]   ;;  %v10927_v2 = vld [vmem:[%s14508_s24 + $0x178] sm:$0xff]   ;;  %v10935_v12 = vld [vmem:[%s14508_s24 + $0x240] sm:$0xff]  }
  0x24   :  { %9315 = vmatprep.subr.bf16.mxu1 %v10884_v21  ;;  %v10926_v1 = vld [vmem:[%s14508_s24 + $0x1b0] sm:$0xff]   ;;  %v10928_v3 = vld [vmem:[%s14508_s24 + $0x1f8] sm:$0xff]   ;;  %v10936_v13 = vld [vmem:[%s14508_s24 + $0x2c0] sm:$0xff]  }
  0x25   :  { %v10929_v4 = vld [vmem:[%s14508_s24 + $0x138] sm:$0xff]   ;;  %v463_v6 = vld [vmem:[%s14509_s28 + $0x10] sm:$0x77]  ;;  %v10937_v14 = vld [vmem:[%s14508_s24 + $0x200] sm:$0xff]  }
  0x26   :  { %9294 = vmatpush3.bf16.msra.mxu0 %v10885_v22  ;;  %v10930_v5 = vld [vmem:[%s14508_s24 + $0x1b8] sm:$0xff]   ;;  %v8746_v7 = vcombine.low %v463_v6, %v463_v6  ;;  %v8747_v8 = vcombine.high %v463_v6, %v463_v6  ;;  %v10938_v15 = vld [vmem:[%s14508_s24 + $0x280] sm:$0xff]   ;;  %v10939_v16 = vld [vmem:[%s14508_s24 + $0x248] sm:$0xff]  }
  0x27   :  { %9316 = vmatpush3.bf16.msra.mxu1 %v10886_v23  ;;  %9295 = vmatprep.subr.bf16.mxu0 %v10887_v24  ;;  %v464_v9 = vld [vmem:[%s14509_s28 + $0x18] sm:$0x77]  ;;  %v10940_v17 = vld [vmem:[%s14508_s24 + $0x2c8] sm:$0xff]   ;;  %v10943_v20 = vld [vmem:[%s14508_s24 + $0x250] sm:$0xff]  }
  0x28   :  { %9317 = vmatprep.subr.bf16.mxu1 %v10888_v25  ;;  %v8748_v10 = vcombine.low %v464_v9, %v464_v9  ;;  %v8749_v11 = vcombine.high %v464_v9, %v464_v9  ;;  %v10941_v18 = vld [vmem:[%s14508_s24 + $0x208] sm:$0xff]   ;;  %v10944_v21 = vld [vmem:[%s14508_s24 + $0x2d0] sm:$0xff]   ;;  %v10947_v24 = vld [vmem:[%s14508_s24 + $0x258] sm:$0xff]  }
  0x29   :  { %v10942_v19 = vld [vmem:[%s14508_s24 + $0x288] sm:$0xff]   ;;  %v10945_v22 = vld [vmem:[%s14508_s24 + $0x210] sm:$0xff]   ;;  %v10948_v25 = vld [vmem:[%s14508_s24 + $0x2d8] sm:$0xff]  }
  0x2a   :  { %9296 = vmatpush3.bf16.msra.mxu0 %v10889_v26  ;;  %v10946_v23 = vld [vmem:[%s14508_s24 + $0x290] sm:$0xff]   ;;  %v10949_v26 = vld [vmem:[%s14508_s24 + $0x218] sm:$0xff]   ;;  %v10955_v32 = vld [vmem:[%s14508_s24 + $0x268] sm:$0xff]  }
  0x2b   :  { %9318 = vmatpush3.bf16.msra.mxu1 %v10890_v27  ;;  %9297 = vmatprep.subr.bf16.mxu0 %v10891_v28  ;;  %v10950_v27 = vld [vmem:[%s14508_s24 + $0x298] sm:$0xff]   ;;  %v10951_v28 = vld [vmem:[%s14508_s24 + $0x260] sm:$0xff]   ;;  %v10956_v33 = vld [vmem:[%s14508_s24 + $0x2e8] sm:$0xff]  }
  0x2c   :  { %9319 = vmatprep.subr.bf16.mxu1 %v10892_v29  ;;  %v10952_v29 = vld [vmem:[%s14508_s24 + $0x2e0] sm:$0xff]   ;;  %v10958_v35 = vld [vmem:[%s14508_s24 + $0x2a8] sm:$0xff]   ;;  %v10960_v37 = vld [vmem:[%s14508_s24 + $0x2f0] sm:$0xff]  }
  0x2d   :  { %v10991_v6 = vld [vmem:[%s14508_s24 + $0x368] sm:$0xff]  }
  0x2e   :  { %9298 = vmatpush3.bf16.msra.mxu0 %v10893_v30  ;;  %v10953_v30 = vld [vmem:[%s14508_s24 + $0x220] sm:$0xff]   ;;  %v10994_v9 = vld [vmem:[%s14508_s24 + $0x3a8] sm:$0xff]  }
  0x2f   :  { %9320 = vmatpush3.bf16.msra.mxu1 %v10894_v31  ;;  %9327 = vmatprep.subr.bf16.mxu0 %v10899_v38  ;;  %v10954_v31 = vld [vmem:[%s14508_s24 + $0x2a0] sm:$0xff]   ;;  %v10961_v38 = vld [vmem:[%s14508_s24 + $0x230] sm:$0xff]  }
  0x30   :  { %9349 = vmatprep.subr.bf16.mxu1 %v10900_v39  ;;  %v10962_v39 = vld [vmem:[%s14508_s24 + $0x2b0] sm:$0xff]  }
  0x31   :  { %1742 = vmatmul.mubr.bf16.vlgmr.msra.gmra.mrb[0].mxu0 %v8742_v34  ;;  %v10957_v34 = vld [vmem:[%s14508_s24 + $0x228] sm:$0xff]  }
  0x32   :  { %1782 = vmatmul.mubr.bf16.vlgmr.msra.gmra.mrb[0].mxu1 %v8744_v36  ;;  %9328 = vmatpush3.bf16.msra.mxu0 %v10901_v40  ;;  %v10959_v36 = vld [vmem:[%s14508_s24 + $0x270] sm:$0xff]   ;;  %v10963_v40 = vld [vmem:[%s14508_s24 + $0x278] sm:$0xff]  }
  0x33   :  { %9350 = vmatpush3.bf16.msra.mxu1 %v10902_v41  ;;  %9329 = vmatprep.subr.bf16.mxu0 %v10903_v42  ;;  %v10964_v41 = vld [vmem:[%s14508_s24 + $0x2f8] sm:$0xff]  }
  0x34   :  { %9351 = vmatprep.subr.bf16.mxu1 %v10904_v43  ;;  %1821 = vmatprep.mubr.bf16.mxu0 %v8747_v8  ;;  %v10965_v42 = vld [vmem:[%s14508_s24 + $0x238] sm:$0xff]   ;;  %v10993_v8 = vld [vmem:[%s14508_s24 + $0x328] sm:$0xff]  }
  0x35   :  { %1861 = vmatprep.mubr.bf16.mxu1 %v8749_v11  ;;  %v10966_v43 = vld [vmem:[%s14508_s24 + $0x2b8] sm:$0xff]   ;;  %v10996_v11 = vld [vmem:[%s14508_s24 + $0x3f0] sm:$0xff]  }
  0x36   :  { %9330 = vmatpush3.bf16.msra.mxu0 %v10905_v44  ;;  %v465_v44 = vld [vmem:[%s14509_s28 + $0x20] sm:$0x77] }
  0x37   :  { %9352 = vmatpush3.bf16.msra.mxu1 %v10906_v45  ;;  %9331 = vmatprep.subr.bf16.mxu0 %v10907_v46  ;;  %v466_v45 = vld [vmem:[%s14509_s28 + $0x28] sm:$0x77]  ;;  %v8750_v46 = vcombine.low %v465_v44, %v465_v44 }
  0x38   :  { %9353 = vmatprep.subr.bf16.mxu1 %v10908_v47  ;;  %v8751_v47 = vcombine.high %v465_v44, %v465_v44  ;;  %v11027_v44 = vld [vmem:[%s14508_s24 + $0x468] sm:$0xff]  }
  0x3a   :  { %9332 = vmatpush3.bf16.msra.mxu0 %v10909_v48  ;;  %v8752_v48 = vcombine.low %v466_v45, %v466_v45 }
  0x3b   :  { %9354 = vmatpush3.bf16.msra.mxu1 %v10910_v49  ;;  %9333 = vmatprep.subr.bf16.mxu0 %v10911_v50  ;;  %v8753_v49 = vcombine.high %v466_v45, %v466_v45  ;;  %v10971_v50 = vld [vmem:[%s14508_s24 + $0x340] sm:$0xff]   ;;  %v11028_v45 = vld [vmem:[%s14508_s24 + $0x4e8] sm:$0xff]  }
  0x3c   :  { %9355 = vmatprep.subr.bf16.mxu1 %v10912_v51  ;;  %v10972_v51 = vld [vmem:[%s14508_s24 + $0x3c0] sm:$0xff]  }
  0x3e   :  { %9334 = vmatpush3.bf16.msra.mxu0 %v10913_v52  ;;  %v10973_v52 = vld [vmem:[%s14508_s24 + $0x300] sm:$0xff]  }
  0x3f   :  { %9356 = vmatpush3.bf16.msra.mxu1 %v10914_v53  ;;  %9335 = vmatprep.subr.bf16.mxu0 %v10915_v54  ;;  %v10974_v53 = vld [vmem:[%s14508_s24 + $0x380] sm:$0xff]   ;;  %v10975_v54 = vld [vmem:[%s14508_s24 + $0x348] sm:$0xff]  }
  0x40   :  { %9357 = vmatprep.subr.bf16.mxu1 %v10916_v55  ;;  %v10976_v55 = vld [vmem:[%s14508_s24 + $0x3c8] sm:$0xff]  }
  0x42   :  { %9336 = vmatpush3.bf16.msra.mxu0 %v10917_v56  ;;  %v10977_v56 = vld [vmem:[%s14508_s24 + $0x308] sm:$0xff]  }
  0x43   :  { %9358 = vmatpush3.bf16.msra.mxu1 %v10918_v57  ;;  %9337 = vmatprep.subr.bf16.mxu0 %v10919_v58  ;;  %v10978_v57 = vld [vmem:[%s14508_s24 + $0x388] sm:$0xff]   ;;  %v10979_v58 = vld [vmem:[%s14508_s24 + $0x350] sm:$0xff]  }
  0x44   :  { %9359 = vmatprep.subr.bf16.mxu1 %v10920_v59  ;;  %v10980_v59 = vld [vmem:[%s14508_s24 + $0x3d0] sm:$0xff]  }
  0x46   :  { %9338 = vmatpush3.bf16.msra.mxu0 %v10921_v60  ;;  %v10981_v60 = vld [vmem:[%s14508_s24 + $0x310] sm:$0xff]  }
  0x47   :  { %9360 = vmatpush3.bf16.msra.mxu1 %v10922_v61  ;;  %9339 = vmatprep.subr.bf16.mxu0 %v10923_v62  ;;  %v10982_v61 = vld [vmem:[%s14508_s24 + $0x390] sm:$0xff]   ;;  %v10983_v62 = vld [vmem:[%s14508_s24 + $0x358] sm:$0xff]  }
  0x48   :  { %9361 = vmatprep.subr.bf16.mxu1 %v10924_v63  ;;  %v10984_v63 = vld [vmem:[%s14508_s24 + $0x3d8] sm:$0xff]  }
  0x4a   :  { %9340 = vmatpush3.bf16.msra.mxu0 %v10925_v0  ;;  %v10985_v0 = vld [vmem:[%s14508_s24 + $0x318] sm:$0xff]  }
  0x4b   :  { %9362 = vmatpush3.bf16.msra.mxu1 %v10926_v1  ;;  %9341 = vmatprep.subr.bf16.mxu0 %v10927_v2  ;;  %v10986_v1 = vld [vmem:[%s14508_s24 + $0x398] sm:$0xff]   ;;  %v10987_v2 = vld [vmem:[%s14508_s24 + $0x360] sm:$0xff]  }
  0x4c   :  { %9363 = vmatprep.subr.bf16.mxu1 %v10928_v3  ;;  %v10988_v3 = vld [vmem:[%s14508_s24 + $0x3e0] sm:$0xff]  }
  0x4e   :  { %9342 = vmatpush3.bf16.msra.mxu0 %v10929_v4  ;;  %v10989_v4 = vld [vmem:[%s14508_s24 + $0x320] sm:$0xff]  }
  0x4f   :  { %9364 = vmatpush3.bf16.msra.mxu1 %v10930_v5  ;;  %9371 = vmatprep.subr.bf16.mxu0 %v10935_v12  ;;  %v10990_v5 = vld [vmem:[%s14508_s24 + $0x3a0] sm:$0xff]   ;;  %v10997_v12 = vld [vmem:[%s14508_s24 + $0x330] sm:$0xff]  }
  0x50   :  { %9393 = vmatprep.subr.bf16.mxu1 %v10936_v13  ;;  %v10998_v13 = vld [vmem:[%s14508_s24 + $0x3b0] sm:$0xff]  }
  0x51   :  { %1822 = vmatmul.mubr.bf16.vlgmr.msra.gmra.mrb[4].mxu0 %v8746_v7  ;;  %v10992_v7 = vld [vmem:[%s14508_s24 + $0x3e8] sm:$0xff]  }
  0x52   :  { %1862 = vmatmul.mubr.bf16.vlgmr.msra.gmra.mrb[4].mxu1 %v8748_v10  ;;  %9372 = vmatpush3.bf16.msra.mxu0 %v10937_v14  ;;  %v10995_v10 = vld [vmem:[%s14508_s24 + $0x370] sm:$0xff]   ;;  %v10999_v14 = vld [vmem:[%s14508_s24 + $0x378] sm:$0xff]  }
  0x53   :  { %9394 = vmatpush3.bf16.msra.mxu1 %v10938_v15  ;;  %9373 = vmatprep.subr.bf16.mxu0 %v10939_v16  ;;  %v11000_v15 = vld [vmem:[%s14508_s24 + $0x3f8] sm:$0xff]  }
  0x54   :  { %9395 = vmatprep.subr.bf16.mxu1 %v10940_v17  ;;  %1901 = vmatprep.mubr.bf16.mxu0 %v8751_v47  ;;  %v11001_v16 = vld [vmem:[%s14508_s24 + $0x338] sm:$0xff]   ;;  %v11030_v47 = vld [vmem:[%s14508_s24 + $0x4a8] sm:$0xff]  }
  0x55   :  { %1941 = vmatprep.mubr.bf16.mxu1 %v8753_v49  ;;  %v11002_v17 = vld [vmem:[%s14508_s24 + $0x3b8] sm:$0xff]   ;;  %v11032_v49 = vld [vmem:[%s14508_s24 + $0x4f0] sm:$0xff]  }
  0x56   :  { %9374 = vmatpush3.bf16.msra.mxu0 %v10941_v18  ;;  %v467_v18 = vld [vmem:[%s14509_s28 + $0x30] sm:$0x77] }
  0x57   :  { %9396 = vmatpush3.bf16.msra.mxu1 %v10942_v19  ;;  %9375 = vmatprep.subr.bf16.mxu0 %v10943_v20  ;;  %v468_v19 = vld [vmem:[%s14509_s28 + $0x38] sm:$0x77]  ;;  %v8754_v20 = vcombine.low %v467_v18, %v467_v18 }
  0x58   :  { %9397 = vmatprep.subr.bf16.mxu1 %v10944_v21  ;;  %v8755_v21 = vcombine.high %v467_v18, %v467_v18  ;;  %v12209_v18 = vld [vmem:[%s14508_s24 + $0x568] sm:$0xff]  }
  0x5a   :  { %9376 = vmatpush3.bf16.msra.mxu0 %v10945_v22  ;;  %v8756_v22 = vcombine.low %v468_v19, %v468_v19 }
  0x5b   :  { %9398 = vmatpush3.bf16.msra.mxu1 %v10946_v23  ;;  %9377 = vmatprep.subr.bf16.mxu0 %v10947_v24  ;;  %v11007_v23 = vld [vmem:[%s14508_s24 + $0x440] sm:$0xff]   ;;  %v8757_v24 = vcombine.high %v468_v19, %v468_v19  ;;  %v12215_v19 = vld [vmem:[%s14508_s24 + $0x5e8] sm:$0xff]  }
  0x5c   :  { %9399 = vmatprep.subr.bf16.mxu1 %v10948_v25  ;;  %v11008_v25 = vld [vmem:[%s14508_s24 + $0x4c0] sm:$0xff]  }
  0x5e   :  { %9378 = vmatpush3.bf16.msra.mxu0 %v10949_v26  ;;  %v11009_v26 = vld [vmem:[%s14508_s24 + $0x400] sm:$0xff]  }
  0x5f   :  { %9400 = vmatpush3.bf16.msra.mxu1 %v10950_v27  ;;  %9379 = vmatprep.subr.bf16.mxu0 %v10951_v28  ;;  %v11010_v27 = vld [vmem:[%s14508_s24 + $0x480] sm:$0xff]   ;;  %v11011_v28 = vld [vmem:[%s14508_s24 + $0x448] sm:$0xff]  }
  0x60   :  { %9401 = vmatprep.subr.bf16.mxu1 %v10952_v29  ;;  %v11012_v29 = vld [vmem:[%s14508_s24 + $0x4c8] sm:$0xff]  }
  0x62   :  { %9380 = vmatpush3.bf16.msra.mxu0 %v10953_v30  ;;  %v11013_v30 = vld [vmem:[%s14508_s24 + $0x408] sm:$0xff]  }
  0x63   :  { %9402 = vmatpush3.bf16.msra.mxu1 %v10954_v31  ;;  %9381 = vmatprep.subr.bf16.mxu0 %v10955_v32  ;;  %v11014_v31 = vld [vmem:[%s14508_s24 + $0x488] sm:$0xff]   ;;  %v11015_v32 = vld [vmem:[%s14508_s24 + $0x450] sm:$0xff]  }
  0x64   :  { %9403 = vmatprep.subr.bf16.mxu1 %v10956_v33  ;;  %v11016_v33 = vld [vmem:[%s14508_s24 + $0x4d0] sm:$0xff]  }
  0x66   :  { %9382 = vmatpush3.bf16.msra.mxu0 %v10957_v34  ;;  %v11017_v34 = vld [vmem:[%s14508_s24 + $0x410] sm:$0xff]  }
  0x67   :  { %9404 = vmatpush3.bf16.msra.mxu1 %v10958_v35  ;;  %9383 = vmatprep.subr.bf16.mxu0 %v10959_v36  ;;  %v11018_v35 = vld [vmem:[%s14508_s24 + $0x490] sm:$0xff]   ;;  %v11019_v36 = vld [vmem:[%s14508_s24 + $0x458] sm:$0xff]  }
  0x68   :  { %9405 = vmatprep.subr.bf16.mxu1 %v10960_v37  ;;  %v11020_v37 = vld [vmem:[%s14508_s24 + $0x4d8] sm:$0xff]  }
  0x6a   :  { %9384 = vmatpush3.bf16.msra.mxu0 %v10961_v38  ;;  %v11021_v38 = vld [vmem:[%s14508_s24 + $0x418] sm:$0xff]  }
  0x6b   :  { %9406 = vmatpush3.bf16.msra.mxu1 %v10962_v39  ;;  %9385 = vmatprep.subr.bf16.mxu0 %v10963_v40  ;;  %v11022_v39 = vld [vmem:[%s14508_s24 + $0x498] sm:$0xff]   ;;  %v11023_v40 = vld [vmem:[%s14508_s24 + $0x460] sm:$0xff]  }
  0x6c   :  { %9407 = vmatprep.subr.bf16.mxu1 %v10964_v41  ;;  %v11024_v41 = vld [vmem:[%s14508_s24 + $0x4e0] sm:$0xff]  }
  0x6e   :  { %9386 = vmatpush3.bf16.msra.mxu0 %v10965_v42  ;;  %v11025_v42 = vld [vmem:[%s14508_s24 + $0x420] sm:$0xff]  }
  0x6f   :  { %9408 = vmatpush3.bf16.msra.mxu1 %v10966_v43  ;;  %9415 = vmatprep.subr.bf16.mxu0 %v10971_v50  ;;  %v11026_v43 = vld [vmem:[%s14508_s24 + $0x4a0] sm:$0xff]   ;;  %v11033_v50 = vld [vmem:[%s14508_s24 + $0x430] sm:$0xff]  }
  0x70   :  { %9437 = vmatprep.subr.bf16.mxu1 %v10972_v51  ;;  %v11034_v51 = vld [vmem:[%s14508_s24 + $0x4b0] sm:$0xff]  }
  0x71   :  { %1902 = vmatmul.mubr.bf16.vlgmr.msra.gmra.mrb[8].mxu0 %v8750_v46  ;;  %v11029_v46 = vld [vmem:[%s14508_s24 + $0x428] sm:$0xff]  }
  0x72   :  { %1942 = vmatmul.mubr.bf16.vlgmr.msra.gmra.mrb[8].mxu1 %v8752_v48  ;;  %9416 = vmatpush3.bf16.msra.mxu0 %v10973_v52  ;;  %v11031_v48 = vld [vmem:[%s14508_s24 + $0x470] sm:$0xff]   ;;  %v11035_v52 = vld [vmem:[%s14508_s24 + $0x478] sm:$0xff]  }
  0x73   :  { %9438 = vmatpush3.bf16.msra.mxu1 %v10974_v53  ;;  %9417 = vmatprep.subr.bf16.mxu0 %v10975_v54  ;;  %v11036_v53 = vld [vmem:[%s14508_s24 + $0x4f8] sm:$0xff]  }
  0x74   :  { %9439 = vmatprep.subr.bf16.mxu1 %v10976_v55  ;;  %1981 = vmatprep.mubr.bf16.mxu0 %v8755_v21  ;;  %v11037_v54 = vld [vmem:[%s14508_s24 + $0x438] sm:$0xff]   ;;  %v12227_v21 = vld [vmem:[%s14508_s24 + $0x5a8] sm:$0xff]  }
  0x75   :  { %2021 = vmatprep.mubr.bf16.mxu1 %v8757_v24  ;;  %v11038_v55 = vld [vmem:[%s14508_s24 + $0x4b8] sm:$0xff]   ;;  %v12245_v24 = vld [vmem:[%s14508_s24 + $0x530] sm:$0xff]  }
  0x76   :  { %9418 = vmatpush3.bf16.msra.mxu0 %v10977_v56  ;;  %v469_v56 = vld [vmem:[%s14509_s28 + $0x40] sm:$0x77] }
  0x77   :  { %9440 = vmatpush3.bf16.msra.mxu1 %v10978_v57  ;;  %9419 = vmatprep.subr.bf16.mxu0 %v10979_v58  ;;  %v8758_v57 = vcombine.low %v469_v56, %v469_v56  ;;  %v8759_v58 = vcombine.high %v469_v56, %v469_v56  ;;  %v11281_v56 = vld [vmem:[%s14508_s24 + $0x60] sm:$0xff]  }
  0x78   :  { %9441 = vmatprep.subr.bf16.mxu1 %v10980_v59  ;;  %v470_v59 = vld [vmem:[%s14509_s28 + $0x48] sm:$0x77] }
  0x7a   :  { %9420 = vmatpush3.bf16.msra.mxu0 %v10981_v60  ;;  %v8760_v60 = vcombine.low %v470_v59, %v470_v59 }
  0x7b   :  { %9442 = vmatpush3.bf16.msra.mxu1 %v10982_v61  ;;  %9421 = vmatprep.subr.bf16.mxu0 %v10983_v62  ;;  %v8761_v61 = vcombine.high %v470_v59, %v470_v59  ;;  %v11043_v62 = vld [vmem:[%s14508_s24 + $0x540] sm:$0xff]  }
  0x7c   :  { %9443 = vmatprep.subr.bf16.mxu1 %v10984_v63  ;;  %v11044_v63 = vld [vmem:[%s14508_s24 + $0x5c0] sm:$0xff]  }
  0x7d   :  { %v11284_v59 = vld [vmem:[%s14508_s24 + $0xa0] sm:$0xff]  }
  0x7e   :  { %9422 = vmatpush3.bf16.msra.mxu0 %v10985_v0  ;;  %v11045_v0 = vld [vmem:[%s14508_s24 + $0x500] sm:$0xff]  }
  0x7f   :  { %9444 = vmatpush3.bf16.msra.mxu1 %v10986_v1  ;;  %9423 = vmatprep.subr.bf16.mxu0 %v10987_v2  ;;  %v11046_v1 = vld [vmem:[%s14508_s24 + $0x580] sm:$0xff]   ;;  %v11047_v2 = vld [vmem:[%s14508_s24 + $0x548] sm:$0xff]  }
  0x80   :  { %9445 = vmatprep.subr.bf16.mxu1 %v10988_v3  ;;  %v12120_v3 = vld [vmem:[%s14508_s24 + $0x5c8] sm:$0xff]  }
  0x82   :  { %9424 = vmatpush3.bf16.msra.mxu0 %v10989_v4  ;;  %v12125_v4 = vld [vmem:[%s14508_s24 + $0x508] sm:$0xff]  }
  0x83   :  { %9446 = vmatpush3.bf16.msra.mxu1 %v10990_v5  ;;  %9425 = vmatprep.subr.bf16.mxu0 %v10991_v6  ;;  %v12131_v5 = vld [vmem:[%s14508_s24 + $0x588] sm:$0xff]   ;;  %v12137_v6 = vld [vmem:[%s14508_s24 + $0x550] sm:$0xff]  }
  0x84   :  { %9447 = vmatprep.subr.bf16.mxu1 %v10992_v7  ;;  %v12143_v7 = vld [vmem:[%s14508_s24 + $0x5d0] sm:$0xff]  }
  0x86   :  { %9426 = vmatpush3.bf16.msra.mxu0 %v10993_v8  ;;  %v12149_v8 = vld [vmem:[%s14508_s24 + $0x510] sm:$0xff]  }
  0x87   :  { %9448 = vmatpush3.bf16.msra.mxu1 %v10994_v9  ;;  %9427 = vmatprep.subr.bf16.mxu0 %v10995_v10  ;;  %v12155_v9 = vld [vmem:[%s14508_s24 + $0x590] sm:$0xff]   ;;  %v12161_v10 = vld [vmem:[%s14508_s24 + $0x558] sm:$0xff]  }
  0x88   :  { %9449 = vmatprep.subr.bf16.mxu1 %v10996_v11  ;;  %v12167_v11 = vld [vmem:[%s14508_s24 + $0x5d8] sm:$0xff]  }
  0x8a   :  { %9428 = vmatpush3.bf16.msra.mxu0 %v10997_v12  ;;  %v12173_v12 = vld [vmem:[%s14508_s24 + $0x518] sm:$0xff]  }
  0x8b   :  { %9450 = vmatpush3.bf16.msra.mxu1 %v10998_v13  ;;  %9429 = vmatprep.subr.bf16.mxu0 %v10999_v14  ;;  %v12179_v13 = vld [vmem:[%s14508_s24 + $0x598] sm:$0xff]   ;;  %v12185_v14 = vld [vmem:[%s14508_s24 + $0x560] sm:$0xff]  }
  0x8c   :  { %9451 = vmatprep.subr.bf16.mxu1 %v11000_v15  ;;  %v12191_v15 = vld [vmem:[%s14508_s24 + $0x5e0] sm:$0xff]  }
  0x8e   :  { %9430 = vmatpush3.bf16.msra.mxu0 %v11001_v16  ;;  %v12197_v16 = vld [vmem:[%s14508_s24 + $0x520] sm:$0xff]  }
  0x8f   :  { %9452 = vmatpush3.bf16.msra.mxu1 %v11002_v17  ;;  %9459 = vmatprep.subr.bf16.mxu0 %v11007_v23  ;;  %v12203_v17 = vld [vmem:[%s14508_s24 + $0x5a0] sm:$0xff]   ;;  %v12239_v23 = vld [vmem:[%s14508_s24 + $0x5f0] sm:$0xff]  }
  0x90   :  { %9481 = vmatprep.subr.bf16.mxu1 %v11008_v25  ;;  %v12251_v25 = vld [vmem:[%s14508_s24 + $0x5b0] sm:$0xff]  }
  0x91   :  { %1982 = vmatmul.mubr.bf16.vlgmr.msra.gmra.mrb[12].mxu0 %v8754_v20  ;;  %v12221_v20 = vld [vmem:[%s14508_s24 + $0x528] sm:$0xff]  }
  0x92   :  { %2022 = vmatmul.mubr.bf16.vlgmr.msra.gmra.mrb[12].mxu1 %v8756_v22  ;;  %9460 = vmatpush3.bf16.msra.mxu0 %v11009_v26  ;;  %v12233_v22 = vld [vmem:[%s14508_s24 + $0x570] sm:$0xff]   ;;  %v12257_v26 = vld [vmem:[%s14508_s24 + $0x578] sm:$0xff]  }
  0x93   :  { %9482 = vmatpush3.bf16.msra.mxu1 %v11010_v27  ;;  %9461 = vmatprep.subr.bf16.mxu0 %v11011_v28  ;;  %v12263_v27 = vld [vmem:[%s14508_s24 + $0x5f8] sm:$0xff]  }
  0x94   :  { %9483 = vmatprep.subr.bf16.mxu1 %v11012_v29  ;;  %2061 = vmatprep.mubr.bf16.mxu0 %v8759_v58  ;;  %v12269_v28 = vld [vmem:[%s14508_s24 + $0x538] sm:$0xff]   ;;  %v11283_v58 = vld [vmem:[%s14508_s24 + $0x20] sm:$0xff]  }
  0x95   :  { %2101 = vmatprep.mubr.bf16.mxu1 %v8761_v61  ;;  %v12275_v29 = vld [vmem:[%s14508_s24 + $0x5b8] sm:$0xff]   ;;  %v11286_v61 = vld [vmem:[%s14508_s24 + $0xe8] sm:$0xff]  }
  0x96   :  { %9462 = vmatpush3.bf16.msra.mxu0 %v11013_v30  ;;  %v471_v30 = vld [vmem:[%s14509_s28 + $0x50] sm:$0x77] }
  0x97   :  { %9484 = vmatpush3.bf16.msra.mxu1 %v11014_v31  ;;  %9463 = vmatprep.subr.bf16.mxu0 %v11015_v32  ;;  %v472_v31 = vld [vmem:[%s14509_s28 + $0x58] sm:$0x77]  ;;  %v8762_v32 = vcombine.low %v471_v30, %v471_v30 }
  0x98   :  { %9485 = vmatprep.subr.bf16.mxu1 %v11016_v33  ;;  %v8763_v33 = vcombine.high %v471_v30, %v471_v30  ;;  %v11292_v30 = vld [vmem:[%s14508_s24 + $0xb0] sm:$0xff]  }
  0x9a   :  { %9464 = vmatpush3.bf16.msra.mxu0 %v11017_v34  ;;  %v8764_v34 = vcombine.low %v472_v31, %v472_v31 }
  0x9b   :  { %9486 = vmatpush3.bf16.msra.mxu1 %v11018_v35  ;;  %9465 = vmatprep.subr.bf16.mxu0 %v11019_v36  ;;  %v8765_v35 = vcombine.high %v472_v31, %v472_v31  ;;  %v12287_v36 = vld [vmem:[%s14509_s28 + $0x60] sm:$0x77]  ;;  %v11293_v31 = vld [vmem:[%s14508_s24 + $0x78] sm:$0xff]  }
  0x9c   :  { %9487 = vmatprep.subr.bf16.mxu1 %v11020_v37  ;;  %v12292_v37 = vld [vmem:[%s14509_s28 + $0x68] sm:$0x77] }
  0x9e   :  { %9466 = vmatpush3.bf16.msra.mxu0 %v11021_v38  ;;  %v11265_v38 = vld [vmem:[%s14508_s24 + $0x40] sm:$0xff]  }
  0x9f   :  { %9488 = vmatpush3.bf16.msra.mxu1 %v11022_v39  ;;  %9467 = vmatprep.subr.bf16.mxu0 %v11023_v40  ;;  %v8971_v39 = vcombine.high %v12287_v36, %v12287_v36  ;;  %v11266_v40 = vld [vmem:[%s14508_s24 + $0xc0] sm:$0xff]  }
  0xa0   :  { %9489 = vmatprep.subr.bf16.mxu1 %v11024_v41  ;;  %v8973_v41 = vcombine.high %v12292_v37, %v12292_v37 }
  0xa2   :  { %9468 = vmatpush3.bf16.msra.mxu0 %v11025_v42  ;;  %v11267_v42 = vld [vmem:[%s14508_s24] sm:$0xff]  }
  0xa3   :  { %9490 = vmatpush3.bf16.msra.mxu1 %v11026_v43  ;;  %9469 = vmatprep.subr.bf16.mxu0 %v11027_v44  ;;  %v11268_v43 = vld [vmem:[%s14508_s24 + $0x80] sm:$0xff]   ;;  %v11269_v44 = vld [vmem:[%s14508_s24 + $0x48] sm:$0xff]  }
  0xa4   :  { %9491 = vmatprep.subr.bf16.mxu1 %v11028_v45  ;;  %v11270_v45 = vld [vmem:[%s14508_s24 + $0xc8] sm:$0xff]  }
  0xa6   :  { %9470 = vmatpush3.bf16.msra.mxu0 %v11029_v46  ;;  %v11271_v46 = vld [vmem:[%s14508_s24 + $0x8] sm:$0xff]  }
  0xa7   :  { %9492 = vmatpush3.bf16.msra.mxu1 %v11030_v47  ;;  %9471 = vmatprep.subr.bf16.mxu0 %v11031_v48  ;;  %v11272_v47 = vld [vmem:[%s14508_s24 + $0x88] sm:$0xff]   ;;  %v11273_v48 = vld [vmem:[%s14508_s24 + $0x50] sm:$0xff]  }
  0xa8   :  { %9493 = vmatprep.subr.bf16.mxu1 %v11032_v49  ;;  %v11274_v49 = vld [vmem:[%s14508_s24 + $0xd0] sm:$0xff]  }
  0xaa   :  { %9472 = vmatpush3.bf16.msra.mxu0 %v11033_v50  ;;  %v11275_v50 = vld [vmem:[%s14508_s24 + $0x10] sm:$0xff]  }
  0xab   :  { %9494 = vmatpush3.bf16.msra.mxu1 %v11034_v51  ;;  %9473 = vmatprep.subr.bf16.mxu0 %v11035_v52  ;;  %v11276_v51 = vld [vmem:[%s14508_s24 + $0x90] sm:$0xff]   ;;  %v11277_v52 = vld [vmem:[%s14508_s24 + $0x58] sm:$0xff]  }
  0xac   :  { %9495 = vmatprep.subr.bf16.mxu1 %v11036_v53  ;;  %v11278_v53 = vld [vmem:[%s14508_s24 + $0xd8] sm:$0xff]  }
  0xae   :  { %9474 = vmatpush3.bf16.msra.mxu0 %v11037_v54  ;;  %v11279_v54 = vld [vmem:[%s14508_s24 + $0x18] sm:$0xff]  }
  0xaf   :  { %9496 = vmatpush3.bf16.msra.mxu1 %v11038_v55  ;;  %9503 = vmatprep.subr.bf16.mxu0 %v11043_v62  ;;  %v11280_v55 = vld [vmem:[%s14508_s24 + $0x98] sm:$0xff]   ;;  %v11287_v62 = vld [vmem:[%s14508_s24 + $0x28] sm:$0xff]  }
  0xb0   :  { %9525 = vmatprep.subr.bf16.mxu1 %v11044_v63  ;;  %v11288_v63 = vld [vmem:[%s14508_s24 + $0xa8] sm:$0xff]  }
  0xb1   :  { %2062 = vmatmul.mubr.bf16.vlgmr.msra.gmra.mrb[16].mxu0 %v8758_v57  ;;  %v11282_v57 = vld [vmem:[%s14508_s24 + $0xe0] sm:$0xff]  }
  0xb2   :  { %2102 = vmatmul.mubr.bf16.vlgmr.msra.gmra.mrb[16].mxu1 %v8760_v60  ;;  %9504 = vmatpush3.bf16.msra.mxu0 %v11045_v0  ;;  %v11285_v60 = vld [vmem:[%s14508_s24 + $0x68] sm:$0xff]   ;;  %v11289_v0 = vld [vmem:[%s14508_s24 + $0x70] sm:$0xff]  }
  0xb3   :  { %9526 = vmatpush3.bf16.msra.mxu1 %v11046_v1  ;;  %9505 = vmatprep.subr.bf16.mxu0 %v11047_v2  ;;  %v11290_v1 = vld [vmem:[%s14508_s24 + $0xf0] sm:$0xff]  }
  0xb4   :  { %9527 = vmatprep.subr.bf16.mxu1 %v12120_v3  ;;  %2141 = vmatprep.mubr.bf16.mxu0 %v8763_v33  ;;  %v11291_v2 = vld [vmem:[%s14508_s24 + $0x30] sm:$0xff]   ;;  %v11294_v33 = vld [vmem:[%s14508_s24 + $0xf8] sm:$0xff]  }
  0xb5   :  { %2181 = vmatprep.mubr.bf16.mxu1 %v8765_v35  ;;  %v8970_v35 = vcombine.low %v12287_v36, %v12287_v36  ;;  %v11298_v36 = vld [vmem:[%s14508_s24 + $0x1c0] sm:$0xff]  }
  0xb6   :  { %9506 = vmatpush3.bf16.msra.mxu0 %v12125_v4 }
  0xb7   :  { %9528 = vmatpush3.bf16.msra.mxu1 %v12131_v5  ;;  %9507 = vmatprep.subr.bf16.mxu0 %v12137_v6 }
  0xb8   :  { %9529 = vmatprep.subr.bf16.mxu1 %v12143_v7 }
  0xba   :  { %9508 = vmatpush3.bf16.msra.mxu0 %v12149_v8 }
  0xbb   :  { %9530 = vmatpush3.bf16.msra.mxu1 %v12155_v9  ;;  %9509 = vmatprep.subr.bf16.mxu0 %v12161_v10 }
  0xbc   :  { %9531 = vmatprep.subr.bf16.mxu1 %v12167_v11 }
  0xbe   :  { %9510 = vmatpush3.bf16.msra.mxu0 %v12173_v12 }
  0xbf   :  { %9532 = vmatpush3.bf16.msra.mxu1 %v12179_v13  ;;  %9511 = vmatprep.subr.bf16.mxu0 %v12185_v14 }
  0xc0   :  { %9533 = vmatprep.subr.bf16.mxu1 %v12191_v15 }
  0xc2   :  { %9512 = vmatpush3.bf16.msra.mxu0 %v12197_v16 }
  0xc3   :  { %9534 = vmatpush3.bf16.msra.mxu1 %v12203_v17  ;;  %9513 = vmatprep.subr.bf16.mxu0 %v12209_v18 }
  0xc4   :  { %9535 = vmatprep.subr.bf16.mxu1 %v12215_v19 }
  0xc6   :  { %9514 = vmatpush3.bf16.msra.mxu0 %v12221_v20 }
  0xc7   :  { %9536 = vmatpush3.bf16.msra.mxu1 %v12227_v21  ;;  %9515 = vmatprep.subr.bf16.mxu0 %v12233_v22 }
  0xc8   :  { %9537 = vmatprep.subr.bf16.mxu1 %v12239_v23 }
  0xca   :  { %9516 = vmatpush3.bf16.msra.mxu0 %v12245_v24 }
  0xcb   :  { %9538 = vmatpush3.bf16.msra.mxu1 %v12251_v25  ;;  %9517 = vmatprep.subr.bf16.mxu0 %v12257_v26 }
  0xcc   :  { %9539 = vmatprep.subr.bf16.mxu1 %v12263_v27 }
  0xce   :  { %9518 = vmatpush3.bf16.msra.mxu0 %v12269_v28 }
  0xcf   :  { %9540 = vmatpush3.bf16.msra.mxu1 %v12275_v29  ;;  %9547 = vmatprep.subr.bf16.mxu0 %v11265_v38  ;;  %v11295_v38 = vld [vmem:[%s14508_s24 + $0x38] sm:$0xff]  }
  0xd0   :  { %9569 = vmatprep.subr.bf16.mxu1 %v11266_v40  ;;  %v11296_v40 = vld [vmem:[%s14508_s24 + $0xb8] sm:$0xff]  }
  0xd1   :  { %2142 = vmatmul.mubr.bf16.vlgmr.msra.gmra.mrb[20].mxu0 %v8762_v32  ;;  %v12389_v32 = vld [vmem:[%s14509_s28 + $0x70] sm:$0x77] }
  0xd2   :  { %2182 = vmatmul.mubr.bf16.vlgmr.msra.gmra.mrb[20].mxu1 %v8764_v34  ;;  %9548 = vmatpush3.bf16.msra.mxu0 %v11267_v42  ;;  %v12397_v34 = vld [vmem:[%s14509_s28 + $0x78] sm:$0x77]  ;;  %v8975_v42 = vcombine.high %v12389_v32, %v12389_v32 }
  0xd3   :  { %9570 = vmatpush3.bf16.msra.mxu1 %v11268_v43  ;;  %9549 = vmatprep.subr.bf16.mxu0 %v11269_v44  ;;  %v11299_v43 = vld [vmem:[%s14508_s24 + $0x100] sm:$0xff]  }
  0xd4   :  { %9571 = vmatprep.subr.bf16.mxu1 %v11270_v45  ;;  %2318 = vmatprep.mubr.bf16.mxu0 %v8971_v39  ;;  %v8972_v39 = vcombine.low %v12292_v37, %v12292_v37  ;;  %v8977_v37 = vcombine.high %v12397_v34, %v12397_v34  ;;  %v11300_v44 = vld [vmem:[%s14508_s24 + $0x180] sm:$0xff]   ;;  %v11301_v45 = vld [vmem:[%s14508_s24 + $0x148] sm:$0xff]  }
  0xd5   :  { %2358 = vmatprep.mubr.bf16.mxu1 %v8973_v41  ;;  %v11297_v41 = vld [vmem:[%s14508_s24 + $0x140] sm:$0xff]  }
  0xd6   :  { %9550 = vmatpush3.bf16.msra.mxu0 %v11271_v46  ;;  %v11302_v46 = vld [vmem:[%s14508_s24 + $0x1c8] sm:$0xff]  }
  0xd7   :  { %9572 = vmatpush3.bf16.msra.mxu1 %v11272_v47  ;;  %9551 = vmatprep.subr.bf16.mxu0 %v11273_v48  ;;  %v11303_v47 = vld [vmem:[%s14508_s24 + $0x108] sm:$0xff]  }
  0xd8   :  { %9573 = vmatprep.subr.bf16.mxu1 %v11274_v49  ;;  %v11304_v48 = vld [vmem:[%s14508_s24 + $0x188] sm:$0xff]   ;;  %v11305_v49 = vld [vmem:[%s14508_s24 + $0x150] sm:$0xff]  }
  0xda   :  { %9552 = vmatpush3.bf16.msra.mxu0 %v11275_v50  ;;  %v11306_v50 = vld [vmem:[%s14508_s24 + $0x1d0] sm:$0xff]  }
  0xdb   :  { %9574 = vmatpush3.bf16.msra.mxu1 %v11276_v51  ;;  %9553 = vmatprep.subr.bf16.mxu0 %v11277_v52 }
  0xdc   :  { %9575 = vmatprep.subr.bf16.mxu1 %v11278_v53 }
  0xde   :  { %9554 = vmatpush3.bf16.msra.mxu0 %v11279_v54 }
  0xdf   :  { %9576 = vmatpush3.bf16.msra.mxu1 %v11280_v55  ;;  %9555 = vmatprep.subr.bf16.mxu0 %v11281_v56 }
  0xe0   :  { %9577 = vmatprep.subr.bf16.mxu1 %v11282_v57 }
  0xe2   :  { %9556 = vmatpush3.bf16.msra.mxu0 %v11283_v58 }
  0xe3   :  { %9578 = vmatpush3.bf16.msra.mxu1 %v11284_v59  ;;  %9557 = vmatprep.subr.bf16.mxu0 %v11285_v60 }
  0xe4   :  { %9579 = vmatprep.subr.bf16.mxu1 %v11286_v61 }
  0xe6   :  { %9558 = vmatpush3.bf16.msra.mxu0 %v11287_v62 }
  0xe7   :  { %9580 = vmatpush3.bf16.msra.mxu1 %v11288_v63  ;;  %9559 = vmatprep.subr.bf16.mxu0 %v11289_v0 }
  0xe8   :  { %9581 = vmatprep.subr.bf16.mxu1 %v11290_v1 }
  0xea   :  { %9560 = vmatpush3.bf16.msra.mxu0 %v11291_v2 }
  0xeb   :  { %9582 = vmatpush3.bf16.msra.mxu1 %v11292_v30  ;;  %9561 = vmatprep.subr.bf16.mxu0 %v11293_v31 }
  0xec   :  { %9583 = vmatprep.subr.bf16.mxu1 %v11294_v33 }
  0xee   :  { %9562 = vmatpush3.bf16.msra.mxu0 %v11295_v38 }
  0xef   :  { %9584 = vmatpush3.bf16.msra.mxu1 %v11296_v40  ;;  %9591 = vmatprep.subr.bf16.mxu0 %v11297_v41 }
  0xf0   :  { %9613 = vmatprep.subr.bf16.mxu1 %v11298_v36 }
  0xf1   :  { %2319 = vmatmul.mubr.bf16.vlgmr.msra.gmra.mrb[24].mxu0 %v8970_v35 }
  0xf2   :  { %9592 = vmatpush3.bf16.msra.mxu0 %v11299_v43  ;;  %2359 = vmatmul.mubr.bf16.vlgmr.msra.gmra.mrb[24].mxu1 %v8972_v39 }
  0xf3   :  { %9614 = vmatpush3.bf16.msra.mxu1 %v11300_v44  ;;  %9593 = vmatprep.subr.bf16.mxu0 %v11301_v45 }
  0xf4   :  { %9615 = vmatprep.subr.bf16.mxu1 %v11302_v46  ;;  %2398 = vmatprep.mubr.bf16.mxu0 %v8975_v42 }
  0xf5   :  { %2438 = vmatprep.mubr.bf16.mxu1 %v8977_v37 }
  0xf6   :  { %9594 = vmatpush3.bf16.msra.mxu0 %v11303_v47 }
  0xf7   :  { %9616 = vmatpush3.bf16.msra.mxu1 %v11304_v48  ;;  %9595 = vmatprep.subr.bf16.mxu0 %v11305_v49 }
  0xf8   :  { %9617 = vmatprep.subr.bf16.mxu1 %v11306_v50 }
  0xf9   :  { %28 = vsyncpa [#allocation3], 0  ;;  %v11307_v51 = vld [vmem:[%s14508_s24 + $0x110] sm:$0xff]   ;;  %v11309_v53 = vld [vmem:[%s14508_s24 + $0x158] sm:$0xff]   ;;  %s14510_s6 = sld [smem:[#allocation9_spill]]  ;;  %v8974_v49 = vcombine.low %v12389_v32, %v12389_v32  ;;  %vm2849_vm0 = vcmask 258048  }
  0xfa   :  { %9596 = vmatpush3.bf16.msra.mxu0 %v11307_v51  ;;  %v11308_v52 = vld [vmem:[%s14508_s24 + $0x190] sm:$0xff]   ;;  %v11310_v54 = vld [vmem:[%s14508_s24 + $0x1d8] sm:$0xff]   ;;  %v11313_v57 = vld [vmem:[%s14508_s24 + $0x160] sm:$0xff]   ;;  %vm11467_vm1 = vmmov 0   ;;  %s14512_s25 = sld [smem:[#allocation10_spill]]  ;;  %s14513_s26 = sld [smem:[#allocation11_spill]] }
  0xfb   :  { %9618 = vmatpush3.bf16.msra.mxu1 %v11308_v52  ;;  %9597 = vmatprep.subr.bf16.mxu0 %v11309_v53  ;;  %v11311_v55 = vld [vmem:[%s14508_s24 + $0x118] sm:$0xff]   ;;  %v11314_v58 = vld [vmem:[%s14508_s24 + $0x1e0] sm:$0xff]   ;;  %v11317_v35 = vld [vmem:[%s14508_s24 + $0x168] sm:$0xff]   ;;  %v8976_v52 = vcombine.low %v12397_v34, %v12397_v34  ;;  %vm2917_vm2 = vcmask 261120   ;;  %s14514_s5 = sld [smem:[#allocation14_spill]]  ;;  %vm3589_vm3 = vcmask 64512  }
  0xfc   :  { %9619 = vmatprep.subr.bf16.mxu1 %v11310_v54  ;;  %v11312_v56 = vld [vmem:[%s14508_s24 + $0x198] sm:$0xff]   ;;  %v11315_v0 = vld [vmem:[%s14508_s24 + $0x120] sm:$0xff]   ;;  %v11318_v40 = vld [vmem:[%s14508_s24 + $0x1e8] sm:$0xff]   ;;  %s14515_s27 = sld [smem:[#allocation13_spill]]  ;;  %vm3835_vm4 = vcmask 1041408   ;;  %vm3836_vm5 = vcmask 1042432  }
  0xfd   :  { %v11316_v33 = vld [vmem:[%s14508_s24 + $0x1a0] sm:$0xff]   ;;  %v11319_v36 = vld [vmem:[%s14508_s24 + $0x128] sm:$0xff]   ;;  %v11321_v43 = vld [vmem:[%s14508_s24 + $0x170] sm:$0xff]   ;;  %vm3778_vm6 = vcmask 36864   ;;  %vm3831_vm7 = vcmask 39936   ;;  %vm4027_vm8 = vcmask 1043456  }
  0xfe   :  { %9598 = vmatpush3.bf16.msra.mxu0 %v11311_v55  ;;  %v11320_v37 = vld [vmem:[%s14508_s24 + $0x1a8] sm:$0xff]   ;;  %v11322_v44 = vld [vmem:[%s14508_s24 + $0x1f0] sm:$0xff]   ;;  %v11325_v47 = vld [vmem:[%s14508_s24 + $0x178] sm:$0xff]   ;;  %vm4367_vm10 = vcmask 523264   ;;  %vm8587_vm13 = vcmask 253952   ;;  %vm8661_vm14 = vcmask 8192  }
  0xff   :  { %9620 = vmatpush3.bf16.msra.mxu1 %v11312_v56  ;;  %9599 = vmatprep.subr.bf16.mxu0 %v11313_v57  ;;  %v12470_v61 = vld [vmem:[%s14510_s6] sm:$0x1f]  ;;  %v11323_v45 = vld [vmem:[%s14508_s24 + $0x130] sm:$0xff]   ;;  %v11326_v48 = vld [vmem:[%s14508_s24 + $0x1f8] sm:$0xff]   ;;  %s14511_s6 = sld [smem:[#allocation12_spill]] }
 0x100   :  { %9621 = vmatprep.subr.bf16.mxu1 %v11314_v58  ;;  %v11324_v46 = vld [vmem:[%s14508_s24 + $0x1b0] sm:$0xff]   ;;  %v12516_v50 = vld [vmem:[%s14509_s28 + $0x80] sm:$0x77]  ;;  %v11327_v51 = vld [vmem:[%s14508_s24 + $0x138] sm:$0xff]  }
 0x101   :  { %v12526_v53 = vld [vmem:[%s14509_s28 + $0x88] sm:$0x77]  ;;  %v11328_v32 = vld [vmem:[%s14508_s24 + $0x1b8] sm:$0xff]   ;;  %v11329_v54 = vld [vmem:[%s14508_s24 + $0x240] sm:$0xff]   ;;  %v8979_v34 = vcombine.high %v12516_v50, %v12516_v50 }
 0x102   :  { %9600 = vmatpush3.bf16.msra.mxu0 %v11315_v0  ;;  %v11330_v55 = vld [vmem:[%s14508_s24 + $0x2c0] sm:$0xff]   ;;  %v8981_v56 = vcombine.high %v12526_v53, %v12526_v53  ;;  %v11337_v0 = vld [vmem:[%s14508_s24 + $0x250] sm:$0xff]  }
 0x103   :  { %9622 = vmatpush3.bf16.msra.mxu1 %v11316_v33  ;;  %9601 = vmatprep.subr.bf16.mxu0 %v11317_v35  ;;  %v11331_v57 = vld [vmem:[%s14508_s24 + $0x200] sm:$0xff]   ;;  %v11342_v33 = vld [vmem:[%s14508_s24 + $0x2d8] sm:$0xff]  }
 0x104   :  { %v9299_v59 = vpop.f32.mrb[0].mxu0  ;;  %9623 = vmatprep.subr.bf16.mxu1 %v11318_v40  ;;  %v11332_v58 = vld [vmem:[%s14508_s24 + $0x280] sm:$0xff]   ;;  %v11343_v35 = vld [vmem:[%s14508_s24 + $0x218] sm:$0xff]  }
 0x105   :  { %v9321_v60 = vpop.f32.mrb[0].mxu1  ;;  %v9300_v62 = vpop.f32.mrb[1].mxu0  ;;  %v11346_v40 = vld [vmem:[%s14508_s24 + $0x2e0] sm:$0xff]  }
 0x106   :  { %v9322_v63 = vpop.f32.mrb[1].mxu1  ;;  %v9301_v1 = vadd.f32 %v9300_v62, %v9299_v59  ;;  %v9302_v30 = vpop.f32.mrb[2].mxu0  ;;  %9602 = vmatpush3.bf16.msra.mxu0 %v11319_v36  ;;  %v11333_v59 = vld [vmem:[%s14508_s24 + $0x248] sm:$0xff]  }
 0x107   :  { %v9323_v2 = vadd.f32 %v9322_v63, %v9321_v60  ;;  %v9324_v31 = vpop.f32.mrb[2].mxu1  ;;  %v9303_v38 = vpop.f32.mrb[3].mxu0  ;;  %9624 = vmatpush3.bf16.msra.mxu1 %v11320_v37  ;;  %9603 = vmatprep.subr.bf16.mxu0 %v11321_v43  ;;  %v11334_v60 = vld [vmem:[%s14508_s24 + $0x2c8] sm:$0xff]   ;;  %v11340_v30 = vld [vmem:[%s14508_s24 + $0x290] sm:$0xff]   ;;  %v11347_v37 = vld [vmem:[%s14508_s24 + $0x220] sm:$0xff]  }
 0x108   :  { %v9325_v39 = vpop.f32.mrb[3].mxu1  ;;  %v1744_v41 = vadd.f32 %v9301_v1, %v12470_v61  ;;  %9625 = vmatprep.subr.bf16.mxu1 %v11322_v44  ;;  %v11335_v62 = vld [vmem:[%s14508_s24 + $0x208] sm:$0xff]   ;;  %v11338_v1 = vld [vmem:[%s14508_s24 + $0x2d0] sm:$0xff]   ;;  %v11341_v31 = vld [vmem:[%s14508_s24 + $0x258] sm:$0xff]  }
 0x109   :  { %v11336_v63 = vld [vmem:[%s14508_s24 + $0x288] sm:$0xff]   ;;  %v11344_v38 = vld [vmem:[%s14508_s24 + $0x298] sm:$0xff]   ;;  %v11345_v39 = vld [vmem:[%s14508_s24 + $0x260] sm:$0xff]  }
 0x10a   :  { %v12488_v42 = vadd.f32 %v9323_v2, %v1744_v41  ;;  %9604 = vmatpush3.bf16.msra.mxu0 %v11323_v45  ;;  %v11339_v2 = vld [vmem:[%s14508_s24 + $0x210] sm:$0xff]   ;;  %v11348_v45 = vld [vmem:[%s14508_s24 + $0x2a0] sm:$0xff]  }
 0x10b   :  { %9626 = vmatpush3.bf16.msra.mxu1 %v11324_v46  ;;  %9605 = vmatprep.subr.bf16.mxu0 %v11325_v47  ;;  %v11349_v46 = vld [vmem:[%s14508_s24 + $0x268] sm:$0xff]  }
 0x10c   :  { %9627 = vmatprep.subr.bf16.mxu1 %v11326_v48 }
 0x10e   :  { %9606 = vmatpush3.bf16.msra.mxu0 %v11327_v51 }
 0x10f   :  { %9628 = vmatpush3.bf16.msra.mxu1 %v11328_v32  ;;  %9635 = vmatprep.subr.bf16.mxu0 %v11329_v54 }
 0x110   :  { %9657 = vmatprep.subr.bf16.mxu1 %v11330_v55 }
 0x111   :  { %2399 = vmatmul.mubr.bf16.vlgmr.msra.gmra.mrb[28].mxu0 %v8974_v49 }
 0x112   :  { %9636 = vmatpush3.bf16.msra.mxu0 %v11331_v57  ;;  %2439 = vmatmul.mubr.bf16.vlgmr.msra.gmra.mrb[28].mxu1 %v8976_v52  ;;  %v11350_v52 = vld [vmem:[%s14508_s24 + $0x2e8] sm:$0xff]   ;;  %v11353_v57 = vld [vmem:[%s14508_s24 + $0x270] sm:$0xff]  }
 0x113   :  { %9658 = vmatpush3.bf16.msra.mxu1 %v11332_v58  ;;  %9637 = vmatprep.subr.bf16.mxu0 %v11333_v59  ;;  %v11355_v59 = vld [vmem:[%s14508_s24 + $0x230] sm:$0xff]  }
 0x114   :  { %9659 = vmatprep.subr.bf16.mxu1 %v11334_v60  ;;  %2478 = vmatprep.mubr.bf16.mxu0 %v8979_v34  ;;  %v11351_v34 = vld [vmem:[%s14508_s24 + $0x228] sm:$0xff]   ;;  %v11356_v60 = vld [vmem:[%s14508_s24 + $0x2b0] sm:$0xff]  }
 0x115   :  { %2518 = vmatprep.mubr.bf16.mxu1 %v8981_v56  ;;  %v11352_v56 = vld [vmem:[%s14508_s24 + $0x2a8] sm:$0xff]  }
 0x116   :  { %9638 = vmatpush3.bf16.msra.mxu0 %v11335_v62  ;;  %v11357_v62 = vld [vmem:[%s14508_s24 + $0x278] sm:$0xff]  }
 0x117   :  { %9660 = vmatpush3.bf16.msra.mxu1 %v11336_v63  ;;  %9639 = vmatprep.subr.bf16.mxu0 %v11337_v0  ;;  %v11358_v63 = vld [vmem:[%s14508_s24 + $0x2f8] sm:$0xff]   ;;  %v8978_v0 = vcombine.low %v12516_v50, %v12516_v50 }
 0x118   :  { %9661 = vmatprep.subr.bf16.mxu1 %v11338_v1  ;;  %v12633_v1 = vld [vmem:[%s14509_s28 + $0x90] sm:$0x77]  ;;  %v11360_v50 = vld [vmem:[%s14508_s24 + $0x2b8] sm:$0xff]  }
 0x11a   :  { %9640 = vmatpush3.bf16.msra.mxu0 %v11339_v2  ;;  %v11359_v2 = vld [vmem:[%s14508_s24 + $0x238] sm:$0xff]  }
 0x11b   :  { %9662 = vmatpush3.bf16.msra.mxu1 %v11340_v30  ;;  %9641 = vmatprep.subr.bf16.mxu0 %v11341_v31  ;;  %v8980_v30 = vcombine.low %v12526_v53, %v12526_v53  ;;  %v12643_v31 = vld [vmem:[%s14509_s28 + $0x98] sm:$0x77]  ;;  %v8983_v53 = vcombine.high %v12633_v1, %v12633_v1 }
 0x11c   :  { %9663 = vmatprep.subr.bf16.mxu1 %v11342_v33  ;;  %v11361_v33 = vld [vmem:[%s14508_s24 + $0x340] sm:$0xff]  }
 0x11e   :  { %9642 = vmatpush3.bf16.msra.mxu0 %v11343_v35  ;;  %v11362_v35 = vld [vmem:[%s14508_s24 + $0x3c0] sm:$0xff]  }
 0x11f   :  { %9664 = vmatpush3.bf16.msra.mxu1 %v11344_v38  ;;  %9643 = vmatprep.subr.bf16.mxu0 %v11345_v39  ;;  %v8985_v38 = vcombine.high %v12643_v31, %v12643_v31  ;;  %v11363_v39 = vld [vmem:[%s14508_s24 + $0x300] sm:$0xff]  }
 0x120   :  { %9665 = vmatprep.subr.bf16.mxu1 %v11346_v40  ;;  %v11364_v40 = vld [vmem:[%s14508_s24 + $0x380] sm:$0xff]  }
 0x122   :  { %9644 = vmatpush3.bf16.msra.mxu0 %v11347_v37  ;;  %v11367_v37 = vld [vmem:[%s14508_s24 + $0x308] sm:$0xff]  }
 0x123   :  { %9666 = vmatpush3.bf16.msra.mxu1 %v11348_v45  ;;  %9645 = vmatprep.subr.bf16.mxu0 %v11349_v46  ;;  %v11370_v45 = vld [vmem:[%s14508_s24 + $0x3d0] sm:$0xff]  }
 0x124   :  { %v9343_v41 = vpop.f32.mrb[4].mxu0  ;;  %9667 = vmatprep.subr.bf16.mxu1 %v11350_v52  ;;  %v11371_v46 = vld [vmem:[%s14508_s24 + $0x310] sm:$0xff]   ;;  %v11376_v52 = vld [vmem:[%s14508_s24 + $0x398] sm:$0xff]  }
 0x125   :  { %v9365_v36 = vpop.f32.mrb[4].mxu1  ;;  %v9344_v43 = vpop.f32.mrb[5].mxu0 }
 0x126   :  { %v9366_v44 = vpop.f32.mrb[5].mxu1  ;;  %v9345_v47 = vadd.f32 %v9344_v43, %v9343_v41  ;;  %v9346_v49 = vpop.f32.mrb[6].mxu0  ;;  %9646 = vmatpush3.bf16.msra.mxu0 %v11351_v34  ;;  %v11365_v41 = vld [vmem:[%s14508_s24 + $0x348] sm:$0xff]   ;;  %v11379_v34 = vld [vmem:[%s14508_s24 + $0x320] sm:$0xff]  }
 0x127   :  { %v9367_v48 = vadd.f32 %v9366_v44, %v9365_v36  ;;  %v9368_v51 = vpop.f32.mrb[6].mxu1  ;;  %v9347_v32 = vpop.f32.mrb[7].mxu0  ;;  %9668 = vmatpush3.bf16.msra.mxu1 %v11352_v56  ;;  %9647 = vmatprep.subr.bf16.mxu0 %v11353_v57  ;;  %v11366_v36 = vld [vmem:[%s14508_s24 + $0x3c8] sm:$0xff]   ;;  %v11369_v44 = vld [vmem:[%s14508_s24 + $0x350] sm:$0xff]   ;;  %v11374_v49 = vld [vmem:[%s14508_s24 + $0x3d8] sm:$0xff]  }
 0x128   :  { %v9369_v54 = vpop.f32.mrb[7].mxu1  ;;  %v1824_v55 = vadd.f32 %v9345_v47, %v12488_v42  ;;  %v11354_v42 = vld [vmem:[%s14508_s24 + $0x2f0] sm:$0xff]   ;;  %v11368_v43 = vld [vmem:[%s14508_s24 + $0x388] sm:$0xff]   ;;  %v11375_v51 = vld [vmem:[%s14508_s24 + $0x318] sm:$0xff]  }
 0x129   :  { %9669 = vmatprep.subr.bf16.mxu1 %v11354_v42  ;;  %v11372_v47 = vld [vmem:[%s14508_s24 + $0x390] sm:$0xff]   ;;  %v11377_v32 = vld [vmem:[%s14508_s24 + $0x360] sm:$0xff]  }
 0x12a   :  { %v12611_v58 = vadd.f32 %v9367_v48, %v1824_v55  ;;  %9648 = vmatpush3.bf16.msra.mxu0 %v11355_v59  ;;  %v11373_v48 = vld [vmem:[%s14508_s24 + $0x358] sm:$0xff]   ;;  %v11378_v54 = vld [vmem:[%s14508_s24 + $0x3e0] sm:$0xff]   ;;  %v11381_v59 = vld [vmem:[%s14508_s24 + $0x368] sm:$0xff]  }
 0x12b   :  { %9670 = vmatpush3.bf16.msra.mxu1 %v11356_v60  ;;  %9649 = vmatprep.subr.bf16.mxu0 %v11357_v62  ;;  %v11380_v42 = vld [vmem:[%s14508_s24 + $0x3a0] sm:$0xff]  }
 0x12c   :  { %9671 = vmatprep.subr.bf16.mxu1 %v11358_v63 }
 0x12e   :  { %9650 = vmatpush3.bf16.msra.mxu0 %v11359_v2 }
 0x12f   :  { %9672 = vmatpush3.bf16.msra.mxu1 %v11360_v50  ;;  %9679 = vmatprep.subr.bf16.mxu0 %v11361_v33 }
 0x130   :  { %9701 = vmatprep.subr.bf16.mxu1 %v11362_v35 }
 0x131   :  { %2479 = vmatmul.mubr.bf16.vlgmr.msra.gmra.mrb[32].mxu0 %v8978_v0  ;;  %v11382_v0 = vld [vmem:[%s14508_s24 + $0x3e8] sm:$0xff]  }
 0x132   :  { %9680 = vmatpush3.bf16.msra.mxu0 %v11363_v39  ;;  %2519 = vmatmul.mubr.bf16.vlgmr.msra.gmra.mrb[32].mxu1 %v8980_v30  ;;  %v11385_v39 = vld [vmem:[%s14508_s24 + $0x370] sm:$0xff]  }
 0x133   :  { %9702 = vmatpush3.bf16.msra.mxu1 %v11364_v40  ;;  %9681 = vmatprep.subr.bf16.mxu0 %v11365_v41  ;;  %v11387_v41 = vld [vmem:[%s14508_s24 + $0x330] sm:$0xff]  }
 0x134   :  { %9703 = vmatprep.subr.bf16.mxu1 %v11366_v36  ;;  %2558 = vmatprep.mubr.bf16.mxu0 %v8983_v53  ;;  %v11383_v53 = vld [vmem:[%s14508_s24 + $0x328] sm:$0xff]   ;;  %v11388_v36 = vld [vmem:[%s14508_s24 + $0x3b0] sm:$0xff]  }
 0x135   :  { %2598 = vmatprep.mubr.bf16.mxu1 %v8985_v38  ;;  %v11384_v38 = vld [vmem:[%s14508_s24 + $0x3a8] sm:$0xff]  }
 0x136   :  { %9682 = vmatpush3.bf16.msra.mxu0 %v11367_v37  ;;  %v11389_v37 = vld [vmem:[%s14508_s24 + $0x378] sm:$0xff]  }
 0x137   :  { %9704 = vmatpush3.bf16.msra.mxu1 %v11368_v43  ;;  %9683 = vmatprep.subr.bf16.mxu0 %v11369_v44  ;;  %v11390_v43 = vld [vmem:[%s14508_s24 + $0x3f8] sm:$0xff]   ;;  %v8982_v44 = vcombine.low %v12633_v1, %v12633_v1 }
 0x138   :  { %9705 = vmatprep.subr.bf16.mxu1 %v11370_v45  ;;  %v12750_v45 = vld [vmem:[%s14509_s28 + $0xa0] sm:$0x77]  ;;  %v11392_v1 = vld [vmem:[%s14508_s24 + $0x3b8] sm:$0xff]  }
 0x13a   :  { %9684 = vmatpush3.bf16.msra.mxu0 %v11371_v46  ;;  %v11391_v46 = vld [vmem:[%s14508_s24 + $0x338] sm:$0xff]  }
 0x13b   :  { %9706 = vmatpush3.bf16.msra.mxu1 %v11372_v47  ;;  %9685 = vmatprep.subr.bf16.mxu0 %v11373_v48  ;;  %v8984_v47 = vcombine.low %v12643_v31, %v12643_v31  ;;  %v12760_v48 = vld [vmem:[%s14509_s28 + $0xa8] sm:$0x77]  ;;  %v8987_v31 = vcombine.high %v12750_v45, %v12750_v45 }
 0x13c   :  { %9707 = vmatprep.subr.bf16.mxu1 %v11374_v49  ;;  %v11393_v49 = vld [vmem:[%s14508_s24 + $0x440] sm:$0xff]  }
 0x13e   :  { %9686 = vmatpush3.bf16.msra.mxu0 %v11375_v51  ;;  %v11394_v51 = vld [vmem:[%s14508_s24 + $0x4c0] sm:$0xff]  }
 0x13f   :  { %9708 = vmatpush3.bf16.msra.mxu1 %v11376_v52  ;;  %9687 = vmatprep.subr.bf16.mxu0 %v11377_v32  ;;  %v8989_v52 = vcombine.high %v12760_v48, %v12760_v48  ;;  %v11395_v32 = vld [vmem:[%s14508_s24 + $0x400] sm:$0xff]  }
 0x140   :  { %9709 = vmatprep.subr.bf16.mxu1 %v11378_v54  ;;  %v11396_v54 = vld [vmem:[%s14508_s24 + $0x480] sm:$0xff]  }
 0x142   :  { %9688 = vmatpush3.bf16.msra.mxu0 %v11379_v34  ;;  %v11398_v34 = vld [vmem:[%s14508_s24 + $0x4c8] sm:$0xff]  }
 0x143   :  { %9710 = vmatpush3.bf16.msra.mxu1 %v11380_v42  ;;  %9689 = vmatprep.subr.bf16.mxu0 %v11381_v59  ;;  %v11401_v42 = vld [vmem:[%s14508_s24 + $0x450] sm:$0xff]  }
 0x144   :  { %v9387_v55 = vpop.f32.mrb[8].mxu0  ;;  %9711 = vmatprep.subr.bf16.mxu1 %v11382_v0  ;;  %v11402_v59 = vld [vmem:[%s14508_s24 + $0x4d0] sm:$0xff]   ;;  %v11406_v0 = vld [vmem:[%s14508_s24 + $0x4d8] sm:$0xff]  }
 0x145   :  { %v9409_v56 = vpop.f32.mrb[8].mxu1  ;;  %v9388_v57 = vpop.f32.mrb[9].mxu0 }
 0x146   :  { %v9389_v60 = vadd.f32 %v9388_v57, %v9387_v55  ;;  %v9410_v62 = vpop.f32.mrb[9].mxu1  ;;  %v9390_v63 = vpop.f32.mrb[10].mxu0  ;;  %9690 = vmatpush3.bf16.msra.mxu0 %v11383_v53  ;;  %v11397_v55 = vld [vmem:[%s14508_s24 + $0x448] sm:$0xff]  }
 0x147   :  { %v9411_v2 = vadd.f32 %v9410_v62, %v9409_v56  ;;  %v9412_v30 = vpop.f32.mrb[10].mxu1  ;;  %v9391_v50 = vpop.f32.mrb[11].mxu0  ;;  %9712 = vmatpush3.bf16.msra.mxu1 %v11384_v38  ;;  %9691 = vmatprep.subr.bf16.mxu0 %v11385_v39  ;;  %v11399_v56 = vld [vmem:[%s14508_s24 + $0x408] sm:$0xff]   ;;  %v11404_v62 = vld [vmem:[%s14508_s24 + $0x490] sm:$0xff]   ;;  %v11405_v63 = vld [vmem:[%s14508_s24 + $0x458] sm:$0xff]  }
 0x148   :  { %v1904_v33 = vadd.f32 %v9389_v60, %v12611_v58  ;;  %v9413_v35 = vpop.f32.mrb[11].mxu1  ;;  %v11386_v58 = vld [vmem:[%s14508_s24 + $0x3f0] sm:$0xff]   ;;  %v11400_v57 = vld [vmem:[%s14508_s24 + $0x488] sm:$0xff]   ;;  %v11408_v30 = vld [vmem:[%s14508_s24 + $0x498] sm:$0xff]  }
 0x149   :  { %9713 = vmatprep.subr.bf16.mxu1 %v11386_v58  ;;  %v11403_v60 = vld [vmem:[%s14508_s24 + $0x410] sm:$0xff]   ;;  %v11409_v50 = vld [vmem:[%s14508_s24 + $0x460] sm:$0xff]   ;;  %v11413_v39 = vld [vmem:[%s14508_s24 + $0x468] sm:$0xff]  }
 0x14a   :  { %v12728_v40 = vadd.f32 %v9411_v2, %v1904_v33  ;;  %9692 = vmatpush3.bf16.msra.mxu0 %v11387_v41  ;;  %v11407_v2 = vld [vmem:[%s14508_s24 + $0x418] sm:$0xff]   ;;  %v11410_v33 = vld [vmem:[%s14508_s24 + $0x4e0] sm:$0xff]  }
 0x14b   :  { %9714 = vmatpush3.bf16.msra.mxu1 %v11388_v36  ;;  %9693 = vmatprep.subr.bf16.mxu0 %v11389_v37  ;;  %v11411_v35 = vld [vmem:[%s14508_s24 + $0x420] sm:$0xff]   ;;  %v11414_v36 = vld [vmem:[%s14508_s24 + $0x4e8] sm:$0xff]  }
 0x14c   :  { %9715 = vmatprep.subr.bf16.mxu1 %v11390_v43  ;;  %v11412_v38 = vld [vmem:[%s14508_s24 + $0x4a0] sm:$0xff]  }
 0x14e   :  { %9694 = vmatpush3.bf16.msra.mxu0 %v11391_v46 }
 0x14f   :  { %9716 = vmatpush3.bf16.msra.mxu1 %v11392_v1  ;;  %9723 = vmatprep.subr.bf16.mxu0 %v11393_v49  ;;  %v11415_v49 = vld [vmem:[%s14508_s24 + $0x428] sm:$0xff]  }
 0x150   :  { %9745 = vmatprep.subr.bf16.mxu1 %v11394_v51 }
 0x151   :  { %2559 = vmatmul.mubr.bf16.vlgmr.msra.gmra.mrb[36].mxu0 %v8982_v44 }
 0x152   :  { %9724 = vmatpush3.bf16.msra.mxu0 %v11395_v32  ;;  %2599 = vmatmul.mubr.bf16.vlgmr.msra.gmra.mrb[36].mxu1 %v8984_v47  ;;  %v11417_v32 = vld [vmem:[%s14508_s24 + $0x470] sm:$0xff]  }
 0x153   :  { %9746 = vmatpush3.bf16.msra.mxu1 %v11396_v54  ;;  %9725 = vmatprep.subr.bf16.mxu0 %v11397_v55  ;;  %v11418_v54 = vld [vmem:[%s14508_s24 + $0x4f0] sm:$0xff]  }
 0x154   :  { %9747 = vmatprep.subr.bf16.mxu1 %v11398_v34  ;;  %2638 = vmatprep.mubr.bf16.mxu0 %v8987_v31  ;;  %v11420_v34 = vld [vmem:[%s14508_s24 + $0x4b0] sm:$0xff]  }
 0x155   :  { %2678 = vmatprep.mubr.bf16.mxu1 %v8989_v52  ;;  %v11416_v52 = vld [vmem:[%s14508_s24 + $0x4a8] sm:$0xff]  }
 0x156   :  { %9726 = vmatpush3.bf16.msra.mxu0 %v11399_v56  ;;  %v11421_v56 = vld [vmem:[%s14508_s24 + $0x478] sm:$0xff]  }
 0x157   :  { %9748 = vmatpush3.bf16.msra.mxu1 %v11400_v57  ;;  %9727 = vmatprep.subr.bf16.mxu0 %v11401_v42  ;;  %v11422_v57 = vld [vmem:[%s14508_s24 + $0x4f8] sm:$0xff]   ;;  %v8986_v42 = vcombine.low %v12750_v45, %v12750_v45 }
 0x158   :  { %9749 = vmatprep.subr.bf16.mxu1 %v11402_v59  ;;  %v12867_v59 = vld [vmem:[%s14509_s28 + $0xb0] sm:$0x77]  ;;  %v11424_v45 = vld [vmem:[%s14508_s24 + $0x4b8] sm:$0xff]  }
 0x15a   :  { %9728 = vmatpush3.bf16.msra.mxu0 %v11403_v60  ;;  %v11423_v60 = vld [vmem:[%s14508_s24 + $0x438] sm:$0xff]  }
 0x15b   :  { %9750 = vmatpush3.bf16.msra.mxu1 %v11404_v62  ;;  %9729 = vmatprep.subr.bf16.mxu0 %v11405_v63  ;;  %v8988_v62 = vcombine.low %v12760_v48, %v12760_v48  ;;  %v8969_v63 = vld [vmem:[%s14509_s28 + $0xb8] sm:$0x77]  ;;  %v8991_v48 = vcombine.high %v12867_v59, %v12867_v59 }
 0x15c   :  { %9751 = vmatprep.subr.bf16.mxu1 %v11406_v0  ;;  %v11425_v0 = vld [vmem:[%s14508_s24 + $0x540] sm:$0xff]  }
 0x15e   :  { %9730 = vmatpush3.bf16.msra.mxu0 %v11407_v2  ;;  %v11426_v2 = vld [vmem:[%s14508_s24 + $0x5c0] sm:$0xff]  }
 0x15f   :  { %9752 = vmatpush3.bf16.msra.mxu1 %v11408_v30  ;;  %9731 = vmatprep.subr.bf16.mxu0 %v11409_v50  ;;  %v8993_v30 = vcombine.high %v8969_v63, %v8969_v63  ;;  %v11427_v50 = vld [vmem:[%s14508_s24 + $0x500] sm:$0xff]  }
 0x160   :  { %9753 = vmatprep.subr.bf16.mxu1 %v11410_v33  ;;  %v11428_v33 = vld [vmem:[%s14508_s24 + $0x580] sm:$0xff]  }
 0x162   :  { %9732 = vmatpush3.bf16.msra.mxu0 %v11411_v35  ;;  %v11429_v35 = vld [vmem:[%s14508_s24 + $0x548] sm:$0xff]  }
 0x163   :  { %9754 = vmatpush3.bf16.msra.mxu1 %v11412_v38  ;;  %9733 = vmatprep.subr.bf16.mxu0 %v11413_v39  ;;  %v11103_v39 = vld [vmem:[%s14511_s6] sm:$0xff]  }
 0x164   :  { %v9431_v53 = vpop.f32.mrb[12].mxu0  ;;  %9755 = vmatprep.subr.bf16.mxu1 %v11414_v36  ;;  %v12947_v36 = vld [vmem:[%s14511_s6 + $0x8] sm:$0xff]  }
 0x165   :  { %v9453_v58 = vpop.f32.mrb[12].mxu1  ;;  %v9432_v41 = vpop.f32.mrb[13].mxu0 }
 0x166   :  { %v9433_v37 = vadd.f32 %v9432_v41, %v9431_v53  ;;  %v9454_v43 = vpop.f32.mrb[13].mxu1  ;;  %v9434_v44 = vpop.f32.mrb[14].mxu0  ;;  %9734 = vmatpush3.bf16.msra.mxu0 %v11415_v49  ;;  %v14496_v41 = vmov 0.0  }
 0x167   :  { %v9455_v46 = vadd.f32 %v9454_v43, %v9453_v58  ;;  %v9456_v47 = vpop.f32.mrb[14].mxu1  ;;  %v9435_v1 = vpop.f32.mrb[15].mxu0  ;;  %9756 = vmatpush3.bf16.msra.mxu1 %v11416_v52  ;;  %9735 = vmatprep.subr.bf16.mxu0 %v11417_v32  ;;  %v11104_v58 = vld [vmem:[%s14511_s6 + $0x10] sm:$0xff]  }
 0x168   :  { %v1984_v51 = vadd.f32 %v9433_v37, %v12728_v40  ;;  %v9457_v31 = vpop.f32.mrb[15].mxu1  ;;  %9757 = vmatprep.subr.bf16.mxu1 %v11418_v54  ;;  %v11419_v40 = vld [vmem:[%s14508_s24 + $0x430] sm:$0xff]   ;;  %v11106_v37 = vld [vmem:[%s14511_s6 + $0x18] sm:$0xff]  }
 0x16a   :  { %v12848_v55 = vadd.f32 %v9455_v46, %v1984_v51  ;;  %9736 = vmatpush3.bf16.msra.mxu0 %v11419_v40 }
 0x16b   :  { %9758 = vmatpush3.bf16.msra.mxu1 %v11420_v34  ;;  %9737 = vmatprep.subr.bf16.mxu0 %v11421_v56 }
 0x16c   :  { %9759 = vmatprep.subr.bf16.mxu1 %v11422_v57 }
 0x16e   :  { %9738 = vmatpush3.bf16.msra.mxu0 %v11423_v60 }
 0x16f   :  { %9760 = vmatpush3.bf16.msra.mxu1 %v11424_v45  ;;  %9767 = vmatprep.subr.bf16.mxu0 %v11425_v0 }
 0x170   :  { %9789 = vmatprep.subr.bf16.mxu1 %v11426_v2 }
 0x171   :  { %2639 = vmatmul.mubr.bf16.vlgmr.msra.gmra.mrb[40].mxu0 %v8986_v42 }
 0x172   :  { %9768 = vmatpush3.bf16.msra.mxu0 %v11427_v50  ;;  %2679 = vmatmul.mubr.bf16.vlgmr.msra.gmra.mrb[40].mxu1 %v8988_v62 }
 0x173   :  { %9790 = vmatpush3.bf16.msra.mxu1 %v11428_v33  ;;  %9769 = vmatprep.subr.bf16.mxu0 %v11429_v35 }
 0x174   :  { %9791 = vmatprep.subr.bf16.mxu1 %v12120_v3  ;;  %2718 = vmatprep.mubr.bf16.mxu0 %v8991_v48 }
 0x175   :  { %2758 = vmatprep.mubr.bf16.mxu1 %v8993_v30 }
 0x176   :  { %9770 = vmatpush3.bf16.msra.mxu0 %v12125_v4 }
 0x177   :  { %9792 = vmatpush3.bf16.msra.mxu1 %v12131_v5  ;;  %9771 = vmatprep.subr.bf16.mxu0 %v12137_v6 }
 0x178   :  { %9793 = vmatprep.subr.bf16.mxu1 %v12143_v7 }
 0x17a   :  { %9772 = vmatpush3.bf16.msra.mxu0 %v12149_v8 }
 0x17b   :  { %9794 = vmatpush3.bf16.msra.mxu1 %v12155_v9  ;;  %9773 = vmatprep.subr.bf16.mxu0 %v12161_v10 }
 0x17c   :  { %9795 = vmatprep.subr.bf16.mxu1 %v12167_v11 }
 0x17e   :  { %9774 = vmatpush3.bf16.msra.mxu0 %v12173_v12 }
 0x17f   :  { %9796 = vmatpush3.bf16.msra.mxu1 %v12179_v13  ;;  %9775 = vmatprep.subr.bf16.mxu0 %v12185_v14 }
 0x180   :  { %9797 = vmatprep.subr.bf16.mxu1 %v12191_v15  ;;  %v8990_v15 = vcombine.low %v12867_v59, %v12867_v59 }
 0x182   :  { %9776 = vmatpush3.bf16.msra.mxu0 %v12197_v16  ;;  %v8992_v16 = vcombine.low %v8969_v63, %v8969_v63 }
 0x183   :  { %9798 = vmatpush3.bf16.msra.mxu1 %v12203_v17  ;;  %9777 = vmatprep.subr.bf16.mxu0 %v12209_v18 }
 0x184   :  { %v9475_v3 = vpop.f32.mrb[16].mxu0  ;;  %9799 = vmatprep.subr.bf16.mxu1 %v12215_v19 }
 0x185   :  { %v9497_v4 = vpop.f32.mrb[16].mxu1  ;;  %v9476_v5 = vpop.f32.mrb[17].mxu0 }
 0x186   :  { %v9498_v6 = vpop.f32.mrb[17].mxu1  ;;  %v9477_v7 = vadd.f32 %v9476_v5, %v9475_v3  ;;  %v9478_v9 = vpop.f32.mrb[18].mxu0  ;;  %9778 = vmatpush3.bf16.msra.mxu0 %v12221_v20 }
 0x187   :  { %v9499_v8 = vadd.f32 %v9498_v6, %v9497_v4  ;;  %v9500_v10 = vpop.f32.mrb[18].mxu1  ;;  %v9479_v11 = vpop.f32.mrb[19].mxu0  ;;  %9800 = vmatpush3.bf16.msra.mxu1 %v12227_v21  ;;  %9779 = vmatprep.subr.bf16.mxu0 %v12233_v22 }
 0x188   :  { %v9501_v12 = vpop.f32.mrb[19].mxu1  ;;  %v2064_v13 = vadd.f32 %v9477_v7, %v12848_v55  ;;  %9801 = vmatprep.subr.bf16.mxu1 %v12239_v23 }
 0x18a   :  { %v2104_v14 = vadd.f32 %v9499_v8, %v2064_v13  ;;  %9780 = vmatpush3.bf16.msra.mxu0 %v12245_v24 }
 0x18b   :  { %9802 = vmatpush3.bf16.msra.mxu1 %v12251_v25  ;;  %9781 = vmatprep.subr.bf16.mxu0 %v12257_v26 }
 0x18c   :  { %9803 = vmatprep.subr.bf16.mxu1 %v12263_v27 }
 0x18e   :  { %9782 = vmatpush3.bf16.msra.mxu0 %v12269_v28 }
 0x18f   :  { %9804 = vmatpush3.bf16.msra.mxu1 %v12275_v29  ;;  %10089 = vmatprep.subr.bf16.mxu0 %v14496_v41 }
 0x190   :  { %10097 = vmatprep.subr.bf16.mxu1 %v14496_v41 }
 0x191   :  { %2719 = vmatmul.mubr.bf16.vlgmr.msra.gmra.mrb[44].mxu0 %v8990_v15 }
 0x192   :  { %2759 = vmatmul.mubr.bf16.vlgmr.msra.gmra.mrb[44].mxu1 %v8992_v16  ;;  %10090 = vmatpush3.bf16.msra.mxu0 %v11103_v39 }
 0x193   :  { %10098 = vmatpush3.bf16.msra.mxu1 %v11104_v58  ;;  %10091 = vmatprep.subr.bf16.mxu0 %v14496_v41 }
 0x194   :  { %10099 = vmatprep.subr.bf16.mxu1 %v14496_v41  ;;  %10093 = vmatprep.mubr.msk.bf16.mxu0 %vm11467_vm1, %v14496_v41 }
 0x195   :  { %10101 = vmatprep.mubr.msk.bf16.mxu1 %vm11467_vm1, %v14496_v41 }
 0x196   :  { %10092 = vmatpush3.bf16.msra.mxu0 %v12947_v36 }
 0x197   :  { %10100 = vmatpush3.bf16.msra.mxu1 %v11106_v37  ;;  %10105 = vmatprep.subr.bf16.mxu0 %v14496_v41 }
 0x198   :  { %10113 = vmatprep.subr.bf16.mxu1 %v14496_v41 }
 0x1a4   :  { %v9519_v17 = vpop.f32.mrb[20].mxu0 }
 0x1a5   :  { %v9541_v18 = vpop.f32.mrb[20].mxu1  ;;  %v9520_v19 = vpop.f32.mrb[21].mxu0 }
 0x1a6   :  { %v9521_v20 = vadd.f32 %v9520_v19, %v9519_v17  ;;  %v9542_v21 = vpop.f32.mrb[21].mxu1  ;;  %v9522_v22 = vpop.f32.mrb[22].mxu0 }
 0x1a7   :  { %v9543_v23 = vadd.f32 %v9542_v21, %v9541_v18  ;;  %v9544_v24 = vpop.f32.mrb[22].mxu1  ;;  %v9523_v25 = vpop.f32.mrb[23].mxu0 }
 0x1a8   :  { %v2144_v26 = vadd.f32 %v9521_v20, %v2104_v14  ;;  %v9545_v27 = vpop.f32.mrb[23].mxu1 }
 0x1aa   :  { %v12927_v53 = vadd.f32 %v9543_v23, %v2144_v26 }
 0x1ac   :  { %v2850_v28 = vsel %vm2849_vm0, %v12927_v53, 0.0  ;;  %v2855_v29 = vmul.f32 %v12927_v53, %v12927_v53 }
 0x1ad   :  { %2851 = vadd.xlane.f32.xlu0 %v2850_v28 }
 0x1ae   :  { %v2856_v38 = vsel %vm2849_vm0, %v2855_v29, 0.0 }
 0x1b1   :  { %2857 = vadd.xlane.f32.xlu0 %v2856_v38 }
 0x1c4   :  { %v9563_v43 = vpop.f32.mrb[24].mxu0 }
 0x1c5   :  { %v9585_v44 = vpop.f32.mrb[24].mxu1  ;;  %v9564_v46 = vpop.f32.mrb[25].mxu0 }
 0x1c6   :  { %v9586_v47 = vpop.f32.mrb[25].mxu1  ;;  %v9565_v1 = vadd.f32 %v9564_v46, %v9563_v43  ;;  %v9566_v49 = vpop.f32.mrb[26].mxu0 }
 0x1c7   :  { %v9587_v51 = vadd.f32 %v9586_v47, %v9585_v44  ;;  %v9588_v31 = vpop.f32.mrb[26].mxu1  ;;  %v9567_v52 = vpop.f32.mrb[27].mxu0 }
 0x1c8   :  { %v9589_v32 = vpop.f32.mrb[27].mxu1  ;;  %v2321_v54 = vadd.f32 %v9565_v1, %v12470_v61  ;;  %v12964_v52 = vld [vmem:[%s14512_s25] ss:$0 sm:$0xff] }
 0x1ca   :  { %v2361_v57 = vadd.f32 %v9587_v51, %v2321_v54  ;;  %v12969_v54 = vld [vmem:[%s14513_s26] ss:$0 sm:$0xff] }
 0x1e4   :  { %v9607_v55 = vpop.f32.mrb[28].mxu0 }
 0x1e5   :  { %v9629_v40 = vpop.f32.mrb[28].mxu1  ;;  %v9608_v34 = vpop.f32.mrb[29].mxu0 }
 0x1e6   :  { %v9630_v56 = vpop.f32.mrb[29].mxu1  ;;  %v9609_v42 = vadd.f32 %v9608_v34, %v9607_v55  ;;  %v9610_v59 = vpop.f32.mrb[30].mxu0  ;;  %v11107_v34 = vld [vmem:[%s14511_s6 + $0x20] sm:$0xff]  }
 0x1e7   :  { %v9631_v60 = vadd.f32 %v9630_v56, %v9629_v40  ;;  %v9632_v62 = vpop.f32.mrb[30].mxu1  ;;  %v9611_v63 = vpop.f32.mrb[31].mxu0  ;;  %v12979_v56 = vld [vmem:[%s14511_s6 + $0x30] sm:$0xff]   ;;  %v12994_v59 = vld [vmem:[%s14511_s6 + $0x38] sm:$0xff]  }
 0x1e8   :  { %v9633_v45 = vpop.f32.mrb[31].mxu1  ;;  %v2401_v0 = vadd.f32 %v9609_v42, %v2361_v57  ;;  %v11109_v42 = vld [vmem:[%s14511_s6 + $0x28] sm:$0xff]   ;;  %v13009_v62 = vld [vmem:[%s14514_s5 + $0x10] sm:$0xff]  }
 0x1e9   :  { %v11113_v63 = vld [vmem:[%s14514_s5 + $0x8] sm:$0xff]   ;;  %v13024_v45 = vld [vmem:[%s14514_s5 + $0x18] sm:$0xff]  }
 0x1ea   :  { %v2441_v33 = vadd.f32 %v9631_v60, %v2401_v0  ;;  %v11111_v60 = vld [vmem:[%s14514_s5] sm:$0xff]  }
 0x204   :  { %v9651_v2 = vpop.f32.mrb[32].mxu0 }
 0x205   :  { %v9673_v48 = vpop.f32.mrb[32].mxu1  ;;  %v9652_v30 = vpop.f32.mrb[33].mxu0 }
 0x206   :  { %v9674_v50 = vpop.f32.mrb[33].mxu1  ;;  %v9653_v35 = vadd.f32 %v9652_v30, %v9651_v2  ;;  %v9654_v3 = vpop.f32.mrb[34].mxu0  ;;  %v11115_v2 = vld [vmem:[%s14514_s5 + $0x20] sm:$0xff]  }
 0x207   :  { %v9675_v61 = vadd.f32 %v9674_v50, %v9673_v48  ;;  %v9676_v4 = vpop.f32.mrb[34].mxu1  ;;  %v9655_v5 = vpop.f32.mrb[35].mxu0  ;;  %v13039_v48 = vld [vmem:[%s14514_s5 + $0x30] sm:$0xff]  }
 0x208   :  { %v9677_v6 = vpop.f32.mrb[35].mxu1  ;;  %v2481_v7 = vadd.f32 %v9653_v35, %v2441_v33 }
 0x20a   :  { %v2521_v8 = vadd.f32 %v9675_v61, %v2481_v7 }
 0x224   :  { %v9695_v9 = vpop.f32.mrb[36].mxu0 }
 0x225   :  { %v9696_v10 = vpop.f32.mrb[37].mxu0  ;;  %v9717_v11 = vpop.f32.mrb[36].mxu1 }
 0x226   :  { %v9697_v12 = vadd.f32 %v9696_v10, %v9695_v9  ;;  %v9698_v13 = vpop.f32.mrb[38].mxu0  ;;  %v9718_v14 = vpop.f32.mrb[37].mxu1  ;;  %v13054_v9 = vld [vmem:[%s14514_s5 + $0x38] sm:$0xff]  }
 0x227   :  { %v9699_v15 = vpop.f32.mrb[39].mxu0  ;;  %v9719_v16 = vadd.f32 %v9718_v14, %v9717_v11  ;;  %v9720_v17 = vpop.f32.mrb[38].mxu1  ;;  %v11119_v11 = vld [vmem:[%s14474_s9] sm:$0xff]   ;;  %v11121_v13 = vld [vmem:[%s14474_s9 + $0x8] sm:$0xff]   ;;  %v13086_v14 = vld [vmem:[%s14474_s9 + $0x18] sm:$0xff]  }
 0x228   :  { %v2561_v18 = vadd.f32 %v9697_v12, %v2521_v8  ;;  %v9721_v19 = vpop.f32.mrb[39].mxu1  ;;  %v11117_v8 = vld [vmem:[%s14514_s5 + $0x28] sm:$0xff]   ;;  %v13071_v12 = vld [vmem:[%s14474_s9 + $0x10] sm:$0xff]   ;;  %v11123_v15 = vld [vmem:[%s14474_s9 + $0x20] sm:$0xff]  }
 0x229   :  { %v13113_v17 = vld [vmem:[%s14474_s9 + $0x28] sm:$0xff]  }
 0x22a   :  { %v2601_v20 = vadd.f32 %v9719_v16, %v2561_v18  ;;  %v13101_v16 = vld [vmem:[%s14474_s9 + $0x30] sm:$0xff]   ;;  %v13118_v18 = vld [vmem:[%s14474_s9 + $0x38] sm:$0xff]  }
 0x23a   :  { %v2852_v21 = vpop.xlane.xlu0 %2851 }
 0x23b   :  { %v2854_v22 = vmul.f32 0.03125, %v2852_v21 }
 0x23d   :  { %v2860_v24 = vmul.f32 %v2854_v22, %v2854_v22  ;;  %v2862_v51 = vsub.f32 %v12927_v53, %v2854_v22 }
 0x23e   :  { %v2858_v23 = vpop.xlane.xlu0 %2857 }
 0x23f   :  { %v2859_v25 = vmul.f32 0.03125, %v2858_v23 }
 0x241   :  { %v2861_v26 = vsub.f32 %v2859_v25, %v2860_v24 }
 0x243   :  { %v2863_v27 = vadd.f32 1e-06, %v2861_v26 }
 0x244   :  { %v9739_v28 = vpop.f32.mrb[40].mxu0 }
 0x245   :  { %11165 = vrsqrt.f32 %v2863_v27  ;;  %v9740_v29 = vpop.f32.mrb[41].mxu0  ;;  %v9761_v38 = vpop.f32.mrb[40].mxu1 }
 0x246   :  { %v9741_v39 = vadd.f32 %v9740_v29, %v9739_v28  ;;  %v9742_v58 = vpop.f32.mrb[42].mxu0  ;;  %v9762_v37 = vpop.f32.mrb[41].mxu1 }
 0x247   :  { %v9743_v43 = vpop.f32.mrb[43].mxu0  ;;  %v9763_v44 = vadd.f32 %v9762_v37, %v9761_v38  ;;  %v9764_v46 = vpop.f32.mrb[42].mxu1 }
 0x248   :  { %v2641_v47 = vadd.f32 %v9741_v39, %v2601_v20  ;;  %v9765_v1 = vpop.f32.mrb[43].mxu1  ;;  %v13146_v46 = vld [vmem:[%s14473_s8 + $0x1] ss:$0 sm:$0xff] }
 0x24a   :  { %v2681_v49 = vadd.f32 %v9763_v44, %v2641_v47  ;;  %v13141_v44 = vld [vmem:[%s14473_s8] ss:$0 sm:$0xff] }
 0x24f   :  { %v11166_v31 = vpop.eup %11165 }
 0x250   :  { %v2865_v32 = vmul.f32 %v11166_v31, %v2862_v51 }
 0x252   :  { %v2872_v55 = vmul.f32 %v12964_v52, %v2865_v32 }
 0x254   :  { %v2879_v40 = vadd.f32 %v12969_v54, %v2872_v55 }
 0x256   :  { %v12981_v57 = vpack.c.bf16 %v2879_v40, %v2879_v40 }
 0x258   :  { %10094 = vmatmul.mubr.msk.bf16.vlgmr.msra.gmra.mrb[48].mxu0 %vm2917_vm2, %v12981_v57  ;;  %10102 = vmatmul.mubr.msk.bf16.vlgmr.msra.gmra.mrb[48].mxu1 %vm2917_vm2, %v12981_v57 }
 0x259   :  { %10106 = vmatpush3.bf16.msra.mxu0 %v11107_v34  ;;  %10114 = vmatpush3.bf16.msra.mxu1 %v12979_v56 }
 0x25a   :  { %10107 = vmatprep.subr.bf16.mxu0 %v14496_v41  ;;  %10115 = vmatprep.subr.bf16.mxu1 %v14496_v41 }
 0x25b   :  { %10109 = vmatprep.mubr.msk.bf16.mxu0 %vm11467_vm1, %v14496_v41  ;;  %10117 = vmatprep.mubr.msk.bf16.mxu1 %vm11467_vm1, %v14496_v41 }
 0x25d   :  { %10108 = vmatpush3.bf16.msra.mxu0 %v11109_v42  ;;  %10116 = vmatpush3.bf16.msra.mxu1 %v12994_v59 }
 0x25e   :  { %10121 = vmatprep.subr.bf16.mxu0 %v14496_v41  ;;  %10129 = vmatprep.subr.bf16.mxu1 %v14496_v41 }
 0x260   :  { %10110 = vmatmul.mubr.msk.bf16.vlgmr.msra.gmra.mrb[52].mxu0 %vm2917_vm2, %v12981_v57  ;;  %10118 = vmatmul.mubr.msk.bf16.vlgmr.msra.gmra.mrb[52].mxu1 %vm2917_vm2, %v12981_v57 }
 0x261   :  { %10122 = vmatpush3.bf16.msra.mxu0 %v11111_v60  ;;  %10130 = vmatpush3.bf16.msra.mxu1 %v13009_v62 }
 0x262   :  { %10123 = vmatprep.subr.bf16.mxu0 %v14496_v41  ;;  %10131 = vmatprep.subr.bf16.mxu1 %v14496_v41 }
 0x263   :  { %10125 = vmatprep.mubr.msk.bf16.mxu0 %vm11467_vm1, %v14496_v41  ;;  %10133 = vmatprep.mubr.msk.bf16.mxu1 %vm11467_vm1, %v14496_v41 }
 0x264   :  { %v9783_v0 = vpop.f32.mrb[44].mxu0 }
 0x265   :  { %10124 = vmatpush3.bf16.msra.mxu0 %v11113_v63  ;;  %10132 = vmatpush3.bf16.msra.mxu1 %v13024_v45  ;;  %v9784_v30 = vpop.f32.mrb[45].mxu0  ;;  %v9805_v50 = vpop.f32.mrb[44].mxu1  ;;  %v13153_v63 = vld [vmem:[%s14515_s27] ss:$0 sm:$0xff] }
 0x266   :  { %10137 = vmatprep.subr.bf16.mxu0 %v14496_v41  ;;  %10145 = vmatprep.subr.bf16.mxu1 %v14496_v41  ;;  %v9785_v33 = vadd.f32 %v9784_v30, %v9783_v0  ;;  %v9806_v35 = vpop.f32.mrb[45].mxu1  ;;  %v9786_v3 = vpop.f32.mrb[46].mxu0  ;;  %v13158_v0 = vld [vmem:[%s14515_s27 + $0x1] ss:$0 sm:$0xff] }
 0x267   :  { %v9807_v61 = vadd.f32 %v9806_v35, %v9805_v50  ;;  %v9787_v4 = vpop.f32.mrb[47].mxu0  ;;  %v9808_v5 = vpop.f32.mrb[46].mxu1  ;;  %v13165_v50 = vld [vmem:[%s14473_s8 + $0x2] ss:$0 sm:$0xff] }
 0x268   :  { %10126 = vmatmul.mubr.msk.bf16.vlgmr.msra.gmra.mrb[56].mxu0 %vm2917_vm2, %v12981_v57  ;;  %10134 = vmatmul.mubr.msk.bf16.vlgmr.msra.gmra.mrb[56].mxu1 %vm2917_vm2, %v12981_v57  ;;  %v2721_v6 = vadd.f32 %v9785_v33, %v2681_v49  ;;  %v9809_v7 = vpop.f32.mrb[47].mxu1  ;;  %v13170_v33 = vld [vmem:[%s14473_s8 + $0x3] ss:$0 sm:$0xff] }
 0x269   :  { %10138 = vmatpush3.bf16.msra.mxu0 %v11115_v2  ;;  %10146 = vmatpush3.bf16.msra.mxu1 %v13039_v48 }
 0x26a   :  { %10139 = vmatprep.subr.bf16.mxu0 %v14496_v41  ;;  %10147 = vmatprep.subr.bf16.mxu1 %v14496_v41  ;;  %v13058_v10 = vadd.f32 %v9807_v61, %v2721_v6 }
 0x26b   :  { %10141 = vmatprep.mubr.msk.bf16.mxu0 %vm11467_vm1, %v14496_v41  ;;  %10149 = vmatprep.mubr.msk.bf16.mxu1 %vm11467_vm1, %v14496_v41 }
 0x26d   :  { %10140 = vmatpush3.bf16.msra.mxu0 %v11117_v8  ;;  %10148 = vmatpush3.bf16.msra.mxu1 %v13054_v9 }
 0x26e   :  { %10153 = vmatprep.subr.bf16.mxu0 %v14496_v41  ;;  %10161 = vmatprep.subr.bf16.mxu1 %v14496_v41 }
 0x270   :  { %10142 = vmatmul.mubr.msk.bf16.vlgmr.msra.gmra.mrb[60].mxu0 %vm2917_vm2, %v12981_v57  ;;  %10150 = vmatmul.mubr.msk.bf16.vlgmr.msra.gmra.mrb[60].mxu1 %vm2917_vm2, %v12981_v57 }
 0x271   :  { %10154 = vmatpush3.bf16.msra.mxu0 %v11119_v11  ;;  %10162 = vmatpush3.bf16.msra.mxu1 %v13071_v12 }
 0x272   :  { %10155 = vmatprep.subr.bf16.mxu0 %v14496_v41  ;;  %10163 = vmatprep.subr.bf16.mxu1 %v14496_v41 }
 0x273   :  { %10157 = vmatprep.mubr.msk.bf16.mxu0 %vm11467_vm1, %v14496_v41  ;;  %10165 = vmatprep.mubr.msk.bf16.mxu1 %vm11467_vm1, %v14496_v41 }
 0x275   :  { %10156 = vmatpush3.bf16.msra.mxu0 %v11121_v13  ;;  %10164 = vmatpush3.bf16.msra.mxu1 %v13086_v14 }
 0x276   :  { %10169 = vmatprep.subr.bf16.mxu0 %v14496_v41  ;;  %10177 = vmatprep.subr.bf16.mxu1 %v14496_v41 }
 0x278   :  { %10158 = vmatmul.mubr.msk.bf16.vlgmr.msra.gmra.mrb[64].mxu0 %vm2917_vm2, %v12981_v57  ;;  %10166 = vmatmul.mubr.msk.bf16.vlgmr.msra.gmra.mrb[64].mxu1 %vm2917_vm2, %v12981_v57 }
 0x279   :  { %10170 = vmatpush3.bf16.msra.mxu0 %v11123_v15  ;;  %10178 = vmatpush3.bf16.msra.mxu1 %v13101_v16 }
 0x27a   :  { %10171 = vmatprep.subr.bf16.mxu0 %v14496_v41  ;;  %10179 = vmatprep.subr.bf16.mxu1 %v14496_v41 }
 0x27b   :  { %10173 = vmatprep.mubr.msk.bf16.mxu0 %vm11467_vm1, %v14496_v41  ;;  %10181 = vmatprep.mubr.msk.bf16.mxu1 %vm11467_vm1, %v14496_v41 }
 0x27d   :  { %10172 = vmatpush3.bf16.msra.mxu0 %v13113_v17  ;;  %10180 = vmatpush3.bf16.msra.mxu1 %v13118_v18 }
 0x27e   :  { %10185 = vmatprep.subr.bf16.mxu0 %v14496_v41  ;;  %10191 = vmatprep.subr.bf16.mxu1 %v14496_v41 }
 0x280   :  { %10174 = vmatmul.mubr.msk.bf16.vlgmr.msra.gmra.mrb[68].mxu0 %vm2917_vm2, %v12981_v57  ;;  %10182 = vmatmul.mubr.msk.bf16.vlgmr.msra.gmra.mrb[68].mxu1 %vm2917_vm2, %v12981_v57 }
 0x281   :  { %10187 = vmatprep.mubr.msk.bf16.mxu0 %vm11467_vm1, %v14496_v41  ;;  %10193 = vmatprep.mubr.msk.bf16.mxu1 %vm11467_vm1, %v14496_v41 }
 0x32b   :  { %v2955_v19 = vpop.f32.mrb[48].mxu0  ;;  %v3007_v20 = vpop.f32.mrb[48].mxu1 }
 0x32c   :  { %v10095_v21 = vpop.f32.mrb[49].mxu0  ;;  %v10103_v22 = vpop.f32.mrb[49].mxu1  ;;  %v2956_v35 = vadd.f32 %v13153_v63, %v2955_v19  ;;  %v3008_v3 = vadd.f32 %v13158_v0, %v3007_v20 }
 0x32d   :  { %v2958_v23 = vpop.f32.mrb[50].mxu0  ;;  %v3010_v24 = vpop.f32.mrb[50].mxu1 }
 0x32e   :  { %v10096_v25 = vpop.f32.mrb[51].mxu0  ;;  %v10104_v26 = vpop.f32.mrb[51].mxu1  ;;  %v3581_v15 = vpack.c.bf16 %v2956_v35, %v2956_v35  ;;  %v3582_v21 = vpack.c.bf16 %v3008_v3, %v3008_v3  ;;  %v13181_v24 = vld [vmem:[%s14515_s27 + $0x2] ss:$0 sm:$0xff] }
 0x32f   :  { %v13186_v25 = vld [vmem:[%s14515_s27 + $0x3] ss:$0 sm:$0xff] }
 0x333   :  { %v3059_v27 = vpop.f32.mrb[52].mxu0  ;;  %v3111_v28 = vpop.f32.mrb[52].mxu1 }
 0x334   :  { %v10111_v29 = vpop.f32.mrb[53].mxu0  ;;  %v10119_v38 = vpop.f32.mrb[53].mxu1 }
 0x335   :  { %v3062_v39 = vpop.f32.mrb[54].mxu0  ;;  %v3114_v58 = vpop.f32.mrb[54].mxu1  ;;  %v13195_v38 = vld [vmem:[%s14475_s10] ss:$0 sm:$0xff] }
 0x336   :  { %v10112_v37 = vpop.f32.mrb[55].mxu0  ;;  %v10120_v43 = vpop.f32.mrb[55].mxu1  ;;  %v13200_v39 = vld [vmem:[%s14475_s10 + $0x1] ss:$0 sm:$0xff]  ;;  %v3060_v58 = vadd.f32 %v13181_v24, %v3059_v27 }
 0x337   :  { %v3112_v37 = vadd.f32 %v13186_v25, %v3111_v28  ;;  %v11468_v43 = vmov 65535  }
 0x33b   :  { %v3187_v47 = vpop.f32.mrb[56].mxu0  ;;  %v3239_v1 = vpop.f32.mrb[56].mxu1 }
 0x33c   :  { %v3188_v49 = vadd.f32 %v13141_v44, %v3187_v47  ;;  %v3240_v51 = vadd.f32 %v13146_v46, %v3239_v1  ;;  %v10127_v31 = vpop.f32.mrb[57].mxu0  ;;  %v10135_v32 = vpop.f32.mrb[57].mxu1  ;;  %v3837_v47 = vsel %vm3835_vm4, 4294967295, %v11468_v43 }
 0x33d   :  { %v3190_v55 = vpop.f32.mrb[58].mxu0  ;;  %v3242_v40 = vpop.f32.mrb[58].mxu1  ;;  %v13212_v32 = vsel %vm3836_vm5, %v3837_v47, 0 }
 0x33e   :  { %v3585_v34 = vpack.c.bf16 %v3188_v49, %v3188_v49  ;;  %v3586_v57 = vpack.c.bf16 %v3240_v51, %v3240_v51  ;;  %v10128_v42 = vpop.f32.mrb[59].mxu0  ;;  %v10136_v60 = vpop.f32.mrb[59].mxu1 }
 0x340   :  { %v3594_v2 = vsel %vm3589_vm3, %v3585_v34, 0  ;;  %v3640_v30 = vsel %vm3589_vm3, %v3586_v57, 0  ;;  %v3583_v34 = vpack.c.bf16 %v3060_v58, %v3060_v58  ;;  %v3584_v57 = vpack.c.bf16 %v3112_v37, %v3112_v37 }
 0x341   :  { %10186 = vmatpush3.bf16.xpose.msra.mxu0 %v3594_v2  ;;  %10192 = vmatpush3.bf16.xpose.msra.mxu1 %v3640_v30 }
 0x342   :  { %10197 = vmatprep.subr.bf16.mxu0 %v14496_v41  ;;  %10203 = vmatprep.subr.bf16.mxu1 %v14496_v41 }
 0x343   :  { %v3291_v61 = vpop.f32.mrb[60].mxu0  ;;  %v3343_v4 = vpop.f32.mrb[60].mxu1 }
 0x344   :  { %v3292_v5 = vadd.f32 %v13165_v50, %v3291_v61  ;;  %v3344_v6 = vadd.f32 %v13170_v33, %v3343_v4  ;;  %v10143_v7 = vpop.f32.mrb[61].mxu0  ;;  %v10151_v8 = vpop.f32.mrb[61].mxu1 }
 0x345   :  { %v3294_v11 = vpop.f32.mrb[62].mxu0  ;;  %v3346_v13 = vpop.f32.mrb[62].mxu1 }
 0x346   :  { %v3587_v22 = vpack.c.bf16 %v3292_v5, %v3292_v5  ;;  %v3588_v19 = vpack.c.bf16 %v3344_v6, %v3344_v6  ;;  %v10144_v23 = vpop.f32.mrb[63].mxu0  ;;  %v10152_v20 = vpop.f32.mrb[63].mxu1 }
 0x348   :  { %v3686_v26 = vsel %vm3589_vm3, %v3587_v22, 0  ;;  %v3732_v29 = vsel %vm3589_vm3, %v3588_v19, 0  ;;  %10188 = vmatmul.mubr.msk.bf16.vlgmr.msra.gmra.mrb[72].mxu0 %vm3589_vm3, %v3581_v15  ;;  %10194 = vmatmul.mubr.msk.bf16.vlgmr.msra.gmra.mrb[72].mxu1 %vm3589_vm3, %v3582_v21 }
 0x349   :  { %10198 = vmatpush3.bf16.xpose.msra.mxu0 %v3686_v26  ;;  %10204 = vmatpush3.bf16.xpose.msra.mxu1 %v3732_v29 }
 0x34a   :  { %10199 = vmatprep.mubr.msk.bf16.mxu0 %vm11467_vm1, %v14496_v41  ;;  %10205 = vmatprep.mubr.msk.bf16.mxu1 %vm11467_vm1, %v14496_v41 }
 0x34b   :  { %v3419_v1 = vpop.f32.mrb[64].mxu0  ;;  %v3471_v49 = vpop.f32.mrb[64].mxu1  ;;  %10209 = vmatprep.subr.bf16.mxu0 %v14496_v41  ;;  %10215 = vmatprep.subr.bf16.mxu1 %v14496_v41 }
 0x34c   :  { %v3420_v51 = vadd.f32 %v13195_v38, %v3419_v1  ;;  %v3472_v27 = vadd.f32 %v13200_v39, %v3471_v49  ;;  %v10159_v28 = vpop.f32.mrb[65].mxu0  ;;  %v10167_v31 = vpop.f32.mrb[65].mxu1 }
 0x34d   :  { %v3422_v55 = vpop.f32.mrb[66].mxu0  ;;  %v3474_v40 = vpop.f32.mrb[66].mxu1 }
 0x34e   :  { %v3827_v42 = vpack.c.bf16 %v3420_v51, %v3420_v51  ;;  %v3828_v60 = vpack.c.bf16 %v3472_v27, %v3472_v27  ;;  %v10160_v2 = vpop.f32.mrb[67].mxu0  ;;  %v10168_v30 = vpop.f32.mrb[67].mxu1 }
 0x350   :  { %v3840_v35 = vand.u32 %v13212_v32, %v3827_v42  ;;  %v3886_v3 = vand.u32 %v13212_v32, %v3828_v60  ;;  %10200 = vmatmul.mubr.msk.bf16.vlgmr.msra.gmra.mrb[76].mxu0 %vm3589_vm3, %v3583_v34  ;;  %10206 = vmatmul.mubr.msk.bf16.vlgmr.msra.gmra.mrb[76].mxu1 %vm3589_vm3, %v3584_v57 }
 0x351   :  { %10211 = vmatprep.mubr.msk.bf16.mxu0 %vm11467_vm1, %v14496_v41  ;;  %10217 = vmatprep.mubr.msk.bf16.mxu1 %vm11467_vm1, %v14496_v41 }
 0x352   :  { %10210 = vmatpush3.bf16.msra.mxu0 %v3840_v35  ;;  %10216 = vmatpush3.bf16.msra.mxu1 %v3886_v3 }
 0x353   :  { %v13222_v61 = vpop.f32.mrb[68].mxu0  ;;  %v13224_v4 = vpop.f32.mrb[68].mxu1  ;;  %10221 = vmatprep.subr.bf16.mxu0 %v14496_v41  ;;  %10227 = vmatprep.subr.bf16.mxu1 %v14496_v41 }
 0x354   :  { %v10175_v5 = vpop.f32.mrb[69].mxu0  ;;  %v10183_v6 = vpop.f32.mrb[69].mxu1 }
 0x355   :  { %v3526_v7 = vpop.f32.mrb[70].mxu0  ;;  %v3578_v8 = vpop.f32.mrb[70].mxu1 }
 0x356   :  { %v10176_v11 = vpop.f32.mrb[71].mxu0  ;;  %v10184_v13 = vpop.f32.mrb[71].mxu1 }
 0x41b   :  { %v3630_v15 = vpop.f32.mrb[72].mxu0  ;;  %v3676_v21 = vpop.f32.mrb[72].mxu1 }
 0x41c   :  { %v3774_v22 = vmul.f32 0.35355338, %v3630_v15  ;;  %v10189_v19 = vpop.f32.mrb[73].mxu0  ;;  %v10195_v23 = vpop.f32.mrb[73].mxu1  ;;  %v3775_v29 = vmul.f32 0.35355338, %v3676_v21 }
 0x41d   :  { %v3633_v20 = vpop.f32.mrb[74].mxu0  ;;  %v3679_v26 = vpop.f32.mrb[74].mxu1 }
 0x41e   :  { %v10190_v58 = vpop.f32.mrb[75].mxu0  ;;  %v10196_v37 = vpop.f32.mrb[75].mxu1  ;;  %v3779_v43 = vsel %vm3778_vm6, %v3774_v22, -inf  ;;  %v3782_v47 = vsel %vm3778_vm6, %v3775_v29, -inf }
 0x41f   :  { %3780 = vmax.xlane.f32.xlu1 %v3779_v43 }
 0x423   :  { %v3768_v1 = vpop.f32.mrb[76].mxu1  ;;  %3783 = vmax.xlane.f32.xlu1 %v3782_v47  ;;  %v3722_v49 = vpop.f32.mrb[76].mxu0  ;;  %v13239_v47 = vld [vmem:[%s14475_s10 + $0x2] ss:$0 sm:$0xff] }
 0x424   :  { %v3777_v51 = vmul.f32 0.35355338, %v3768_v1  ;;  %v3776_v27 = vmul.f32 0.35355338, %v3722_v49  ;;  %v10201_v28 = vpop.f32.mrb[77].mxu0  ;;  %v10207_v31 = vpop.f32.mrb[77].mxu1  ;;  %v3524_v49 = vadd.f32 %v13239_v47, %v13222_v61 }
 0x425   :  { %v3725_v55 = vpop.f32.mrb[78].mxu0  ;;  %v3771_v40 = vpop.f32.mrb[78].mxu1 }
 0x426   :  { %v10202_v34 = vpop.f32.mrb[79].mxu0  ;;  %v10208_v57 = vpop.f32.mrb[79].mxu1  ;;  %v3788_v42 = vsel %vm3778_vm6, %v3777_v51, -inf  ;;  %v3785_v60 = vsel %vm3778_vm6, %v3776_v27, -inf  ;;  %v3829_v55 = vpack.c.bf16 %v3524_v49, %v3524_v49 }
 0x427   :  { %3789 = vmax.xlane.f32.xlu1 %v3788_v42  ;;  %3786 = vmax.xlane.f32.xlu0 %v3785_v60 }
 0x428   :  { %v3932_v61 = vand.u32 %v13212_v32, %v3829_v55 }
 0x4ac   :  { %v3781_v2 = vpop.xlane.xlu1 %3780 }
 0x4ad   :  { %v3791_v30 = vsub.f32 %v3774_v22, %v3781_v2 }
 0x4af   :  { %v3795_v35 = vmul.f32 1.442695, %v3791_v30 }
 0x4b0   :  { %v3784_v3 = vpop.xlane.xlu1 %3783 }
 0x4b1   :  { %11167 = vpow2.f32 %v3795_v35  ;;  %v3792_v5 = vsub.f32 %v3775_v29, %v3784_v3 }
 0x4b3   :  { %v3797_v6 = vmul.f32 1.442695, %v3792_v5  ;;  %v2828_v5 = vld [vmem:[%s14476_s11] sm:$0xf] }
 0x4b4   :  { %v3790_v7 = vpop.xlane.xlu1 %3789  ;;  %v3787_v8 = vpop.xlane.xlu0 %3786 }
 0x4b5   :  { %11169 = vpow2.f32 %v3797_v6  ;;  %v3794_v11 = vsub.f32 %v3777_v51, %v3790_v7  ;;  %v3793_v13 = vsub.f32 %v3776_v27, %v3787_v8  ;;  %v13246_v51 = vld [vmem:[%s14475_s10 + $0x3] ss:$0 sm:$0xff] }
 0x4b6   :  { %v3576_v40 = vadd.f32 %v13246_v51, %v13224_v4 }
 0x4b7   :  { %v3801_v15 = vmul.f32 1.442695, %v3794_v11  ;;  %v3799_v21 = vmul.f32 1.442695, %v3793_v13  ;;  %v13264_v11 = vsel %vm4027_vm8, %v2828_v5, 0 }
 0x4b8   :  { %v3830_v60 = vpack.c.bf16 %v3576_v40, %v3576_v40 }
 0x4b9   :  { %11171 = vpow2.f32 %v3801_v15  ;;  %v2829_v15 = vld [vmem:[%s14476_s11 + $0x4] sm:$0xf] }
 0x4ba   :  { %11173 = vpow2.f32 %v3799_v21  ;;  %v3978_v4 = vand.u32 %v13212_v32, %v3830_v60  ;;  %v13278_v21 = vsel %vm4027_vm8, %v2829_v15, 0 }
 0x4bb   :  { %v11168_v19 = vpop.eup %11167 }
 0x4bc   :  { %v3803_v23 = vsel %vm3778_vm6, %v11168_v19, 0.0 }
 0x4bd   :  { %3804 = vadd.xlane.f32.xlu0 %v3803_v23 }
 0x4bf   :  { %v11170_v20 = vpop.eup %11169 }
 0x4c0   :  { %v3806_v22 = vsel %vm3778_vm6, %v11170_v20, 0.0 }
 0x4c1   :  { %3807 = vadd.xlane.f32.xlu1 %v3806_v22 }
 0x4c3   :  { %v11172_v26 = vpop.eup %11171 }
 0x4c4   :  { %v11174_v29 = vpop.eup %11173  ;;  %v3812_v58 = vsel %vm3778_vm6, %v11172_v26, 0.0 }
 0x4c5   :  { %3813 = vadd.xlane.f32.xlu1 %v3812_v58  ;;  %v3809_v37 = vsel %vm3778_vm6, %v11174_v29, 0.0  ;;  %v2831_v58 = vld [vmem:[%s14476_s11 + $0xc] sm:$0xf] }
 0x4c6   :  { %3810 = vadd.xlane.f32.xlu0 %v3809_v37 }
 0x54a   :  { %v3805_v43 = vpop.xlane.xlu0 %3804 }
 0x54b   :  { %11175 = vrcp.f32 %v3805_v43 }
 0x54e   :  { %v3808_v1 = vpop.xlane.xlu1 %3807 }
 0x54f   :  { %11177 = vrcp.f32 %v3808_v1 }
 0x552   :  { %v3814_v27 = vpop.xlane.xlu1 %3813 }
 0x553   :  { %11179 = vrcp.f32 %v3814_v27  ;;  %v3811_v28 = vpop.xlane.xlu0 %3810  ;;  %v13296_v27 = vsel %vm4027_vm8, %v2831_v58, 0 }
 0x554   :  { %11181 = vrcp.f32 %v3811_v28 }
 0x555   :  { %v11176_v31 = vpop.eup %11175 }
 0x556   :  { %v3819_v34 = vmul.f32 %v11176_v31, %v11168_v19  ;;  %v2830_v19 = vld [vmem:[%s14476_s11 + $0x8] sm:$0xf] }
 0x558   :  { %v3823_v57 = vpack.c.bf16 %v3819_v34, %v3819_v34 }
 0x559   :  { %v11178_v42 = vpop.eup %11177 }
 0x55a   :  { %v3820_v2 = vmul.f32 %v11178_v42, %v11170_v20  ;;  %10212 = vmatmul.mubr.msk.bf16.vlgmr.msra.gmra.mrb[80].mxu0 %vm3831_vm7, %v3823_v57 }
 0x55b   :  { %10222 = vmatpush3.bf16.msra.mxu0 %v3932_v61  ;;  %10223 = vmatprep.mubr.msk.bf16.mxu0 %vm11467_vm1, %v14496_v41 }
 0x55c   :  { %v3824_v30 = vpack.c.bf16 %v3820_v2, %v3820_v2  ;;  %10233 = vmatprep.subr.bf16.mxu0 %v14496_v41 }
 0x55d   :  { %v11180_v35 = vpop.eup %11179 }
 0x55e   :  { %v11182_v3 = vpop.eup %11181  ;;  %10218 = vmatmul.mubr.msk.bf16.vlgmr.msra.gmra.mrb[80].mxu1 %vm3831_vm7, %v3824_v30  ;;  %v3822_v7 = vmul.f32 %v11180_v35, %v11172_v26  ;;  %v13286_v26 = vsel %vm4027_vm8, %v2830_v19, 0 }
 0x55f   :  { %v3821_v6 = vmul.f32 %v11182_v3, %v11174_v29  ;;  %10228 = vmatpush3.bf16.msra.mxu1 %v3978_v4  ;;  %10229 = vmatprep.mubr.msk.bf16.mxu1 %vm11467_vm1, %v14496_v41 }
 0x560   :  { %10239 = vmatprep.subr.bf16.mxu1 %v14496_v41  ;;  %v3826_v13 = vpack.c.bf16 %v3822_v7, %v3822_v7 }
 0x561   :  { %v3825_v8 = vpack.c.bf16 %v3821_v6, %v3821_v6 }
 0x563   :  { %10224 = vmatmul.mubr.msk.bf16.vlgmr.msra.gmra.mrb[84].mxu0 %vm3831_vm7, %v3825_v8 }
 0x564   :  { %10234 = vmatpush3.bf16.msra.mxu0 %v13264_v11  ;;  %10235 = vmatprep.mubr.msk.bf16.mxu0 %vm11467_vm1, %v14496_v41 }
 0x565   :  { %10245 = vmatprep.subr.bf16.mxu0 %v14496_v41 }
 0x566   :  { %10230 = vmatmul.mubr.msk.bf16.vlgmr.msra.gmra.mrb[84].mxu1 %vm3831_vm7, %v3826_v13 }
 0x567   :  { %10241 = vmatprep.mubr.msk.bf16.mxu1 %vm11467_vm1, %v14496_v41  ;;  %10240 = vmatpush3.bf16.msra.mxu1 %v13278_v21 }
 0x568   :  { %10251 = vmatprep.subr.bf16.mxu1 %v14496_v41 }
 0x62d   :  { %v3876_v23 = vpop.f32.mrb[80].mxu0 }
 0x62e   :  { %v4020_v20 = vpack.c.bf16 %v3876_v23, %v3876_v23  ;;  %v10213_v22 = vpop.f32.mrb[81].mxu0 }
 0x62f   :  { %v3879_v29 = vpop.f32.mrb[82].mxu0 }
 0x630   :  { %v10214_v37 = vpop.f32.mrb[83].mxu0  ;;  %10236 = vmatmul.mubr.msk.bf16.vlgmr.msra.gmra.mrb[88].mxu0 %vm3589_vm3, %v4020_v20 }
 0x631   :  { %v3922_v43 = vpop.f32.mrb[80].mxu1  ;;  %10246 = vmatpush3.bf16.msra.mxu0 %v13286_v26  ;;  %10247 = vmatprep.mubr.msk.bf16.mxu0 %vm11467_vm1, %v14496_v41 }
 0x632   :  { %v4021_v1 = vpack.c.bf16 %v3922_v43, %v3922_v43  ;;  %v10219_v49 = vpop.f32.mrb[81].mxu1  ;;  %10257 = vmatprep.subr.bf16.mxu0 %v14496_v41 }
 0x633   :  { %v3925_v28 = vpop.f32.mrb[82].mxu1 }
 0x634   :  { %v10220_v31 = vpop.f32.mrb[83].mxu1  ;;  %10242 = vmatmul.mubr.msk.bf16.vlgmr.msra.gmra.mrb[88].mxu1 %vm3589_vm3, %v4021_v1 }
 0x635   :  { %10252 = vmatpush3.bf16.msra.mxu1 %v13296_v27  ;;  %10253 = vmatprep.mubr.msk.bf16.mxu1 %vm11467_vm1, %v14496_v41 }
 0x636   :  { %v3968_v55 = vpop.f32.mrb[84].mxu0  ;;  %10265 = vmatprep.subr.bf16.mxu1 %v14496_v41 }
 0x637   :  { %v4022_v40 = vpack.c.bf16 %v3968_v55, %v3968_v55  ;;  %v10225_v34 = vpop.f32.mrb[85].mxu0 }
 0x638   :  { %v3971_v57 = vpop.f32.mrb[86].mxu0  ;;  %v13317_v34 = vld [vmem:[%s14477_s12] ss:$0 sm:$0xff] }
 0x639   :  { %v10226_v42 = vpop.f32.mrb[87].mxu0  ;;  %10248 = vmatmul.mubr.msk.bf16.vlgmr.msra.gmra.mrb[92].mxu0 %vm3589_vm3, %v4022_v40  ;;  %v4014_v61 = vpop.f32.mrb[84].mxu1 }
 0x63a   :  { %v4023_v60 = vpack.c.bf16 %v4014_v61, %v4014_v61  ;;  %v10231_v2 = vpop.f32.mrb[85].mxu1  ;;  %10261 = vmatprep.mubr.msk.bf16.mxu0 %vm11467_vm1, %v14496_v41 }
 0x63b   :  { %v4017_v30 = vpop.f32.mrb[86].mxu1 }
 0x63c   :  { %v10232_v35 = vpop.f32.mrb[87].mxu1  ;;  %10254 = vmatmul.mubr.msk.bf16.vlgmr.msra.gmra.mrb[92].mxu1 %vm3589_vm3, %v4023_v60 }
 0x63d   :  { %10273 = vmatprep.mubr.msk.bf16.mxu1 %vm11467_vm1, %v14496_v41  ;;  %v4423_v35 = vmul.f32 %v13058_v10, %v13058_v10 }
 0x703   :  { %v4065_v4 = vpop.f32.mrb[88].mxu0 }
 0x704   :  { %v10237_v3 = vpop.f32.mrb[89].mxu0  ;;  %v4209_v8 = vsel %vm2849_vm0, %v4065_v4, 0.0  ;;  %v4419_v4 = vsel %vm2849_vm0, %v13058_v10, 0.0 }
 0x705   :  { %v4068_v5 = vpop.f32.mrb[90].mxu0  ;;  %v13336_v3 = vld [vmem:[%s14480_s15] sm:$0xff]  }
 0x706   :  { %v10238_v6 = vpop.f32.mrb[91].mxu0  ;;  %10258 = vmatpush3.bf16.msra.mxu0 %v13336_v3  ;;  %v13343_v5 = vld [vmem:[%s14480_s15 + $0x8] sm:$0xff]  }
 0x707   :  { %v4111_v7 = vpop.f32.mrb[88].mxu1  ;;  %10259 = vmatprep.subr.bf16.mxu0 %v14496_v41 }
 0x708   :  { %v4210_v13 = vsel %vm2849_vm0, %v4111_v7, 0.0  ;;  %v10243_v15 = vpop.f32.mrb[89].mxu1 }
 0x709   :  { %v4211_v19 = vadd.f32 %v4210_v13, %v4209_v8  ;;  %v4114_v23 = vpop.f32.mrb[90].mxu1 }
 0x70a   :  { %v10244_v20 = vpop.f32.mrb[91].mxu1  ;;  %10260 = vmatpush3.bf16.msra.mxu0 %v13343_v5 }
 0x70b   :  { %10277 = vmatprep.subr.bf16.mxu0 %v14496_v41 }
 0x70c   :  { %v4157_v22 = vpop.f32.mrb[92].mxu0 }
 0x70d   :  { %v4212_v29 = vsel %vm2849_vm0, %v4157_v22, 0.0  ;;  %v10249_v58 = vpop.f32.mrb[93].mxu0 }
 0x70e   :  { %v4213_v37 = vadd.f32 %v4212_v29, %v4211_v19  ;;  %v4160_v43 = vpop.f32.mrb[94].mxu0 }
 0x70f   :  { %v10250_v1 = vpop.f32.mrb[95].mxu0  ;;  %v4203_v49 = vpop.f32.mrb[92].mxu1 }
 0x710   :  { %v4214_v28 = vsel %vm2849_vm0, %v4203_v49, 0.0  ;;  %v10255_v31 = vpop.f32.mrb[93].mxu1 }
 0x711   :  { %v4215_v55 = vadd.f32 %v4214_v28, %v4213_v37  ;;  %v4206_v40 = vpop.f32.mrb[94].mxu1  ;;  %v13351_v31 = vld [vmem:[%s14478_s13] ss:$0 sm:$0xff] }
 0x712   :  { %v10256_v57 = vpop.f32.mrb[95].mxu1  ;;  %v13356_v40 = vld [vmem:[%s14479_s14] ss:$0 sm:$0xff] }
 0x713   :  { %v4216_v42 = vadd.f32 %v4215_v55, %v12927_v53  ;;  %v4424_v53 = vsel %vm2849_vm0, %v4423_v35, 0.0 }
 0x715   :  { %v13321_v61 = vadd.f32 %v13317_v34, %v4216_v42 }
 0x717   :  { %v4224_v60 = vsel %vm2849_vm0, %v13321_v61, 0.0  ;;  %v4228_v2 = vmul.f32 %v13321_v61, %v13321_v61 }
 0x718   :  { %4225 = vadd.xlane.f32.xlu0 %v4224_v60 }
 0x719   :  { %v4229_v30 = vsel %vm2849_vm0, %v4228_v2, 0.0 }
 0x71a   :  { %4230 = vadd.xlane.f32.xlu1 %v4229_v30 }
 0x71c   :  { %4420 = vadd.xlane.f32.xlu0 %v4419_v4 }
 0x71e   :  { %4425 = vadd.xlane.f32.xlu1 %v4424_v53  ;;  %v11430_v53 = vld [vmem:[%s14511_s6] sm:$0xff]  }
 0x7a5   :  { %v4226_v6 = vpop.xlane.xlu0 %4225 }
 0x7a6   :  { %v4227_v7 = vmul.f32 0.03125, %v4226_v6 }
 0x7a7   :  { %v4231_v8 = vpop.xlane.xlu1 %4230 }
 0x7a8   :  { %v4233_v13 = vmul.f32 %v4227_v7, %v4227_v7  ;;  %v4232_v15 = vmul.f32 0.03125, %v4231_v8  ;;  %v4235_v49 = vsub.f32 %v13321_v61, %v4227_v7 }
 0x7a9   :  { %v4421_v19 = vpop.xlane.xlu0 %4420 }
 0x7aa   :  { %v4234_v23 = vsub.f32 %v4232_v15, %v4233_v13  ;;  %v4422_v20 = vmul.f32 0.03125, %v4421_v19 }
 0x7ab   :  { %v4426_v22 = vpop.xlane.xlu1 %4425 }
 0x7ac   :  { %v4236_v29 = vadd.f32 1e-06, %v4234_v23  ;;  %v4428_v58 = vmul.f32 %v4422_v20, %v4422_v20  ;;  %v4427_v37 = vmul.f32 0.03125, %v4426_v22  ;;  %v4430_v57 = vsub.f32 %v13058_v10, %v4422_v20 }
 0x7ae   :  { %11183 = vrsqrt.f32 %v4236_v29  ;;  %v4429_v43 = vsub.f32 %v4427_v37, %v4428_v58 }
 0x7b0   :  { %v4431_v1 = vadd.f32 1e-06, %v4429_v43 }
 0x7b2   :  { %11185 = vrsqrt.f32 %v4431_v1 }
 0x7b8   :  { %v11184_v28 = vpop.eup %11183 }
 0x7b9   :  { %v4238_v55 = vmul.f32 %v11184_v28, %v4235_v49 }
 0x7bb   :  { %v4245_v42 = vmul.f32 %v13351_v31, %v4238_v55 }
 0x7bc   :  { %v11186_v60 = vpop.eup %11185 }
 0x7bd   :  { %v4433_v2 = vmul.f32 %v11186_v60, %v4430_v57  ;;  %v4252_v30 = vadd.f32 %v13356_v40, %v4245_v42 }
 0x7bf   :  { %v4434_v35 = vmul.f32 %v12964_v52, %v4433_v2  ;;  %v4253_v4 = vpack.c.bf16 %v4252_v30, %v4252_v30  ;;  %v11431_v52 = vld [vmem:[%s14511_s6 + $0x10] sm:$0xff]  }
 0x7c1   :  { %10262 = vmatmul.mubr.msk.bf16.vlgmr.msra.gmra.mrb[96].mxu0 %vm2917_vm2, %v4253_v4  ;;  %v4435_v6 = vadd.f32 %v12969_v54, %v4434_v35  ;;  %v13433_v54 = vld [vmem:[%s14482_s17] sm:$0xff]  }
 0x7c2   :  { %10278 = vmatpush3.bf16.msra.mxu0 %v11430_v53  ;;  %10281 = vmatprep.mubr.msk.bf16.mxu0 %vm11467_vm1, %v14496_v41 }
 0x7c3   :  { %10279 = vmatprep.subr.bf16.mxu0 %v14496_v41  ;;  %v13371_v7 = vpack.c.bf16 %v4435_v6, %v4435_v6  ;;  %10266 = vmatpush3.bf16.msra.mxu1 %v13433_v54 }
 0x7c4   :  { %10267 = vmatprep.subr.bf16.mxu1 %v14496_v41 }
 0x7c6   :  { %10280 = vmatpush3.bf16.msra.mxu0 %v12947_v36  ;;  %v11432_v36 = vld [vmem:[%s14511_s6 + $0x18] sm:$0xff]  }
 0x7c7   :  { %10285 = vmatprep.subr.bf16.mxu0 %v14496_v41 }
 0x7c9   :  { %10282 = vmatmul.mubr.msk.bf16.vlgmr.msra.gmra.mrb[100].mxu0 %vm2917_vm2, %v13371_v7 }
 0x7ca   :  { %10286 = vmatpush3.bf16.msra.mxu0 %v11431_v52  ;;  %10289 = vmatprep.mubr.msk.bf16.mxu0 %vm11467_vm1, %v14496_v41 }
 0x7cb   :  { %10287 = vmatprep.subr.bf16.mxu0 %v14496_v41 }
 0x7ce   :  { %10288 = vmatpush3.bf16.msra.mxu0 %v11432_v36 }
 0x7cf   :  { %10301 = vmatprep.subr.bf16.mxu0 %v14496_v41 }
 0x7d1   :  { %10290 = vmatmul.mubr.msk.bf16.vlgmr.msra.gmra.mrb[104].mxu0 %vm2917_vm2, %v13371_v7 }
 0x7d2   :  { %10302 = vmatpush3.bf16.msra.mxu0 %v12979_v56  ;;  %10305 = vmatprep.mubr.msk.bf16.mxu0 %vm11467_vm1, %v14496_v41  ;;  %v13440_v56 = vld [vmem:[%s14482_s17 + $0x8] sm:$0xff]  }
 0x7d3   :  { %10303 = vmatprep.subr.bf16.mxu0 %v14496_v41  ;;  %10268 = vmatpush3.bf16.msra.mxu1 %v13440_v56 }
 0x7d4   :  { %10269 = vmatprep.subr.bf16.mxu1 %v14496_v41 }
 0x7d6   :  { %10304 = vmatpush3.bf16.msra.mxu0 %v12994_v59  ;;  %v13447_v59 = vld [vmem:[%s14482_s17 + $0x10] sm:$0xff]  }
 0x7d7   :  { %10317 = vmatprep.subr.bf16.mxu0 %v14496_v41  ;;  %10270 = vmatpush3.bf16.msra.mxu1 %v13447_v59 }
 0x7d8   :  { %10271 = vmatprep.subr.bf16.mxu1 %v14496_v41 }
 0x7d9   :  { %10306 = vmatmul.mubr.msk.bf16.vlgmr.msra.gmra.mrb[108].mxu0 %vm2917_vm2, %v13371_v7 }
 0x7da   :  { %10318 = vmatpush3.bf16.msra.mxu0 %v13009_v62  ;;  %10321 = vmatprep.mubr.msk.bf16.mxu0 %vm11467_vm1, %v14496_v41  ;;  %v13454_v62 = vld [vmem:[%s14482_s17 + $0x18] sm:$0xff]  }
 0x7db   :  { %10319 = vmatprep.subr.bf16.mxu0 %v14496_v41  ;;  %10272 = vmatpush3.bf16.msra.mxu1 %v13454_v62 }
 0x7dc   :  { %10293 = vmatprep.subr.bf16.mxu1 %v14496_v41 }
 0x7de   :  { %10320 = vmatpush3.bf16.msra.mxu0 %v13024_v45  ;;  %v13461_v45 = vld [vmem:[%s14481_s16] ss:$0 sm:$0xff] }
 0x7df   :  { %10333 = vmatprep.subr.bf16.mxu0 %v14496_v41 }
 0x7e1   :  { %10322 = vmatmul.mubr.msk.bf16.vlgmr.msra.gmra.mrb[112].mxu0 %vm2917_vm2, %v13371_v7 }
 0x7e2   :  { %10334 = vmatpush3.bf16.msra.mxu0 %v13039_v48  ;;  %10337 = vmatprep.mubr.msk.bf16.mxu0 %vm11467_vm1, %v14496_v41 }
 0x7e3   :  { %10335 = vmatprep.subr.bf16.mxu0 %v14496_v41 }
 0x7e6   :  { %10336 = vmatpush3.bf16.msra.mxu0 %v13054_v9 }
 0x7e7   :  { %10349 = vmatprep.subr.bf16.mxu0 %v14496_v41 }
 0x7e9   :  { %10338 = vmatmul.mubr.msk.bf16.vlgmr.msra.gmra.mrb[116].mxu0 %vm2917_vm2, %v13371_v7 }
 0x7ea   :  { %10350 = vmatpush3.bf16.msra.mxu0 %v13071_v12  ;;  %10353 = vmatprep.mubr.msk.bf16.mxu0 %vm11467_vm1, %v14496_v41 }
 0x7eb   :  { %10351 = vmatprep.subr.bf16.mxu0 %v14496_v41 }
 0x7ee   :  { %10352 = vmatpush3.bf16.msra.mxu0 %v13086_v14 }
 0x7ef   :  { %10365 = vmatprep.subr.bf16.mxu0 %v14496_v41 }
 0x7f1   :  { %10354 = vmatmul.mubr.msk.bf16.vlgmr.msra.gmra.mrb[120].mxu0 %vm2917_vm2, %v13371_v7 }
 0x7f2   :  { %10366 = vmatpush3.bf16.msra.mxu0 %v13101_v16  ;;  %10369 = vmatprep.mubr.msk.bf16.mxu0 %vm11467_vm1, %v14496_v41 }
 0x7f3   :  { %10367 = vmatprep.subr.bf16.mxu0 %v14496_v41 }
 0x7f6   :  { %10368 = vmatpush3.bf16.msra.mxu0 %v13118_v18 }
 0x7f7   :  { %10379 = vmatprep.subr.bf16.mxu0 %v14496_v41 }
 0x7f9   :  { %10370 = vmatmul.mubr.msk.bf16.vlgmr.msra.gmra.mrb[124].mxu0 %vm2917_vm2, %v13371_v7 }
 0x7fa   :  { %10381 = vmatprep.mubr.msk.bf16.mxu0 %vm11467_vm1, %v14496_v41 }
 0x894   :  { %v4309_v48 = vpop.f32.mrb[96].mxu0 }
 0x895   :  { %v4310_v9 = vadd.f32 %v13461_v45, %v4309_v48  ;;  %v10263_v12 = vpop.f32.mrb[97].mxu0 }
 0x896   :  { %v4312_v14 = vpop.f32.mrb[98].mxu0 }
 0x897   :  { %v4316_v16 = vmul.f32 0.70710677, %v4310_v9  ;;  %v10264_v18 = vpop.f32.mrb[99].mxu0 }
 0x899   :  { %v4317_v8 = vand.u32 2147483647, %v4316_v16  ;;  %vm4337_vm9 = vcmp.ge.f32.partialorder %v4316_v16, 0.0 }
 0x89b   :  { %v4318_v13 = vmul.f32 0.3275911, %v4317_v8  ;;  %v4331_v58 = vsub.f32 0.0, %v4317_v8 }
 0x89c   :  { %v13464_v15 = vpop.f32.mrb[100].mxu0 }
 0x89d   :  { %v4319_v19 = vadd.f32 1.0, %v4318_v13  ;;  %v10283_v23 = vpop.f32.mrb[101].mxu0  ;;  %v4332_v28 = vmul.f32 %v4331_v58, %v4317_v8 }
 0x89e   :  { %v4477_v20 = vpop.f32.mrb[102].mxu0 }
 0x89f   :  { %11187 = vrcp.f32 %v4319_v19  ;;  %v10284_v22 = vpop.f32.mrb[103].mxu0  ;;  %v4333_v60 = vmul.f32 1.442695, %v4332_v28 }
 0x8a1   :  { %11189 = vpow2.f32 %v4333_v60 }
 0x8a4   :  { %v4514_v29 = vpop.f32.mrb[104].mxu0 }
 0x8a5   :  { %v10291_v37 = vpop.f32.mrb[105].mxu0  ;;  %v4515_v58 = vadd.f32 %v13158_v0, %v4514_v29  ;;  %v4315_v0 = vmul.f32 0.5, %v4310_v9 }
 0x8a6   :  { %v4517_v43 = vpop.f32.mrb[106].mxu0 }
 0x8a7   :  { %v10292_v1 = vpop.f32.mrb[107].mxu0 }
 0x8a9   :  { %v11188_v49 = vpop.eup %11187 }
 0x8aa   :  { %v4322_v55 = vmul.f32 1.0614054, %v11188_v49 }
 0x8ab   :  { %v11190_v22 = vpop.eup %11189 }
 0x8ac   :  { %v4323_v57 = vadd.f32 -1.4531521, %v4322_v55  ;;  %v4594_v42 = vpop.f32.mrb[108].mxu0 }
 0x8ad   :  { %v10307_v2 = vpop.f32.mrb[109].mxu0 }
 0x8ae   :  { %v4324_v30 = vmul.f32 %v11188_v49, %v4323_v57  ;;  %v4597_v35 = vpop.f32.mrb[110].mxu0  ;;  %v4921_v57 = vpack.c.bf16 %v4515_v58, %v4515_v58  ;;  %v11439_v58 = vld [vmem:[%s14474_s9] sm:$0xff]  }
 0x8af   :  { %v10308_v4 = vpop.f32.mrb[111].mxu0 }
 0x8b0   :  { %v4325_v53 = vadd.f32 1.4214138, %v4324_v30 }
 0x8b2   :  { %v4326_v6 = vmul.f32 %v11188_v49, %v4325_v53 }
 0x8b4   :  { %v4327_v52 = vadd.f32 -0.28449672, %v4326_v6  ;;  %v4674_v36 = vpop.f32.mrb[112].mxu0 }
 0x8b5   :  { %v4675_v48 = vadd.f32 %v13146_v46, %v4674_v36  ;;  %v10323_v12 = vpop.f32.mrb[113].mxu0 }
 0x8b6   :  { %v4328_v14 = vmul.f32 %v11188_v49, %v4327_v52  ;;  %v4677_v18 = vpop.f32.mrb[114].mxu0 }
 0x8b7   :  { %v4925_v13 = vpack.c.bf16 %v4675_v48, %v4675_v48  ;;  %v10324_v8 = vpop.f32.mrb[115].mxu0 }
 0x8b8   :  { %v4329_v19 = vadd.f32 0.2548296, %v4328_v14 }
 0x8b9   :  { %v4978_v23 = vsel %vm3589_vm3, %v4925_v13, 0 }
 0x8ba   :  { %v4330_v20 = vmul.f32 %v11188_v49, %v4329_v19  ;;  %10380 = vmatpush3.bf16.xpose.msra.mxu0 %v4978_v23  ;;  %v11435_v19 = vld [vmem:[%s14514_s5] sm:$0xff]   ;;  %v11436_v23 = vld [vmem:[%s14514_s5 + $0x8] sm:$0xff]  }
 0x8bb   :  { %10391 = vmatprep.subr.bf16.mxu0 %v14496_v41 }
 0x8bc   :  { %v4335_v37 = vmul.f32 %v11190_v22, %v4330_v20  ;;  %v4754_v43 = vpop.f32.mrb[116].mxu0  ;;  %v11437_v20 = vld [vmem:[%s14514_s5 + $0x20] sm:$0xff]   ;;  %v11438_v22 = vld [vmem:[%s14514_s5 + $0x28] sm:$0xff]  }
 0x8bd   :  { %v4755_v1 = vadd.f32 %v13170_v33, %v4754_v43  ;;  %v10339_v46 = vpop.f32.mrb[117].mxu0  ;;  %v4595_v33 = vadd.f32 %v13186_v25, %v4594_v42  ;;  %v11433_v25 = vld [vmem:[%s14511_s6 + $0x20] sm:$0xff]   ;;  %v11434_v42 = vld [vmem:[%s14511_s6 + $0x28] sm:$0xff]  }
 0x8be   :  { %v4336_v28 = vsub.f32 1.0, %v4335_v37  ;;  %v4757_v55 = vpop.f32.mrb[118].mxu0  ;;  %v11440_v37 = vld [vmem:[%s14474_s9 + $0x8] sm:$0xff]   ;;  %v11441_v43 = vld [vmem:[%s14474_s9 + $0x20] sm:$0xff]  }
 0x8bf   :  { %v4927_v60 = vpack.c.bf16 %v4755_v1, %v4755_v1  ;;  %v10340_v2 = vpop.f32.mrb[119].mxu0  ;;  %v4923_v48 = vpack.c.bf16 %v4595_v33, %v4595_v33 }
 0x8c0   :  { %v4338_v30 = vsub.f32 0.0, %v4336_v28 }
 0x8c1   :  { %v5070_v49 = vsel %vm3589_vm3, %v4927_v60, 0  ;;  %10382 = vmatmul.mubr.msk.bf16.vlgmr.msra.gmra.mrb[128].mxu0 %vm3589_vm3, %v4921_v57 }
 0x8c2   :  { %v4339_v35 = vsel %vm4337_vm9, %v4336_v28, %v4338_v30  ;;  %10392 = vmatpush3.bf16.xpose.msra.mxu0 %v5070_v49  ;;  %10393 = vmatprep.mubr.msk.bf16.mxu0 %vm11467_vm1, %v14496_v41 }
 0x8c3   :  { %v4340_v29 = vadd.f32 1.0, %v4339_v35  ;;  %10403 = vmatprep.subr.bf16.mxu0 %v14496_v41 }
 0x8c4   :  { %v4834_v4 = vpop.f32.mrb[120].mxu0 }
 0x8c5   :  { %v4341_v53 = vmul.f32 %v4340_v29, %v4315_v0  ;;  %v4835_v6 = vadd.f32 %v13200_v39, %v4834_v4  ;;  %v10355_v16 = vpop.f32.mrb[121].mxu0 }
 0x8c6   :  { %v4837_v52 = vpop.f32.mrb[122].mxu0 }
 0x8c7   :  { %v4342_v36 = vpack.c.bf16 %v4341_v53, %v4341_v53  ;;  %v5165_v12 = vpack.c.bf16 %v4835_v6, %v4835_v6  ;;  %v10356_v14 = vpop.f32.mrb[123].mxu0 }
 0x8c9   :  { %v5218_v18 = vand.u32 %v5165_v12, %v13212_v32  ;;  %10274 = vmatmul.mubr.msk.bf16.vlgmr.msra.gmra.mrb[96].mxu1 %vm4367_vm10, %v4342_v36  ;;  %10394 = vmatmul.mubr.msk.bf16.vlgmr.msra.gmra.mrb[132].mxu0 %vm3589_vm3, %v4923_v48 }
 0x8ca   :  { %10294 = vmatpush3.bf16.msra.mxu1 %v11433_v25  ;;  %10297 = vmatprep.mubr.msk.bf16.mxu1 %vm11467_vm1, %v14496_v41 }
 0x8cb   :  { %10404 = vmatpush3.bf16.msra.mxu0 %v5218_v18  ;;  %10295 = vmatprep.subr.bf16.mxu1 %v14496_v41 }
 0x8cc   :  { %v13487_v39 = vpop.f32.mrb[124].mxu0  ;;  %10405 = vmatprep.mubr.msk.bf16.mxu0 %vm11467_vm1, %v14496_v41  ;;  %10415 = vmatprep.subr.bf16.mxu0 %v14496_v41 }
 0x8cd   :  { %v10371_v9 = vpop.f32.mrb[125].mxu0 }
 0x8ce   :  { %10296 = vmatpush3.bf16.msra.mxu1 %v11434_v42  ;;  %v4917_v13 = vpop.f32.mrb[126].mxu0  ;;  %v4475_v42 = vadd.f32 %v13153_v63, %v13464_v15 }
 0x8cf   :  { %v10372_v8 = vpop.f32.mrb[127].mxu0  ;;  %10309 = vmatprep.subr.bf16.mxu1 %v14496_v41 }
 0x8d1   :  { %10298 = vmatmul.mubr.msk.bf16.vlgmr.msra.gmra.mrb[100].mxu1 %vm2917_vm2, %v13371_v7 }
 0x8d2   :  { %10310 = vmatpush3.bf16.msra.mxu1 %v11435_v19  ;;  %10313 = vmatprep.mubr.msk.bf16.mxu1 %vm11467_vm1, %v14496_v41 }
 0x8d3   :  { %10311 = vmatprep.subr.bf16.mxu1 %v14496_v41 }
 0x8d6   :  { %10312 = vmatpush3.bf16.msra.mxu1 %v11436_v23 }
 0x8d7   :  { %10325 = vmatprep.subr.bf16.mxu1 %v14496_v41 }
 0x8d9   :  { %10314 = vmatmul.mubr.msk.bf16.vlgmr.msra.gmra.mrb[104].mxu1 %vm2917_vm2, %v13371_v7 }
 0x8da   :  { %10326 = vmatpush3.bf16.msra.mxu1 %v11437_v20  ;;  %10329 = vmatprep.mubr.msk.bf16.mxu1 %vm11467_vm1, %v14496_v41  ;;  %v4920_v20 = vpack.c.bf16 %v4475_v42, %v4475_v42 }
 0x8db   :  { %10327 = vmatprep.subr.bf16.mxu1 %v14496_v41 }
 0x8de   :  { %10328 = vmatpush3.bf16.msra.mxu1 %v11438_v22 }
 0x8df   :  { %10341 = vmatprep.subr.bf16.mxu1 %v14496_v41 }
 0x8e1   :  { %10330 = vmatmul.mubr.msk.bf16.vlgmr.msra.gmra.mrb[108].mxu1 %vm2917_vm2, %v13371_v7 }
 0x8e2   :  { %10342 = vmatpush3.bf16.msra.mxu1 %v11439_v58  ;;  %10345 = vmatprep.mubr.msk.bf16.mxu1 %vm11467_vm1, %v14496_v41 }
 0x8e3   :  { %10343 = vmatprep.subr.bf16.mxu1 %v14496_v41 }
 0x8e6   :  { %10344 = vmatpush3.bf16.msra.mxu1 %v11440_v37 }
 0x8e7   :  { %10357 = vmatprep.subr.bf16.mxu1 %v14496_v41 }
 0x8e9   :  { %10346 = vmatmul.mubr.msk.bf16.vlgmr.msra.gmra.mrb[112].mxu1 %vm2917_vm2, %v13371_v7 }
 0x8ea   :  { %10358 = vmatpush3.bf16.msra.mxu1 %v11441_v43  ;;  %10361 = vmatprep.mubr.msk.bf16.mxu1 %vm11467_vm1, %v14496_v41 }
 0x8eb   :  { %10359 = vmatprep.subr.bf16.mxu1 %v14496_v41 }
 0x8ee   :  { %10360 = vmatpush3.bf16.msra.mxu1 %v13113_v17 }
 0x8ef   :  { %10373 = vmatprep.subr.bf16.mxu1 %v14496_v41 }
 0x8f1   :  { %10362 = vmatmul.mubr.msk.bf16.vlgmr.msra.gmra.mrb[116].mxu1 %vm2917_vm2, %v13371_v7 }
 0x8f2   :  { %10375 = vmatprep.mubr.msk.bf16.mxu1 %vm11467_vm1, %v14496_v41 }
 0x994   :  { %v5014_v1 = vpop.f32.mrb[128].mxu0 }
 0x995   :  { %v5113_v46 = vmul.f32 0.35355338, %v5014_v1  ;;  %v10383_v28 = vpop.f32.mrb[129].mxu0 }
 0x996   :  { %v5017_v55 = vpop.f32.mrb[130].mxu0 }
 0x997   :  { %v10384_v57 = vpop.f32.mrb[131].mxu0  ;;  %v5119_v60 = vsel %vm3778_vm6, %v5113_v46, -inf }
 0x998   :  { %5120 = vmax.xlane.f32.xlu1 %v5119_v60 }
 0x99c   :  { %v13547_v2 = vpop.f32.mrb[96].mxu1  ;;  %v5106_v30 = vpop.f32.mrb[132].mxu0 }
 0x99d   :  { %v5115_v17 = vmul.f32 0.35355338, %v5106_v30  ;;  %v10275_v49 = vpop.f32.mrb[97].mxu1  ;;  %v10395_v35 = vpop.f32.mrb[133].mxu0 }
 0x99e   :  { %v4408_v0 = vpop.f32.mrb[98].mxu1  ;;  %v5109_v29 = vpop.f32.mrb[134].mxu0 }
 0x99f   :  { %v10276_v7 = vpop.f32.mrb[99].mxu1  ;;  %v10396_v33 = vpop.f32.mrb[135].mxu0  ;;  %v5125_v4 = vsel %vm3778_vm6, %v5115_v17, -inf }
 0x9a0   :  { %5126 = vmax.xlane.f32.xlu1 %v5125_v4 }
 0x9a4   :  { %v4554_v53 = vpop.f32.mrb[100].mxu1 }
 0x9a5   :  { %v10299_v6 = vpop.f32.mrb[101].mxu1  ;;  %v4555_v63 = vadd.f32 %v13181_v24, %v4554_v53 }
 0x9a6   :  { %v4557_v16 = vpop.f32.mrb[102].mxu1 }
 0x9a7   :  { %v10300_v52 = vpop.f32.mrb[103].mxu1  ;;  %v4922_v1 = vpack.c.bf16 %v4555_v63, %v4555_v63 }
 0x9ac   :  { %v4634_v36 = vpop.f32.mrb[104].mxu1 }
 0x9ad   :  { %v4635_v48 = vadd.f32 %v13141_v44, %v4634_v36  ;;  %v10315_v12 = vpop.f32.mrb[105].mxu1 }
 0x9ae   :  { %v4637_v14 = vpop.f32.mrb[106].mxu1 }
 0x9af   :  { %v4924_v18 = vpack.c.bf16 %v4635_v48, %v4635_v48  ;;  %v10316_v25 = vpop.f32.mrb[107].mxu1 }
 0x9b1   :  { %v4932_v9 = vsel %vm3589_vm3, %v4924_v18, 0 }
 0x9b2   :  { %10374 = vmatpush3.bf16.xpose.msra.mxu1 %v4932_v9 }
 0x9b3   :  { %10385 = vmatprep.subr.bf16.mxu1 %v14496_v41 }
 0x9b4   :  { %v4714_v13 = vpop.f32.mrb[108].mxu1 }
 0x9b5   :  { %v4715_v8 = vadd.f32 %v13165_v50, %v4714_v13  ;;  %v10331_v19 = vpop.f32.mrb[109].mxu1 }
 0x9b6   :  { %v4717_v23 = vpop.f32.mrb[110].mxu1  ;;  %v4915_v19 = vadd.f32 %v13246_v51, %v13487_v39 }
 0x9b7   :  { %v4926_v22 = vpack.c.bf16 %v4715_v8, %v4715_v8  ;;  %v10332_v44 = vpop.f32.mrb[111].mxu1 }
 0x9b9   :  { %v5024_v58 = vsel %vm3589_vm3, %v4926_v22, 0  ;;  %10376 = vmatmul.mubr.msk.bf16.vlgmr.msra.gmra.mrb[120].mxu1 %vm3589_vm3, %v4920_v20  ;;  %v5167_v22 = vpack.c.bf16 %v4915_v19, %v4915_v19 }
 0x9ba   :  { %10386 = vmatpush3.bf16.xpose.msra.mxu1 %v5024_v58  ;;  %10387 = vmatprep.mubr.msk.bf16.mxu1 %vm11467_vm1, %v14496_v41 }
 0x9bb   :  { %10397 = vmatprep.subr.bf16.mxu1 %v14496_v41  ;;  %v5310_v63 = vand.u32 %v5167_v22, %v13212_v32 }
 0x9bc   :  { %v4794_v15 = vpop.f32.mrb[112].mxu1 }
 0x9bd   :  { %v4795_v50 = vadd.f32 %v13195_v38, %v4794_v15  ;;  %v10347_v37 = vpop.f32.mrb[113].mxu1 }
 0x9be   :  { %v4797_v43 = vpop.f32.mrb[114].mxu1 }
 0x9bf   :  { %v5164_v28 = vpack.c.bf16 %v4795_v50, %v4795_v50  ;;  %v10348_v55 = vpop.f32.mrb[115].mxu1 }
 0x9c1   :  { %v5172_v57 = vand.u32 %v5164_v28, %v13212_v32  ;;  %10388 = vmatmul.mubr.msk.bf16.vlgmr.msra.gmra.mrb[124].mxu1 %vm3589_vm3, %v4922_v1 }
 0x9c2   :  { %10399 = vmatprep.mubr.msk.bf16.mxu1 %vm11467_vm1, %v14496_v41 }
 0x9c3   :  { %10398 = vmatpush3.bf16.msra.mxu1 %v5172_v57 }
 0x9c4   :  { %v13567_v60 = vpop.f32.mrb[116].mxu1  ;;  %10409 = vmatprep.subr.bf16.mxu1 %v14496_v41 }
 0x9c5   :  { %v10363_v24 = vpop.f32.mrb[117].mxu1 }
 0x9c6   :  { %v4877_v30 = vpop.f32.mrb[118].mxu1 }
 0x9c7   :  { %v10364_v38 = vpop.f32.mrb[119].mxu1 }
 0xa25   :  { %v5121_v49 = vpop.xlane.xlu1 %5120 }
 0xa26   :  { %v5129_v35 = vsub.f32 %v5113_v46, %v5121_v49 }
 0xa28   :  { %v5134_v0 = vmul.f32 1.442695, %v5129_v35 }
 0xa2a   :  { %11191 = vpow2.f32 %v5134_v0 }
 0xa2d   :  { %v5127_v29 = vpop.xlane.xlu1 %5126 }
 0xa2e   :  { %v5131_v7 = vsub.f32 %v5115_v17, %v5127_v29 }
 0xa30   :  { %v5138_v33 = vmul.f32 1.442695, %v5131_v7 }
 0xa32   :  { %11193 = vpow2.f32 %v5138_v33 }
 0xa34   :  { %v11192_v4 = vpop.eup %11191 }
 0xa35   :  { %v5143_v53 = vsel %vm3778_vm6, %v11192_v4, 0.0 }
 0xa36   :  { %5144 = vadd.xlane.f32.xlu1 %v5143_v53 }
 0xa3c   :  { %v11194_v6 = vpop.eup %11193 }
 0xa3d   :  { %v5149_v16 = vsel %vm3778_vm6, %v11194_v6, 0.0 }
 0xa3e   :  { %5150 = vadd.xlane.f32.xlu1 %v5149_v16 }
 0xa8c   :  { %v4968_v52 = vpop.f32.mrb[120].mxu1 }
 0xa8d   :  { %v5112_v36 = vmul.f32 0.35355338, %v4968_v52  ;;  %v10377_v48 = vpop.f32.mrb[121].mxu1 }
 0xa8e   :  { %v4971_v12 = vpop.f32.mrb[122].mxu1 }
 0xa8f   :  { %v10378_v14 = vpop.f32.mrb[123].mxu1  ;;  %v5116_v46 = vsel %vm3778_vm6, %v5112_v36, -inf }
 0xa90   :  { %5117 = vmax.xlane.f32.xlu0 %v5116_v46 }
 0xa94   :  { %v5060_v18 = vpop.f32.mrb[124].mxu1 }
 0xa95   :  { %v5114_v17 = vmul.f32 0.35355338, %v5060_v18  ;;  %v10389_v25 = vpop.f32.mrb[125].mxu1 }
 0xa96   :  { %v5063_v9 = vpop.f32.mrb[126].mxu1 }
 0xa97   :  { %v10390_v42 = vpop.f32.mrb[127].mxu1  ;;  %v5122_v13 = vsel %vm3778_vm6, %v5114_v17, -inf }
 0xa98   :  { %5123 = vmax.xlane.f32.xlu0 %v5122_v13 }
 0xac3   :  { %v5145_v8 = vpop.xlane.xlu1 %5144 }
 0xac4   :  { %11195 = vrcp.f32 %v5145_v8 }
 0xacb   :  { %v5151_v23 = vpop.xlane.xlu1 %5150 }
 0xacc   :  { %11197 = vrcp.f32 %v5151_v23 }
 0xace   :  { %v11196_v20 = vpop.eup %11195 }
 0xacf   :  { %v5157_v44 = vmul.f32 %v11196_v20, %v11192_v4 }
 0xad1   :  { %v5161_v58 = vpack.c.bf16 %v5157_v44, %v5157_v44 }
 0xad3   :  { %10406 = vmatmul.mubr.msk.bf16.vlgmr.msra.gmra.mrb[136].mxu0 %vm3831_vm7, %v5161_v58 }
 0xad4   :  { %10416 = vmatpush3.bf16.msra.mxu0 %v5310_v63  ;;  %10417 = vmatprep.mubr.msk.bf16.mxu0 %vm11467_vm1, %v14496_v41 }
 0xad5   :  { %10427 = vmatprep.subr.bf16.mxu0 %v14496_v41 }
 0xad6   :  { %v11198_v15 = vpop.eup %11197 }
 0xad7   :  { %v5159_v50 = vmul.f32 %v11198_v15, %v11194_v6 }
 0xad9   :  { %v5163_v37 = vpack.c.bf16 %v5159_v50, %v5159_v50 }
 0xadb   :  { %10418 = vmatmul.mubr.msk.bf16.vlgmr.msra.gmra.mrb[140].mxu0 %vm3831_vm7, %v5163_v37 }
 0xadc   :  { %10428 = vmatpush3.bf16.msra.mxu0 %v13278_v21  ;;  %10429 = vmatprep.mubr.msk.bf16.mxu0 %vm11467_vm1, %v14496_v41 }
 0xadd   :  { %10439 = vmatprep.subr.bf16.mxu0 %v14496_v41 }
 0xb1d   :  { %v5118_v51 = vpop.xlane.xlu0 %5117 }
 0xb1e   :  { %v5128_v39 = vsub.f32 %v5112_v36, %v5118_v51 }
 0xb20   :  { %v5132_v43 = vmul.f32 1.442695, %v5128_v39 }
 0xb22   :  { %11199 = vpow2.f32 %v5132_v43 }
 0xb25   :  { %v5124_v1 = vpop.xlane.xlu0 %5123 }
 0xb26   :  { %v5130_v28 = vsub.f32 %v5114_v17, %v5124_v1 }
 0xb28   :  { %v5136_v55 = vmul.f32 1.442695, %v5130_v28 }
 0xb2a   :  { %11201 = vpow2.f32 %v5136_v55 }
 0xb2c   :  { %v11200_v57 = vpop.eup %11199 }
 0xb2d   :  { %v5140_v24 = vsel %vm3778_vm6, %v11200_v57, 0.0 }
 0xb2e   :  { %5141 = vadd.xlane.f32.xlu0 %v5140_v24 }
 0xb34   :  { %v11202_v30 = vpop.eup %11201 }
 0xb35   :  { %v5146_v21 = vsel %vm3778_vm6, %v11202_v30, 0.0 }
 0xb36   :  { %5147 = vadd.xlane.f32.xlu0 %v5146_v21 }
 0xba6   :  { %v5254_v38 = vpop.f32.mrb[136].mxu0 }
 0xba7   :  { %v5353_v49 = vpack.c.bf16 %v5254_v38, %v5254_v38  ;;  %v10407_v35 = vpop.f32.mrb[137].mxu0  ;;  %v13637_v38 = vld [vmem:[%s14483_s18] ss:$0 sm:$0xff] }
 0xba8   :  { %v5257_v0 = vpop.f32.mrb[138].mxu0 }
 0xba9   :  { %v10408_v29 = vpop.f32.mrb[139].mxu0  ;;  %10430 = vmatmul.mubr.msk.bf16.vlgmr.msra.gmra.mrb[144].mxu0 %vm3589_vm3, %v5353_v49 }
 0xbaa   :  { %10440 = vmatpush3.bf16.msra.mxu0 %v13296_v27  ;;  %10441 = vmatprep.mubr.msk.bf16.mxu0 %vm11467_vm1, %v14496_v41 }
 0xbab   :  { %10453 = vmatprep.subr.bf16.mxu0 %v14496_v41 }
 0xbae   :  { %v5346_v7 = vpop.f32.mrb[140].mxu0 }
 0xbaf   :  { %v5355_v33 = vpack.c.bf16 %v5346_v7, %v5346_v7  ;;  %v10419_v4 = vpop.f32.mrb[141].mxu0 }
 0xbb0   :  { %v5349_v53 = vpop.f32.mrb[142].mxu0 }
 0xbb1   :  { %v10420_v6 = vpop.f32.mrb[143].mxu0  ;;  %10442 = vmatmul.mubr.msk.bf16.vlgmr.msra.gmra.mrb[148].mxu0 %vm3589_vm3, %v5355_v33 }
 0xbb2   :  { %10454 = vmatpush3.bf16.msra.mxu0 %v13433_v54  ;;  %10461 = vmatprep.mubr.msk.bf16.mxu0 %vm11467_vm1, %v14496_v41  ;;  %v4875_v54 = vadd.f32 %v13239_v47, %v13567_v60 }
 0xbb3   :  { %10455 = vmatprep.subr.bf16.mxu0 %v14496_v41 }
 0xbb4   :  { %v5166_v36 = vpack.c.bf16 %v4875_v54, %v4875_v54 }
 0xbb6   :  { %10456 = vmatpush3.bf16.msra.mxu0 %v13440_v56  ;;  %v5264_v12 = vand.u32 %v5166_v36, %v13212_v32 }
 0xbb7   :  { %10457 = vmatprep.subr.bf16.mxu0 %v14496_v41 }
 0xbba   :  { %10458 = vmatpush3.bf16.msra.mxu0 %v13447_v59 }
 0xbbb   :  { %v5142_v27 = vpop.xlane.xlu0 %5141  ;;  %10459 = vmatprep.subr.bf16.mxu0 %v14496_v41 }
 0xbbc   :  { %11203 = vrcp.f32 %v5142_v27 }
 0xbbe   :  { %10460 = vmatpush3.bf16.msra.mxu0 %v13454_v62 }
 0xbbf   :  { %10481 = vmatprep.subr.bf16.mxu0 %v14496_v41 }
 0xbc3   :  { %v5148_v16 = vpop.xlane.xlu0 %5147 }
 0xbc4   :  { %11205 = vrcp.f32 %v5148_v16 }
 0xbc6   :  { %v11204_v52 = vpop.eup %11203 }
 0xbc7   :  { %v5156_v56 = vmul.f32 %v11204_v52, %v11200_v57 }
 0xbc9   :  { %v5160_v48 = vpack.c.bf16 %v5156_v56, %v5156_v56 }
 0xbcb   :  { %10400 = vmatmul.mubr.msk.bf16.vlgmr.msra.gmra.mrb[128].mxu1 %vm3831_vm7, %v5160_v48 }
 0xbcc   :  { %10410 = vmatpush3.bf16.msra.mxu1 %v5264_v12  ;;  %10411 = vmatprep.mubr.msk.bf16.mxu1 %vm11467_vm1, %v14496_v41 }
 0xbcd   :  { %10421 = vmatprep.subr.bf16.mxu1 %v14496_v41 }
 0xbce   :  { %v11206_v59 = vpop.eup %11205 }
 0xbcf   :  { %v5158_v62 = vmul.f32 %v11206_v59, %v11202_v30  ;;  %v4411_v30 = vadd.f32 %v13547_v2, %v13321_v61 }
 0xbd1   :  { %v5162_v14 = vpack.c.bf16 %v5158_v62, %v5158_v62  ;;  %v13641_v35 = vadd.f32 %v13637_v38, %v4411_v30 }
 0xbd3   :  { %10412 = vmatmul.mubr.msk.bf16.vlgmr.msra.gmra.mrb[132].mxu1 %vm3831_vm7, %v5162_v14  ;;  %v5774_v7 = vmul.f32 %v13641_v35, %v13641_v35 }
 0xbd4   :  { %10422 = vmatpush3.bf16.msra.mxu1 %v13264_v11  ;;  %10423 = vmatprep.mubr.msk.bf16.mxu1 %vm11467_vm1, %v14496_v41 }
 0xbd5   :  { %10433 = vmatprep.subr.bf16.mxu1 %v14496_v41 }
 0xc7c   :  { %v5436_v47 = vpop.f32.mrb[144].mxu0 }
 0xc7d   :  { %v10431_v60 = vpop.f32.mrb[145].mxu0  ;;  %v5529_v15 = vsel %vm2849_vm0, %v5436_v47, 0.0 }
 0xc7e   :  { %v5439_v46 = vpop.f32.mrb[146].mxu0 }
 0xc7f   :  { %v10432_v18 = vpop.f32.mrb[147].mxu0 }
 0xc84   :  { %v5522_v17 = vpop.f32.mrb[148].mxu0 }
 0xc85   :  { %v10443_v25 = vpop.f32.mrb[149].mxu0  ;;  %v5533_v24 = vsel %vm2849_vm0, %v5522_v17, 0.0 }
 0xc86   :  { %v5525_v9 = vpop.f32.mrb[150].mxu0  ;;  %v13662_v25 = vld [vmem:[%s14512_s25 + $0x1] ss:$0 sm:$0xff] }
 0xc87   :  { %v10444_v42 = vpop.f32.mrb[151].mxu0 }
 0xc9e   :  { %v5208_v13 = vpop.f32.mrb[128].mxu1 }
 0xc9f   :  { %v5352_v8 = vpack.c.bf16 %v5208_v13, %v5208_v13  ;;  %v10401_v19 = vpop.f32.mrb[129].mxu1  ;;  %v13668_v13 = vld [vmem:[%s14511_s6 + $0x40] sm:$0xff]  }
 0xca0   :  { %v5211_v23 = vpop.f32.mrb[130].mxu1 }
 0xca1   :  { %v10402_v20 = vpop.f32.mrb[131].mxu1  ;;  %10424 = vmatmul.mubr.msk.bf16.vlgmr.msra.gmra.mrb[136].mxu1 %vm3589_vm3, %v5352_v8 }
 0xca2   :  { %10434 = vmatpush3.bf16.msra.mxu1 %v13286_v26  ;;  %10435 = vmatprep.mubr.msk.bf16.mxu1 %vm11467_vm1, %v14496_v41  ;;  %v13691_v20 = vld [vmem:[%s14511_s6 + $0x50] sm:$0xff]  }
 0xca3   :  { %10445 = vmatprep.subr.bf16.mxu1 %v14496_v41 }
 0xca6   :  { %v5300_v11 = vpop.f32.mrb[132].mxu1 }
 0xca7   :  { %v5354_v22 = vpack.c.bf16 %v5300_v11, %v5300_v11  ;;  %v10413_v44 = vpop.f32.mrb[133].mxu1 }
 0xca8   :  { %v5303_v58 = vpop.f32.mrb[134].mxu1  ;;  %v13711_v44 = vld [vmem:[%s14511_s6 + $0x70] sm:$0xff]  }
 0xca9   :  { %v10414_v63 = vpop.f32.mrb[135].mxu1  ;;  %10436 = vmatmul.mubr.msk.bf16.vlgmr.msra.gmra.mrb[140].mxu1 %vm3589_vm3, %v5354_v22  ;;  %v13702_v22 = vld [vmem:[%s14511_s6 + $0x58] sm:$0xff]  }
 0xcaa   :  { %10446 = vmatpush3.bf16.msra.mxu1 %v13336_v3  ;;  %10449 = vmatprep.mubr.msk.bf16.mxu1 %vm11467_vm1, %v14496_v41  ;;  %v13720_v58 = vld [vmem:[%s14511_s6 + $0x78] sm:$0xff]   ;;  %v13729_v63 = vld [vmem:[%s14514_s5 + $0x50] sm:$0xff]  }
 0xcab   :  { %10447 = vmatprep.subr.bf16.mxu1 %v14496_v41 }
 0xcae   :  { %10448 = vmatpush3.bf16.msra.mxu1 %v13343_v5 }
 0xcaf   :  { %10465 = vmatprep.subr.bf16.mxu1 %v14496_v41 }
 0xd74   :  { %v5393_v26 = vpop.f32.mrb[136].mxu1 }
 0xd75   :  { %v5528_v50 = vsel %vm2849_vm0, %v5393_v26, 0.0  ;;  %v10425_v37 = vpop.f32.mrb[137].mxu1  ;;  %v13738_v26 = vld [vmem:[%s14514_s5 + $0x58] sm:$0xff]  }
 0xd76   :  { %v5530_v51 = vadd.f32 %v5529_v15, %v5528_v50  ;;  %v5396_v39 = vpop.f32.mrb[138].mxu1  ;;  %v13747_v15 = vld [vmem:[%s14514_s5 + $0x70] sm:$0xff]   ;;  %v13756_v50 = vld [vmem:[%s14514_s5 + $0x78] sm:$0xff]  }
 0xd77   :  { %v10426_v43 = vpop.f32.mrb[139].mxu1  ;;  %v13765_v37 = vld [vmem:[%s14474_s9 + $0x50] sm:$0xff]  }
 0xd78   :  { %v13783_v39 = vld [vmem:[%s14474_s9 + $0x70] sm:$0xff]   ;;  %v13792_v43 = vld [vmem:[%s14474_s9 + $0x78] sm:$0xff]  }
 0xd7c   :  { %v5479_v1 = vpop.f32.mrb[140].mxu1 }
 0xd7d   :  { %v5531_v3 = vsel %vm2849_vm0, %v5479_v1, 0.0  ;;  %v10437_v28 = vpop.f32.mrb[141].mxu1 }
 0xd7e   :  { %v5532_v55 = vadd.f32 %v5531_v3, %v5530_v51  ;;  %v5482_v57 = vpop.f32.mrb[142].mxu1  ;;  %v13774_v51 = vld [vmem:[%s14474_s9 + $0x58] sm:$0xff]  }
 0xd7f   :  { %v10438_v5 = vpop.f32.mrb[143].mxu1 }
 0xd80   :  { %v5534_v21 = vadd.f32 %v5533_v24, %v5532_v55 }
 0xd82   :  { %v5535_v49 = vadd.f32 %v5534_v21, %v13058_v10  ;;  %v5770_v10 = vsel %vm2849_vm0, %v13641_v35, 0.0 }
 0xd84   :  { %v13644_v0 = vadd.f32 %v13317_v34, %v5535_v49  ;;  %v5775_v34 = vsel %vm2849_vm0, %v5774_v7, 0.0 }
 0xd86   :  { %v5537_v29 = vsel %vm2849_vm0, %v13644_v0, 0.0  ;;  %v5541_v61 = vmul.f32 %v13644_v0, %v13644_v0 }
 0xd87   :  { %5538 = vadd.xlane.f32.xlu0 %v5537_v29 }
 0xd88   :  { %v5542_v2 = vsel %vm2849_vm0, %v5541_v61, 0.0 }
 0xd89   :  { %5543 = vadd.xlane.f32.xlu1 %v5542_v2 }
 0xd8b   :  { %5771 = vadd.xlane.f32.xlu0 %v5770_v10 }
 0xd8d   :  { %5776 = vadd.xlane.f32.xlu1 %v5775_v34 }
 0xe14   :  { %v5539_v33 = vpop.xlane.xlu0 %5538 }
 0xe15   :  { %v5540_v4 = vmul.f32 0.03125, %v5539_v33 }
 0xe16   :  { %v5544_v53 = vpop.xlane.xlu1 %5543 }
 0xe17   :  { %v5546_v6 = vmul.f32 %v5540_v4, %v5540_v4  ;;  %v5545_v27 = vmul.f32 0.03125, %v5544_v53  ;;  %v5548_v14 = vsub.f32 %v13644_v0, %v5540_v4 }
 0xe18   :  { %v5772_v54 = vpop.xlane.xlu0 %5771 }
 0xe19   :  { %v5547_v16 = vsub.f32 %v5545_v27, %v5546_v6  ;;  %v5773_v52 = vmul.f32 0.03125, %v5772_v54 }
 0xe1a   :  { %v5777_v36 = vpop.xlane.xlu1 %5776 }
 0xe1b   :  { %v5549_v56 = vadd.f32 1e-06, %v5547_v16  ;;  %v5779_v48 = vmul.f32 %v5773_v52, %v5773_v52  ;;  %v5778_v12 = vmul.f32 0.03125, %v5777_v36  ;;  %v5781_v46 = vsub.f32 %v13641_v35, %v5773_v52 }
 0xe1d   :  { %11207 = vrsqrt.f32 %v5549_v56  ;;  %v5780_v59 = vsub.f32 %v5778_v12, %v5779_v48 }
 0xe1f   :  { %v5782_v62 = vadd.f32 1e-06, %v5780_v59 }
 0xe21   :  { %11209 = vrsqrt.f32 %v5782_v62  ;;  %v13812_v62 = vld [vmem:[%s14473_s8 + $0x5] ss:$0 sm:$0xff] }
 0xe27   :  { %v11208_v47 = vpop.eup %11207 }
 0xe28   :  { %v5551_v60 = vmul.f32 %v11208_v47, %v5548_v14 }
 0xe2a   :  { %v5552_v18 = vmul.f32 %v13351_v31, %v5551_v60  ;;  %v13674_v31 = vld [vmem:[%s14513_s26 + $0x1] ss:$0 sm:$0xff] }
 0xe2b   :  { %v11210_v17 = vpop.eup %11209 }
 0xe2c   :  { %v5784_v9 = vmul.f32 %v11210_v17, %v5781_v46  ;;  %v5553_v42 = vadd.f32 %v13356_v40, %v5552_v18  ;;  %v13681_v40 = vld [vmem:[%s14511_s6 + $0x48] sm:$0xff]  }
 0xe2e   :  { %v5791_v8 = vmul.f32 %v13662_v25, %v5784_v9  ;;  %v5554_v19 = vpack.c.bf16 %v5553_v42, %v5553_v42 }
 0xe30   :  { %10450 = vmatmul.mubr.msk.bf16.vlgmr.msra.gmra.mrb[144].mxu1 %vm2917_vm2, %v5554_v19  ;;  %v5798_v23 = vadd.f32 %v13674_v31, %v5791_v8  ;;  %v13818_v19 = vld [vmem:[%s14515_s27 + $0x5] ss:$0 sm:$0xff] }
 0xe31   :  { %10466 = vmatpush3.bf16.msra.mxu1 %v13668_v13  ;;  %10469 = vmatprep.mubr.msk.bf16.mxu1 %vm11467_vm1, %v14496_v41 }
 0xe32   :  { %10467 = vmatprep.subr.bf16.mxu1 %v14496_v41  ;;  %v13693_v11 = vpack.c.bf16 %v5798_v23, %v5798_v23 }
 0xe35   :  { %10468 = vmatpush3.bf16.msra.mxu1 %v13681_v40 }
 0xe36   :  { %10473 = vmatprep.subr.bf16.mxu1 %v14496_v41 }
 0xe38   :  { %10470 = vmatmul.mubr.msk.bf16.vlgmr.msra.gmra.mrb[148].mxu1 %vm2917_vm2, %v13693_v11 }
 0xe39   :  { %10474 = vmatpush3.bf16.msra.mxu1 %v13691_v20  ;;  %10477 = vmatprep.mubr.msk.bf16.mxu1 %vm11467_vm1, %v14496_v41 }
 0xe3a   :  { %10475 = vmatprep.subr.bf16.mxu1 %v14496_v41 }
 0xe3d   :  { %10476 = vmatpush3.bf16.msra.mxu1 %v13702_v22 }
 0xe3e   :  { %10489 = vmatprep.subr.bf16.mxu1 %v14496_v41 }
 0xe40   :  { %10478 = vmatmul.mubr.msk.bf16.vlgmr.msra.gmra.mrb[152].mxu1 %vm2917_vm2, %v13693_v11 }
 0xe41   :  { %10490 = vmatpush3.bf16.msra.mxu1 %v13711_v44  ;;  %10493 = vmatprep.mubr.msk.bf16.mxu1 %vm11467_vm1, %v14496_v41 }
 0xe42   :  { %10491 = vmatprep.subr.bf16.mxu1 %v14496_v41 }
 0xe45   :  { %10492 = vmatpush3.bf16.msra.mxu1 %v13720_v58 }
 0xe46   :  { %10505 = vmatprep.subr.bf16.mxu1 %v14496_v41 }
 0xe48   :  { %10494 = vmatmul.mubr.msk.bf16.vlgmr.msra.gmra.mrb[156].mxu1 %vm2917_vm2, %v13693_v11 }
 0xe49   :  { %10506 = vmatpush3.bf16.msra.mxu1 %v13729_v63  ;;  %10509 = vmatprep.mubr.msk.bf16.mxu1 %vm11467_vm1, %v14496_v41 }
 0xe4a   :  { %10507 = vmatprep.subr.bf16.mxu1 %v14496_v41 }
 0xe4d   :  { %10508 = vmatpush3.bf16.msra.mxu1 %v13738_v26 }
 0xe4e   :  { %10521 = vmatprep.subr.bf16.mxu1 %v14496_v41 }
 0xe50   :  { %10510 = vmatmul.mubr.msk.bf16.vlgmr.msra.gmra.mrb[160].mxu1 %vm2917_vm2, %v13693_v11 }
 0xe51   :  { %10522 = vmatpush3.bf16.msra.mxu1 %v13747_v15  ;;  %10525 = vmatprep.mubr.msk.bf16.mxu1 %vm11467_vm1, %v14496_v41 }
 0xe52   :  { %10523 = vmatprep.subr.bf16.mxu1 %v14496_v41 }
 0xe55   :  { %10524 = vmatpush3.bf16.msra.mxu1 %v13756_v50 }
 0xe56   :  { %10537 = vmatprep.subr.bf16.mxu1 %v14496_v41 }
 0xe58   :  { %10526 = vmatmul.mubr.msk.bf16.vlgmr.msra.gmra.mrb[164].mxu1 %vm2917_vm2, %v13693_v11 }
 0xe59   :  { %10538 = vmatpush3.bf16.msra.mxu1 %v13765_v37  ;;  %10541 = vmatprep.mubr.msk.bf16.mxu1 %vm11467_vm1, %v14496_v41 }
 0xe5a   :  { %10539 = vmatprep.subr.bf16.mxu1 %v14496_v41 }
 0xe5d   :  { %10540 = vmatpush3.bf16.msra.mxu1 %v13774_v51 }
 0xe5e   :  { %10553 = vmatprep.subr.bf16.mxu1 %v14496_v41 }
 0xe60   :  { %10542 = vmatmul.mubr.msk.bf16.vlgmr.msra.gmra.mrb[168].mxu1 %vm2917_vm2, %v13693_v11 }
 0xe61   :  { %10554 = vmatpush3.bf16.msra.mxu1 %v13783_v39  ;;  %10557 = vmatprep.mubr.msk.bf16.mxu1 %vm11467_vm1, %v14496_v41 }
 0xe62   :  { %10555 = vmatprep.subr.bf16.mxu1 %v14496_v41 }
 0xe65   :  { %10556 = vmatpush3.bf16.msra.mxu1 %v13792_v43 }
 0xe66   :  { %10567 = vmatprep.subr.bf16.mxu1 %v14496_v41 }
 0xe68   :  { %10558 = vmatmul.mubr.msk.bf16.vlgmr.msra.gmra.mrb[172].mxu1 %vm2917_vm2, %v13693_v11 }
 0xe69   :  { %10569 = vmatprep.mubr.msk.bf16.mxu1 %vm11467_vm1, %v14496_v41 }
 0xf03   :  { %v5592_v1 = vpop.f32.mrb[144].mxu1 }
 0xf04   :  { %v13804_v3 = vadd.f32 %v13461_v45, %v5592_v1  ;;  %v10451_v28 = vpop.f32.mrb[145].mxu1 }
 0xf05   :  { %v5595_v55 = vpop.f32.mrb[146].mxu1  ;;  %v13824_v28 = vld [vmem:[%s14473_s8 + $0x7] ss:$0 sm:$0xff] }
 0xf06   :  { %v5599_v57 = vmul.f32 0.70710677, %v13804_v3  ;;  %v10452_v24 = vpop.f32.mrb[147].mxu1 }
 0xf08   :  { %v5600_v5 = vand.u32 2147483647, %v5599_v57  ;;  %vm5620_vm11 = vcmp.ge.f32.partialorder %v5599_v57, 0.0 }
 0xf0a   :  { %v5601_v30 = vmul.f32 0.3275911, %v5600_v5  ;;  %v5614_v10 = vsub.f32 0.0, %v5600_v5 }
 0xf0b   :  { %v13807_v21 = vpop.f32.mrb[148].mxu1 }
 0xf0c   :  { %v5602_v49 = vadd.f32 1.0, %v5601_v30  ;;  %v10471_v29 = vpop.f32.mrb[149].mxu1  ;;  %v5615_v53 = vmul.f32 %v5614_v10, %v5600_v5 }
 0xf0d   :  { %v5876_v61 = vpop.f32.mrb[150].mxu1 }
 0xf0e   :  { %11211 = vrcp.f32 %v5602_v49  ;;  %v10472_v2 = vpop.f32.mrb[151].mxu1  ;;  %v5616_v16 = vmul.f32 1.442695, %v5615_v53 }
 0xf10   :  { %11213 = vpow2.f32 %v5616_v16 }
 0xf13   :  { %v5925_v7 = vpop.f32.mrb[152].mxu1 }
 0xf14   :  { %v10479_v34 = vpop.f32.mrb[153].mxu1  ;;  %v5926_v24 = vadd.f32 %v13818_v19, %v5925_v7 }
 0xf15   :  { %v5928_v33 = vpop.f32.mrb[154].mxu1 }
 0xf16   :  { %v10480_v45 = vpop.f32.mrb[155].mxu1  ;;  %v6500_v10 = vpack.c.bf16 %v5926_v24, %v5926_v24  ;;  %v13909_v24 = vld [vmem:[%s14474_s9 + $0x40] sm:$0xff]  }
 0xf18   :  { %v11212_v4 = vpop.eup %11211 }
 0xf19   :  { %v5605_v6 = vmul.f32 1.0614054, %v11212_v4 }
 0xf1a   :  { %v11214_v55 = vpop.eup %11213 }
 0xf1b   :  { %v5606_v27 = vadd.f32 -1.4531521, %v5605_v6  ;;  %v6029_v54 = vpop.f32.mrb[156].mxu1  ;;  %v13839_v6 = vld [vmem:[%s14475_s10 + $0x5] ss:$0 sm:$0xff] }
 0xf1c   :  { %v10495_v52 = vpop.f32.mrb[157].mxu1 }
 0xf1d   :  { %v5607_v36 = vmul.f32 %v11212_v4, %v5606_v27  ;;  %v6032_v56 = vpop.f32.mrb[158].mxu1  ;;  %v5598_v27 = vmul.f32 0.5, %v13804_v3 }
 0xf1e   :  { %v10496_v48 = vpop.f32.mrb[159].mxu1 }
 0xf1f   :  { %v5608_v12 = vadd.f32 1.4214138, %v5607_v36 }
 0xf21   :  { %v5609_v59 = vmul.f32 %v11212_v4, %v5608_v12 }
 0xf23   :  { %v5610_v14 = vadd.f32 -0.28449672, %v5609_v59  ;;  %v6157_v47 = vpop.f32.mrb[160].mxu1  ;;  %v13850_v59 = vld [vmem:[%s14511_s6 + $0x60] sm:$0xff]  }
 0xf24   :  { %v6158_v60 = vadd.f32 %v13812_v62, %v6157_v47  ;;  %v10511_v46 = vpop.f32.mrb[161].mxu1 }
 0xf25   :  { %v5611_v18 = vmul.f32 %v11212_v4, %v5610_v14  ;;  %v6160_v17 = vpop.f32.mrb[162].mxu1 }
 0xf26   :  { %v6504_v9 = vpack.c.bf16 %v6158_v60, %v6158_v60  ;;  %v10512_v42 = vpop.f32.mrb[163].mxu1 }
 0xf27   :  { %v5612_v8 = vadd.f32 0.2548296, %v5611_v18  ;;  %v13873_v42 = vld [vmem:[%s14514_s5 + $0x40] sm:$0xff]  }
 0xf28   :  { %v6557_v23 = vsel %vm3589_vm3, %v6504_v9, 0 }
 0xf29   :  { %v5613_v1 = vmul.f32 %v11212_v4, %v5612_v8  ;;  %10568 = vmatpush3.bf16.xpose.msra.mxu1 %v6557_v23  ;;  %v13832_v4 = vld [vmem:[%s14515_s27 + $0x7] ss:$0 sm:$0xff]  ;;  %v13882_v23 = vld [vmem:[%s14514_s5 + $0x48] sm:$0xff]  }
 0xf2a   :  { %10579 = vmatprep.subr.bf16.mxu1 %v14496_v41  ;;  %v6030_v52 = vadd.f32 %v13832_v4, %v6029_v54  ;;  %v13859_v54 = vld [vmem:[%s14511_s6 + $0x68] sm:$0xff]  }
 0xf2b   :  { %v5618_v5 = vmul.f32 %v11214_v55, %v5613_v1  ;;  %v6261_v30 = vpop.f32.mrb[164].mxu1  ;;  %v13891_v1 = vld [vmem:[%s14514_s5 + $0x60] sm:$0xff]   ;;  %v13900_v55 = vld [vmem:[%s14514_s5 + $0x68] sm:$0xff]  }
 0xf2c   :  { %v6262_v49 = vadd.f32 %v13824_v28, %v6261_v30  ;;  %v10527_v29 = vpop.f32.mrb[165].mxu1  ;;  %v6502_v47 = vpack.c.bf16 %v6030_v52, %v6030_v52  ;;  %v13927_v30 = vld [vmem:[%s14474_s9 + $0x60] sm:$0xff]  }
 0xf2d   :  { %v5619_v61 = vsub.f32 1.0, %v5618_v5  ;;  %v6264_v2 = vpop.f32.mrb[166].mxu1  ;;  %v13918_v5 = vld [vmem:[%s14474_s9 + $0x48] sm:$0xff]  }
 0xf2e   :  { %v6506_v34 = vpack.c.bf16 %v6262_v49, %v6262_v49  ;;  %v10528_v33 = vpop.f32.mrb[167].mxu1  ;;  %v13936_v49 = vld [vmem:[%s14474_s9 + $0x68] sm:$0xff]  }
 0xf2f   :  { %v5621_v45 = vsub.f32 0.0, %v5619_v61 }
 0xf30   :  { %v6649_v7 = vsel %vm3589_vm3, %v6506_v34, 0  ;;  %10570 = vmatmul.mubr.msk.bf16.vlgmr.msra.gmra.mrb[176].mxu1 %vm3589_vm3, %v6500_v10 }
 0xf31   :  { %v5622_v53 = vsel %vm5620_vm11, %v5619_v61, %v5621_v45  ;;  %10580 = vmatpush3.bf16.xpose.msra.mxu1 %v6649_v7  ;;  %10581 = vmatprep.mubr.msk.bf16.mxu1 %vm11467_vm1, %v14496_v41 }
 0xf32   :  { %v5623_v16 = vadd.f32 1.0, %v5622_v53  ;;  %10591 = vmatprep.subr.bf16.mxu1 %v14496_v41 }
 0xf33   :  { %v6389_v57 = vpop.f32.mrb[168].mxu1 }
 0xf34   :  { %v5624_v36 = vmul.f32 %v5623_v16, %v5598_v27  ;;  %v6390_v56 = vadd.f32 %v13839_v6, %v6389_v57  ;;  %v10543_v48 = vpop.f32.mrb[169].mxu1 }
 0xf35   :  { %v6392_v12 = vpop.f32.mrb[170].mxu1 }
 0xf36   :  { %v5625_v14 = vpack.c.bf16 %v5624_v36, %v5624_v36  ;;  %v6744_v60 = vpack.c.bf16 %v6390_v56, %v6390_v56  ;;  %v10544_v3 = vpop.f32.mrb[171].mxu1 }
 0xf38   :  { %v6797_v46 = vand.u32 %v6744_v60, %v13212_v32  ;;  %10462 = vmatmul.mubr.msk.bf16.vlgmr.msra.gmra.mrb[152].mxu0 %vm4367_vm10, %v5625_v14  ;;  %10582 = vmatmul.mubr.msk.bf16.vlgmr.msra.gmra.mrb[180].mxu1 %vm3589_vm3, %v6502_v47  ;;  %v13960_v60 = vld [vmem:[%s14473_s8 + $0x4] ss:$0 sm:$0xff] }
 0xf39   :  { %10482 = vmatpush3.bf16.msra.mxu0 %v13850_v59  ;;  %10485 = vmatprep.mubr.msk.bf16.mxu0 %vm11467_vm1, %v14496_v41 }
 0xf3a   :  { %10592 = vmatpush3.bf16.msra.mxu1 %v6797_v46  ;;  %10483 = vmatprep.subr.bf16.mxu0 %v14496_v41 }
 0xf3b   :  { %v13864_v18 = vpop.f32.mrb[172].mxu1  ;;  %10593 = vmatprep.mubr.msk.bf16.mxu1 %vm11467_vm1, %v14496_v41  ;;  %10603 = vmatprep.subr.bf16.mxu1 %v14496_v41 }
 0xf3c   :  { %v10559_v17 = vpop.f32.mrb[173].mxu1 }
 0xf3d   :  { %10484 = vmatpush3.bf16.msra.mxu0 %v13859_v54  ;;  %v6496_v9 = vpop.f32.mrb[174].mxu1 }
 0xf3e   :  { %v10560_v8 = vpop.f32.mrb[175].mxu1  ;;  %10497 = vmatprep.subr.bf16.mxu0 %v14496_v41 }
 0xf40   :  { %10486 = vmatmul.mubr.msk.bf16.vlgmr.msra.gmra.mrb[156].mxu0 %vm2917_vm2, %v13693_v11 }
 0xf41   :  { %10498 = vmatpush3.bf16.msra.mxu0 %v13873_v42  ;;  %10501 = vmatprep.mubr.msk.bf16.mxu0 %vm11467_vm1, %v14496_v41 }
 0xf42   :  { %10499 = vmatprep.subr.bf16.mxu0 %v14496_v41 }
 0xf45   :  { %10500 = vmatpush3.bf16.msra.mxu0 %v13882_v23 }
 0xf46   :  { %10513 = vmatprep.subr.bf16.mxu0 %v14496_v41 }
 0xf48   :  { %10502 = vmatmul.mubr.msk.bf16.vlgmr.msra.gmra.mrb[160].mxu0 %vm2917_vm2, %v13693_v11 }
 0xf49   :  { %10514 = vmatpush3.bf16.msra.mxu0 %v13891_v1  ;;  %10517 = vmatprep.mubr.msk.bf16.mxu0 %vm11467_vm1, %v14496_v41 }
 0xf4a   :  { %10515 = vmatprep.subr.bf16.mxu0 %v14496_v41 }
 0xf4d   :  { %10516 = vmatpush3.bf16.msra.mxu0 %v13900_v55 }
 0xf4e   :  { %10529 = vmatprep.subr.bf16.mxu0 %v14496_v41 }
 0xf50   :  { %10518 = vmatmul.mubr.msk.bf16.vlgmr.msra.gmra.mrb[164].mxu0 %vm2917_vm2, %v13693_v11 }
 0xf51   :  { %10530 = vmatpush3.bf16.msra.mxu0 %v13909_v24  ;;  %10533 = vmatprep.mubr.msk.bf16.mxu0 %vm11467_vm1, %v14496_v41 }
 0xf52   :  { %10531 = vmatprep.subr.bf16.mxu0 %v14496_v41 }
 0xf55   :  { %10532 = vmatpush3.bf16.msra.mxu0 %v13918_v5 }
 0xf56   :  { %10545 = vmatprep.subr.bf16.mxu0 %v14496_v41 }
 0xf58   :  { %10534 = vmatmul.mubr.msk.bf16.vlgmr.msra.gmra.mrb[168].mxu0 %vm2917_vm2, %v13693_v11 }
 0xf59   :  { %10546 = vmatpush3.bf16.msra.mxu0 %v13927_v30  ;;  %10549 = vmatprep.mubr.msk.bf16.mxu0 %vm11467_vm1, %v14496_v41 }
 0xf5a   :  { %10547 = vmatprep.subr.bf16.mxu0 %v14496_v41 }
 0xf5d   :  { %10548 = vmatpush3.bf16.msra.mxu0 %v13936_v49 }
 0xf5e   :  { %10561 = vmatprep.subr.bf16.mxu0 %v14496_v41 }
 0xf60   :  { %10550 = vmatmul.mubr.msk.bf16.vlgmr.msra.gmra.mrb[172].mxu0 %vm2917_vm2, %v13693_v11 }
 0xf61   :  { %10563 = vmatprep.mubr.msk.bf16.mxu0 %vm11467_vm1, %v14496_v41 }
0x1003   :  { %v6593_v29 = vpop.f32.mrb[176].mxu1 }
0x1004   :  { %v13947_v61 = vmul.f32 0.35355338, %v6593_v29  ;;  %v10571_v2 = vpop.f32.mrb[177].mxu1 }
0x1005   :  { %v6596_v10 = vpop.f32.mrb[178].mxu1  ;;  %v13966_v2 = vld [vmem:[%s14515_s27 + $0x4] ss:$0 sm:$0xff] }
0x1006   :  { %v10572_v34 = vpop.f32.mrb[179].mxu1  ;;  %v6698_v33 = vsel %vm3778_vm6, %v13947_v61, -inf }
0x1007   :  { %6699 = vmax.xlane.f32.xlu1 %v6698_v33  ;;  %v13972_v34 = vld [vmem:[%s14473_s8 + $0x6] ss:$0 sm:$0xff]  ;;  %v5874_v33 = vadd.f32 %v13966_v2, %v13807_v21  ;;  %v13988_v21 = vld [vmem:[%s14475_s10 + $0x4] ss:$0 sm:$0xff] }
0x100b   :  { %v13951_v45 = vpop.f32.mrb[152].mxu0  ;;  %v6685_v7 = vpop.f32.mrb[180].mxu1 }
0x100c   :  { %v13953_v53 = vmul.f32 0.35355338, %v6685_v7  ;;  %v10463_v27 = vpop.f32.mrb[153].mxu0  ;;  %v10583_v11 = vpop.f32.mrb[181].mxu1 }
0x100d   :  { %v5666_v16 = vpop.f32.mrb[154].mxu0  ;;  %v6688_v52 = vpop.f32.mrb[182].mxu1 }
0x100e   :  { %v10464_v57 = vpop.f32.mrb[155].mxu0  ;;  %v10584_v36 = vpop.f32.mrb[183].mxu1  ;;  %v6704_v56 = vsel %vm3778_vm6, %v13953_v53, -inf  ;;  %v6499_v52 = vpack.c.bf16 %v5874_v33, %v5874_v33 }
0x100f   :  { %6705 = vmax.xlane.f32.xlu1 %v6704_v56  ;;  %v13981_v56 = vld [vmem:[%s14515_s27 + $0x6] ss:$0 sm:$0xff] }
0x1013   :  { %v5977_v48 = vpop.f32.mrb[156].mxu0 }
0x1014   :  { %v10487_v12 = vpop.f32.mrb[157].mxu0 }
0x1015   :  { %v5980_v14 = vpop.f32.mrb[158].mxu0 }
0x1016   :  { %v10488_v47 = vpop.f32.mrb[159].mxu0  ;;  %v5978_v14 = vadd.f32 %v13981_v56, %v5977_v48 }
0x101b   :  { %v6105_v3 = vpop.f32.mrb[160].mxu0 }
0x101c   :  { %v6106_v46 = vadd.f32 %v13960_v60, %v6105_v3  ;;  %v10503_v17 = vpop.f32.mrb[161].mxu0 }
0x101d   :  { %v6108_v9 = vpop.f32.mrb[162].mxu0 }
0x101e   :  { %v6503_v8 = vpack.c.bf16 %v6106_v46, %v6106_v46  ;;  %v10504_v29 = vpop.f32.mrb[163].mxu0  ;;  %v6501_v9 = vpack.c.bf16 %v5978_v14, %v5978_v14 }
0x1020   :  { %v6511_v10 = vsel %vm3589_vm3, %v6503_v8, 0 }
0x1021   :  { %10562 = vmatpush3.bf16.xpose.msra.mxu0 %v6511_v10 }
0x1022   :  { %10573 = vmatprep.subr.bf16.mxu0 %v14496_v41 }
0x1023   :  { %v6209_v7 = vpop.f32.mrb[164].mxu0 }
0x1024   :  { %v6210_v27 = vadd.f32 %v13972_v34, %v6209_v7  ;;  %v10519_v11 = vpop.f32.mrb[165].mxu0 }
0x1025   :  { %v6212_v16 = vpop.f32.mrb[166].mxu0 }
0x1026   :  { %v6505_v57 = vpack.c.bf16 %v6210_v27, %v6210_v27  ;;  %v10520_v36 = vpop.f32.mrb[167].mxu0 }
0x1028   :  { %v6603_v12 = vsel %vm3589_vm3, %v6505_v57, 0  ;;  %10564 = vmatmul.mubr.msk.bf16.vlgmr.msra.gmra.mrb[176].mxu0 %vm3589_vm3, %v6499_v52 }
0x1029   :  { %10574 = vmatpush3.bf16.xpose.msra.mxu0 %v6603_v12  ;;  %10575 = vmatprep.mubr.msk.bf16.mxu0 %vm11467_vm1, %v14496_v41 }
0x102a   :  { %10585 = vmatprep.subr.bf16.mxu0 %v14496_v41 }
0x102b   :  { %v6337_v47 = vpop.f32.mrb[168].mxu0 }
0x102c   :  { %v6338_v3 = vadd.f32 %v13988_v21, %v6337_v47  ;;  %v10535_v46 = vpop.f32.mrb[169].mxu0 }
0x102d   :  { %v6340_v17 = vpop.f32.mrb[170].mxu0 }
0x102e   :  { %v6743_v8 = vpack.c.bf16 %v6338_v3, %v6338_v3  ;;  %v10536_v29 = vpop.f32.mrb[171].mxu0 }
0x1030   :  { %v6751_v10 = vand.u32 %v6743_v8, %v13212_v32  ;;  %10576 = vmatmul.mubr.msk.bf16.vlgmr.msra.gmra.mrb[180].mxu0 %vm3589_vm3, %v6501_v9 }
0x1031   :  { %10587 = vmatprep.mubr.msk.bf16.mxu0 %vm11467_vm1, %v14496_v41 }
0x1032   :  { %10586 = vmatpush3.bf16.msra.mxu0 %v6751_v10 }
0x1033   :  { %v13999_v33 = vpop.f32.mrb[172].mxu0  ;;  %10597 = vmatprep.subr.bf16.mxu0 %v14496_v41 }
0x1034   :  { %v10551_v48 = vpop.f32.mrb[173].mxu0 }
0x1035   :  { %v6444_v7 = vpop.f32.mrb[174].mxu0 }
0x1036   :  { %v10552_v27 = vpop.f32.mrb[175].mxu0 }
0x1094   :  { %v6700_v11 = vpop.xlane.xlu1 %6699 }
0x1095   :  { %v6708_v16 = vsub.f32 %v13947_v61, %v6700_v11 }
0x1097   :  { %v6713_v52 = vmul.f32 1.442695, %v6708_v16 }
0x1099   :  { %11215 = vpow2.f32 %v6713_v52 }
0x109c   :  { %v6706_v57 = vpop.xlane.xlu1 %6705 }
0x109d   :  { %v6710_v36 = vsub.f32 %v13953_v53, %v6706_v57  ;;  %v14011_v57 = vld [vmem:[%s14475_s10 + $0x7] ss:$0 sm:$0xff] }
0x109f   :  { %v6717_v12 = vmul.f32 1.442695, %v6710_v36  ;;  %v6494_v36 = vadd.f32 %v14011_v57, %v13864_v18 }
0x10a1   :  { %11217 = vpow2.f32 %v6717_v12 }
0x10a3   :  { %v11216_v14 = vpop.eup %11215 }
0x10a4   :  { %v6722_v47 = vsel %vm3778_vm6, %v11216_v14, 0.0 }
0x10a5   :  { %6723 = vadd.xlane.f32.xlu1 %v6722_v47 }
0x10ab   :  { %v11218_v3 = vpop.eup %11217 }
0x10ac   :  { %v6728_v46 = vsel %vm3778_vm6, %v11218_v3, 0.0 }
0x10ad   :  { %6729 = vadd.xlane.f32.xlu1 %v6728_v46  ;;  %v6746_v46 = vpack.c.bf16 %v6494_v36, %v6494_v36 }
0x10fb   :  { %v6547_v17 = vpop.f32.mrb[176].mxu0 }
0x10fc   :  { %v6691_v9 = vmul.f32 0.35355338, %v6547_v17  ;;  %v10565_v8 = vpop.f32.mrb[177].mxu0 }
0x10fd   :  { %v6550_v29 = vpop.f32.mrb[178].mxu0 }
0x10fe   :  { %v10566_v61 = vpop.f32.mrb[179].mxu0  ;;  %v6695_v10 = vsel %vm3778_vm6, %v6691_v9, -inf  ;;  %v6889_v29 = vand.u32 %v6746_v46, %v13212_v32 }
0x10ff   :  { %6696 = vmax.xlane.f32.xlu0 %v6695_v10 }
0x1103   :  { %v6639_v48 = vpop.f32.mrb[180].mxu0 }
0x1104   :  { %v6693_v53 = vmul.f32 0.35355338, %v6639_v48  ;;  %v10577_v7 = vpop.f32.mrb[181].mxu0 }
0x1105   :  { %v6642_v27 = vpop.f32.mrb[182].mxu0 }
0x1106   :  { %v10578_v11 = vpop.f32.mrb[183].mxu0  ;;  %v6701_v16 = vsel %vm3778_vm6, %v6693_v53, -inf }
0x1107   :  { %6702 = vmax.xlane.f32.xlu0 %v6701_v16  ;;  %v9158_v11 = vld [vmem:[%s14476_s11 + $0x14] sm:$0xf] }
0x1132   :  { %v6724_v52 = vpop.xlane.xlu1 %6723 }
0x1133   :  { %11219 = vrcp.f32 %v6724_v52  ;;  %v14027_v52 = vsel %vm4027_vm8, %v9158_v11, 0 }
0x113a   :  { %v6730_v12 = vpop.xlane.xlu1 %6729 }
0x113b   :  { %11221 = vrcp.f32 %v6730_v12 }
0x113d   :  { %v11220_v47 = vpop.eup %11219 }
0x113e   :  { %v6736_v17 = vmul.f32 %v11220_v47, %v11216_v14 }
0x1140   :  { %v6740_v8 = vpack.c.bf16 %v6736_v17, %v6736_v17 }
0x1142   :  { %10594 = vmatmul.mubr.msk.bf16.vlgmr.msra.gmra.mrb[184].mxu1 %vm3831_vm7, %v6740_v8 }
0x1143   :  { %10604 = vmatpush3.bf16.msra.mxu1 %v6889_v29  ;;  %10605 = vmatprep.mubr.msk.bf16.mxu1 %vm11467_vm1, %v14496_v41 }
0x1144   :  { %10615 = vmatprep.subr.bf16.mxu1 %v14496_v41 }
0x1145   :  { %v11222_v61 = vpop.eup %11221 }
0x1146   :  { %v6738_v10 = vmul.f32 %v11222_v61, %v11218_v3 }
0x1148   :  { %v6742_v48 = vpack.c.bf16 %v6738_v10, %v6738_v10 }
0x114a   :  { %10606 = vmatmul.mubr.msk.bf16.vlgmr.msra.gmra.mrb[188].mxu1 %vm3831_vm7, %v6742_v48 }
0x114b   :  { %10617 = vmatprep.mubr.msk.bf16.mxu1 %vm11467_vm1, %v14496_v41  ;;  %10616 = vmatpush3.bf16.msra.mxu1 %v14027_v52 }
0x114c   :  { %10627 = vmatprep.subr.bf16.mxu1 %v14496_v41 }
0x118c   :  { %v6697_v18 = vpop.xlane.xlu0 %6696 }
0x118d   :  { %v6707_v14 = vsub.f32 %v6691_v9, %v6697_v18 }
0x118f   :  { %v6711_v7 = vmul.f32 1.442695, %v6707_v14 }
0x1191   :  { %11223 = vpow2.f32 %v6711_v7 }
0x1194   :  { %v6703_v27 = vpop.xlane.xlu0 %6702 }
0x1195   :  { %v6709_v16 = vsub.f32 %v6693_v53, %v6703_v27  ;;  %v9160_v53 = vld [vmem:[%s14476_s11 + $0x1c] sm:$0xf] }
0x1196   :  { %v14037_v29 = vsel %vm4027_vm8, %v9160_v53, 0 }
0x1197   :  { %v6715_v3 = vmul.f32 1.442695, %v6709_v16  ;;  %v14050_v16 = vld [vmem:[%s14475_s10 + $0x6] ss:$0 sm:$0xff] }
0x1199   :  { %11225 = vpow2.f32 %v6715_v3  ;;  %v6442_v3 = vadd.f32 %v14050_v16, %v13999_v33  ;;  %v9157_v33 = vld [vmem:[%s14476_s11 + $0x10] sm:$0xf] }
0x119b   :  { %v11224_v36 = vpop.eup %11223  ;;  %v6745_v53 = vpack.c.bf16 %v6442_v3, %v6442_v3 }
0x119c   :  { %v6719_v9 = vsel %vm3778_vm6, %v11224_v36, 0.0 }
0x119d   :  { %6720 = vadd.xlane.f32.xlu0 %v6719_v9 }
0x11a3   :  { %v11226_v12 = vpop.eup %11225 }
0x11a4   :  { %v6725_v47 = vsel %vm3778_vm6, %v11226_v12, 0.0 }
0x11a5   :  { %6726 = vadd.xlane.f32.xlu0 %v6725_v47 }
0x1215   :  { %v6833_v46 = vpop.f32.mrb[184].mxu1 }
0x1216   :  { %v6932_v17 = vpack.c.bf16 %v6833_v46, %v6833_v46  ;;  %v10595_v8 = vpop.f32.mrb[185].mxu1 }
0x1217   :  { %v6836_v61 = vpop.f32.mrb[186].mxu1  ;;  %v6843_v8 = vand.u32 %v6745_v53, %v13212_v32 }
0x1218   :  { %v10596_v10 = vpop.f32.mrb[187].mxu1  ;;  %10618 = vmatmul.mubr.msk.bf16.vlgmr.msra.gmra.mrb[192].mxu1 %vm3589_vm3, %v6932_v17 }
0x1219   :  { %10628 = vmatpush3.bf16.msra.mxu1 %v14037_v29  ;;  %10629 = vmatprep.mubr.msk.bf16.mxu1 %vm11467_vm1, %v14496_v41 }
0x121a   :  { %10641 = vmatprep.subr.bf16.mxu1 %v14496_v41 }
0x121d   :  { %v6925_v48 = vpop.f32.mrb[188].mxu1 }
0x121e   :  { %v6934_v18 = vpack.c.bf16 %v6925_v48, %v6925_v48  ;;  %v10607_v14 = vpop.f32.mrb[189].mxu1 }
0x121f   :  { %v6928_v7 = vpop.f32.mrb[190].mxu1 }
0x1220   :  { %v10608_v27 = vpop.f32.mrb[191].mxu1  ;;  %10630 = vmatmul.mubr.msk.bf16.vlgmr.msra.gmra.mrb[196].mxu1 %vm3589_vm3, %v6934_v18 }
0x1221   :  { %10649 = vmatprep.mubr.msk.bf16.mxu1 %vm11467_vm1, %v14496_v41 }
0x122a   :  { %v6721_v11 = vpop.xlane.xlu0 %6720 }
0x122b   :  { %11227 = vrcp.f32 %v6721_v11 }
0x1232   :  { %v6727_v9 = vpop.xlane.xlu0 %6726 }
0x1233   :  { %11229 = vrcp.f32 %v6727_v9 }
0x1235   :  { %v11228_v47 = vpop.eup %11227 }
0x1236   :  { %v6735_v46 = vmul.f32 %v11228_v47, %v11224_v36  ;;  %v14066_v36 = vsel %vm4027_vm8, %v9157_v33, 0  ;;  %v9159_v47 = vld [vmem:[%s14476_s11 + $0x18] sm:$0xf] }
0x1238   :  { %v6739_v17 = vpack.c.bf16 %v6735_v46, %v6735_v46 }
0x123a   :  { %10588 = vmatmul.mubr.msk.bf16.vlgmr.msra.gmra.mrb[184].mxu0 %vm3831_vm7, %v6739_v17 }
0x123b   :  { %10598 = vmatpush3.bf16.msra.mxu0 %v6843_v8  ;;  %10599 = vmatprep.mubr.msk.bf16.mxu0 %vm11467_vm1, %v14496_v41  ;;  %v14074_v8 = vsel %vm4027_vm8, %v9159_v47, 0 }
0x123c   :  { %10609 = vmatprep.subr.bf16.mxu0 %v14496_v41  ;;  %14516 = vst [vmem:[#allocation5_spill] sm:$0xff] %v14074_v8 }
0x123d   :  { %v11230_v61 = vpop.eup %11229 }
0x123e   :  { %v6737_v10 = vmul.f32 %v11230_v61, %v11226_v12 }
0x1240   :  { %v6741_v48 = vpack.c.bf16 %v6737_v10, %v6737_v10 }
0x1242   :  { %10600 = vmatmul.mubr.msk.bf16.vlgmr.msra.gmra.mrb[188].mxu0 %vm3831_vm7, %v6741_v48 }
0x1243   :  { %10611 = vmatprep.mubr.msk.bf16.mxu0 %vm11467_vm1, %v14496_v41  ;;  %10610 = vmatpush3.bf16.msra.mxu0 %v14066_v36 }
0x1244   :  { %10621 = vmatprep.subr.bf16.mxu0 %v14496_v41 }
0x12eb   :  { %v7021_v18 = vpop.f32.mrb[192].mxu1 }
0x12ec   :  { %v10619_v14 = vpop.f32.mrb[193].mxu1 }
0x12ed   :  { %v7024_v12 = vpop.f32.mrb[194].mxu1 }
0x12ee   :  { %v10620_v7 = vpop.f32.mrb[195].mxu1 }
0x12f3   :  { %v7113_v27 = vpop.f32.mrb[196].mxu1 }
0x12f4   :  { %v10631_v11 = vpop.f32.mrb[197].mxu1 }
0x12f5   :  { %v7116_v3 = vpop.f32.mrb[198].mxu1 }
0x12f6   :  { %v10632_v9 = vpop.f32.mrb[199].mxu1  ;;  %v7120_v3 = vsel %vm2849_vm0, %v7021_v18, 0.0  ;;  %v14093_v18 = vld [vmem:[%s14477_s12 + $0x1] ss:$0 sm:$0xff] }
0x130d   :  { %v6787_v53 = vpop.f32.mrb[184].mxu0 }
0x130e   :  { %v6931_v46 = vpack.c.bf16 %v6787_v53, %v6787_v53  ;;  %v10589_v17 = vpop.f32.mrb[185].mxu0 }
0x130f   :  { %v6790_v61 = vpop.f32.mrb[186].mxu0 }
0x1310   :  { %v10590_v10 = vpop.f32.mrb[187].mxu0  ;;  %10612 = vmatmul.mubr.msk.bf16.vlgmr.msra.gmra.mrb[192].mxu0 %vm3589_vm3, %v6931_v46 }
0x1311   :  { %10622 = vmatpush3.bf16.msra.mxu0 %v14074_v8  ;;  %10623 = vmatprep.mubr.msk.bf16.mxu0 %vm11467_vm1, %v14496_v41 }
0x1312   :  { %10633 = vmatprep.subr.bf16.mxu0 %v14496_v41 }
0x1315   :  { %v6879_v48 = vpop.f32.mrb[188].mxu0 }
0x1316   :  { %v6933_v33 = vpack.c.bf16 %v6879_v48, %v6879_v48  ;;  %v10601_v14 = vpop.f32.mrb[189].mxu0 }
0x1317   :  { %v6882_v12 = vpop.f32.mrb[190].mxu0 }
0x1318   :  { %v10602_v7 = vpop.f32.mrb[191].mxu0  ;;  %10624 = vmatmul.mubr.msk.bf16.vlgmr.msra.gmra.mrb[196].mxu0 %vm3589_vm3, %v6933_v33  ;;  %v7124_v33 = vsel %vm2849_vm0, %v7113_v27, 0.0 }
0x1319   :  { %10637 = vmatprep.mubr.msk.bf16.mxu0 %vm11467_vm1, %v14496_v41  ;;  %v5669_v41 = vadd.f32 %v13951_v45, %v13644_v0 }
0x13e3   :  { %v6975_v11 = vpop.f32.mrb[192].mxu0 }
0x13e4   :  { %v7119_v9 = vsel %vm2849_vm0, %v6975_v11, 0.0  ;;  %v10613_v47 = vpop.f32.mrb[193].mxu0 }
0x13e5   :  { %v7121_v53 = vadd.f32 %v7120_v3, %v7119_v9  ;;  %v6978_v46 = vpop.f32.mrb[194].mxu0  ;;  %v14097_v3 = vadd.f32 %v13637_v38, %v5669_v41 }
0x13e6   :  { %v10614_v17 = vpop.f32.mrb[195].mxu0 }
0x13e7   :  { %v7332_v47 = vmul.f32 %v14097_v3, %v14097_v3  ;;  %v7328_v41 = vsel %vm2849_vm0, %v14097_v3, 0.0 }
0x13e9   :  { %v7333_v38 = vsel %vm2849_vm0, %v7332_v47, 0.0 }
0x13eb   :  { %v7067_v61 = vpop.f32.mrb[196].mxu0 }
0x13ec   :  { %v7122_v10 = vsel %vm2849_vm0, %v7067_v61, 0.0  ;;  %v10625_v48 = vpop.f32.mrb[197].mxu0 }
0x13ed   :  { %v7123_v14 = vadd.f32 %v7122_v10, %v7121_v53  ;;  %v7070_v12 = vpop.f32.mrb[198].mxu0  ;;  %v14122_v53 = vld [vmem:[%s14480_s15 + $0x18] sm:$0xff]  }
0x13ee   :  { %v10626_v7 = vpop.f32.mrb[199].mxu0 }
0x13ef   :  { %v7125_v8 = vadd.f32 %v7124_v33, %v7123_v14 }
0x13f1   :  { %v7126_v11 = vadd.f32 %v7125_v8, %v13641_v35  ;;  %v14115_v35 = vld [vmem:[%s14480_s15 + $0x10] sm:$0xff]   ;;  %v14517_v8 = vmov 0.0  }
0x13f2   :  { %10634 = vmatpush3.bf16.msra.mxu0 %v14115_v35 }
0x13f3   :  { %v14100_v9 = vadd.f32 %v14093_v18, %v7126_v11  ;;  %10635 = vmatprep.subr.bf16.mxu0 %v14517_v8 }
0x13f5   :  { %v7134_v27 = vsel %vm2849_vm0, %v14100_v9, 0.0  ;;  %v7138_v0 = vmul.f32 %v14100_v9, %v14100_v9 }
0x13f6   :  { %7135 = vadd.xlane.f32.xlu0 %v7134_v27  ;;  %10636 = vmatpush3.bf16.msra.mxu0 %v14122_v53 }
0x13f7   :  { %v7139_v45 = vsel %vm2849_vm0, %v7138_v0, 0.0  ;;  %10653 = vmatprep.subr.bf16.mxu0 %v14517_v8 }
0x13f8   :  { %7140 = vadd.xlane.f32.xlu1 %v7139_v45 }
0x13fa   :  { %7329 = vadd.xlane.f32.xlu0 %v7328_v41 }
0x13fc   :  { %7334 = vadd.xlane.f32.xlu1 %v7333_v38 }
0x1483   :  { %v7136_v46 = vpop.xlane.xlu0 %7135 }
0x1484   :  { %v7137_v17 = vmul.f32 0.03125, %v7136_v46  ;;  %v14130_v46 = vld [vmem:[%s14478_s13 + $0x1] ss:$0 sm:$0xff] }
0x1485   :  { %v7141_v61 = vpop.xlane.xlu1 %7140 }
0x1486   :  { %v7143_v10 = vmul.f32 %v7137_v17, %v7137_v17  ;;  %v7142_v48 = vmul.f32 0.03125, %v7141_v61  ;;  %v7145_v41 = vsub.f32 %v14100_v9, %v7137_v17 }
0x1487   :  { %v7330_v14 = vpop.xlane.xlu0 %7329 }
0x1488   :  { %v7144_v12 = vsub.f32 %v7142_v48, %v7143_v10  ;;  %v7331_v33 = vmul.f32 0.03125, %v7330_v14  ;;  %v14135_v10 = vld [vmem:[%s14479_s14 + $0x1] ss:$0 sm:$0xff] }
0x1489   :  { %v7335_v7 = vpop.xlane.xlu1 %7334 }
0x148a   :  { %v7146_v11 = vadd.f32 1e-06, %v7144_v12  ;;  %v7337_v27 = vmul.f32 %v7331_v33, %v7331_v33  ;;  %v7336_v0 = vmul.f32 0.03125, %v7335_v7  ;;  %v7339_v48 = vsub.f32 %v14097_v3, %v7331_v33 }
0x148c   :  { %11231 = vrsqrt.f32 %v7146_v11  ;;  %v7338_v45 = vsub.f32 %v7336_v0, %v7337_v27 }
0x148e   :  { %v7340_v47 = vadd.f32 1e-06, %v7338_v45 }
0x1490   :  { %11233 = vrsqrt.f32 %v7340_v47 }
0x1496   :  { %v11232_v38 = vpop.eup %11231 }
0x1497   :  { %v7148_v61 = vmul.f32 %v11232_v38, %v7145_v41 }
0x1499   :  { %v7155_v14 = vmul.f32 %v14130_v46, %v7148_v61 }
0x149a   :  { %v11234_v12 = vpop.eup %11233 }
0x149b   :  { %v7342_v7 = vmul.f32 %v11234_v12, %v7339_v48  ;;  %v7162_v17 = vadd.f32 %v14135_v10, %v7155_v14 }
0x149d   :  { %v7343_v11 = vmul.f32 %v13662_v25, %v7342_v7  ;;  %v7163_v27 = vpack.c.bf16 %v7162_v17, %v7162_v17  ;;  %v14206_v25 = vld [vmem:[%s14482_s17 + $0x20] sm:$0xff]  }
0x149e   :  { %10642 = vmatpush3.bf16.msra.mxu1 %v14206_v25 }
0x149f   :  { %10638 = vmatmul.mubr.msk.bf16.vlgmr.msra.gmra.mrb[200].mxu0 %vm2917_vm2, %v7163_v27  ;;  %v7344_v0 = vadd.f32 %v13674_v31, %v7343_v11  ;;  %10643 = vmatprep.subr.bf16.mxu1 %v14517_v8  ;;  %v14220_v31 = vld [vmem:[%s14482_s17 + $0x30] sm:$0xff]  }
0x14a0   :  { %10654 = vmatpush3.bf16.msra.mxu0 %v13668_v13  ;;  %10657 = vmatprep.mubr.msk.bf16.mxu0 %vm11467_vm1, %v14517_v8  ;;  %v14213_v13 = vld [vmem:[%s14482_s17 + $0x28] sm:$0xff]  }
0x14a1   :  { %10655 = vmatprep.subr.bf16.mxu0 %v14517_v8  ;;  %v14148_v33 = vpack.c.bf16 %v7344_v0, %v7344_v0 }
0x14a2   :  { %10644 = vmatpush3.bf16.msra.mxu1 %v14213_v13 }
0x14a3   :  { %10645 = vmatprep.subr.bf16.mxu1 %v14517_v8 }
0x14a4   :  { %10656 = vmatpush3.bf16.msra.mxu0 %v13681_v40  ;;  %v14227_v40 = vld [vmem:[%s14482_s17 + $0x38] sm:$0xff]  }
0x14a5   :  { %10661 = vmatprep.subr.bf16.mxu0 %v14517_v8 }
0x14a6   :  { %10646 = vmatpush3.bf16.msra.mxu1 %v14220_v31 }
0x14a7   :  { %10658 = vmatmul.mubr.msk.bf16.vlgmr.msra.gmra.mrb[204].mxu0 %vm2917_vm2, %v14148_v33  ;;  %10647 = vmatprep.subr.bf16.mxu1 %v14517_v8 }
0x14a8   :  { %10662 = vmatpush3.bf16.msra.mxu0 %v13691_v20  ;;  %10665 = vmatprep.mubr.msk.bf16.mxu0 %vm11467_vm1, %v14517_v8  ;;  %v14234_v20 = vld [vmem:[%s14481_s16 + $0x1] ss:$0 sm:$0xff] }
0x14a9   :  { %10663 = vmatprep.subr.bf16.mxu0 %v14517_v8  ;;  %14518 = vst [vmem:[#allocation6_spill] sm:$0xff] %v14234_v20 }
0x14aa   :  { %10648 = vmatpush3.bf16.msra.mxu1 %v14227_v40 }
0x14ab   :  { %10669 = vmatprep.subr.bf16.mxu1 %v14517_v8 }
0x14ac   :  { %10664 = vmatpush3.bf16.msra.mxu0 %v13702_v22 }
0x14ad   :  { %10677 = vmatprep.subr.bf16.mxu0 %v14517_v8 }
0x14af   :  { %10666 = vmatmul.mubr.msk.bf16.vlgmr.msra.gmra.mrb[208].mxu0 %vm2917_vm2, %v14148_v33 }
0x14b0   :  { %10678 = vmatpush3.bf16.msra.mxu0 %v13711_v44  ;;  %10681 = vmatprep.mubr.msk.bf16.mxu0 %vm11467_vm1, %v14517_v8 }
0x14b1   :  { %10679 = vmatprep.subr.bf16.mxu0 %v14517_v8 }
0x14b4   :  { %10680 = vmatpush3.bf16.msra.mxu0 %v13720_v58 }
0x14b5   :  { %10693 = vmatprep.subr.bf16.mxu0 %v14517_v8 }
0x14b7   :  { %10682 = vmatmul.mubr.msk.bf16.vlgmr.msra.gmra.mrb[212].mxu0 %vm2917_vm2, %v14148_v33 }
0x14b8   :  { %10694 = vmatpush3.bf16.msra.mxu0 %v13729_v63  ;;  %10697 = vmatprep.mubr.msk.bf16.mxu0 %vm11467_vm1, %v14517_v8 }
0x14b9   :  { %10695 = vmatprep.subr.bf16.mxu0 %v14517_v8 }
0x14bc   :  { %10696 = vmatpush3.bf16.msra.mxu0 %v13738_v26 }
0x14bd   :  { %10709 = vmatprep.subr.bf16.mxu0 %v14517_v8 }
0x14bf   :  { %10698 = vmatmul.mubr.msk.bf16.vlgmr.msra.gmra.mrb[216].mxu0 %vm2917_vm2, %v14148_v33 }
0x14c0   :  { %10710 = vmatpush3.bf16.msra.mxu0 %v13747_v15  ;;  %10713 = vmatprep.mubr.msk.bf16.mxu0 %vm11467_vm1, %v14517_v8 }
0x14c1   :  { %10711 = vmatprep.subr.bf16.mxu0 %v14517_v8 }
0x14c4   :  { %10712 = vmatpush3.bf16.msra.mxu0 %v13756_v50 }
0x14c5   :  { %10725 = vmatprep.subr.bf16.mxu0 %v14517_v8 }
0x14c7   :  { %10714 = vmatmul.mubr.msk.bf16.vlgmr.msra.gmra.mrb[220].mxu0 %vm2917_vm2, %v14148_v33 }
0x14c8   :  { %10726 = vmatpush3.bf16.msra.mxu0 %v13765_v37  ;;  %10729 = vmatprep.mubr.msk.bf16.mxu0 %vm11467_vm1, %v14517_v8 }
0x14c9   :  { %10727 = vmatprep.subr.bf16.mxu0 %v14517_v8 }
0x14cc   :  { %10728 = vmatpush3.bf16.msra.mxu0 %v13774_v51 }
0x14cd   :  { %10741 = vmatprep.subr.bf16.mxu0 %v14517_v8 }
0x14cf   :  { %10730 = vmatmul.mubr.msk.bf16.vlgmr.msra.gmra.mrb[224].mxu0 %vm2917_vm2, %v14148_v33 }
0x14d0   :  { %10742 = vmatpush3.bf16.msra.mxu0 %v13783_v39  ;;  %10745 = vmatprep.mubr.msk.bf16.mxu0 %vm11467_vm1, %v14517_v8 }
0x14d1   :  { %10743 = vmatprep.subr.bf16.mxu0 %v14517_v8 }
0x14d4   :  { %10744 = vmatpush3.bf16.msra.mxu0 %v13792_v43 }
0x14d5   :  { %10755 = vmatprep.subr.bf16.mxu0 %v14517_v8 }
0x14d7   :  { %10746 = vmatmul.mubr.msk.bf16.vlgmr.msra.gmra.mrb[228].mxu0 %vm2917_vm2, %v14148_v33 }
0x14d8   :  { %10757 = vmatprep.mubr.msk.bf16.mxu0 %vm11467_vm1, %v14517_v8 }
0x1572   :  { %v7219_v22 = vpop.f32.mrb[200].mxu0 }
0x1573   :  { %v7220_v44 = vadd.f32 %v14234_v20, %v7219_v22  ;;  %v10639_v58 = vpop.f32.mrb[201].mxu0 }
0x1574   :  { %v7222_v63 = vpop.f32.mrb[202].mxu0 }
0x1575   :  { %v7226_v26 = vmul.f32 0.70710677, %v7220_v44  ;;  %v10640_v15 = vpop.f32.mrb[203].mxu0 }
0x1577   :  { %v7227_v50 = vand.u32 2147483647, %v7226_v26  ;;  %vm7247_vm12 = vcmp.ge.f32.partialorder %v7226_v26, 0.0 }
0x1579   :  { %v7228_v37 = vmul.f32 0.3275911, %v7227_v50  ;;  %v7241_v38 = vsub.f32 0.0, %v7227_v50 }
0x157a   :  { %v14237_v51 = vpop.f32.mrb[204].mxu0 }
0x157b   :  { %v7229_v39 = vadd.f32 1.0, %v7228_v37  ;;  %v10659_v43 = vpop.f32.mrb[205].mxu0  ;;  %v7242_v7 = vmul.f32 %v7241_v38, %v7227_v50 }
0x157c   :  { %v7386_v45 = vpop.f32.mrb[206].mxu0 }
0x157d   :  { %11235 = vrcp.f32 %v7229_v39  ;;  %v10660_v47 = vpop.f32.mrb[207].mxu0  ;;  %v7243_v0 = vmul.f32 1.442695, %v7242_v7 }
0x157f   :  { %11237 = vpow2.f32 %v7243_v0 }
0x1582   :  { %v7423_v41 = vpop.f32.mrb[208].mxu0 }
0x1583   :  { %v10667_v61 = vpop.f32.mrb[209].mxu0 }
0x1584   :  { %v7426_v48 = vpop.f32.mrb[210].mxu0 }
0x1585   :  { %v10668_v14 = vpop.f32.mrb[211].mxu0 }
0x1587   :  { %v11236_v12 = vpop.eup %11235 }
0x1588   :  { %v7232_v17 = vmul.f32 1.0614054, %v11236_v12 }
0x158a   :  { %v7233_v11 = vadd.f32 -1.4531521, %v7232_v17  ;;  %v7503_v27 = vpop.f32.mrb[212].mxu0 }
0x158b   :  { %v10683_v22 = vpop.f32.mrb[213].mxu0 }
0x158c   :  { %v7234_v58 = vmul.f32 %v11236_v12, %v7233_v11  ;;  %v7506_v63 = vpop.f32.mrb[214].mxu0  ;;  %v11238_v11 = vpop.eup %11237  ;;  %v7424_v22 = vadd.f32 %v13818_v19, %v7423_v41  ;;  %v7225_v19 = vmul.f32 0.5, %v7220_v44 }
0x158d   :  { %v10684_v15 = vpop.f32.mrb[215].mxu0 }
0x158e   :  { %v7235_v37 = vadd.f32 1.4214138, %v7234_v58 }
0x1590   :  { %v7236_v43 = vmul.f32 %v11236_v12, %v7235_v37 }
0x1592   :  { %v7237_v39 = vadd.f32 -0.28449672, %v7236_v43  ;;  %v7583_v45 = vpop.f32.mrb[216].mxu0  ;;  %v7830_v43 = vpack.c.bf16 %v7424_v22, %v7424_v22 }
0x1593   :  { %v7584_v47 = vadd.f32 %v13812_v62, %v7583_v45  ;;  %v10699_v61 = vpop.f32.mrb[217].mxu0 }
0x1594   :  { %v7238_v48 = vmul.f32 %v11236_v12, %v7237_v39  ;;  %v7586_v14 = vpop.f32.mrb[218].mxu0 }
0x1595   :  { %v7834_v20 = vpack.c.bf16 %v7584_v47, %v7584_v47  ;;  %v10700_v50 = vpop.f32.mrb[219].mxu0 }
0x1596   :  { %v7239_v38 = vadd.f32 0.2548296, %v7238_v48 }
0x1597   :  { %v7887_v17 = vsel %vm3589_vm3, %v7834_v20, 0 }
0x1598   :  { %v7240_v7 = vmul.f32 %v11236_v12, %v7239_v38  ;;  %10756 = vmatpush3.bf16.xpose.msra.mxu0 %v7887_v17 }
0x1599   :  { %10767 = vmatprep.subr.bf16.mxu0 %v14517_v8 }
0x159a   :  { %v7245_v0 = vmul.f32 %v11238_v11, %v7240_v7  ;;  %v7663_v58 = vpop.f32.mrb[220].mxu0 }
0x159b   :  { %v7664_v63 = vadd.f32 %v13824_v28, %v7663_v58  ;;  %v10715_v62 = vpop.f32.mrb[221].mxu0  ;;  %v7504_v28 = vadd.f32 %v13832_v4, %v7503_v27 }
0x159c   :  { %v7246_v15 = vsub.f32 1.0, %v7245_v0  ;;  %v7666_v37 = vpop.f32.mrb[222].mxu0 }
0x159d   :  { %v7836_v39 = vpack.c.bf16 %v7664_v63, %v7664_v63  ;;  %v10716_v45 = vpop.f32.mrb[223].mxu0  ;;  %v7832_v17 = vpack.c.bf16 %v7504_v28, %v7504_v28 }
0x159e   :  { %v7248_v47 = vsub.f32 0.0, %v7246_v15 }
0x159f   :  { %v7979_v20 = vsel %vm3589_vm3, %v7836_v39, 0  ;;  %10758 = vmatmul.mubr.msk.bf16.vlgmr.msra.gmra.mrb[232].mxu0 %vm3589_vm3, %v7830_v43 }
0x15a0   :  { %v7249_v12 = vsel %vm7247_vm12, %v7246_v15, %v7248_v47  ;;  %10768 = vmatpush3.bf16.xpose.msra.mxu0 %v7979_v20  ;;  %10769 = vmatprep.mubr.msk.bf16.mxu0 %vm11467_vm1, %v14517_v8 }
0x15a1   :  { %v7250_v41 = vadd.f32 1.0, %v7249_v12  ;;  %10779 = vmatprep.subr.bf16.mxu0 %v14517_v8 }
0x15a2   :  { %v7743_v61 = vpop.f32.mrb[224].mxu0 }
0x15a3   :  { %v7251_v48 = vmul.f32 %v7250_v41, %v7225_v19  ;;  %v7744_v14 = vadd.f32 %v13839_v6, %v7743_v61  ;;  %v10731_v26 = vpop.f32.mrb[225].mxu0 }
0x15a4   :  { %v7746_v50 = vpop.f32.mrb[226].mxu0 }
0x15a5   :  { %v7252_v38 = vpack.c.bf16 %v7251_v48, %v7251_v48  ;;  %v8074_v7 = vpack.c.bf16 %v7744_v14, %v7744_v14  ;;  %v10732_v11 = vpop.f32.mrb[227].mxu0  ;;  %v7384_v48 = vadd.f32 %v13966_v2, %v14237_v51 }
0x15a7   :  { %v8127_v22 = vand.u32 %v8074_v7, %v13212_v32  ;;  %10650 = vmatmul.mubr.msk.bf16.vlgmr.msra.gmra.mrb[200].mxu1 %vm4367_vm10, %v7252_v38  ;;  %10770 = vmatmul.mubr.msk.bf16.vlgmr.msra.gmra.mrb[236].mxu0 %vm3589_vm3, %v7832_v17  ;;  %v7829_v17 = vpack.c.bf16 %v7384_v48, %v7384_v48 }
0x15a8   :  { %10670 = vmatpush3.bf16.msra.mxu1 %v13850_v59  ;;  %10673 = vmatprep.mubr.msk.bf16.mxu1 %vm11467_vm1, %v14517_v8 }
0x15a9   :  { %10780 = vmatpush3.bf16.msra.mxu0 %v8127_v22  ;;  %10671 = vmatprep.subr.bf16.mxu1 %v14517_v8 }
0x15aa   :  { %v14258_v4 = vpop.f32.mrb[228].mxu0  ;;  %10781 = vmatprep.mubr.msk.bf16.mxu0 %vm11467_vm1, %v14517_v8  ;;  %10791 = vmatprep.subr.bf16.mxu0 %v14517_v8 }
0x15ab   :  { %v10747_v6 = vpop.f32.mrb[229].mxu0 }
0x15ac   :  { %10672 = vmatpush3.bf16.msra.mxu1 %v13859_v54  ;;  %v7826_v44 = vpop.f32.mrb[230].mxu0 }
0x15ad   :  { %v10748_v27 = vpop.f32.mrb[231].mxu0  ;;  %10685 = vmatprep.subr.bf16.mxu1 %v14517_v8 }
0x15af   :  { %10674 = vmatmul.mubr.msk.bf16.vlgmr.msra.gmra.mrb[204].mxu1 %vm2917_vm2, %v14148_v33 }
0x15b0   :  { %10686 = vmatpush3.bf16.msra.mxu1 %v13873_v42  ;;  %10689 = vmatprep.mubr.msk.bf16.mxu1 %vm11467_vm1, %v14517_v8 }
0x15b1   :  { %10687 = vmatprep.subr.bf16.mxu1 %v14517_v8 }
0x15b4   :  { %10688 = vmatpush3.bf16.msra.mxu1 %v13882_v23 }
0x15b5   :  { %10701 = vmatprep.subr.bf16.mxu1 %v14517_v8 }
0x15b7   :  { %10690 = vmatmul.mubr.msk.bf16.vlgmr.msra.gmra.mrb[208].mxu1 %vm2917_vm2, %v14148_v33 }
0x15b8   :  { %10702 = vmatpush3.bf16.msra.mxu1 %v13891_v1  ;;  %10705 = vmatprep.mubr.msk.bf16.mxu1 %vm11467_vm1, %v14517_v8 }
0x15b9   :  { %10703 = vmatprep.subr.bf16.mxu1 %v14517_v8 }
0x15bc   :  { %10704 = vmatpush3.bf16.msra.mxu1 %v13900_v55 }
0x15bd   :  { %10717 = vmatprep.subr.bf16.mxu1 %v14517_v8 }
0x15bf   :  { %10706 = vmatmul.mubr.msk.bf16.vlgmr.msra.gmra.mrb[212].mxu1 %vm2917_vm2, %v14148_v33 }
0x15c0   :  { %10718 = vmatpush3.bf16.msra.mxu1 %v13909_v24  ;;  %10721 = vmatprep.mubr.msk.bf16.mxu1 %vm11467_vm1, %v14517_v8 }
0x15c1   :  { %10719 = vmatprep.subr.bf16.mxu1 %v14517_v8 }
0x15c4   :  { %10720 = vmatpush3.bf16.msra.mxu1 %v13918_v5 }
0x15c5   :  { %10733 = vmatprep.subr.bf16.mxu1 %v14517_v8 }
0x15c7   :  { %10722 = vmatmul.mubr.msk.bf16.vlgmr.msra.gmra.mrb[216].mxu1 %vm2917_vm2, %v14148_v33 }
0x15c8   :  { %10734 = vmatpush3.bf16.msra.mxu1 %v13927_v30  ;;  %10737 = vmatprep.mubr.msk.bf16.mxu1 %vm11467_vm1, %v14517_v8 }
0x15c9   :  { %10735 = vmatprep.subr.bf16.mxu1 %v14517_v8 }
0x15cc   :  { %10736 = vmatpush3.bf16.msra.mxu1 %v13936_v49 }
0x15cd   :  { %10749 = vmatprep.subr.bf16.mxu1 %v14517_v8 }
0x15cf   :  { %10738 = vmatmul.mubr.msk.bf16.vlgmr.msra.gmra.mrb[220].mxu1 %vm2917_vm2, %v14148_v33 }
0x15d0   :  { %10751 = vmatprep.mubr.msk.bf16.mxu1 %vm11467_vm1, %v14517_v8 }
0x1672   :  { %v7923_v59 = vpop.f32.mrb[232].mxu0 }
0x1673   :  { %v8022_v54 = vmul.f32 0.35355338, %v7923_v59  ;;  %v10759_v42 = vpop.f32.mrb[233].mxu0 }
0x1674   :  { %v7926_v23 = vpop.f32.mrb[234].mxu0 }
0x1675   :  { %v10760_v1 = vpop.f32.mrb[235].mxu0  ;;  %v8028_v55 = vsel %vm3778_vm6, %v8022_v54, -inf }
0x1676   :  { %8029 = vmax.xlane.f32.xlu1 %v8028_v55 }
0x167a   :  { %v14302_v24 = vpop.f32.mrb[200].mxu1  ;;  %v8015_v5 = vpop.f32.mrb[236].mxu0 }
0x167b   :  { %v8024_v30 = vmul.f32 0.35355338, %v8015_v5  ;;  %v10651_v49 = vpop.f32.mrb[201].mxu1  ;;  %v10771_v0 = vpop.f32.mrb[237].mxu0 }
0x167c   :  { %v7317_v58 = vpop.f32.mrb[202].mxu1  ;;  %v8018_v63 = vpop.f32.mrb[238].mxu0 }
0x167d   :  { %v10652_v33 = vpop.f32.mrb[203].mxu1  ;;  %v10772_v62 = vpop.f32.mrb[239].mxu0  ;;  %v8034_v15 = vsel %vm3778_vm6, %v8024_v30, -inf }
0x167e   :  { %8035 = vmax.xlane.f32.xlu1 %v8034_v15 }
0x1682   :  { %v7463_v37 = vpop.f32.mrb[204].mxu1 }
0x1683   :  { %v10675_v43 = vpop.f32.mrb[205].mxu1  ;;  %v7464_v2 = vadd.f32 %v13981_v56, %v7463_v37 }
0x1684   :  { %v7466_v39 = vpop.f32.mrb[206].mxu1 }
0x1685   :  { %v10676_v45 = vpop.f32.mrb[207].mxu1  ;;  %v7831_v44 = vpack.c.bf16 %v7464_v2, %v7464_v2 }
0x168a   :  { %v7543_v47 = vpop.f32.mrb[208].mxu1 }
0x168b   :  { %v7544_v20 = vadd.f32 %v13960_v60, %v7543_v47  ;;  %v10691_v12 = vpop.f32.mrb[209].mxu1 }
0x168c   :  { %v7546_v19 = vpop.f32.mrb[210].mxu1 }
0x168d   :  { %v7833_v41 = vpack.c.bf16 %v7544_v20, %v7544_v20  ;;  %v10692_v28 = vpop.f32.mrb[211].mxu1 }
0x168f   :  { %v7841_v61 = vsel %vm3589_vm3, %v7833_v41, 0 }
0x1690   :  { %10750 = vmatpush3.bf16.xpose.msra.mxu1 %v7841_v61 }
0x1691   :  { %10761 = vmatprep.subr.bf16.mxu1 %v14517_v8 }
0x1692   :  { %v7623_v14 = vpop.f32.mrb[212].mxu1 }
0x1693   :  { %v7624_v26 = vadd.f32 %v13972_v34, %v7623_v14  ;;  %v10707_v50 = vpop.f32.mrb[213].mxu1  ;;  %v7824_v14 = vadd.f32 %v14011_v57, %v14258_v4 }
0x1694   :  { %v7626_v38 = vpop.f32.mrb[214].mxu1 }
0x1695   :  { %v7835_v7 = vpack.c.bf16 %v7624_v26, %v7624_v26  ;;  %v10708_v60 = vpop.f32.mrb[215].mxu1  ;;  %v8076_v38 = vpack.c.bf16 %v7824_v14, %v7824_v14 }
0x1697   :  { %v7933_v11 = vsel %vm3589_vm3, %v7835_v7, 0  ;;  %10752 = vmatmul.mubr.msk.bf16.vlgmr.msra.gmra.mrb[224].mxu1 %vm3589_vm3, %v7829_v17  ;;  %v8219_v60 = vand.u32 %v8076_v38, %v13212_v32 }
0x1698   :  { %10762 = vmatpush3.bf16.xpose.msra.mxu1 %v7933_v11  ;;  %10763 = vmatprep.mubr.msk.bf16.mxu1 %vm11467_vm1, %v14517_v8 }
0x1699   :  { %10773 = vmatprep.subr.bf16.mxu1 %v14517_v8 }
0x169a   :  { %v7703_v51 = vpop.f32.mrb[216].mxu1 }
0x169b   :  { %v7704_v34 = vadd.f32 %v13988_v21, %v7703_v51  ;;  %v10723_v22 = vpop.f32.mrb[217].mxu1 }
0x169c   :  { %v7706_v6 = vpop.f32.mrb[218].mxu1 }
0x169d   :  { %v8073_v27 = vpack.c.bf16 %v7704_v34, %v7704_v34  ;;  %v10724_v59 = vpop.f32.mrb[219].mxu1 }
0x169f   :  { %v8081_v42 = vand.u32 %v8073_v27, %v13212_v32  ;;  %10764 = vmatmul.mubr.msk.bf16.vlgmr.msra.gmra.mrb[228].mxu1 %vm3589_vm3, %v7831_v44 }
0x16a0   :  { %10775 = vmatprep.mubr.msk.bf16.mxu1 %vm11467_vm1, %v14517_v8 }
0x16a1   :  { %10774 = vmatpush3.bf16.msra.mxu1 %v8081_v42 }
0x16a2   :  { %v14322_v23 = vpop.f32.mrb[220].mxu1  ;;  %10785 = vmatprep.subr.bf16.mxu1 %v14517_v8 }
0x16a3   :  { %v10739_v56 = vpop.f32.mrb[221].mxu1 }
0x16a4   :  { %v7786_v1 = vpop.f32.mrb[222].mxu1 }
0x16a5   :  { %v10740_v21 = vpop.f32.mrb[223].mxu1 }
0x1703   :  { %v8030_v55 = vpop.xlane.xlu1 %8029 }
0x1704   :  { %v8038_v5 = vsub.f32 %v8022_v54, %v8030_v55 }
0x1706   :  { %v8043_v49 = vmul.f32 1.442695, %v8038_v5 }
0x1708   :  { %11239 = vpow2.f32 %v8043_v49 }
0x170b   :  { %v8036_v0 = vpop.xlane.xlu1 %8035 }
0x170c   :  { %v8040_v58 = vsub.f32 %v8024_v30, %v8036_v0 }
0x170e   :  { %v8047_v63 = vmul.f32 1.442695, %v8040_v58 }
0x1710   :  { %11241 = vpow2.f32 %v8047_v63 }
0x1712   :  { %v11240_v33 = vpop.eup %11239 }
0x1713   :  { %v8052_v62 = vsel %vm3778_vm6, %v11240_v33, 0.0 }
0x1714   :  { %8053 = vadd.xlane.f32.xlu1 %v8052_v62 }
0x171a   :  { %v11242_v15 = vpop.eup %11241 }
0x171b   :  { %v8058_v37 = vsel %vm3778_vm6, %v11242_v15, 0.0 }
0x171c   :  { %8059 = vadd.xlane.f32.xlu1 %v8058_v37 }
0x176a   :  { %v7877_v43 = vpop.f32.mrb[224].mxu1 }
0x176b   :  { %v8021_v39 = vmul.f32 0.35355338, %v7877_v43  ;;  %v10753_v45 = vpop.f32.mrb[225].mxu1 }
0x176c   :  { %v7880_v47 = vpop.f32.mrb[226].mxu1 }
0x176d   :  { %v10754_v20 = vpop.f32.mrb[227].mxu1  ;;  %v8025_v54 = vsel %vm3778_vm6, %v8021_v39, -inf }
0x176e   :  { %8026 = vmax.xlane.f32.xlu0 %v8025_v54 }
0x1772   :  { %v7969_v12 = vpop.f32.mrb[228].mxu1 }
0x1773   :  { %v8023_v30 = vmul.f32 0.35355338, %v7969_v12  ;;  %v10765_v19 = vpop.f32.mrb[229].mxu1 }
0x1774   :  { %v7972_v41 = vpop.f32.mrb[230].mxu1 }
0x1775   :  { %v10766_v28 = vpop.f32.mrb[231].mxu1  ;;  %v8031_v61 = vsel %vm3778_vm6, %v8023_v30, -inf }
0x1776   :  { %8032 = vmax.xlane.f32.xlu0 %v8031_v61 }
0x17a1   :  { %v8054_v48 = vpop.xlane.xlu1 %8053 }
0x17a2   :  { %11243 = vrcp.f32 %v8054_v48 }
0x17a9   :  { %v8060_v26 = vpop.xlane.xlu1 %8059 }
0x17aa   :  { %11245 = vrcp.f32 %v8060_v26 }
0x17ac   :  { %v11244_v50 = vpop.eup %11243 }
0x17ad   :  { %v8066_v17 = vmul.f32 %v11244_v50, %v11240_v33 }
0x17af   :  { %v8070_v7 = vpack.c.bf16 %v8066_v17, %v8066_v17 }
0x17b1   :  { %10782 = vmatmul.mubr.msk.bf16.vlgmr.msra.gmra.mrb[240].mxu0 %vm3831_vm7, %v8070_v7 }
0x17b2   :  { %10792 = vmatpush3.bf16.msra.mxu0 %v8219_v60  ;;  %10793 = vmatprep.mubr.msk.bf16.mxu0 %vm11467_vm1, %v14517_v8 }
0x17b3   :  { %10803 = vmatprep.subr.bf16.mxu0 %v14517_v8 }
0x17b4   :  { %v11246_v11 = vpop.eup %11245 }
0x17b5   :  { %v8068_v2 = vmul.f32 %v11246_v11, %v11242_v15 }
0x17b7   :  { %v8072_v51 = vpack.c.bf16 %v8068_v2, %v8068_v2 }
0x17b9   :  { %10794 = vmatmul.mubr.msk.bf16.vlgmr.msra.gmra.mrb[244].mxu0 %vm3831_vm7, %v8072_v51 }
0x17ba   :  { %10804 = vmatpush3.bf16.msra.mxu0 %v14027_v52  ;;  %10805 = vmatprep.mubr.msk.bf16.mxu0 %vm11467_vm1, %v14517_v8 }
0x17bb   :  { %10815 = vmatprep.subr.bf16.mxu0 %v14517_v8 }
0x17fb   :  { %v8027_v57 = vpop.xlane.xlu0 %8026 }
0x17fc   :  { %v8037_v4 = vsub.f32 %v8021_v39, %v8027_v57 }
0x17fe   :  { %v8041_v34 = vmul.f32 1.442695, %v8037_v4 }
0x1800   :  { %11247 = vpow2.f32 %v8041_v34 }
0x1803   :  { %v8033_v22 = vpop.xlane.xlu0 %8032 }
0x1804   :  { %v8039_v6 = vsub.f32 %v8023_v30, %v8033_v22 }
0x1806   :  { %v8045_v44 = vmul.f32 1.442695, %v8039_v6 }
0x1808   :  { %11249 = vpow2.f32 %v8045_v44 }
0x180a   :  { %v11248_v27 = vpop.eup %11247 }
0x180b   :  { %v8049_v59 = vsel %vm3778_vm6, %v11248_v27, 0.0 }
0x180c   :  { %8050 = vadd.xlane.f32.xlu0 %v8049_v59  ;;  %v7320_v59 = vadd.f32 %v14302_v24, %v14100_v9 }
0x1812   :  { %v11250_v42 = vpop.eup %11249 }
0x1813   :  { %v8055_v52 = vsel %vm3778_vm6, %v11250_v42, 0.0 }
0x1814   :  { %8056 = vadd.xlane.f32.xlu0 %v8055_v52  ;;  %v14391_v52 = vld [vmem:[%s14483_s18 + $0x1] ss:$0 sm:$0xff] }
0x1884   :  { %v8163_v56 = vpop.f32.mrb[240].mxu0 }
0x1885   :  { %v8262_v1 = vpack.c.bf16 %v8163_v56, %v8163_v56  ;;  %v10783_v21 = vpop.f32.mrb[241].mxu0 }
0x1886   :  { %v8166_v55 = vpop.f32.mrb[242].mxu0 }
0x1887   :  { %v10784_v5 = vpop.f32.mrb[243].mxu0  ;;  %10806 = vmatmul.mubr.msk.bf16.vlgmr.msra.gmra.mrb[248].mxu0 %vm3589_vm3, %v8262_v1  ;;  %v7327_v1 = vadd.f32 %v14391_v52, %v7320_v59 }
0x1888   :  { %10816 = vmatpush3.bf16.msra.mxu0 %v14037_v29  ;;  %10817 = vmatprep.mubr.msk.bf16.mxu0 %vm11467_vm1, %v14517_v8 }
0x1889   :  { %10829 = vmatprep.subr.bf16.mxu0 %v14517_v8  ;;  %v8592_v24 = vmul.f32 %v7327_v1, %v7327_v1 }
0x188c   :  { %v8255_v49 = vpop.f32.mrb[244].mxu0 }
0x188d   :  { %v8264_v0 = vpack.c.bf16 %v8255_v49, %v8255_v49  ;;  %v10795_v58 = vpop.f32.mrb[245].mxu0  ;;  %v8588_v49 = vsel %vm8587_vm13, %v7327_v1, 0.0 }
0x188e   :  { %v8258_v63 = vpop.f32.mrb[246].mxu0 }
0x188f   :  { %v10796_v33 = vpop.f32.mrb[247].mxu0  ;;  %10818 = vmatmul.mubr.msk.bf16.vlgmr.msra.gmra.mrb[252].mxu0 %vm3589_vm3, %v8264_v0 }
0x1890   :  { %10830 = vmatpush3.bf16.msra.mxu0 %v14206_v25  ;;  %10837 = vmatprep.mubr.msk.bf16.mxu0 %vm11467_vm1, %v14517_v8  ;;  %v7784_v25 = vadd.f32 %v14050_v16, %v14322_v23 }
0x1891   :  { %10831 = vmatprep.subr.bf16.mxu0 %v14517_v8 }
0x1892   :  { %v8075_v37 = vpack.c.bf16 %v7784_v25, %v7784_v25 }
0x1894   :  { %10832 = vmatpush3.bf16.msra.mxu0 %v14213_v13  ;;  %v8173_v13 = vand.u32 %v8075_v37, %v13212_v32 }
0x1895   :  { %10833 = vmatprep.subr.bf16.mxu0 %v14517_v8 }
0x1898   :  { %10834 = vmatpush3.bf16.msra.mxu0 %v14220_v31 }
0x1899   :  { %v8051_v29 = vpop.xlane.xlu0 %8050  ;;  %10835 = vmatprep.subr.bf16.mxu0 %v14517_v8 }
0x189a   :  { %11251 = vrcp.f32 %v8051_v29 }
0x189c   :  { %10836 = vmatpush3.bf16.msra.mxu0 %v14227_v40 }
0x18a1   :  { %v8057_v62 = vpop.xlane.xlu0 %8056 }
0x18a2   :  { %11253 = vrcp.f32 %v8057_v62 }
0x18a4   :  { %v11252_v15 = vpop.eup %11251 }
0x18a5   :  { %v8065_v43 = vmul.f32 %v11252_v15, %v11248_v27 }
0x18a7   :  { %v8069_v39 = vpack.c.bf16 %v8065_v43, %v8065_v43 }
0x18a9   :  { %10776 = vmatmul.mubr.msk.bf16.vlgmr.msra.gmra.mrb[232].mxu1 %vm3831_vm7, %v8069_v39 }
0x18aa   :  { %10786 = vmatpush3.bf16.msra.mxu1 %v8173_v13  ;;  %10787 = vmatprep.mubr.msk.bf16.mxu1 %vm11467_vm1, %v14517_v8 }
0x18ab   :  { %10797 = vmatprep.subr.bf16.mxu1 %v14517_v8 }
0x18ac   :  { %v11254_v31 = vpop.eup %11253 }
0x18ad   :  { %v8067_v40 = vmul.f32 %v11254_v31, %v11250_v42 }
0x18af   :  { %v8071_v45 = vpack.c.bf16 %v8067_v40, %v8067_v40 }
0x18b1   :  { %10788 = vmatmul.mubr.msk.bf16.vlgmr.msra.gmra.mrb[236].mxu1 %vm3831_vm7, %v8071_v45 }
0x18b2   :  { %10798 = vmatpush3.bf16.msra.mxu1 %v14066_v36  ;;  %10799 = vmatprep.mubr.msk.bf16.mxu1 %vm11467_vm1, %v14517_v8  ;;  %v14519_v36 = vld [vmem:[#allocation5_spill] sm:$0xff] }
0x18b3   :  { %10809 = vmatprep.subr.bf16.mxu1 %v14517_v8 }
0x195a   :  { %v8345_v32 = vpop.f32.mrb[248].mxu0 }
0x195b   :  { %v10807_v16 = vpop.f32.mrb[249].mxu0  ;;  %v8438_v60 = vsel %vm2849_vm0, %v8345_v32, 0.0 }
0x195c   :  { %v8348_v23 = vpop.f32.mrb[250].mxu0 }
0x195d   :  { %v10808_v47 = vpop.f32.mrb[251].mxu0 }
0x1962   :  { %v8431_v20 = vpop.f32.mrb[252].mxu0 }
0x1963   :  { %v10819_v54 = vpop.f32.mrb[253].mxu0  ;;  %v8442_v27 = vsel %vm2849_vm0, %v8431_v20, 0.0  ;;  %v14410_v20 = vld [vmem:[%s14484_s19] sm:$0x1] }
0x1964   :  { %v8434_v12 = vpop.f32.mrb[254].mxu0 }
0x1965   :  { %v10820_v30 = vpop.f32.mrb[255].mxu0 }
0x1966   :  { %v11163_v30 = vld [vmem:[%s14486_s21] sm:$0xff]  }
0x197c   :  { %v8117_v19 = vpop.f32.mrb[232].mxu1 }
0x197d   :  { %v8261_v41 = vpack.c.bf16 %v8117_v19, %v8117_v19  ;;  %v10777_v28 = vpop.f32.mrb[233].mxu1 }
0x197e   :  { %v8120_v61 = vpop.f32.mrb[234].mxu1  ;;  %v11164_v28 = vld [vmem:[%s14486_s21 + $0x8] sm:$0xff]  }
0x197f   :  { %v10778_v48 = vpop.f32.mrb[235].mxu1  ;;  %10800 = vmatmul.mubr.msk.bf16.vlgmr.msra.gmra.mrb[240].mxu1 %vm3589_vm3, %v8261_v41 }
0x1980   :  { %10810 = vmatpush3.bf16.msra.mxu1 %v14519_v36  ;;  %10811 = vmatprep.mubr.msk.bf16.mxu1 %vm11467_vm1, %v14517_v8  ;;  %v14520_v36 = vld [vmem:[#allocation6_spill] sm:$0xff] }
0x1981   :  { %10821 = vmatprep.subr.bf16.mxu1 %v14517_v8 }
0x1984   :  { %v8209_v14 = vpop.f32.mrb[236].mxu1 }
0x1985   :  { %v8263_v26 = vpack.c.bf16 %v8209_v14, %v8209_v14  ;;  %v10789_v50 = vpop.f32.mrb[237].mxu1 }
0x1986   :  { %v8212_v38 = vpop.f32.mrb[238].mxu1 }
0x1987   :  { %v10790_v17 = vpop.f32.mrb[239].mxu1  ;;  %10812 = vmatmul.mubr.msk.bf16.vlgmr.msra.gmra.mrb[244].mxu1 %vm3589_vm3, %v8263_v26 }
0x1988   :  { %10822 = vmatpush3.bf16.msra.mxu1 %v14115_v35  ;;  %10825 = vmatprep.mubr.msk.bf16.mxu1 %vm11467_vm1, %v14517_v8 }
0x1989   :  { %10823 = vmatprep.subr.bf16.mxu1 %v14517_v8 }
0x198c   :  { %10824 = vmatpush3.bf16.msra.mxu1 %v14122_v53 }
0x198d   :  { %10841 = vmatprep.subr.bf16.mxu1 %v14517_v8 }
0x1a52   :  { %v8302_v7 = vpop.f32.mrb[240].mxu1 }
0x1a53   :  { %v8437_v11 = vsel %vm2849_vm0, %v8302_v7, 0.0  ;;  %v10801_v2 = vpop.f32.mrb[241].mxu1 }
0x1a54   :  { %v8439_v51 = vadd.f32 %v8438_v60, %v8437_v11  ;;  %v8305_v57 = vpop.f32.mrb[242].mxu1  ;;  %v14439_v60 = vld [vmem:[%s14487_s22] sm:$0x1]  ;;  %s11469_s22 = smov [#allocation2]  }
0x1a55   :  { %v10802_v4 = vpop.f32.mrb[243].mxu1  ;;  %s8731_s28 = sshll.u32 %s11469_s22, 4  ;;  %s8732_s28 = int_to_ptr.vmem [resolvable:$true] %s8731_s28 }
0x1a56   :  { %s11442_s30 = scalar_lea.vmem %s8732_s28, 32  ;;  %p11447_p1 = scmp.lt.s32.totalorder %s8732_s28, %s8732_s28 }
0x1a57   :  { %p11443_p0 = scmp.ne.s32.totalorder %s8732_s28, %s11442_s30  ;;  %p11448_p2 = scmp.lt.s32.totalorder %s11442_s30, %s11442_s30 }
0x1a59   :  { %p11449_p3 = por %p11448_p2, %p11447_p1 }
0x1a5a   :  { %v8388_v34 = vpop.f32.mrb[244].mxu1 }
0x1a5b   :  { %v8440_v35 = vsel %vm2849_vm0, %v8388_v34, 0.0  ;;  %v10813_v22 = vpop.f32.mrb[245].mxu1  ;;  %p11450_p4 = pnand %p11449_p3, %p11443_p0 }
0x1a5c   :  { %v8441_v6 = vadd.f32 %v8440_v35, %v8439_v51  ;;  %v8391_v44 = vpop.f32.mrb[246].mxu1 }
0x1a5d   :  { %v10814_v53 = vpop.f32.mrb[247].mxu1 }
0x1a5e   :  { %v8443_v42 = vadd.f32 %v8442_v27, %v8441_v6 }
0x1a60   :  { %v8444_v56 = vadd.f32 %v8443_v42, %v14097_v3  ;;  %v8593_v3 = vsel %vm8587_vm13, %v8592_v24, 0.0 }
0x1a62   :  { %v14396_v21 = vadd.f32 %v14093_v18, %v8444_v56 }
0x1a64   :  { %v8446_v55 = vsel %vm2849_vm0, %v14396_v21, 0.0  ;;  %v8450_v5 = vmul.f32 %v14396_v21, %v14396_v21 }
0x1a65   :  { %8447 = vadd.xlane.f32.xlu0 %v8446_v55 }
0x1a66   :  { %v8451_v9 = vsel %vm2849_vm0, %v8450_v5, 0.0 }
0x1a67   :  { %8452 = vadd.xlane.f32.xlu1 %v8451_v9 }
0x1a69   :  { %8589 = vadd.xlane.f32.xlu0 %v8588_v49 }
0x1a6b   :  { %8594 = vadd.xlane.f32.xlu1 %v8593_v3 }
0x1af2   :  { %v8448_v18 = vpop.xlane.xlu0 %8447 }
0x1af3   :  { %v8449_v0 = vmul.f32 0.03125, %v8448_v18 }
0x1af4   :  { %v8453_v58 = vpop.xlane.xlu1 %8452 }
0x1af5   :  { %v8455_v63 = vmul.f32 %v8449_v0, %v8449_v0  ;;  %v8454_v33 = vmul.f32 0.03125, %v8453_v58  ;;  %v8457_v40 = vsub.f32 %v14396_v21, %v8449_v0 }
0x1af6   :  { %v8590_v29 = vpop.xlane.xlu0 %8589 }
0x1af7   :  { %v8456_v25 = vsub.f32 %v8454_v33, %v8455_v63  ;;  %v8591_v62 = vmul.f32 0.03125, %v8590_v29 }
0x1af8   :  { %v8595_v15 = vpop.xlane.xlu1 %8594 }
0x1af9   :  { %v8458_v37 = vadd.f32 1e-06, %v8456_v25  ;;  %v8597_v43 = vmul.f32 %v8591_v62, %v8591_v62  ;;  %v8596_v39 = vmul.f32 0.03125, %v8595_v15  ;;  %v8599_v16 = vsub.f32 %v7327_v1, %v8591_v62 }
0x1afb   :  { %11255 = vrsqrt.f32 %v8458_v37  ;;  %v8598_v13 = vsub.f32 %v8596_v39, %v8597_v43 }
0x1afd   :  { %v8600_v31 = vadd.f32 1e-06, %v8598_v13 }
0x1aff   :  { %11257 = vrsqrt.f32 %v8600_v31 }
0x1b05   :  { %v11256_v45 = vpop.eup %11255 }
0x1b06   :  { %v8460_v32 = vmul.f32 %v11256_v45, %v8457_v40 }
0x1b08   :  { %v8461_v23 = vmul.f32 %v14130_v46, %v8460_v32  ;;  %v14420_v46 = vld [vmem:[%s14485_s20] sm:$0x1] }
0x1b09   :  { %v11258_v47 = vpop.eup %11257 }
0x1b0a   :  { %v8602_v54 = vmul.f32 %v11258_v47, %v8599_v16  ;;  %v8462_v12 = vadd.f32 %v14135_v10, %v8461_v23 }
0x1b0c   :  { %v8463_v19 = vpack.c.bf16 %v8462_v12, %v8462_v12  ;;  %v8603_v41 = vmul.f32 %v8602_v54, %v14410_v20 }
0x1b0e   :  { %10826 = vmatmul.mubr.msk.bf16.vlgmr.msra.gmra.mrb[248].mxu1 %vm2917_vm2, %v8463_v19  ;;  %v8604_v10 = vadd.f32 %v8603_v41, %v14420_v46 }
0x1b0f   :  { %10842 = vmatpush3.bf16.msra.mxu1 %v11163_v30  ;;  %10845 = vmatprep.mubr.msk.bf16.mxu1 %vm11467_vm1, %v14517_v8 }
0x1b10   :  { %10843 = vmatprep.subr.bf16.mxu1 %v14517_v8  ;;  %v8605_v61 = vpack.c.bf16 %v8604_v10, %v8604_v10 }
0x1b13   :  { %10844 = vmatpush3.bf16.msra.mxu1 %v11164_v28 }
0x1b14   :  { %10849 = vmatprep.subr.bf16.mxu1 %v14517_v8 }
0x1b16   :  { %10846 = vmatmul.mubr.msk.bf16.vlgmr.msra.gmra.mrb[252].mxu1 %vm2917_vm2, %v8605_v61 }
0x1b17   :  { %10850 = vmatpush3.bf16.msra.mxu1 %v11163_v30  ;;  %10853 = vmatprep.mubr.msk.bf16.mxu1 %vm11467_vm1, %v14517_v8 }
0x1b18   :  { %10851 = vmatprep.subr.bf16.mxu1 %v14517_v8 }
0x1b1b   :  { %10852 = vmatpush3.bf16.msra.mxu1 %v11164_v28 }
0x1be1   :  { %v8501_v48 = vpop.f32.mrb[248].mxu1 }
0x1be2   :  { %v8502_v14 = vadd.f32 %v14520_v36, %v8501_v48  ;;  %v10827_v26 = vpop.f32.mrb[249].mxu1 }
0x1be3   :  { %v8504_v50 = vpop.f32.mrb[250].mxu1 }
0x1be4   :  { %v8508_v38 = vmul.f32 0.70710677, %v8502_v14  ;;  %v10828_v17 = vpop.f32.mrb[251].mxu1  ;;  %v8507_v58 = vmul.f32 0.5, %v8502_v14 }
0x1be6   :  { %v8509_v7 = vand.u32 2147483647, %v8508_v38  ;;  %vm8529_vm15 = vcmp.ge.f32.partialorder %v8508_v38, 0.0 }
0x1be8   :  { %v8510_v11 = vmul.f32 0.3275911, %v8509_v7  ;;  %v8523_v35 = vsub.f32 0.0, %v8509_v7 }
0x1be9   :  { %v8655_v2 = vpop.f32.mrb[252].mxu1 }
0x1bea   :  { %v8511_v51 = vadd.f32 1.0, %v8510_v11  ;;  %v8656_v8 = vadd.f32 %v8655_v2, %v14439_v60  ;;  %v10847_v57 = vpop.f32.mrb[253].mxu1  ;;  %v8524_v6 = vmul.f32 %v8523_v35, %v8509_v7 }
0x1beb   :  { %v8658_v4 = vpop.f32.mrb[254].mxu1 }
0x1bec   :  { %11259 = vrcp.f32 %v8511_v51  ;;  %8662 = vst.msk [vmem:[#allocation2] sm:$0x1] %vm8661_vm14, %v8656_v8  ;;  %v10848_v34 = vpop.f32.mrb[255].mxu1  ;;  %v8525_v53 = vmul.f32 1.442695, %v8524_v6 }
0x1bee   :  { %11261 = vpow2.f32 %v8525_v53 }
0x1bf6   :  { %v11260_v22 = vpop.eup %11259 }
0x1bf7   :  { %v8514_v44 = vmul.f32 1.0614054, %v11260_v22 }
0x1bf8   :  { %v11262_v24 = vpop.eup %11261 }
0x1bf9   :  { %v8515_v27 = vadd.f32 -1.4531521, %v8514_v44 }
0x1bfb   :  { %v8516_v59 = vmul.f32 %v11260_v22, %v8515_v27 }
0x1bfd   :  { %v8517_v42 = vadd.f32 1.4214138, %v8516_v59 }
0x1bff   :  { %v8518_v56 = vmul.f32 %v11260_v22, %v8517_v42 }
0x1c01   :  { %v8519_v1 = vadd.f32 -0.28449672, %v8518_v56 }
0x1c03   :  { %v8520_v55 = vmul.f32 %v11260_v22, %v8519_v1 }
0x1c05   :  { %v8521_v5 = vadd.f32 0.2548296, %v8520_v55 }
0x1c07   :  { %v8522_v9 = vmul.f32 %v11260_v22, %v8521_v5 }
0x1c09   :  { %v8527_v49 = vmul.f32 %v11262_v24, %v8522_v9 }
0x1c0b   :  { %v8528_v3 = vsub.f32 1.0, %v8527_v49 }
0x1c0d   :  { %v8530_v18 = vsub.f32 0.0, %v8528_v3 }
0x1c0f   :  { %v8531_v0 = vsel %vm8529_vm15, %v8528_v3, %v8530_v18 }
0x1c10   :  { %v8532_v63 = vadd.f32 1.0, %v8531_v0 }
0x1c12   :  { %v8533_v33 = vmul.f32 %v8532_v63, %v8507_v58 }
0x1c14   :  { %v8534_v29 = vpack.c.bf16 %v8533_v33, %v8533_v33 }
0x1c16   :  { %10838 = vmatmul.mubr.msk.bf16.vlgmr.msra.gmra.mrb[0].mxu0 %vm4367_vm10, %v8534_v29 }
0x1ce9   :  { %v8572_v25 = vpop.f32.mrb[0].mxu0 }
0x1cea   :  { %v8578_v62 = vadd.f32 %v8572_v25, %v14396_v21  ;;  %v10839_v15 = vpop.f32.mrb[1].mxu0 }
0x1ceb   :  { %v8575_v37 = vpop.f32.mrb[2].mxu0 }
0x1cec   :  { %v8579_v43 = vadd.f32 %v14391_v52, %v8578_v62  ;;  %v10840_v39 = vpop.f32.mrb[3].mxu0 }
0x1cee   :  { %v8663_v13 = vsel %vm8587_vm13, %v8579_v43, 0.0  ;;  %v8667_v31 = vmul.f32 %v8579_v43, %v8579_v43 }
0x1cef   :  { %8664 = vadd.xlane.f32.xlu0 %v8663_v13 }
0x1cf0   :  { %v8668_v40 = vsel %vm8587_vm13, %v8667_v31, 0.0 }
0x1cf1   :  { %8669 = vadd.xlane.f32.xlu1 %v8668_v40 }
0x1d7c   :  { %v8665_v45 = vpop.xlane.xlu0 %8664 }
0x1d7d   :  { %v8666_v32 = vmul.f32 0.03125, %v8665_v45 }
0x1d7e   :  { %v8670_v16 = vpop.xlane.xlu1 %8669 }
0x1d7f   :  { %v8672_v23 = vmul.f32 %v8666_v32, %v8666_v32  ;;  %v8671_v47 = vmul.f32 0.03125, %v8670_v16  ;;  %v8674_v21 = vsub.f32 %v8579_v43, %v8666_v32 }
0x1d81   :  { %v8673_v54 = vsub.f32 %v8671_v47, %v8672_v23 }
0x1d83   :  { %v8675_v12 = vadd.f32 1e-06, %v8673_v54 }
0x1d85   :  { %11263 = vrsqrt.f32 %v8675_v12 }
0x1d8f   :  { %v11264_v30 = vpop.eup %11263 }
0x1d90   :  { %v8677_v19 = vmul.f32 %v11264_v30, %v8674_v21 }
0x1d92   :  { %v8678_v52 = vmul.f32 %v8677_v19, %v14410_v20 }
0x1d94   :  { %v8679_v41 = vadd.f32 %v8678_v52, %v14420_v46 }
0x1d96   :  { %v8680_v28 = vpack.c.bf16 %v8679_v41, %v8679_v41 }
0x1d98   :  { %10854 = vmatmul.mubr.msk.bf16.vlgmr.msra.gmra.mrb[0].mxu1 %vm2917_vm2, %v8680_v28 }
0x1e6b   :  { %v8718_v10 = vpop.f32.mrb[0].mxu1 }
0x1e6c   :  { %v8719_v61 = vadd.f32 %v8718_v10, %v14439_v60  ;;  %v10855_v48 = vpop.f32.mrb[1].mxu1 }
0x1e6d   :  { %v8721_v36 = vpop.f32.mrb[2].mxu1 }
0x1e6e   :  { %8725 = vst.msk [vmem:[#allocation2 + $0x1] sm:$0x1] %vm8661_vm14, %v8719_v61  ;;  %v10856_v14 = vpop.f32.mrb[3].mxu1 }
0x1e6f   :  { %11453 = shalt.err (!%p11450_p4)
}
0x1e70   :  { %s11454_s8 = scalar_lea.hbm %s14488_s23, 32 }
0x1e71   :  { %p11455_p5 = scmp.ne.s32.totalorder %s14488_s23, %s11454_s8  ;;  %p11458_p6 = scmp.lt.u32.totalorder %s11454_s8, %s14488_s23 }
0x1e73   :  { %p11460_p7 = pnand %p11458_p6, %p11455_p5 }
0x1e75   :  { %11463 = shalt.err (!%p11460_p7)
}
0x1e76   :  { %s11470_s5 = smov 16   ;;  %s11471_s24 = smov 1  }
0x1e77   :  { %8737 = dma.vmem_to_hbm [thread:$0]  %s8732_s28, 32, %s14488_s23, [#allocation3], %s11470_s5, %s11470_s5, %s11471_s24  }
0x1e78   :  { %11464 = dma.done.wait [#allocation3], 32  }
0x1e79   :  { %11465 = vsyncadd [#allocation3], 4294967264 }
0x1e7a   :  { %8741 = vsyncpa [#allocation3], 1 }

</bundles_post_ra>
